<compile_context>
chip_gen: v7x
topology: tpu7x:2x2x1
jax: 0.10.0
libtpu: 0.0.40
codegen_flags: <defaults>
</compile_context>

<pallas_src>
import functools

import jax
import jax.numpy as jnp
from jax import lax
from jax.experimental import pallas as pl
from jax.experimental.pallas import tpu as pltpu


# ----------------------------------------------------------------------------
# Kernel 1: fused  (x @ W1) * scale + shift -> ReLU      (tiled over N only)
# ----------------------------------------------------------------------------
def _fc1_kernel(x_ref, w_ref, scale_ref, shift_ref, o_ref):
    z = jnp.dot(x_ref[...], w_ref[...], preferred_element_type=jnp.float32)
    z = z * scale_ref[...] + shift_ref[...]
    o_ref[...] = jnp.maximum(z, 0.0).astype(o_ref.dtype)


def linear_bn_relu(x_bf16, w_bf16, scale, shift, *, tn=1024):
    """x: [B, K] bf16, w: [K, N] bf16, scale/shift: [1, N] f32 -> [B, N] bf16."""
    B, K = x_bf16.shape
    _, N = w_bf16.shape
    assert N % tn == 0
    grid = (N // tn,)
    return pl.pallas_call(
        _fc1_kernel,
        out_shape=jax.ShapeDtypeStruct((B, N), jnp.bfloat16),
        grid_spec=pltpu.PrefetchScalarGridSpec(
            num_scalar_prefetch=0,
            grid=grid,
            in_specs=[
                # x: full block, constant block index -> DMA'd once, resident.
                pl.BlockSpec((B, K), lambda j: (0, 0)),
                # weight column-panel: 6 MiB bf16 per block (K=3072, tn=1024).
                pl.BlockSpec((K, tn), lambda j: (0, j)),
                pl.BlockSpec((1, tn), lambda j: (0, j)),
                pl.BlockSpec((1, tn), lambda j: (0, j)),
            ],
            out_specs=pl.BlockSpec((B, tn), lambda j: (0, j)),
        ),
        compiler_params=pltpu.CompilerParams(
            dimension_semantics=("parallel",),        # 2 N-blocks -> both TCs on v7x
            vmem_limit_bytes=32 * 1024 * 1024,
        ),
    )(x_bf16, w_bf16, scale, shift)


# ----------------------------------------------------------------------------
# Kernel 2: fused  fc2 (+folded BN) -> ReLU -> fc3 (+bias) -> ReLU ->
#           LogSoftmax over the valid 10 classes (output padded to 128 lanes)
# ----------------------------------------------------------------------------
def _fc2_head_kernel(h1_ref, w2_ref, scale2_ref, shift2_ref, w3_ref, b3_ref,
                     o_ref, *, num_classes):
    # fc2 + BN2 + ReLU
    z2 = jnp.dot(h1_ref[...], w2_ref[...], preferred_element_type=jnp.float32)
    z2 = z2 * scale2_ref[...] + shift2_ref[...]
    h2 = jnp.maximum(z2, 0.0).astype(jnp.bfloat16)

    # fc3 + bias + ReLU
    z3 = jnp.dot(h2, w3_ref[...], preferred_element_type=jnp.float32)
    z3 = z3 + b3_ref[...]
    z3 = jnp.maximum(z3, 0.0)

    # log-softmax over valid classes only (padded lanes masked out)
    col = lax.broadcasted_iota(jnp.int32, z3.shape, 1)
    valid = col < num_classes
    zm = jnp.where(valid, z3, -jnp.inf)
    m = jnp.max(zm, axis=1, keepdims=True)
    sum_exp = jnp.sum(jnp.where(valid, jnp.exp(zm - m), 0.0),
                      axis=1, keepdims=True)
    lse = m + jnp.log(sum_exp)
    o_ref[...] = (z3 - lse).astype(o_ref.dtype)


def fc2_head(h1_bf16, w2_bf16, scale2, shift2, w3_pad_bf16, b3_pad,
             *, num_classes=10):
    """h1: [B, K] bf16, w2: [K, N2] bf16, w3_pad: [N2, 128] bf16 -> [B, nc]."""
    B, K = h1_bf16.shape
    N2 = w2_bf16.shape[1]
    Np = w3_pad_bf16.shape[1]
    out = pl.pallas_call(
        functools.partial(_fc2_head_kernel, num_classes=num_classes),
        out_shape=jax.ShapeDtypeStruct((B, Np), jnp.float32),
        grid_spec=pltpu.PrefetchScalarGridSpec(
            num_scalar_prefetch=0,
            grid=(1,),
            in_specs=[
                pl.BlockSpec((B, K), lambda i: (0, 0)),
                pl.BlockSpec((K, N2), lambda i: (0, 0)),
                pl.BlockSpec((1, N2), lambda i: (0, 0)),
                pl.BlockSpec((1, N2), lambda i: (0, 0)),
                pl.BlockSpec((N2, Np), lambda i: (0, 0)),
                pl.BlockSpec((1, Np), lambda i: (0, 0)),
            ],
            out_specs=pl.BlockSpec((B, Np), lambda i: (0, 0)),
        ),
        compiler_params=pltpu.CompilerParams(
            dimension_semantics=("arbitrary",),
            vmem_limit_bytes=32 * 1024 * 1024,
        ),
    )(h1_bf16, w2_bf16, scale2, shift2, w3_pad_bf16, b3_pad)
    return out[:, :num_classes]


# ----------------------------------------------------------------------------
# Parameter construction (deterministic, PyTorch-shaped) + BN folding
# ----------------------------------------------------------------------------
def _init_linear(key, in_f, out_f):
    kw, kb = jax.random.split(key)
    bound = 1.0 / jnp.sqrt(in_f)
    w = jax.random.uniform(kw, (in_f, out_f), jnp.float32, -bound, bound)
    b = jax.random.uniform(kb, (out_f,), jnp.float32, -bound, bound)
    return w, b


def _init_bn(key, n):
    k1, k2, k3, k4 = jax.random.split(key, 4)
    gamma = 1.0 + 0.1 * jax.random.normal(k1, (n,), jnp.float32)
    beta = 0.1 * jax.random.normal(k2, (n,), jnp.float32)
    running_mean = 0.1 * jax.random.normal(k3, (n,), jnp.float32)
    running_var = 1.0 + 0.1 * jax.random.uniform(k4, (n,), jnp.float32)
    return gamma, beta, running_mean, running_var


def _fold_bn(bias, gamma, beta, mean, var, eps=1e-5):
    # y = ((x@W + b) - mean) / sqrt(var+eps) * gamma + beta = (x@W) * s + t
    s = gamma / jnp.sqrt(var + eps)
    t = (bias - mean) * s + beta
    return s.reshape(1, -1), t.reshape(1, -1)


def make_params(seed=0):
    key = jax.random.PRNGKey(seed)
    k1, k2, k3, kb1, kb2 = jax.random.split(key, 5)
    w1, b1 = _init_linear(k1, 3 * 32 * 32, 2048)
    w2, b2 = _init_linear(k2, 2048, 512)
    w3, b3 = _init_linear(k3, 512, 10)
    bn1 = _init_bn(kb1, 2048)
    bn2 = _init_bn(kb2, 512)

    scale1, shift1 = _fold_bn(b1, *bn1)
    scale2, shift2 = _fold_bn(b2, *bn2)

    # pad fc3 to 128 output lanes (TPU lane width); padded lanes are zeros and
    # are masked out of the softmax / sliced away by the wrapper.
    w3_pad = jnp.zeros((512, 128), jnp.float32).at[:, :10].set(w3)
    b3_pad = jnp.zeros((1, 128), jnp.float32).at[0, :10].set(b3)

    return dict(
        w1=w1.astype(jnp.bfloat16), scale1=scale1, shift1=shift1,
        w2=w2.astype(jnp.bfloat16), scale2=scale2, shift2=shift2,
        w3_pad=w3_pad.astype(jnp.bfloat16), b3_pad=b3_pad,
    )


# ----------------------------------------------------------------------------
# Full forward pass (eval mode; Dropout(0.1) is identity)
# ----------------------------------------------------------------------------
@jax.jit
def mlp_forward(x_nchw, params):
    B = x_nchw.shape[0]
    x = x_nchw.reshape(B, -1).astype(jnp.bfloat16)   # nn.Flatten + bf16 stream

    # fc1 -> BN1 -> ReLU
    h1 = linear_bn_relu(x, params["w1"], params["scale1"], params["shift1"],
                        tn=1024)
    # fc2 -> BN2 -> ReLU -> fc3 -> ReLU -> LogSoftmax   (single fused kernel)
    out = fc2_head(h1, params["w2"], params["scale2"], params["shift2"],
                   params["w3_pad"], params["b3_pad"], num_classes=10)
    return out


if __name__ == "__main__":
    B = 8
    key = jax.random.PRNGKey(0)
    x = jax.random.normal(key, (B, 3, 32, 32), jnp.float32)

    params = make_params(seed=0)
    out = mlp_forward(x, params)
    out = jax.block_until_ready(out)

    assert out.shape == (B, 10), out.shape
    # log_softmax rows should sum (in prob space) to ~1
    probs_sum = jnp.sum(jnp.exp(out), axis=1)
    assert jnp.allclose(probs_sum, 1.0, atol=1e-3), probs_sum

    print("KERNEL_OK")
</pallas_src>

<mosaic_0001>
module attributes {stable_mosaic.version = 11 : i64} {
  func.func @_fc2_head_kernel(%arg0: i32, %arg1: memref<8x2048xbf16, #tpu.memory_space<vmem>>, %arg2: memref<2048x512xbf16, #tpu.memory_space<vmem>>, %arg3: memref<1x512xf32, #tpu.memory_space<vmem>>, %arg4: memref<1x512xf32, #tpu.memory_space<vmem>>, %arg5: memref<512x128xbf16, #tpu.memory_space<vmem>>, %arg6: memref<1x128xf32, #tpu.memory_space<vmem>>, %arg7: memref<8x128xf32, #tpu.memory_space<vmem>>) attributes {dimension_semantics = [#tpu.dimension_semantics<arbitrary>], iteration_bounds = array<i64: 1>, scalar_prefetch = 0 : i64, scratch_operands = 0 : i64, tpu.core_type = #tpu.core_type<tc>, window_params = [{pipeline_mode = #tpu.pipeline_mode<synchronous>, transform_indices = @transform_0, window_bounds = array<i64: 8, 2048>}, {pipeline_mode = #tpu.pipeline_mode<synchronous>, transform_indices = @transform_1, window_bounds = array<i64: 2048, 512>}, {pipeline_mode = #tpu.pipeline_mode<synchronous>, transform_indices = @transform_2, window_bounds = array<i64: 1, 512>}, {pipeline_mode = #tpu.pipeline_mode<synchronous>, transform_indices = @transform_3, window_bounds = array<i64: 1, 512>}, {pipeline_mode = #tpu.pipeline_mode<synchronous>, transform_indices = @transform_4, window_bounds = array<i64: 512, 128>}, {pipeline_mode = #tpu.pipeline_mode<synchronous>, transform_indices = @transform_5, window_bounds = array<i64: 1, 128>}, {pipeline_mode = #tpu.pipeline_mode<synchronous>, transform_indices = @transform_6, window_bounds = array<i64: 8, 128>}]} {
    %c0 = arith.constant 0 : index
    %c0_0 = arith.constant 0 : index
    %0 = vector.load %arg1[%c0, %c0_0] : memref<8x2048xbf16, #tpu.memory_space<vmem>>, vector<8x2048xbf16>
    %c0_1 = arith.constant 0 : index
    %c0_2 = arith.constant 0 : index
    %1 = vector.load %arg2[%c0_1, %c0_2] : memref<2048x512xbf16, #tpu.memory_space<vmem>>, vector<2048x512xbf16>
    %cst = arith.constant dense<0.000000e+00> : vector<8x512xf32>
    %2 = tpu.matmul %0, %1, %cst {dimension_numbers = #tpu.dot_dimension_numbers<[1], [0], [0], [1], [0, 0, 1, 1], [], []>} : vector<8x2048xbf16>, vector<2048x512xbf16>, vector<8x512xf32> -> vector<8x512xf32>
    %c0_3 = arith.constant 0 : index
    %c0_4 = arith.constant 0 : index
    %3 = vector.load %arg3[%c0_3, %c0_4] : memref<1x512xf32, #tpu.memory_space<vmem>>, vector<1x512xf32>
    %4 = vector.broadcast %3 : vector<1x512xf32> to vector<8x512xf32>
    %5 = arith.mulf %2, %4 : vector<8x512xf32>
    %c0_5 = arith.constant 0 : index
    %c0_6 = arith.constant 0 : index
    %6 = vector.load %arg4[%c0_5, %c0_6] : memref<1x512xf32, #tpu.memory_space<vmem>>, vector<1x512xf32>
    %7 = vector.broadcast %6 : vector<1x512xf32> to vector<8x512xf32>
    %8 = arith.addf %5, %7 : vector<8x512xf32>
    %cst_7 = arith.constant 0.000000e+00 : f32
    %9 = vector.broadcast %cst_7 : f32 to vector<8x512xf32>
    %10 = arith.maximumf %8, %9 : vector<8x512xf32>
    %11 = arith.truncf %10 : vector<8x512xf32> to vector<8x512xbf16>
    %c0_8 = arith.constant 0 : index
    %c0_9 = arith.constant 0 : index
    %12 = vector.load %arg5[%c0_8, %c0_9] : memref<512x128xbf16, #tpu.memory_space<vmem>>, vector<512x128xbf16>
    %cst_10 = arith.constant dense<0.000000e+00> : vector<8x128xf32>
    %13 = tpu.matmul %11, %12, %cst_10 {dimension_numbers = #tpu.dot_dimension_numbers<[1], [0], [0], [1], [0, 0, 1, 1], [], []>} : vector<8x512xbf16>, vector<512x128xbf16>, vector<8x128xf32> -> vector<8x128xf32>
    %c0_11 = arith.constant 0 : index
    %c0_12 = arith.constant 0 : index
    %14 = vector.load %arg6[%c0_11, %c0_12] : memref<1x128xf32, #tpu.memory_space<vmem>>, vector<1x128xf32>
    %15 = vector.broadcast %14 : vector<1x128xf32> to vector<8x128xf32>
    %16 = arith.addf %13, %15 : vector<8x128xf32>
    %cst_13 = arith.constant 0.000000e+00 : f32
    %17 = vector.broadcast %cst_13 : f32 to vector<8x128xf32>
    %18 = arith.maximumf %16, %17 : vector<8x128xf32>
    %19 = tpu.iota {dimensions = array<i32: 1>} : vector<8x128xi32>
    %c10_i32 = arith.constant 10 : i32
    %20 = vector.broadcast %c10_i32 : i32 to vector<8x128xi32>
    %21 = arith.cmpi slt, %19, %20 : vector<8x128xi32>
    %cst_14 = arith.constant 0xFF800000 : f32
    %22 = vector.broadcast %cst_14 : f32 to vector<8x128xf32>
    %23 = arith.select %21, %18, %22 : vector<8x128xi1>, vector<8x128xf32>
    %cst_15 = arith.constant dense<0xFF800000> : vector<8xf32>
    %24 = vector.multi_reduction <maximumf>, %23, %cst_15 [1] : vector<8x128xf32> to vector<8xf32>
    %25 = vector.shape_cast %24 : vector<8xf32> to vector<8x1xf32>
    %26 = vector.broadcast %25 : vector<8x1xf32> to vector<8x128xf32>
    %27 = arith.subf %23, %26 : vector<8x128xf32>
    %28 = math.exp %27 : vector<8x128xf32>
    %cst_16 = arith.constant 0.000000e+00 : f32
    %29 = vector.broadcast %cst_16 : f32 to vector<8x128xf32>
    %30 = arith.select %21, %28, %29 : vector<8x128xi1>, vector<8x128xf32>
    %cst_17 = arith.constant dense<0.000000e+00> : vector<8xf32>
    %31 = vector.multi_reduction <add>, %30, %cst_17 [1] : vector<8x128xf32> to vector<8xf32>
    %32 = vector.shape_cast %31 : vector<8xf32> to vector<8x1xf32>
    %33 = math.log %32 : vector<8x1xf32>
    %34 = arith.addf %25, %33 : vector<8x1xf32>
    %35 = vector.broadcast %34 : vector<8x1xf32> to vector<8x128xf32>
    %36 = arith.subf %18, %35 : vector<8x128xf32>
    %c0_18 = arith.constant 0 : index
    %c0_19 = arith.constant 0 : index
    %37 = vector.load %arg7[%c0_18, %c0_19] : memref<8x128xf32, #tpu.memory_space<vmem>>, vector<8x128xf32>
    tpu.vector_store %arg7[%c0_18, %c0_19], %36 {strides = array<i32>} : memref<8x128xf32, #tpu.memory_space<vmem>>, vector<8x128xf32>,
    return
  }
  func.func @transform_0(%arg0: i32) -> (i32, i32) {
    %c0_i32 = arith.constant 0 : i32
    %c0_i32_0 = arith.constant 0 : i32
    %c0_i32_1 = arith.constant 0 : i32
    return %c0_i32, %c0_i32_0 : i32, i32
  }
  func.func @transform_1(%arg0: i32) -> (i32, i32) {
    %c0_i32 = arith.constant 0 : i32
    %c0_i32_0 = arith.constant 0 : i32
    %c0_i32_1 = arith.constant 0 : i32
    return %c0_i32, %c0_i32_0 : i32, i32
  }
  func.func @transform_2(%arg0: i32) -> (i32, i32) {
    %c0_i32 = arith.constant 0 : i32
    %c0_i32_0 = arith.constant 0 : i32
    %c0_i32_1 = arith.constant 0 : i32
    return %c0_i32, %c0_i32_0 : i32, i32
  }
  func.func @transform_3(%arg0: i32) -> (i32, i32) {
    %c0_i32 = arith.constant 0 : i32
    %c0_i32_0 = arith.constant 0 : i32
    %c0_i32_1 = arith.constant 0 : i32
    return %c0_i32, %c0_i32_0 : i32, i32
  }
  func.func @transform_4(%arg0: i32) -> (i32, i32) {
    %c0_i32 = arith.constant 0 : i32
    %c0_i32_0 = arith.constant 0 : i32
    %c0_i32_1 = arith.constant 0 : i32
    return %c0_i32, %c0_i32_0 : i32, i32
  }
  func.func @transform_5(%arg0: i32) -> (i32, i32) {
    %c0_i32 = arith.constant 0 : i32
    %c0_i32_0 = arith.constant 0 : i32
    %c0_i32_1 = arith.constant 0 : i32
    return %c0_i32, %c0_i32_0 : i32, i32
  }
  func.func @transform_6(%arg0: i32) -> (i32, i32) {
    %c0_i32 = arith.constant 0 : i32
    %c0_i32_0 = arith.constant 0 : i32
    %c0_i32_1 = arith.constant 0 : i32
    return %c0_i32, %c0_i32_0 : i32, i32
  }
}

module attributes {stable_mosaic.version = 11 : i64} {
  func.func @_fc1_kernel(%arg0: i32, %arg1: memref<8x3072xbf16, #tpu.memory_space<vmem>>, %arg2: memref<3072x1024xbf16, #tpu.memory_space<vmem>>, %arg3: memref<1x1024xf32, #tpu.memory_space<vmem>>, %arg4: memref<1x1024xf32, #tpu.memory_space<vmem>>, %arg5: memref<8x1024xbf16, #tpu.memory_space<vmem>>) attributes {dimension_semantics = [#tpu.dimension_semantics<parallel>], iteration_bounds = array<i64: 2>, scalar_prefetch = 0 : i64, scratch_operands = 0 : i64, tpu.core_type = #tpu.core_type<tc>, window_params = [{pipeline_mode = #tpu.pipeline_mode<synchronous>, transform_indices = @transform_0, window_bounds = array<i64: 8, 3072>}, {transform_indices = @transform_1, window_bounds = array<i64: 3072, 1024>}, {transform_indices = @transform_2, window_bounds = array<i64: 1, 1024>}, {transform_indices = @transform_3, window_bounds = array<i64: 1, 1024>}, {transform_indices = @transform_4, window_bounds = array<i64: 8, 1024>}]} {
    %c0 = arith.constant 0 : index
    %c0_0 = arith.constant 0 : index
    %0 = vector.load %arg1[%c0, %c0_0] : memref<8x3072xbf16, #tpu.memory_space<vmem>>, vector<8x3072xbf16>
    %c0_1 = arith.constant 0 : index
    %c0_2 = arith.constant 0 : index
    %1 = vector.load %arg2[%c0_1, %c0_2] : memref<3072x1024xbf16, #tpu.memory_space<vmem>>, vector<3072x1024xbf16>
    %cst = arith.constant dense<0.000000e+00> : vector<8x1024xf32>
    %2 = tpu.matmul %0, %1, %cst {dimension_numbers = #tpu.dot_dimension_numbers<[1], [0], [0], [1], [0, 0, 1, 1], [], []>} : vector<8x3072xbf16>, vector<3072x1024xbf16>, vector<8x1024xf32> -> vector<8x1024xf32>
    %c0_3 = arith.constant 0 : index
    %c0_4 = arith.constant 0 : index
    %3 = vector.load %arg3[%c0_3, %c0_4] : memref<1x1024xf32, #tpu.memory_space<vmem>>, vector<1x1024xf32>
    %4 = vector.broadcast %3 : vector<1x1024xf32> to vector<8x1024xf32>
    %5 = arith.mulf %2, %4 : vector<8x1024xf32>
    %c0_5 = arith.constant 0 : index
    %c0_6 = arith.constant 0 : index
    %6 = vector.load %arg4[%c0_5, %c0_6] : memref<1x1024xf32, #tpu.memory_space<vmem>>, vector<1x1024xf32>
    %7 = vector.broadcast %6 : vector<1x1024xf32> to vector<8x1024xf32>
    %8 = arith.addf %5, %7 : vector<8x1024xf32>
    %cst_7 = arith.constant 0.000000e+00 : f32
    %9 = vector.broadcast %cst_7 : f32 to vector<8x1024xf32>
    %10 = arith.maximumf %8, %9 : vector<8x1024xf32>
    %11 = arith.truncf %10 : vector<8x1024xf32> to vector<8x1024xbf16>
    %c0_8 = arith.constant 0 : index
    %c0_9 = arith.constant 0 : index
    %12 = vector.load %arg5[%c0_8, %c0_9] : memref<8x1024xbf16, #tpu.memory_space<vmem>>, vector<8x1024xbf16>
    tpu.vector_store %arg5[%c0_8, %c0_9], %11 {strides = array<i32>} : memref<8x1024xbf16, #tpu.memory_space<vmem>>, vector<8x1024xbf16>,
    return
  }
  func.func @transform_0(%arg0: i32) -> (i32, i32) {
    %c0_i32 = arith.constant 0 : i32
    %c0_i32_0 = arith.constant 0 : i32
    %c0_i32_1 = arith.constant 0 : i32
    return %c0_i32, %c0_i32_0 : i32, i32
  }
  func.func @transform_1(%arg0: i32) -> (i32, i32) {
    %c0_i32 = arith.constant 0 : i32
    %c0_i32_0 = arith.constant 0 : i32
    return %c0_i32, %arg0 : i32, i32
  }
  func.func @transform_2(%arg0: i32) -> (i32, i32) {
    %c0_i32 = arith.constant 0 : i32
    %c0_i32_0 = arith.constant 0 : i32
    return %c0_i32, %arg0 : i32, i32
  }
  func.func @transform_3(%arg0: i32) -> (i32, i32) {
    %c0_i32 = arith.constant 0 : i32
    %c0_i32_0 = arith.constant 0 : i32
    return %c0_i32, %arg0 : i32, i32
  }
  func.func @transform_4(%arg0: i32) -> (i32, i32) {
    %c0_i32 = arith.constant 0 : i32
    %c0_i32_0 = arith.constant 0 : i32
    return %c0_i32, %arg0 : i32, i32
  }
}

</mosaic_0001>

<bundles_post_ra>
// kernel: mlp_forward.3
= control target key start
LH: loop header
LB: loop body
LE: loop exit
PB: predicated region body
PF: predicated region fallthrough
CT: control target
= control target key end

     0   :  { %s7513_s0 = inlined_call_operand.vmem [shape: bf16[8,2048], index: 0, kind: input, shape index: {}]   ;;  %s7514_s1 = inlined_call_operand.vmem [shape: bf16[2048,512], index: 1, kind: input, shape index: {}]   ;;  %s7515_s2 = inlined_call_operand.vmem [shape: f32[1,512], index: 2, kind: input, shape index: {}]   ;;  %s7516_s3 = inlined_call_operand.vmem [shape: f32[1,512], index: 3, kind: input, shape index: {}]   ;;  %s7517_s4 = inlined_call_operand.vmem [shape: bf16[512,128], index: 4, kind: input, shape index: {}]   ;;  %s7518_s5 = inlined_call_operand.vmem [shape: f32[1,128], index: 5, kind: input, shape index: {}]   ;;  %s7519_s6 = inlined_call_operand.hbm [shape: f32[8,128], index: 6, kind: output, shape index: {}]  }
   0x1   :  { %v4914_v0 = vld [vmem:[%s7514_s1 + $0x4] ss:$16 sps:$4 sm:$0xff]   ;;  %v4916_v1 = vld [vmem:[%s7514_s1 + $0xc] ss:$16 sps:$4 sm:$0xff]   ;;  %v4918_v2 = vld [vmem:[%s7514_s1] ss:$16 sps:$4 sm:$0xff]  }
   0x2   :  { %3161 = vmatprep.subr.bf16.mxu0 %v4914_v0  ;;  %v4919_v3 = vld [vmem:[%s7514_s1 + $0x8] ss:$16 sps:$4 sm:$0xff]   ;;  %3489 = vmatprep.subr.bf16.mxu1 %v4916_v1  ;;  %v4920_v4 = vld [vmem:[%s7514_s1 + $0x24] ss:$16 sps:$4 sm:$0xff]   ;;  %v4922_v5 = vld [vmem:[%s7514_s1 + $0x2c] ss:$16 sps:$4 sm:$0xff]  }
   0x3   :  { %3162 = vmatpush1.bf16.msra.mxu0 %v4918_v2  ;;  %3490 = vmatpush1.bf16.msra.mxu1 %v4919_v3  ;;  %v4924_v6 = vld [vmem:[%s7514_s1 + $0x20] ss:$16 sps:$4 sm:$0xff]   ;;  %v4925_v7 = vld [vmem:[%s7514_s1 + $0x28] ss:$16 sps:$4 sm:$0xff]   ;;  %v4926_v8 = vld [vmem:[%s7514_s1 + $0x44] ss:$16 sps:$4 sm:$0xff]  }
   0x4   :  { %3163 = vmatprep.subr.bf16.mxu0 %v4920_v4  ;;  %3491 = vmatprep.subr.bf16.mxu1 %v4922_v5  ;;  %v4928_v9 = vld [vmem:[%s7514_s1 + $0x4c] ss:$16 sps:$4 sm:$0xff]   ;;  %v4930_v10 = vld [vmem:[%s7514_s1 + $0x40] ss:$16 sps:$4 sm:$0xff]   ;;  %v4931_v11 = vld [vmem:[%s7514_s1 + $0x48] ss:$16 sps:$4 sm:$0xff]  }
   0x5   :  { %v4932_v12 = vld [vmem:[%s7514_s1 + $0x64] ss:$16 sps:$4 sm:$0xff]   ;;  %v4934_v13 = vld [vmem:[%s7514_s1 + $0x6c] ss:$16 sps:$4 sm:$0xff]   ;;  %v4936_v14 = vld [vmem:[%s7514_s1 + $0x60] ss:$16 sps:$4 sm:$0xff]  }
   0x6   :  { %v4937_v15 = vld [vmem:[%s7514_s1 + $0x68] ss:$16 sps:$4 sm:$0xff]   ;;  %v4938_v16 = vld [vmem:[%s7514_s1 + $0x84] ss:$16 sps:$4 sm:$0xff]   ;;  %v4940_v17 = vld [vmem:[%s7514_s1 + $0x8c] ss:$16 sps:$4 sm:$0xff]  }
   0x7   :  { %3164 = vmatpush1.bf16.msra.mxu0 %v4924_v6  ;;  %3492 = vmatpush1.bf16.msra.mxu1 %v4925_v7  ;;  %v4942_v18 = vld [vmem:[%s7514_s1 + $0x80] ss:$16 sps:$4 sm:$0xff]   ;;  %v4943_v19 = vld [vmem:[%s7514_s1 + $0x88] ss:$16 sps:$4 sm:$0xff]   ;;  %v4944_v20 = vld [vmem:[%s7514_s1 + $0xa4] ss:$16 sps:$4 sm:$0xff]  }
   0x8   :  { %3165 = vmatprep.subr.bf16.mxu0 %v4926_v8  ;;  %3493 = vmatprep.subr.bf16.mxu1 %v4928_v9  ;;  %v4946_v21 = vld [vmem:[%s7514_s1 + $0xac] ss:$16 sps:$4 sm:$0xff]   ;;  %v4948_v22 = vld [vmem:[%s7514_s1 + $0xa0] ss:$16 sps:$4 sm:$0xff]   ;;  %v4949_v23 = vld [vmem:[%s7514_s1 + $0xa8] ss:$16 sps:$4 sm:$0xff]  }
   0x9   :  { %v4950_v24 = vld [vmem:[%s7514_s1 + $0xc4] ss:$16 sps:$4 sm:$0xff]   ;;  %v4952_v25 = vld [vmem:[%s7514_s1 + $0xcc] ss:$16 sps:$4 sm:$0xff]   ;;  %v4954_v26 = vld [vmem:[%s7514_s1 + $0xc0] ss:$16 sps:$4 sm:$0xff]  }
   0xa   :  { %v4955_v27 = vld [vmem:[%s7514_s1 + $0xc8] ss:$16 sps:$4 sm:$0xff]   ;;  %v4956_v28 = vld [vmem:[%s7514_s1 + $0xe4] ss:$16 sps:$4 sm:$0xff]   ;;  %v4958_v29 = vld [vmem:[%s7514_s1 + $0xec] ss:$16 sps:$4 sm:$0xff]  }
   0xb   :  { %3166 = vmatpush1.bf16.msra.mxu0 %v4930_v10  ;;  %3494 = vmatpush1.bf16.msra.mxu1 %v4931_v11  ;;  %v4960_v30 = vld [vmem:[%s7514_s1 + $0xe0] ss:$16 sps:$4 sm:$0xff]   ;;  %v4961_v31 = vld [vmem:[%s7514_s1 + $0xe8] ss:$16 sps:$4 sm:$0xff]   ;;  %v4962_v32 = vld [vmem:[%s7514_s1 + $0x104] ss:$16 sps:$4 sm:$0xff]  }
   0xc   :  { %3167 = vmatprep.subr.bf16.mxu0 %v4932_v12  ;;  %3495 = vmatprep.subr.bf16.mxu1 %v4934_v13  ;;  %v4964_v33 = vld [vmem:[%s7514_s1 + $0x10c] ss:$16 sps:$4 sm:$0xff]   ;;  %v4966_v34 = vld [vmem:[%s7514_s1 + $0x100] ss:$16 sps:$4 sm:$0xff]   ;;  %v4967_v35 = vld [vmem:[%s7514_s1 + $0x108] ss:$16 sps:$4 sm:$0xff]  }
   0xd   :  { %v4968_v36 = vld [vmem:[%s7514_s1 + $0x124] ss:$16 sps:$4 sm:$0xff]   ;;  %v4970_v37 = vld [vmem:[%s7514_s1 + $0x12c] ss:$16 sps:$4 sm:$0xff]   ;;  %v4972_v38 = vld [vmem:[%s7514_s1 + $0x120] ss:$16 sps:$4 sm:$0xff]  }
   0xe   :  { %v4973_v39 = vld [vmem:[%s7514_s1 + $0x128] ss:$16 sps:$4 sm:$0xff]   ;;  %v4974_v40 = vld [vmem:[%s7514_s1 + $0x144] ss:$16 sps:$4 sm:$0xff]   ;;  %v4976_v41 = vld [vmem:[%s7514_s1 + $0x14c] ss:$16 sps:$4 sm:$0xff]  }
   0xf   :  { %3168 = vmatpush1.bf16.msra.mxu0 %v4936_v14  ;;  %3496 = vmatpush1.bf16.msra.mxu1 %v4937_v15  ;;  %v4978_v42 = vld [vmem:[%s7514_s1 + $0x140] ss:$16 sps:$4 sm:$0xff]   ;;  %v4979_v43 = vld [vmem:[%s7514_s1 + $0x148] ss:$16 sps:$4 sm:$0xff]   ;;  %v4980_v44 = vld [vmem:[%s7514_s1 + $0x164] ss:$16 sps:$4 sm:$0xff]  }
  0x10   :  { %3169 = vmatprep.subr.bf16.mxu0 %v4938_v16  ;;  %3497 = vmatprep.subr.bf16.mxu1 %v4940_v17  ;;  %v4982_v45 = vld [vmem:[%s7514_s1 + $0x16c] ss:$16 sps:$4 sm:$0xff]   ;;  %v25_v46 = vld [vmem:[%s7513_s0] sm:$0xff]  ;;  %v4985_v49 = vld [vmem:[%s7514_s1 + $0x168] ss:$16 sps:$4 sm:$0xff]  }
  0x11   :  { %v4984_v47 = vld [vmem:[%s7514_s1 + $0x160] ss:$16 sps:$4 sm:$0xff]   ;;  %v4253_v48 = vcombine.high %v25_v46, %v25_v46  ;;  %v4986_v50 = vld [vmem:[%s7514_s1 + $0x184] ss:$16 sps:$4 sm:$0xff]   ;;  %v4988_v51 = vld [vmem:[%s7514_s1 + $0x18c] ss:$16 sps:$4 sm:$0xff]   ;;  %v4252_v4 = vcombine.low %v25_v46, %v25_v46 }
  0x12   :  { %v4990_v52 = vld [vmem:[%s7514_s1 + $0x180] ss:$16 sps:$4 sm:$0xff]   ;;  %v4991_v53 = vld [vmem:[%s7514_s1 + $0x188] ss:$16 sps:$4 sm:$0xff]   ;;  %v4992_v54 = vld [vmem:[%s7514_s1 + $0x1a4] ss:$16 sps:$4 sm:$0xff]  }
  0x13   :  { %3170 = vmatpush1.bf16.msra.mxu0 %v4942_v18  ;;  %3498 = vmatpush1.bf16.msra.mxu1 %v4943_v19  ;;  %v4994_v55 = vld [vmem:[%s7514_s1 + $0x1ac] ss:$16 sps:$4 sm:$0xff]   ;;  %v4996_v56 = vld [vmem:[%s7514_s1 + $0x1a0] ss:$16 sps:$4 sm:$0xff]   ;;  %v4997_v57 = vld [vmem:[%s7514_s1 + $0x1a8] ss:$16 sps:$4 sm:$0xff]  }
  0x14   :  { %3171 = vmatprep.subr.bf16.mxu0 %v4944_v20  ;;  %3499 = vmatprep.subr.bf16.mxu1 %v4946_v21  ;;  %v4998_v58 = vld [vmem:[%s7514_s1 + $0x1c4] ss:$16 sps:$4 sm:$0xff]   ;;  %v5000_v59 = vld [vmem:[%s7514_s1 + $0x1cc] ss:$16 sps:$4 sm:$0xff]   ;;  %v5002_v60 = vld [vmem:[%s7514_s1 + $0x1c0] ss:$16 sps:$4 sm:$0xff]  }
  0x15   :  { %3193 = vmatprep.mubr.bf16.mxu0 %v4253_v48  ;;  %3521 = vmatprep.mubr.bf16.mxu1 %v4253_v48  ;;  %v5003_v61 = vld [vmem:[%s7514_s1 + $0x1c8] ss:$16 sps:$4 sm:$0xff]   ;;  %v5004_v62 = vld [vmem:[%s7514_s1 + $0x1e4] ss:$16 sps:$4 sm:$0xff]   ;;  %v5006_v63 = vld [vmem:[%s7514_s1 + $0x1ec] ss:$16 sps:$4 sm:$0xff]  }
  0x16   :  { %v5008_v0 = vld [vmem:[%s7514_s1 + $0x1e0] ss:$16 sps:$4 sm:$0xff]   ;;  %v5009_v1 = vld [vmem:[%s7514_s1 + $0x1e8] ss:$16 sps:$4 sm:$0xff]   ;;  %v5014_v2 = vld [vmem:[%s7514_s1 + $0x204] ss:$16 sps:$4 sm:$0xff]  }
  0x17   :  { %3172 = vmatpush1.bf16.msra.mxu0 %v4948_v22  ;;  %3500 = vmatpush1.bf16.msra.mxu1 %v4949_v23  ;;  %v5017_v3 = vld [vmem:[%s7514_s1 + $0x20c] ss:$16 sps:$4 sm:$0xff]   ;;  %v5012_v5 = vld [vmem:[%s7514_s1 + $0x200] ss:$16 sps:$4 sm:$0xff]   ;;  %v5015_v6 = vld [vmem:[%s7514_s1 + $0x208] ss:$16 sps:$4 sm:$0xff]  }
  0x18   :  { %3173 = vmatprep.subr.bf16.mxu0 %v4950_v24  ;;  %3501 = vmatprep.subr.bf16.mxu1 %v4952_v25  ;;  %v5020_v7 = vld [vmem:[%s7514_s1 + $0x224] ss:$16 sps:$4 sm:$0xff]   ;;  %v5023_v8 = vld [vmem:[%s7514_s1 + $0x22c] ss:$16 sps:$4 sm:$0xff]   ;;  %v5018_v9 = vld [vmem:[%s7514_s1 + $0x220] ss:$16 sps:$4 sm:$0xff]  }
  0x19   :  { %v5021_v10 = vld [vmem:[%s7514_s1 + $0x228] ss:$16 sps:$4 sm:$0xff]   ;;  %v5026_v11 = vld [vmem:[%s7514_s1 + $0x244] ss:$16 sps:$4 sm:$0xff]   ;;  %v5029_v12 = vld [vmem:[%s7514_s1 + $0x24c] ss:$16 sps:$4 sm:$0xff]  }
  0x1a   :  { %v5024_v13 = vld [vmem:[%s7514_s1 + $0x240] ss:$16 sps:$4 sm:$0xff]   ;;  %v5027_v14 = vld [vmem:[%s7514_s1 + $0x248] ss:$16 sps:$4 sm:$0xff]   ;;  %v5032_v15 = vld [vmem:[%s7514_s1 + $0x264] ss:$16 sps:$4 sm:$0xff]  }
  0x1b   :  { %3174 = vmatpush1.bf16.msra.mxu0 %v4954_v26  ;;  %3502 = vmatpush1.bf16.msra.mxu1 %v4955_v27  ;;  %v5035_v16 = vld [vmem:[%s7514_s1 + $0x26c] ss:$16 sps:$4 sm:$0xff]   ;;  %v5030_v17 = vld [vmem:[%s7514_s1 + $0x260] ss:$16 sps:$4 sm:$0xff]   ;;  %v5033_v18 = vld [vmem:[%s7514_s1 + $0x268] ss:$16 sps:$4 sm:$0xff]  }
  0x1c   :  { %3175 = vmatprep.subr.bf16.mxu0 %v4956_v28  ;;  %3503 = vmatprep.subr.bf16.mxu1 %v4958_v29  ;;  %v5038_v19 = vld [vmem:[%s7514_s1 + $0x284] ss:$16 sps:$4 sm:$0xff]   ;;  %v5041_v20 = vld [vmem:[%s7514_s1 + $0x28c] ss:$16 sps:$4 sm:$0xff]   ;;  %v5036_v21 = vld [vmem:[%s7514_s1 + $0x280] ss:$16 sps:$4 sm:$0xff]  }
  0x1d   :  { %v5039_v22 = vld [vmem:[%s7514_s1 + $0x288] ss:$16 sps:$4 sm:$0xff]   ;;  %v5044_v23 = vld [vmem:[%s7514_s1 + $0x2a4] ss:$16 sps:$4 sm:$0xff]   ;;  %v5047_v24 = vld [vmem:[%s7514_s1 + $0x2ac] ss:$16 sps:$4 sm:$0xff]  }
  0x1e   :  { %v5042_v25 = vld [vmem:[%s7514_s1 + $0x2a0] ss:$16 sps:$4 sm:$0xff]   ;;  %v5045_v26 = vld [vmem:[%s7514_s1 + $0x2a8] ss:$16 sps:$4 sm:$0xff]   ;;  %v5050_v27 = vld [vmem:[%s7514_s1 + $0x2c4] ss:$16 sps:$4 sm:$0xff]  }
  0x1f   :  { %3176 = vmatpush1.bf16.msra.mxu0 %v4960_v30  ;;  %3504 = vmatpush1.bf16.msra.mxu1 %v4961_v31  ;;  %v5053_v28 = vld [vmem:[%s7514_s1 + $0x2cc] ss:$16 sps:$4 sm:$0xff]   ;;  %v5048_v31 = vld [vmem:[%s7514_s1 + $0x2c0] ss:$16 sps:$4 sm:$0xff]   ;;  %v5075_v48 = vld [vmem:[%s7514_s1 + $0x348] ss:$16 sps:$4 sm:$0xff]  }
  0x20   :  { %3177 = vmatprep.subr.bf16.mxu0 %v4962_v32  ;;  %3505 = vmatprep.subr.bf16.mxu1 %v4964_v33  ;;  %v6070_v29 = vld [vmem:[%s7513_s0 + $0x8] sm:$0xff]  ;;  %v5056_v33 = vld [vmem:[%s7514_s1 + $0x2e4] ss:$16 sps:$4 sm:$0xff]  }
  0x21   :  { %v4255_v30 = vcombine.high %v6070_v29, %v6070_v29  ;;  %v5051_v32 = vld [vmem:[%s7514_s1 + $0x2c8] ss:$16 sps:$4 sm:$0xff]   ;;  %v5077_v46 = vld [vmem:[%s7514_s1 + $0x34c] ss:$16 sps:$4 sm:$0xff]  }
  0x23   :  { %3178 = vmatpush1.bf16.msra.mxu0 %v4966_v34  ;;  %3506 = vmatpush1.bf16.msra.mxu1 %v4967_v35  ;;  %v5059_v34 = vld [vmem:[%s7514_s1 + $0x2ec] ss:$16 sps:$4 sm:$0xff]   ;;  %v5054_v35 = vld [vmem:[%s7514_s1 + $0x2e0] ss:$16 sps:$4 sm:$0xff]  }
  0x24   :  { %3179 = vmatprep.subr.bf16.mxu0 %v4968_v36  ;;  %3507 = vmatprep.subr.bf16.mxu1 %v4970_v37  ;;  %v5057_v36 = vld [vmem:[%s7514_s1 + $0x2e8] ss:$16 sps:$4 sm:$0xff]   ;;  %v5062_v37 = vld [vmem:[%s7514_s1 + $0x304] ss:$16 sps:$4 sm:$0xff]  }
  0x27   :  { %3180 = vmatpush1.bf16.msra.mxu0 %v4972_v38  ;;  %3508 = vmatpush1.bf16.msra.mxu1 %v4973_v39  ;;  %v5065_v38 = vld [vmem:[%s7514_s1 + $0x30c] ss:$16 sps:$4 sm:$0xff]   ;;  %v5060_v39 = vld [vmem:[%s7514_s1 + $0x300] ss:$16 sps:$4 sm:$0xff]  }
  0x28   :  { %3181 = vmatprep.subr.bf16.mxu0 %v4974_v40  ;;  %3509 = vmatprep.subr.bf16.mxu1 %v4976_v41  ;;  %v5063_v40 = vld [vmem:[%s7514_s1 + $0x308] ss:$16 sps:$4 sm:$0xff]   ;;  %v5068_v41 = vld [vmem:[%s7514_s1 + $0x324] ss:$16 sps:$4 sm:$0xff]  }
  0x2b   :  { %3182 = vmatpush1.bf16.msra.mxu0 %v4978_v42  ;;  %3510 = vmatpush1.bf16.msra.mxu1 %v4979_v43  ;;  %v5071_v42 = vld [vmem:[%s7514_s1 + $0x32c] ss:$16 sps:$4 sm:$0xff]   ;;  %v5066_v43 = vld [vmem:[%s7514_s1 + $0x320] ss:$16 sps:$4 sm:$0xff]  }
  0x2c   :  { %3183 = vmatprep.subr.bf16.mxu0 %v4980_v44  ;;  %3511 = vmatprep.subr.bf16.mxu1 %v4982_v45  ;;  %v5069_v44 = vld [vmem:[%s7514_s1 + $0x328] ss:$16 sps:$4 sm:$0xff]   ;;  %v5074_v45 = vld [vmem:[%s7514_s1 + $0x344] ss:$16 sps:$4 sm:$0xff]  }
  0x2f   :  { %3184 = vmatpush1.bf16.msra.mxu0 %v4984_v47  ;;  %3512 = vmatpush1.bf16.msra.mxu1 %v4985_v49  ;;  %v5072_v47 = vld [vmem:[%s7514_s1 + $0x340] ss:$16 sps:$4 sm:$0xff]   ;;  %v5080_v49 = vld [vmem:[%s7514_s1 + $0x364] ss:$16 sps:$4 sm:$0xff]  }
  0x30   :  { %3185 = vmatprep.subr.bf16.mxu0 %v4986_v50  ;;  %3513 = vmatprep.subr.bf16.mxu1 %v4988_v51  ;;  %v5083_v50 = vld [vmem:[%s7514_s1 + $0x36c] ss:$16 sps:$4 sm:$0xff]   ;;  %v5078_v51 = vld [vmem:[%s7514_s1 + $0x360] ss:$16 sps:$4 sm:$0xff]  }
  0x33   :  { %3186 = vmatpush1.bf16.msra.mxu0 %v4990_v52  ;;  %3514 = vmatpush1.bf16.msra.mxu1 %v4991_v53  ;;  %v5081_v52 = vld [vmem:[%s7514_s1 + $0x368] ss:$16 sps:$4 sm:$0xff]   ;;  %v5086_v53 = vld [vmem:[%s7514_s1 + $0x384] ss:$16 sps:$4 sm:$0xff]  }
  0x34   :  { %3187 = vmatprep.subr.bf16.mxu0 %v4992_v54  ;;  %3515 = vmatprep.subr.bf16.mxu1 %v4994_v55  ;;  %v5089_v54 = vld [vmem:[%s7514_s1 + $0x38c] ss:$16 sps:$4 sm:$0xff]   ;;  %v5084_v55 = vld [vmem:[%s7514_s1 + $0x380] ss:$16 sps:$4 sm:$0xff]  }
  0x37   :  { %3188 = vmatpush1.bf16.msra.mxu0 %v4996_v56  ;;  %3516 = vmatpush1.bf16.msra.mxu1 %v4997_v57  ;;  %v5087_v56 = vld [vmem:[%s7514_s1 + $0x388] ss:$16 sps:$4 sm:$0xff]   ;;  %v5092_v57 = vld [vmem:[%s7514_s1 + $0x3a4] ss:$16 sps:$4 sm:$0xff]  }
  0x38   :  { %3189 = vmatprep.subr.bf16.mxu0 %v4998_v58  ;;  %3517 = vmatprep.subr.bf16.mxu1 %v5000_v59  ;;  %v5095_v58 = vld [vmem:[%s7514_s1 + $0x3ac] ss:$16 sps:$4 sm:$0xff]   ;;  %v5090_v59 = vld [vmem:[%s7514_s1 + $0x3a0] ss:$16 sps:$4 sm:$0xff]  }
  0x3b   :  { %3190 = vmatpush1.bf16.msra.mxu0 %v5002_v60  ;;  %3518 = vmatpush1.bf16.msra.mxu1 %v5003_v61  ;;  %v5093_v60 = vld [vmem:[%s7514_s1 + $0x3a8] ss:$16 sps:$4 sm:$0xff]   ;;  %v5098_v61 = vld [vmem:[%s7514_s1 + $0x3c4] ss:$16 sps:$4 sm:$0xff]  }
  0x3c   :  { %3191 = vmatprep.subr.bf16.mxu0 %v5004_v62  ;;  %3519 = vmatprep.subr.bf16.mxu1 %v5006_v63  ;;  %v5101_v62 = vld [vmem:[%s7514_s1 + $0x3cc] ss:$16 sps:$4 sm:$0xff]   ;;  %v5096_v63 = vld [vmem:[%s7514_s1 + $0x3c0] ss:$16 sps:$4 sm:$0xff]  }
  0x3f   :  { %3192 = vmatpush1.bf16.msra.mxu0 %v5008_v0  ;;  %3520 = vmatpush1.bf16.msra.mxu1 %v5009_v1  ;;  %v5099_v0 = vld [vmem:[%s7514_s1 + $0x3c8] ss:$16 sps:$4 sm:$0xff]   ;;  %v5104_v1 = vld [vmem:[%s7514_s1 + $0x3e4] ss:$16 sps:$4 sm:$0xff]  }
  0x40   :  { %3202 = vmatprep.subr.bf16.mxu0 %v5014_v2  ;;  %3530 = vmatprep.subr.bf16.mxu1 %v5017_v3  ;;  %v5107_v2 = vld [vmem:[%s7514_s1 + $0x3ec] ss:$16 sps:$4 sm:$0xff]   ;;  %v5102_v3 = vld [vmem:[%s7514_s1 + $0x3e0] ss:$16 sps:$4 sm:$0xff]  }
  0x42   :  { %3194 = vmatmul.mubr.bf16.vlgmr.msra.gmra.mrb[0].mxu0 %v4252_v4  ;;  %3522 = vmatmul.mubr.bf16.vlgmr.msra.gmra.mrb[0].mxu1 %v4252_v4  ;;  %v5105_v4 = vld [vmem:[%s7514_s1 + $0x3e8] ss:$16 sps:$4 sm:$0xff]  }
  0x43   :  { %3203 = vmatpush1.bf16.msra.mxu0 %v5012_v5  ;;  %3531 = vmatpush1.bf16.msra.mxu1 %v5015_v6  ;;  %v5112_v5 = vld [vmem:[%s7514_s1 + $0x404] ss:$16 sps:$4 sm:$0xff]   ;;  %v5115_v6 = vld [vmem:[%s7514_s1 + $0x40c] ss:$16 sps:$4 sm:$0xff]  }
  0x44   :  { %3204 = vmatprep.subr.bf16.mxu0 %v5020_v7  ;;  %3532 = vmatprep.subr.bf16.mxu1 %v5023_v8  ;;  %v4254_v7 = vcombine.low %v6070_v29, %v6070_v29  ;;  %v5110_v8 = vld [vmem:[%s7514_s1 + $0x400] ss:$16 sps:$4 sm:$0xff]   ;;  %v5145_v29 = vld [vmem:[%s7514_s1 + $0x4ac] ss:$16 sps:$4 sm:$0xff]  }
  0x45   :  { %3234 = vmatprep.mubr.bf16.mxu0 %v4255_v30  ;;  %3562 = vmatprep.mubr.bf16.mxu1 %v4255_v30  ;;  %v5140_v30 = vld [vmem:[%s7514_s1 + $0x4a0] ss:$16 sps:$4 sm:$0xff]  }
  0x47   :  { %3205 = vmatpush1.bf16.msra.mxu0 %v5018_v9  ;;  %3533 = vmatpush1.bf16.msra.mxu1 %v5021_v10  ;;  %v5113_v9 = vld [vmem:[%s7514_s1 + $0x408] ss:$16 sps:$4 sm:$0xff]   ;;  %v5118_v10 = vld [vmem:[%s7514_s1 + $0x424] ss:$16 sps:$4 sm:$0xff]  }
  0x48   :  { %3206 = vmatprep.subr.bf16.mxu0 %v5026_v11  ;;  %3534 = vmatprep.subr.bf16.mxu1 %v5029_v12  ;;  %v6208_v11 = vld [vmem:[%s7513_s0 + $0x10] sm:$0xff]  ;;  %v5121_v12 = vld [vmem:[%s7514_s1 + $0x42c] ss:$16 sps:$4 sm:$0xff]  }
  0x4b   :  { %3207 = vmatpush1.bf16.msra.mxu0 %v5024_v13  ;;  %3535 = vmatpush1.bf16.msra.mxu1 %v5027_v14  ;;  %v4257_v13 = vcombine.high %v6208_v11, %v6208_v11  ;;  %v5116_v14 = vld [vmem:[%s7514_s1 + $0x420] ss:$16 sps:$4 sm:$0xff]  }
  0x4c   :  { %3208 = vmatprep.subr.bf16.mxu0 %v5032_v15  ;;  %3536 = vmatprep.subr.bf16.mxu1 %v5035_v16  ;;  %v5119_v15 = vld [vmem:[%s7514_s1 + $0x428] ss:$16 sps:$4 sm:$0xff]   ;;  %v5124_v16 = vld [vmem:[%s7514_s1 + $0x444] ss:$16 sps:$4 sm:$0xff]  }
  0x4f   :  { %3209 = vmatpush1.bf16.msra.mxu0 %v5030_v17  ;;  %3537 = vmatpush1.bf16.msra.mxu1 %v5033_v18  ;;  %v5127_v17 = vld [vmem:[%s7514_s1 + $0x44c] ss:$16 sps:$4 sm:$0xff]   ;;  %v5122_v18 = vld [vmem:[%s7514_s1 + $0x440] ss:$16 sps:$4 sm:$0xff]  }
  0x50   :  { %3210 = vmatprep.subr.bf16.mxu0 %v5038_v19  ;;  %3538 = vmatprep.subr.bf16.mxu1 %v5041_v20  ;;  %v5125_v19 = vld [vmem:[%s7514_s1 + $0x448] ss:$16 sps:$4 sm:$0xff]   ;;  %v5130_v20 = vld [vmem:[%s7514_s1 + $0x464] ss:$16 sps:$4 sm:$0xff]  }
  0x53   :  { %3211 = vmatpush1.bf16.msra.mxu0 %v5036_v21  ;;  %3539 = vmatpush1.bf16.msra.mxu1 %v5039_v22  ;;  %v5133_v21 = vld [vmem:[%s7514_s1 + $0x46c] ss:$16 sps:$4 sm:$0xff]   ;;  %v5128_v22 = vld [vmem:[%s7514_s1 + $0x460] ss:$16 sps:$4 sm:$0xff]  }
  0x54   :  { %3212 = vmatprep.subr.bf16.mxu0 %v5044_v23  ;;  %3540 = vmatprep.subr.bf16.mxu1 %v5047_v24  ;;  %v5131_v23 = vld [vmem:[%s7514_s1 + $0x468] ss:$16 sps:$4 sm:$0xff]   ;;  %v5136_v24 = vld [vmem:[%s7514_s1 + $0x484] ss:$16 sps:$4 sm:$0xff]  }
  0x57   :  { %3213 = vmatpush1.bf16.msra.mxu0 %v5042_v25  ;;  %3541 = vmatpush1.bf16.msra.mxu1 %v5045_v26  ;;  %v5139_v25 = vld [vmem:[%s7514_s1 + $0x48c] ss:$16 sps:$4 sm:$0xff]   ;;  %v5134_v26 = vld [vmem:[%s7514_s1 + $0x480] ss:$16 sps:$4 sm:$0xff]  }
  0x58   :  { %3214 = vmatprep.subr.bf16.mxu0 %v5050_v27  ;;  %3542 = vmatprep.subr.bf16.mxu1 %v5053_v28  ;;  %v5137_v27 = vld [vmem:[%s7514_s1 + $0x488] ss:$16 sps:$4 sm:$0xff]   ;;  %v5142_v28 = vld [vmem:[%s7514_s1 + $0x4a4] ss:$16 sps:$4 sm:$0xff]  }
  0x5b   :  { %3215 = vmatpush1.bf16.msra.mxu0 %v5048_v31  ;;  %3543 = vmatpush1.bf16.msra.mxu1 %v5051_v32  ;;  %v5143_v31 = vld [vmem:[%s7514_s1 + $0x4a8] ss:$16 sps:$4 sm:$0xff]   ;;  %v5148_v32 = vld [vmem:[%s7514_s1 + $0x4c4] ss:$16 sps:$4 sm:$0xff]  }
  0x5c   :  { %3216 = vmatprep.subr.bf16.mxu0 %v5056_v33  ;;  %3544 = vmatprep.subr.bf16.mxu1 %v5059_v34  ;;  %v5151_v33 = vld [vmem:[%s7514_s1 + $0x4cc] ss:$16 sps:$4 sm:$0xff]   ;;  %v5146_v34 = vld [vmem:[%s7514_s1 + $0x4c0] ss:$16 sps:$4 sm:$0xff]  }
  0x5f   :  { %3217 = vmatpush1.bf16.msra.mxu0 %v5054_v35  ;;  %3545 = vmatpush1.bf16.msra.mxu1 %v5057_v36  ;;  %v5149_v35 = vld [vmem:[%s7514_s1 + $0x4c8] ss:$16 sps:$4 sm:$0xff]   ;;  %v5154_v36 = vld [vmem:[%s7514_s1 + $0x4e4] ss:$16 sps:$4 sm:$0xff]  }
  0x60   :  { %3218 = vmatprep.subr.bf16.mxu0 %v5062_v37  ;;  %3546 = vmatprep.subr.bf16.mxu1 %v5065_v38  ;;  %v5157_v37 = vld [vmem:[%s7514_s1 + $0x4ec] ss:$16 sps:$4 sm:$0xff]   ;;  %v5152_v38 = vld [vmem:[%s7514_s1 + $0x4e0] ss:$16 sps:$4 sm:$0xff]  }
  0x63   :  { %3219 = vmatpush1.bf16.msra.mxu0 %v5060_v39  ;;  %3547 = vmatpush1.bf16.msra.mxu1 %v5063_v40  ;;  %v5155_v39 = vld [vmem:[%s7514_s1 + $0x4e8] ss:$16 sps:$4 sm:$0xff]   ;;  %v5160_v40 = vld [vmem:[%s7514_s1 + $0x504] ss:$16 sps:$4 sm:$0xff]  }
  0x64   :  { %3220 = vmatprep.subr.bf16.mxu0 %v5068_v41  ;;  %3548 = vmatprep.subr.bf16.mxu1 %v5071_v42  ;;  %v5163_v41 = vld [vmem:[%s7514_s1 + $0x50c] ss:$16 sps:$4 sm:$0xff]   ;;  %v5158_v42 = vld [vmem:[%s7514_s1 + $0x500] ss:$16 sps:$4 sm:$0xff]  }
  0x67   :  { %3221 = vmatpush1.bf16.msra.mxu0 %v5066_v43  ;;  %3549 = vmatpush1.bf16.msra.mxu1 %v5069_v44  ;;  %v5161_v43 = vld [vmem:[%s7514_s1 + $0x508] ss:$16 sps:$4 sm:$0xff]   ;;  %v5166_v44 = vld [vmem:[%s7514_s1 + $0x524] ss:$16 sps:$4 sm:$0xff]  }
  0x68   :  { %3222 = vmatprep.subr.bf16.mxu0 %v5074_v45  ;;  %3550 = vmatprep.subr.bf16.mxu1 %v5077_v46  ;;  %v5169_v45 = vld [vmem:[%s7514_s1 + $0x52c] ss:$16 sps:$4 sm:$0xff]   ;;  %v5164_v46 = vld [vmem:[%s7514_s1 + $0x520] ss:$16 sps:$4 sm:$0xff]  }
  0x6b   :  { %3223 = vmatpush1.bf16.msra.mxu0 %v5072_v47  ;;  %3551 = vmatpush1.bf16.msra.mxu1 %v5075_v48  ;;  %v5167_v47 = vld [vmem:[%s7514_s1 + $0x528] ss:$16 sps:$4 sm:$0xff]   ;;  %v5172_v48 = vld [vmem:[%s7514_s1 + $0x544] ss:$16 sps:$4 sm:$0xff]  }
  0x6c   :  { %3224 = vmatprep.subr.bf16.mxu0 %v5080_v49  ;;  %3552 = vmatprep.subr.bf16.mxu1 %v5083_v50  ;;  %v5175_v49 = vld [vmem:[%s7514_s1 + $0x54c] ss:$16 sps:$4 sm:$0xff]   ;;  %v5170_v50 = vld [vmem:[%s7514_s1 + $0x540] ss:$16 sps:$4 sm:$0xff]  }
  0x6f   :  { %3225 = vmatpush1.bf16.msra.mxu0 %v5078_v51  ;;  %3553 = vmatpush1.bf16.msra.mxu1 %v5081_v52  ;;  %v5173_v51 = vld [vmem:[%s7514_s1 + $0x548] ss:$16 sps:$4 sm:$0xff]   ;;  %v5178_v52 = vld [vmem:[%s7514_s1 + $0x564] ss:$16 sps:$4 sm:$0xff]  }
  0x70   :  { %3226 = vmatprep.subr.bf16.mxu0 %v5086_v53  ;;  %3554 = vmatprep.subr.bf16.mxu1 %v5089_v54  ;;  %v5181_v53 = vld [vmem:[%s7514_s1 + $0x56c] ss:$16 sps:$4 sm:$0xff]   ;;  %v5176_v54 = vld [vmem:[%s7514_s1 + $0x560] ss:$16 sps:$4 sm:$0xff]  }
  0x73   :  { %3227 = vmatpush1.bf16.msra.mxu0 %v5084_v55  ;;  %3555 = vmatpush1.bf16.msra.mxu1 %v5087_v56  ;;  %v5179_v55 = vld [vmem:[%s7514_s1 + $0x568] ss:$16 sps:$4 sm:$0xff]   ;;  %v5184_v56 = vld [vmem:[%s7514_s1 + $0x584] ss:$16 sps:$4 sm:$0xff]  }
  0x74   :  { %3228 = vmatprep.subr.bf16.mxu0 %v5092_v57  ;;  %3556 = vmatprep.subr.bf16.mxu1 %v5095_v58  ;;  %v5187_v57 = vld [vmem:[%s7514_s1 + $0x58c] ss:$16 sps:$4 sm:$0xff]   ;;  %v5182_v58 = vld [vmem:[%s7514_s1 + $0x580] ss:$16 sps:$4 sm:$0xff]  }
  0x77   :  { %3229 = vmatpush1.bf16.msra.mxu0 %v5090_v59  ;;  %3557 = vmatpush1.bf16.msra.mxu1 %v5093_v60  ;;  %v5185_v59 = vld [vmem:[%s7514_s1 + $0x588] ss:$16 sps:$4 sm:$0xff]   ;;  %v5190_v60 = vld [vmem:[%s7514_s1 + $0x5a4] ss:$16 sps:$4 sm:$0xff]  }
  0x78   :  { %3230 = vmatprep.subr.bf16.mxu0 %v5098_v61  ;;  %3558 = vmatprep.subr.bf16.mxu1 %v5101_v62  ;;  %v5193_v61 = vld [vmem:[%s7514_s1 + $0x5ac] ss:$16 sps:$4 sm:$0xff]   ;;  %v5188_v62 = vld [vmem:[%s7514_s1 + $0x5a0] ss:$16 sps:$4 sm:$0xff]  }
  0x7b   :  { %3231 = vmatpush1.bf16.msra.mxu0 %v5096_v63  ;;  %3559 = vmatpush1.bf16.msra.mxu1 %v5099_v0  ;;  %v5191_v63 = vld [vmem:[%s7514_s1 + $0x5a8] ss:$16 sps:$4 sm:$0xff]   ;;  %v5196_v0 = vld [vmem:[%s7514_s1 + $0x5c4] ss:$16 sps:$4 sm:$0xff]  }
  0x7c   :  { %3232 = vmatprep.subr.bf16.mxu0 %v5104_v1  ;;  %3560 = vmatprep.subr.bf16.mxu1 %v5107_v2  ;;  %v5199_v1 = vld [vmem:[%s7514_s1 + $0x5cc] ss:$16 sps:$4 sm:$0xff]   ;;  %v5194_v2 = vld [vmem:[%s7514_s1 + $0x5c0] ss:$16 sps:$4 sm:$0xff]  }
  0x7f   :  { %3233 = vmatpush1.bf16.msra.mxu0 %v5102_v3  ;;  %3561 = vmatpush1.bf16.msra.mxu1 %v5105_v4  ;;  %v5197_v3 = vld [vmem:[%s7514_s1 + $0x5c8] ss:$16 sps:$4 sm:$0xff]   ;;  %v5202_v4 = vld [vmem:[%s7514_s1 + $0x5e4] ss:$16 sps:$4 sm:$0xff]  }
  0x80   :  { %3243 = vmatprep.subr.bf16.mxu0 %v5112_v5  ;;  %3571 = vmatprep.subr.bf16.mxu1 %v5115_v6  ;;  %v5205_v5 = vld [vmem:[%s7514_s1 + $0x5ec] ss:$16 sps:$4 sm:$0xff]   ;;  %v5200_v6 = vld [vmem:[%s7514_s1 + $0x5e0] ss:$16 sps:$4 sm:$0xff]  }
  0x82   :  { %3235 = vmatmul.mubr.bf16.vlgmr.msra.gmra.mrb[0].mxu0 %v4254_v7  ;;  %3563 = vmatmul.mubr.bf16.vlgmr.msra.gmra.mrb[0].mxu1 %v4254_v7  ;;  %v5203_v7 = vld [vmem:[%s7514_s1 + $0x5e8] ss:$16 sps:$4 sm:$0xff]  }
  0x83   :  { %3244 = vmatpush1.bf16.msra.mxu0 %v5110_v8  ;;  %3572 = vmatpush1.bf16.msra.mxu1 %v5113_v9  ;;  %v5210_v8 = vld [vmem:[%s7514_s1 + $0x604] ss:$16 sps:$4 sm:$0xff]   ;;  %v5213_v9 = vld [vmem:[%s7514_s1 + $0x60c] ss:$16 sps:$4 sm:$0xff]  }
  0x84   :  { %3245 = vmatprep.subr.bf16.mxu0 %v5118_v10  ;;  %3573 = vmatprep.subr.bf16.mxu1 %v5121_v12  ;;  %v5208_v10 = vld [vmem:[%s7514_s1 + $0x600] ss:$16 sps:$4 sm:$0xff]   ;;  %v4256_v12 = vcombine.low %v6208_v11, %v6208_v11  ;;  %v5219_v11 = vld [vmem:[%s7514_s1 + $0x62c] ss:$16 sps:$4 sm:$0xff]  }
  0x85   :  { %3275 = vmatprep.mubr.bf16.mxu0 %v4257_v13  ;;  %3603 = vmatprep.mubr.bf16.mxu1 %v4257_v13  ;;  %v5211_v13 = vld [vmem:[%s7514_s1 + $0x608] ss:$16 sps:$4 sm:$0xff]  }
  0x87   :  { %3246 = vmatpush1.bf16.msra.mxu0 %v5116_v14  ;;  %3574 = vmatpush1.bf16.msra.mxu1 %v5119_v15  ;;  %v6406_v14 = vld [vmem:[%s7513_s0 + $0x18] sm:$0xff]  ;;  %v5216_v15 = vld [vmem:[%s7514_s1 + $0x624] ss:$16 sps:$4 sm:$0xff]  }
  0x88   :  { %3247 = vmatprep.subr.bf16.mxu0 %v5124_v16  ;;  %3575 = vmatprep.subr.bf16.mxu1 %v5127_v17  ;;  %v4259_v16 = vcombine.high %v6406_v14, %v6406_v14  ;;  %v5214_v17 = vld [vmem:[%s7514_s1 + $0x620] ss:$16 sps:$4 sm:$0xff]  }
  0x8b   :  { %3248 = vmatpush1.bf16.msra.mxu0 %v5122_v18  ;;  %3576 = vmatpush1.bf16.msra.mxu1 %v5125_v19  ;;  %v5217_v18 = vld [vmem:[%s7514_s1 + $0x628] ss:$16 sps:$4 sm:$0xff]   ;;  %v5222_v19 = vld [vmem:[%s7514_s1 + $0x644] ss:$16 sps:$4 sm:$0xff]  }
  0x8c   :  { %3249 = vmatprep.subr.bf16.mxu0 %v5130_v20  ;;  %3577 = vmatprep.subr.bf16.mxu1 %v5133_v21  ;;  %v5225_v20 = vld [vmem:[%s7514_s1 + $0x64c] ss:$16 sps:$4 sm:$0xff]   ;;  %v5220_v21 = vld [vmem:[%s7514_s1 + $0x640] ss:$16 sps:$4 sm:$0xff]  }
  0x8f   :  { %3250 = vmatpush1.bf16.msra.mxu0 %v5128_v22  ;;  %3578 = vmatpush1.bf16.msra.mxu1 %v5131_v23  ;;  %v5223_v22 = vld [vmem:[%s7514_s1 + $0x648] ss:$16 sps:$4 sm:$0xff]   ;;  %v5228_v23 = vld [vmem:[%s7514_s1 + $0x664] ss:$16 sps:$4 sm:$0xff]  }
  0x90   :  { %3251 = vmatprep.subr.bf16.mxu0 %v5136_v24  ;;  %3579 = vmatprep.subr.bf16.mxu1 %v5139_v25  ;;  %v5231_v24 = vld [vmem:[%s7514_s1 + $0x66c] ss:$16 sps:$4 sm:$0xff]   ;;  %v5226_v25 = vld [vmem:[%s7514_s1 + $0x660] ss:$16 sps:$4 sm:$0xff]  }
  0x93   :  { %3252 = vmatpush1.bf16.msra.mxu0 %v5134_v26  ;;  %3580 = vmatpush1.bf16.msra.mxu1 %v5137_v27  ;;  %v5229_v26 = vld [vmem:[%s7514_s1 + $0x668] ss:$16 sps:$4 sm:$0xff]   ;;  %v5234_v27 = vld [vmem:[%s7514_s1 + $0x684] ss:$16 sps:$4 sm:$0xff]  }
  0x94   :  { %3253 = vmatprep.subr.bf16.mxu0 %v5142_v28  ;;  %3581 = vmatprep.subr.bf16.mxu1 %v5145_v29  ;;  %v5237_v28 = vld [vmem:[%s7514_s1 + $0x68c] ss:$16 sps:$4 sm:$0xff]   ;;  %v5232_v29 = vld [vmem:[%s7514_s1 + $0x680] ss:$16 sps:$4 sm:$0xff]  }
  0x97   :  { %3254 = vmatpush1.bf16.msra.mxu0 %v5140_v30  ;;  %3582 = vmatpush1.bf16.msra.mxu1 %v5143_v31  ;;  %v5235_v30 = vld [vmem:[%s7514_s1 + $0x688] ss:$16 sps:$4 sm:$0xff]   ;;  %v5240_v31 = vld [vmem:[%s7514_s1 + $0x6a4] ss:$16 sps:$4 sm:$0xff]  }
  0x98   :  { %3255 = vmatprep.subr.bf16.mxu0 %v5148_v32  ;;  %3583 = vmatprep.subr.bf16.mxu1 %v5151_v33  ;;  %v5243_v32 = vld [vmem:[%s7514_s1 + $0x6ac] ss:$16 sps:$4 sm:$0xff]   ;;  %v5238_v33 = vld [vmem:[%s7514_s1 + $0x6a0] ss:$16 sps:$4 sm:$0xff]  }
  0x9b   :  { %3256 = vmatpush1.bf16.msra.mxu0 %v5146_v34  ;;  %3584 = vmatpush1.bf16.msra.mxu1 %v5149_v35  ;;  %v5241_v34 = vld [vmem:[%s7514_s1 + $0x6a8] ss:$16 sps:$4 sm:$0xff]   ;;  %v5246_v35 = vld [vmem:[%s7514_s1 + $0x6c4] ss:$16 sps:$4 sm:$0xff]  }
  0x9c   :  { %3257 = vmatprep.subr.bf16.mxu0 %v5154_v36  ;;  %3585 = vmatprep.subr.bf16.mxu1 %v5157_v37  ;;  %v5249_v36 = vld [vmem:[%s7514_s1 + $0x6cc] ss:$16 sps:$4 sm:$0xff]   ;;  %v5244_v37 = vld [vmem:[%s7514_s1 + $0x6c0] ss:$16 sps:$4 sm:$0xff]  }
  0x9f   :  { %3258 = vmatpush1.bf16.msra.mxu0 %v5152_v38  ;;  %3586 = vmatpush1.bf16.msra.mxu1 %v5155_v39  ;;  %v5247_v38 = vld [vmem:[%s7514_s1 + $0x6c8] ss:$16 sps:$4 sm:$0xff]   ;;  %v5252_v39 = vld [vmem:[%s7514_s1 + $0x6e4] ss:$16 sps:$4 sm:$0xff]  }
  0xa0   :  { %3259 = vmatprep.subr.bf16.mxu0 %v5160_v40  ;;  %3587 = vmatprep.subr.bf16.mxu1 %v5163_v41  ;;  %v5255_v40 = vld [vmem:[%s7514_s1 + $0x6ec] ss:$16 sps:$4 sm:$0xff]   ;;  %v5250_v41 = vld [vmem:[%s7514_s1 + $0x6e0] ss:$16 sps:$4 sm:$0xff]  }
  0xa3   :  { %3260 = vmatpush1.bf16.msra.mxu0 %v5158_v42  ;;  %3588 = vmatpush1.bf16.msra.mxu1 %v5161_v43  ;;  %v5253_v42 = vld [vmem:[%s7514_s1 + $0x6e8] ss:$16 sps:$4 sm:$0xff]   ;;  %v5258_v43 = vld [vmem:[%s7514_s1 + $0x704] ss:$16 sps:$4 sm:$0xff]  }
  0xa4   :  { %3261 = vmatprep.subr.bf16.mxu0 %v5166_v44  ;;  %3589 = vmatprep.subr.bf16.mxu1 %v5169_v45  ;;  %v5261_v44 = vld [vmem:[%s7514_s1 + $0x70c] ss:$16 sps:$4 sm:$0xff]   ;;  %v5256_v45 = vld [vmem:[%s7514_s1 + $0x700] ss:$16 sps:$4 sm:$0xff]  }
  0xa7   :  { %3262 = vmatpush1.bf16.msra.mxu0 %v5164_v46  ;;  %3590 = vmatpush1.bf16.msra.mxu1 %v5167_v47  ;;  %v5259_v46 = vld [vmem:[%s7514_s1 + $0x708] ss:$16 sps:$4 sm:$0xff]   ;;  %v5264_v47 = vld [vmem:[%s7514_s1 + $0x724] ss:$16 sps:$4 sm:$0xff]  }
  0xa8   :  { %3263 = vmatprep.subr.bf16.mxu0 %v5172_v48  ;;  %3591 = vmatprep.subr.bf16.mxu1 %v5175_v49  ;;  %v5267_v48 = vld [vmem:[%s7514_s1 + $0x72c] ss:$16 sps:$4 sm:$0xff]   ;;  %v5262_v49 = vld [vmem:[%s7514_s1 + $0x720] ss:$16 sps:$4 sm:$0xff]  }
  0xab   :  { %3264 = vmatpush1.bf16.msra.mxu0 %v5170_v50  ;;  %3592 = vmatpush1.bf16.msra.mxu1 %v5173_v51  ;;  %v5265_v50 = vld [vmem:[%s7514_s1 + $0x728] ss:$16 sps:$4 sm:$0xff]   ;;  %v5270_v51 = vld [vmem:[%s7514_s1 + $0x744] ss:$16 sps:$4 sm:$0xff]  }
  0xac   :  { %3265 = vmatprep.subr.bf16.mxu0 %v5178_v52  ;;  %3593 = vmatprep.subr.bf16.mxu1 %v5181_v53  ;;  %v5273_v52 = vld [vmem:[%s7514_s1 + $0x74c] ss:$16 sps:$4 sm:$0xff]   ;;  %v5268_v53 = vld [vmem:[%s7514_s1 + $0x740] ss:$16 sps:$4 sm:$0xff]  }
  0xaf   :  { %3266 = vmatpush1.bf16.msra.mxu0 %v5176_v54  ;;  %3594 = vmatpush1.bf16.msra.mxu1 %v5179_v55  ;;  %v5271_v54 = vld [vmem:[%s7514_s1 + $0x748] ss:$16 sps:$4 sm:$0xff]   ;;  %v5276_v55 = vld [vmem:[%s7514_s1 + $0x764] ss:$16 sps:$4 sm:$0xff]  }
  0xb0   :  { %3267 = vmatprep.subr.bf16.mxu0 %v5184_v56  ;;  %3595 = vmatprep.subr.bf16.mxu1 %v5187_v57  ;;  %v5279_v56 = vld [vmem:[%s7514_s1 + $0x76c] ss:$16 sps:$4 sm:$0xff]   ;;  %v5274_v57 = vld [vmem:[%s7514_s1 + $0x760] ss:$16 sps:$4 sm:$0xff]  }
  0xb3   :  { %3268 = vmatpush1.bf16.msra.mxu0 %v5182_v58  ;;  %3596 = vmatpush1.bf16.msra.mxu1 %v5185_v59  ;;  %v5277_v58 = vld [vmem:[%s7514_s1 + $0x768] ss:$16 sps:$4 sm:$0xff]   ;;  %v5282_v59 = vld [vmem:[%s7514_s1 + $0x784] ss:$16 sps:$4 sm:$0xff]  }
  0xb4   :  { %3269 = vmatprep.subr.bf16.mxu0 %v5190_v60  ;;  %3597 = vmatprep.subr.bf16.mxu1 %v5193_v61  ;;  %v5285_v60 = vld [vmem:[%s7514_s1 + $0x78c] ss:$16 sps:$4 sm:$0xff]   ;;  %v5280_v61 = vld [vmem:[%s7514_s1 + $0x780] ss:$16 sps:$4 sm:$0xff]  }
  0xb7   :  { %3270 = vmatpush1.bf16.msra.mxu0 %v5188_v62  ;;  %3598 = vmatpush1.bf16.msra.mxu1 %v5191_v63  ;;  %v5283_v62 = vld [vmem:[%s7514_s1 + $0x788] ss:$16 sps:$4 sm:$0xff]   ;;  %v5288_v63 = vld [vmem:[%s7514_s1 + $0x7a4] ss:$16 sps:$4 sm:$0xff]  }
  0xb8   :  { %3271 = vmatprep.subr.bf16.mxu0 %v5196_v0  ;;  %3599 = vmatprep.subr.bf16.mxu1 %v5199_v1  ;;  %v5291_v0 = vld [vmem:[%s7514_s1 + $0x7ac] ss:$16 sps:$4 sm:$0xff]   ;;  %v5286_v1 = vld [vmem:[%s7514_s1 + $0x7a0] ss:$16 sps:$4 sm:$0xff]  }
  0xbb   :  { %3272 = vmatpush1.bf16.msra.mxu0 %v5194_v2  ;;  %3600 = vmatpush1.bf16.msra.mxu1 %v5197_v3  ;;  %v5289_v2 = vld [vmem:[%s7514_s1 + $0x7a8] ss:$16 sps:$4 sm:$0xff]   ;;  %v5294_v3 = vld [vmem:[%s7514_s1 + $0x7c4] ss:$16 sps:$4 sm:$0xff]  }
  0xbc   :  { %3273 = vmatprep.subr.bf16.mxu0 %v5202_v4  ;;  %3601 = vmatprep.subr.bf16.mxu1 %v5205_v5  ;;  %v5297_v4 = vld [vmem:[%s7514_s1 + $0x7cc] ss:$16 sps:$4 sm:$0xff]   ;;  %v5292_v5 = vld [vmem:[%s7514_s1 + $0x7c0] ss:$16 sps:$4 sm:$0xff]  }
  0xbf   :  { %3274 = vmatpush1.bf16.msra.mxu0 %v5200_v6  ;;  %3602 = vmatpush1.bf16.msra.mxu1 %v5203_v7  ;;  %v5295_v6 = vld [vmem:[%s7514_s1 + $0x7c8] ss:$16 sps:$4 sm:$0xff]   ;;  %v5300_v7 = vld [vmem:[%s7514_s1 + $0x7e4] ss:$16 sps:$4 sm:$0xff]  }
  0xc0   :  { %3284 = vmatprep.subr.bf16.mxu0 %v5210_v8  ;;  %3612 = vmatprep.subr.bf16.mxu1 %v5213_v9  ;;  %v5303_v8 = vld [vmem:[%s7514_s1 + $0x7ec] ss:$16 sps:$4 sm:$0xff]   ;;  %v5298_v9 = vld [vmem:[%s7514_s1 + $0x7e0] ss:$16 sps:$4 sm:$0xff]  }
  0xc2   :  { %3276 = vmatmul.mubr.bf16.vlgmr.msra.gmra.mrb[0].mxu0 %v4256_v12  ;;  %3604 = vmatmul.mubr.bf16.vlgmr.msra.gmra.mrb[0].mxu1 %v4256_v12  ;;  %v5308_v12 = vld [vmem:[%s7514_s1 + $0x804] ss:$16 sps:$4 sm:$0xff]  }
  0xc3   :  { %3285 = vmatpush1.bf16.msra.mxu0 %v5208_v10  ;;  %3613 = vmatpush1.bf16.msra.mxu1 %v5211_v13  ;;  %v5301_v10 = vld [vmem:[%s7514_s1 + $0x7e8] ss:$16 sps:$4 sm:$0xff]   ;;  %v5311_v13 = vld [vmem:[%s7514_s1 + $0x80c] ss:$16 sps:$4 sm:$0xff]  }
  0xc4   :  { %3286 = vmatprep.subr.bf16.mxu0 %v5216_v15  ;;  %3614 = vmatprep.subr.bf16.mxu1 %v5219_v11  ;;  %v5306_v15 = vld [vmem:[%s7514_s1 + $0x800] ss:$16 sps:$4 sm:$0xff]   ;;  %v4258_v11 = vcombine.low %v6406_v14, %v6406_v14  ;;  %v5317_v14 = vld [vmem:[%s7514_s1 + $0x82c] ss:$16 sps:$4 sm:$0xff]  }
  0xc5   :  { %3316 = vmatprep.mubr.bf16.mxu0 %v4259_v16  ;;  %3644 = vmatprep.mubr.bf16.mxu1 %v4259_v16  ;;  %v6604_v16 = vld [vmem:[%s7513_s0 + $0x20] sm:$0xff] }
  0xc7   :  { %3287 = vmatpush1.bf16.msra.mxu0 %v5214_v17  ;;  %3615 = vmatpush1.bf16.msra.mxu1 %v5217_v18  ;;  %v5309_v17 = vld [vmem:[%s7514_s1 + $0x808] ss:$16 sps:$4 sm:$0xff]   ;;  %v5314_v18 = vld [vmem:[%s7514_s1 + $0x824] ss:$16 sps:$4 sm:$0xff]  }
  0xc8   :  { %3288 = vmatprep.subr.bf16.mxu0 %v5222_v19  ;;  %3616 = vmatprep.subr.bf16.mxu1 %v5225_v20  ;;  %v4261_v19 = vcombine.high %v6604_v16, %v6604_v16  ;;  %v5312_v20 = vld [vmem:[%s7514_s1 + $0x820] ss:$16 sps:$4 sm:$0xff]  }
  0xcb   :  { %3289 = vmatpush1.bf16.msra.mxu0 %v5220_v21  ;;  %3617 = vmatpush1.bf16.msra.mxu1 %v5223_v22  ;;  %v5315_v21 = vld [vmem:[%s7514_s1 + $0x828] ss:$16 sps:$4 sm:$0xff]   ;;  %v5320_v22 = vld [vmem:[%s7514_s1 + $0x844] ss:$16 sps:$4 sm:$0xff]  }
  0xcc   :  { %3290 = vmatprep.subr.bf16.mxu0 %v5228_v23  ;;  %3618 = vmatprep.subr.bf16.mxu1 %v5231_v24  ;;  %v5323_v23 = vld [vmem:[%s7514_s1 + $0x84c] ss:$16 sps:$4 sm:$0xff]   ;;  %v5318_v24 = vld [vmem:[%s7514_s1 + $0x840] ss:$16 sps:$4 sm:$0xff]  }
  0xcf   :  { %3291 = vmatpush1.bf16.msra.mxu0 %v5226_v25  ;;  %3619 = vmatpush1.bf16.msra.mxu1 %v5229_v26  ;;  %v5321_v25 = vld [vmem:[%s7514_s1 + $0x848] ss:$16 sps:$4 sm:$0xff]   ;;  %v5326_v26 = vld [vmem:[%s7514_s1 + $0x864] ss:$16 sps:$4 sm:$0xff]  }
  0xd0   :  { %3292 = vmatprep.subr.bf16.mxu0 %v5234_v27  ;;  %3620 = vmatprep.subr.bf16.mxu1 %v5237_v28  ;;  %v5329_v27 = vld [vmem:[%s7514_s1 + $0x86c] ss:$16 sps:$4 sm:$0xff]   ;;  %v5324_v28 = vld [vmem:[%s7514_s1 + $0x860] ss:$16 sps:$4 sm:$0xff]  }
  0xd3   :  { %3293 = vmatpush1.bf16.msra.mxu0 %v5232_v29  ;;  %3621 = vmatpush1.bf16.msra.mxu1 %v5235_v30  ;;  %v5327_v29 = vld [vmem:[%s7514_s1 + $0x868] ss:$16 sps:$4 sm:$0xff]   ;;  %v5332_v30 = vld [vmem:[%s7514_s1 + $0x884] ss:$16 sps:$4 sm:$0xff]  }
  0xd4   :  { %3294 = vmatprep.subr.bf16.mxu0 %v5240_v31  ;;  %3622 = vmatprep.subr.bf16.mxu1 %v5243_v32  ;;  %v5335_v31 = vld [vmem:[%s7514_s1 + $0x88c] ss:$16 sps:$4 sm:$0xff]   ;;  %v5330_v32 = vld [vmem:[%s7514_s1 + $0x880] ss:$16 sps:$4 sm:$0xff]  }
  0xd7   :  { %3295 = vmatpush1.bf16.msra.mxu0 %v5238_v33  ;;  %3623 = vmatpush1.bf16.msra.mxu1 %v5241_v34  ;;  %v5333_v33 = vld [vmem:[%s7514_s1 + $0x888] ss:$16 sps:$4 sm:$0xff]   ;;  %v5338_v34 = vld [vmem:[%s7514_s1 + $0x8a4] ss:$16 sps:$4 sm:$0xff]  }
  0xd8   :  { %3296 = vmatprep.subr.bf16.mxu0 %v5246_v35  ;;  %3624 = vmatprep.subr.bf16.mxu1 %v5249_v36  ;;  %v5341_v35 = vld [vmem:[%s7514_s1 + $0x8ac] ss:$16 sps:$4 sm:$0xff]   ;;  %v5336_v36 = vld [vmem:[%s7514_s1 + $0x8a0] ss:$16 sps:$4 sm:$0xff]  }
  0xdb   :  { %3297 = vmatpush1.bf16.msra.mxu0 %v5244_v37  ;;  %3625 = vmatpush1.bf16.msra.mxu1 %v5247_v38  ;;  %v5339_v37 = vld [vmem:[%s7514_s1 + $0x8a8] ss:$16 sps:$4 sm:$0xff]   ;;  %v5344_v38 = vld [vmem:[%s7514_s1 + $0x8c4] ss:$16 sps:$4 sm:$0xff]  }
  0xdc   :  { %3298 = vmatprep.subr.bf16.mxu0 %v5252_v39  ;;  %3626 = vmatprep.subr.bf16.mxu1 %v5255_v40  ;;  %v5347_v39 = vld [vmem:[%s7514_s1 + $0x8cc] ss:$16 sps:$4 sm:$0xff]   ;;  %v5342_v40 = vld [vmem:[%s7514_s1 + $0x8c0] ss:$16 sps:$4 sm:$0xff]  }
  0xdf   :  { %3299 = vmatpush1.bf16.msra.mxu0 %v5250_v41  ;;  %3627 = vmatpush1.bf16.msra.mxu1 %v5253_v42  ;;  %v5345_v41 = vld [vmem:[%s7514_s1 + $0x8c8] ss:$16 sps:$4 sm:$0xff]   ;;  %v5350_v42 = vld [vmem:[%s7514_s1 + $0x8e4] ss:$16 sps:$4 sm:$0xff]  }
  0xe0   :  { %3300 = vmatprep.subr.bf16.mxu0 %v5258_v43  ;;  %3628 = vmatprep.subr.bf16.mxu1 %v5261_v44  ;;  %v5353_v43 = vld [vmem:[%s7514_s1 + $0x8ec] ss:$16 sps:$4 sm:$0xff]   ;;  %v5348_v44 = vld [vmem:[%s7514_s1 + $0x8e0] ss:$16 sps:$4 sm:$0xff]  }
  0xe3   :  { %3301 = vmatpush1.bf16.msra.mxu0 %v5256_v45  ;;  %3629 = vmatpush1.bf16.msra.mxu1 %v5259_v46  ;;  %v5351_v45 = vld [vmem:[%s7514_s1 + $0x8e8] ss:$16 sps:$4 sm:$0xff]   ;;  %v5356_v46 = vld [vmem:[%s7514_s1 + $0x904] ss:$16 sps:$4 sm:$0xff]  }
  0xe4   :  { %3302 = vmatprep.subr.bf16.mxu0 %v5264_v47  ;;  %3630 = vmatprep.subr.bf16.mxu1 %v5267_v48  ;;  %v5359_v47 = vld [vmem:[%s7514_s1 + $0x90c] ss:$16 sps:$4 sm:$0xff]   ;;  %v5354_v48 = vld [vmem:[%s7514_s1 + $0x900] ss:$16 sps:$4 sm:$0xff]  }
  0xe7   :  { %3303 = vmatpush1.bf16.msra.mxu0 %v5262_v49  ;;  %3631 = vmatpush1.bf16.msra.mxu1 %v5265_v50  ;;  %v5357_v49 = vld [vmem:[%s7514_s1 + $0x908] ss:$16 sps:$4 sm:$0xff]   ;;  %v5362_v50 = vld [vmem:[%s7514_s1 + $0x924] ss:$16 sps:$4 sm:$0xff]  }
  0xe8   :  { %3304 = vmatprep.subr.bf16.mxu0 %v5270_v51  ;;  %3632 = vmatprep.subr.bf16.mxu1 %v5273_v52  ;;  %v5365_v51 = vld [vmem:[%s7514_s1 + $0x92c] ss:$16 sps:$4 sm:$0xff]   ;;  %v5360_v52 = vld [vmem:[%s7514_s1 + $0x920] ss:$16 sps:$4 sm:$0xff]  }
  0xeb   :  { %3305 = vmatpush1.bf16.msra.mxu0 %v5268_v53  ;;  %3633 = vmatpush1.bf16.msra.mxu1 %v5271_v54  ;;  %v5363_v53 = vld [vmem:[%s7514_s1 + $0x928] ss:$16 sps:$4 sm:$0xff]   ;;  %v5368_v54 = vld [vmem:[%s7514_s1 + $0x944] ss:$16 sps:$4 sm:$0xff]  }
  0xec   :  { %3306 = vmatprep.subr.bf16.mxu0 %v5276_v55  ;;  %3634 = vmatprep.subr.bf16.mxu1 %v5279_v56  ;;  %v5371_v55 = vld [vmem:[%s7514_s1 + $0x94c] ss:$16 sps:$4 sm:$0xff]   ;;  %v5366_v56 = vld [vmem:[%s7514_s1 + $0x940] ss:$16 sps:$4 sm:$0xff]  }
  0xef   :  { %3307 = vmatpush1.bf16.msra.mxu0 %v5274_v57  ;;  %3635 = vmatpush1.bf16.msra.mxu1 %v5277_v58  ;;  %v5369_v57 = vld [vmem:[%s7514_s1 + $0x948] ss:$16 sps:$4 sm:$0xff]   ;;  %v5374_v58 = vld [vmem:[%s7514_s1 + $0x964] ss:$16 sps:$4 sm:$0xff]  }
  0xf0   :  { %3308 = vmatprep.subr.bf16.mxu0 %v5282_v59  ;;  %3636 = vmatprep.subr.bf16.mxu1 %v5285_v60  ;;  %v5377_v59 = vld [vmem:[%s7514_s1 + $0x96c] ss:$16 sps:$4 sm:$0xff]   ;;  %v5372_v60 = vld [vmem:[%s7514_s1 + $0x960] ss:$16 sps:$4 sm:$0xff]  }
  0xf3   :  { %3309 = vmatpush1.bf16.msra.mxu0 %v5280_v61  ;;  %3637 = vmatpush1.bf16.msra.mxu1 %v5283_v62  ;;  %v5375_v61 = vld [vmem:[%s7514_s1 + $0x968] ss:$16 sps:$4 sm:$0xff]   ;;  %v5380_v62 = vld [vmem:[%s7514_s1 + $0x984] ss:$16 sps:$4 sm:$0xff]  }
  0xf4   :  { %3310 = vmatprep.subr.bf16.mxu0 %v5288_v63  ;;  %3638 = vmatprep.subr.bf16.mxu1 %v5291_v0  ;;  %v5383_v63 = vld [vmem:[%s7514_s1 + $0x98c] ss:$16 sps:$4 sm:$0xff]   ;;  %v5378_v0 = vld [vmem:[%s7514_s1 + $0x980] ss:$16 sps:$4 sm:$0xff]  }
  0xf7   :  { %3311 = vmatpush1.bf16.msra.mxu0 %v5286_v1  ;;  %3639 = vmatpush1.bf16.msra.mxu1 %v5289_v2  ;;  %v5381_v1 = vld [vmem:[%s7514_s1 + $0x988] ss:$16 sps:$4 sm:$0xff]   ;;  %v5386_v2 = vld [vmem:[%s7514_s1 + $0x9a4] ss:$16 sps:$4 sm:$0xff]  }
  0xf8   :  { %3312 = vmatprep.subr.bf16.mxu0 %v5294_v3  ;;  %3640 = vmatprep.subr.bf16.mxu1 %v5297_v4  ;;  %v5389_v3 = vld [vmem:[%s7514_s1 + $0x9ac] ss:$16 sps:$4 sm:$0xff]   ;;  %v5384_v4 = vld [vmem:[%s7514_s1 + $0x9a0] ss:$16 sps:$4 sm:$0xff]  }
  0xfb   :  { %3313 = vmatpush1.bf16.msra.mxu0 %v5292_v5  ;;  %3641 = vmatpush1.bf16.msra.mxu1 %v5295_v6  ;;  %v5387_v5 = vld [vmem:[%s7514_s1 + $0x9a8] ss:$16 sps:$4 sm:$0xff]   ;;  %v5392_v6 = vld [vmem:[%s7514_s1 + $0x9c4] ss:$16 sps:$4 sm:$0xff]  }
  0xfc   :  { %3314 = vmatprep.subr.bf16.mxu0 %v5300_v7  ;;  %3642 = vmatprep.subr.bf16.mxu1 %v5303_v8  ;;  %v5395_v7 = vld [vmem:[%s7514_s1 + $0x9cc] ss:$16 sps:$4 sm:$0xff]   ;;  %v5390_v8 = vld [vmem:[%s7514_s1 + $0x9c0] ss:$16 sps:$4 sm:$0xff]  }
  0xff   :  { %3315 = vmatpush1.bf16.msra.mxu0 %v5298_v9  ;;  %3643 = vmatpush1.bf16.msra.mxu1 %v5301_v10  ;;  %v5393_v9 = vld [vmem:[%s7514_s1 + $0x9c8] ss:$16 sps:$4 sm:$0xff]   ;;  %v5398_v10 = vld [vmem:[%s7514_s1 + $0x9e4] ss:$16 sps:$4 sm:$0xff]  }
 0x100   :  { %3325 = vmatprep.subr.bf16.mxu0 %v5308_v12  ;;  %3653 = vmatprep.subr.bf16.mxu1 %v5311_v13  ;;  %v5401_v12 = vld [vmem:[%s7514_s1 + $0x9ec] ss:$16 sps:$4 sm:$0xff]   ;;  %v5396_v13 = vld [vmem:[%s7514_s1 + $0x9e0] ss:$16 sps:$4 sm:$0xff]  }
 0x102   :  { %3317 = vmatmul.mubr.bf16.vlgmr.msra.gmra.mrb[0].mxu0 %v4258_v11  ;;  %3645 = vmatmul.mubr.bf16.vlgmr.msra.gmra.mrb[0].mxu1 %v4258_v11  ;;  %v5406_v11 = vld [vmem:[%s7514_s1 + $0xa04] ss:$16 sps:$4 sm:$0xff]  }
 0x103   :  { %3326 = vmatpush1.bf16.msra.mxu0 %v5306_v15  ;;  %3654 = vmatpush1.bf16.msra.mxu1 %v5309_v17  ;;  %v5399_v15 = vld [vmem:[%s7514_s1 + $0x9e8] ss:$16 sps:$4 sm:$0xff]   ;;  %v5409_v17 = vld [vmem:[%s7514_s1 + $0xa0c] ss:$16 sps:$4 sm:$0xff]  }
 0x104   :  { %3327 = vmatprep.subr.bf16.mxu0 %v5314_v18  ;;  %3655 = vmatprep.subr.bf16.mxu1 %v5317_v14  ;;  %v6800_v18 = vld [vmem:[%s7513_s0 + $0x28] sm:$0xff]  ;;  %v4260_v14 = vcombine.low %v6604_v16, %v6604_v16 }
 0x105   :  { %3357 = vmatprep.mubr.bf16.mxu0 %v4261_v19  ;;  %3685 = vmatprep.mubr.bf16.mxu1 %v4261_v19  ;;  %v5404_v19 = vld [vmem:[%s7514_s1 + $0xa00] ss:$16 sps:$4 sm:$0xff]   ;;  %v5415_v16 = vld [vmem:[%s7514_s1 + $0xa2c] ss:$16 sps:$4 sm:$0xff]  }
 0x107   :  { %3328 = vmatpush1.bf16.msra.mxu0 %v5312_v20  ;;  %3656 = vmatpush1.bf16.msra.mxu1 %v5315_v21  ;;  %v5407_v20 = vld [vmem:[%s7514_s1 + $0xa08] ss:$16 sps:$4 sm:$0xff]   ;;  %v5412_v21 = vld [vmem:[%s7514_s1 + $0xa24] ss:$16 sps:$4 sm:$0xff]  }
 0x108   :  { %3329 = vmatprep.subr.bf16.mxu0 %v5320_v22  ;;  %3657 = vmatprep.subr.bf16.mxu1 %v5323_v23  ;;  %v4263_v22 = vcombine.high %v6800_v18, %v6800_v18  ;;  %v5410_v23 = vld [vmem:[%s7514_s1 + $0xa20] ss:$16 sps:$4 sm:$0xff]  }
 0x10b   :  { %3330 = vmatpush1.bf16.msra.mxu0 %v5318_v24  ;;  %3658 = vmatpush1.bf16.msra.mxu1 %v5321_v25  ;;  %v5413_v24 = vld [vmem:[%s7514_s1 + $0xa28] ss:$16 sps:$4 sm:$0xff]   ;;  %v5418_v25 = vld [vmem:[%s7514_s1 + $0xa44] ss:$16 sps:$4 sm:$0xff]  }
 0x10c   :  { %3331 = vmatprep.subr.bf16.mxu0 %v5326_v26  ;;  %3659 = vmatprep.subr.bf16.mxu1 %v5329_v27  ;;  %v5421_v26 = vld [vmem:[%s7514_s1 + $0xa4c] ss:$16 sps:$4 sm:$0xff]   ;;  %v5416_v27 = vld [vmem:[%s7514_s1 + $0xa40] ss:$16 sps:$4 sm:$0xff]  }
 0x10f   :  { %3332 = vmatpush1.bf16.msra.mxu0 %v5324_v28  ;;  %3660 = vmatpush1.bf16.msra.mxu1 %v5327_v29  ;;  %v5419_v28 = vld [vmem:[%s7514_s1 + $0xa48] ss:$16 sps:$4 sm:$0xff]   ;;  %v5424_v29 = vld [vmem:[%s7514_s1 + $0xa64] ss:$16 sps:$4 sm:$0xff]  }
 0x110   :  { %3333 = vmatprep.subr.bf16.mxu0 %v5332_v30  ;;  %3661 = vmatprep.subr.bf16.mxu1 %v5335_v31  ;;  %v5427_v30 = vld [vmem:[%s7514_s1 + $0xa6c] ss:$16 sps:$4 sm:$0xff]   ;;  %v5422_v31 = vld [vmem:[%s7514_s1 + $0xa60] ss:$16 sps:$4 sm:$0xff]  }
 0x113   :  { %3334 = vmatpush1.bf16.msra.mxu0 %v5330_v32  ;;  %3662 = vmatpush1.bf16.msra.mxu1 %v5333_v33  ;;  %v5425_v32 = vld [vmem:[%s7514_s1 + $0xa68] ss:$16 sps:$4 sm:$0xff]   ;;  %v5430_v33 = vld [vmem:[%s7514_s1 + $0xa84] ss:$16 sps:$4 sm:$0xff]  }
 0x114   :  { %3335 = vmatprep.subr.bf16.mxu0 %v5338_v34  ;;  %3663 = vmatprep.subr.bf16.mxu1 %v5341_v35  ;;  %v5433_v34 = vld [vmem:[%s7514_s1 + $0xa8c] ss:$16 sps:$4 sm:$0xff]   ;;  %v5428_v35 = vld [vmem:[%s7514_s1 + $0xa80] ss:$16 sps:$4 sm:$0xff]  }
 0x117   :  { %3336 = vmatpush1.bf16.msra.mxu0 %v5336_v36  ;;  %3664 = vmatpush1.bf16.msra.mxu1 %v5339_v37  ;;  %v5431_v36 = vld [vmem:[%s7514_s1 + $0xa88] ss:$16 sps:$4 sm:$0xff]   ;;  %v5436_v37 = vld [vmem:[%s7514_s1 + $0xaa4] ss:$16 sps:$4 sm:$0xff]  }
 0x118   :  { %3337 = vmatprep.subr.bf16.mxu0 %v5344_v38  ;;  %3665 = vmatprep.subr.bf16.mxu1 %v5347_v39  ;;  %v5439_v38 = vld [vmem:[%s7514_s1 + $0xaac] ss:$16 sps:$4 sm:$0xff]   ;;  %v5434_v39 = vld [vmem:[%s7514_s1 + $0xaa0] ss:$16 sps:$4 sm:$0xff]  }
 0x11b   :  { %3338 = vmatpush1.bf16.msra.mxu0 %v5342_v40  ;;  %3666 = vmatpush1.bf16.msra.mxu1 %v5345_v41  ;;  %v5437_v40 = vld [vmem:[%s7514_s1 + $0xaa8] ss:$16 sps:$4 sm:$0xff]   ;;  %v5442_v41 = vld [vmem:[%s7514_s1 + $0xac4] ss:$16 sps:$4 sm:$0xff]  }
 0x11c   :  { %3339 = vmatprep.subr.bf16.mxu0 %v5350_v42  ;;  %3667 = vmatprep.subr.bf16.mxu1 %v5353_v43  ;;  %v5445_v42 = vld [vmem:[%s7514_s1 + $0xacc] ss:$16 sps:$4 sm:$0xff]   ;;  %v5440_v43 = vld [vmem:[%s7514_s1 + $0xac0] ss:$16 sps:$4 sm:$0xff]  }
 0x11f   :  { %3340 = vmatpush1.bf16.msra.mxu0 %v5348_v44  ;;  %3668 = vmatpush1.bf16.msra.mxu1 %v5351_v45  ;;  %v5443_v44 = vld [vmem:[%s7514_s1 + $0xac8] ss:$16 sps:$4 sm:$0xff]   ;;  %v5448_v45 = vld [vmem:[%s7514_s1 + $0xae4] ss:$16 sps:$4 sm:$0xff]  }
 0x120   :  { %3341 = vmatprep.subr.bf16.mxu0 %v5356_v46  ;;  %3669 = vmatprep.subr.bf16.mxu1 %v5359_v47  ;;  %v5451_v46 = vld [vmem:[%s7514_s1 + $0xaec] ss:$16 sps:$4 sm:$0xff]   ;;  %v5446_v47 = vld [vmem:[%s7514_s1 + $0xae0] ss:$16 sps:$4 sm:$0xff]  }
 0x123   :  { %3342 = vmatpush1.bf16.msra.mxu0 %v5354_v48  ;;  %3670 = vmatpush1.bf16.msra.mxu1 %v5357_v49  ;;  %v5449_v48 = vld [vmem:[%s7514_s1 + $0xae8] ss:$16 sps:$4 sm:$0xff]   ;;  %v5454_v49 = vld [vmem:[%s7514_s1 + $0xb04] ss:$16 sps:$4 sm:$0xff]  }
 0x124   :  { %3343 = vmatprep.subr.bf16.mxu0 %v5362_v50  ;;  %3671 = vmatprep.subr.bf16.mxu1 %v5365_v51  ;;  %v5457_v50 = vld [vmem:[%s7514_s1 + $0xb0c] ss:$16 sps:$4 sm:$0xff]   ;;  %v5452_v51 = vld [vmem:[%s7514_s1 + $0xb00] ss:$16 sps:$4 sm:$0xff]  }
 0x127   :  { %3344 = vmatpush1.bf16.msra.mxu0 %v5360_v52  ;;  %3672 = vmatpush1.bf16.msra.mxu1 %v5363_v53  ;;  %v5455_v52 = vld [vmem:[%s7514_s1 + $0xb08] ss:$16 sps:$4 sm:$0xff]   ;;  %v5460_v53 = vld [vmem:[%s7514_s1 + $0xb24] ss:$16 sps:$4 sm:$0xff]  }
 0x128   :  { %3345 = vmatprep.subr.bf16.mxu0 %v5368_v54  ;;  %3673 = vmatprep.subr.bf16.mxu1 %v5371_v55  ;;  %v5463_v54 = vld [vmem:[%s7514_s1 + $0xb2c] ss:$16 sps:$4 sm:$0xff]  }
 0x12b   :  { %3346 = vmatpush1.bf16.msra.mxu0 %v5366_v56  ;;  %3674 = vmatpush1.bf16.msra.mxu1 %v5369_v57 }
 0x12c   :  { %3347 = vmatprep.subr.bf16.mxu0 %v5374_v58  ;;  %3675 = vmatprep.subr.bf16.mxu1 %v5377_v59 }
 0x12f   :  { %3348 = vmatpush1.bf16.msra.mxu0 %v5372_v60  ;;  %3676 = vmatpush1.bf16.msra.mxu1 %v5375_v61 }
 0x130   :  { %3349 = vmatprep.subr.bf16.mxu0 %v5380_v62  ;;  %3677 = vmatprep.subr.bf16.mxu1 %v5383_v63 }
 0x133   :  { %3350 = vmatpush1.bf16.msra.mxu0 %v5378_v0  ;;  %3678 = vmatpush1.bf16.msra.mxu1 %v5381_v1 }
 0x134   :  { %3351 = vmatprep.subr.bf16.mxu0 %v5386_v2  ;;  %3679 = vmatprep.subr.bf16.mxu1 %v5389_v3 }
 0x137   :  { %3352 = vmatpush1.bf16.msra.mxu0 %v5384_v4  ;;  %3680 = vmatpush1.bf16.msra.mxu1 %v5387_v5 }
 0x138   :  { %3353 = vmatprep.subr.bf16.mxu0 %v5392_v6  ;;  %3681 = vmatprep.subr.bf16.mxu1 %v5395_v7 }
 0x13b   :  { %3354 = vmatpush1.bf16.msra.mxu0 %v5390_v8  ;;  %3682 = vmatpush1.bf16.msra.mxu1 %v5393_v9 }
 0x13c   :  { %3355 = vmatprep.subr.bf16.mxu0 %v5398_v10  ;;  %3683 = vmatprep.subr.bf16.mxu1 %v5401_v12 }
 0x13f   :  { %3356 = vmatpush1.bf16.msra.mxu0 %v5396_v13  ;;  %3684 = vmatpush1.bf16.msra.mxu1 %v5399_v15 }
 0x140   :  { %3366 = vmatprep.subr.bf16.mxu0 %v5406_v11  ;;  %3694 = vmatprep.subr.bf16.mxu1 %v5409_v17 }
 0x142   :  { %3358 = vmatmul.mubr.bf16.vlgmr.msra.gmra.mrb[0].mxu0 %v4260_v14  ;;  %3686 = vmatmul.mubr.bf16.vlgmr.msra.gmra.mrb[0].mxu1 %v4260_v14 }
 0x143   :  { %3367 = vmatpush1.bf16.msra.mxu0 %v5404_v19  ;;  %3695 = vmatpush1.bf16.msra.mxu1 %v5407_v20 }
 0x144   :  { %3368 = vmatprep.subr.bf16.mxu0 %v5412_v21  ;;  %3696 = vmatprep.subr.bf16.mxu1 %v5415_v16 }
 0x145   :  { %3398 = vmatprep.mubr.bf16.mxu0 %v4263_v22  ;;  %3726 = vmatprep.mubr.bf16.mxu1 %v4263_v22 }
 0x147   :  { %3369 = vmatpush1.bf16.msra.mxu0 %v5410_v23  ;;  %3697 = vmatpush1.bf16.msra.mxu1 %v5413_v24 }
 0x148   :  { %3370 = vmatprep.subr.bf16.mxu0 %v5418_v25  ;;  %3698 = vmatprep.subr.bf16.mxu1 %v5421_v26 }
 0x14b   :  { %3371 = vmatpush1.bf16.msra.mxu0 %v5416_v27  ;;  %3699 = vmatpush1.bf16.msra.mxu1 %v5419_v28 }
 0x14c   :  { %3372 = vmatprep.subr.bf16.mxu0 %v5424_v29  ;;  %3700 = vmatprep.subr.bf16.mxu1 %v5427_v30 }
 0x14f   :  { %3373 = vmatpush1.bf16.msra.mxu0 %v5422_v31  ;;  %3701 = vmatpush1.bf16.msra.mxu1 %v5425_v32 }
 0x150   :  { %3374 = vmatprep.subr.bf16.mxu0 %v5430_v33  ;;  %3702 = vmatprep.subr.bf16.mxu1 %v5433_v34 }
 0x153   :  { %3375 = vmatpush1.bf16.msra.mxu0 %v5428_v35  ;;  %3703 = vmatpush1.bf16.msra.mxu1 %v5431_v36 }
 0x154   :  { %3376 = vmatprep.subr.bf16.mxu0 %v5436_v37  ;;  %3704 = vmatprep.subr.bf16.mxu1 %v5439_v38 }
 0x157   :  { %3377 = vmatpush1.bf16.msra.mxu0 %v5434_v39  ;;  %3705 = vmatpush1.bf16.msra.mxu1 %v5437_v40 }
 0x158   :  { %3378 = vmatprep.subr.bf16.mxu0 %v5442_v41  ;;  %3706 = vmatprep.subr.bf16.mxu1 %v5445_v42 }
 0x15b   :  { %3379 = vmatpush1.bf16.msra.mxu0 %v5440_v43  ;;  %3707 = vmatpush1.bf16.msra.mxu1 %v5443_v44 }
 0x15c   :  { %3380 = vmatprep.subr.bf16.mxu0 %v5448_v45  ;;  %3708 = vmatprep.subr.bf16.mxu1 %v5451_v46 }
 0x15f   :  { %3381 = vmatpush1.bf16.msra.mxu0 %v5446_v47  ;;  %3709 = vmatpush1.bf16.msra.mxu1 %v5449_v48 }
 0x160   :  { %3382 = vmatprep.subr.bf16.mxu0 %v5454_v49  ;;  %3710 = vmatprep.subr.bf16.mxu1 %v5457_v50 }
 0x161   :  { %11 = vsyncpa [#allocation3], 0  ;;  %v5458_v55 = vld [vmem:[%s7514_s1 + $0xb20] ss:$16 sps:$4 sm:$0xff]   ;;  %v5461_v56 = vld [vmem:[%s7514_s1 + $0xb28] ss:$16 sps:$4 sm:$0xff]   ;;  %v4262_v21 = vcombine.low %v6800_v18, %v6800_v18 }
 0x162   :  { %v5466_v57 = vld [vmem:[%s7514_s1 + $0xb44] ss:$16 sps:$4 sm:$0xff]   ;;  %v5469_v58 = vld [vmem:[%s7514_s1 + $0xb4c] ss:$16 sps:$4 sm:$0xff]   ;;  %v5464_v59 = vld [vmem:[%s7514_s1 + $0xb40] ss:$16 sps:$4 sm:$0xff]  }
 0x163   :  { %3383 = vmatpush1.bf16.msra.mxu0 %v5452_v51  ;;  %3711 = vmatpush1.bf16.msra.mxu1 %v5455_v52  ;;  %v5467_v60 = vld [vmem:[%s7514_s1 + $0xb48] ss:$16 sps:$4 sm:$0xff]   ;;  %v5472_v61 = vld [vmem:[%s7514_s1 + $0xb64] ss:$16 sps:$4 sm:$0xff]   ;;  %v5475_v62 = vld [vmem:[%s7514_s1 + $0xb6c] ss:$16 sps:$4 sm:$0xff]  }
 0x164   :  { %3384 = vmatprep.subr.bf16.mxu0 %v5460_v53  ;;  %3712 = vmatprep.subr.bf16.mxu1 %v5463_v54  ;;  %v5470_v63 = vld [vmem:[%s7514_s1 + $0xb60] ss:$16 sps:$4 sm:$0xff]   ;;  %v5473_v0 = vld [vmem:[%s7514_s1 + $0xb68] ss:$16 sps:$4 sm:$0xff]   ;;  %v5478_v1 = vld [vmem:[%s7514_s1 + $0xb84] ss:$16 sps:$4 sm:$0xff]  }
 0x165   :  { %v5481_v2 = vld [vmem:[%s7514_s1 + $0xb8c] ss:$16 sps:$4 sm:$0xff]   ;;  %v5476_v3 = vld [vmem:[%s7514_s1 + $0xb80] ss:$16 sps:$4 sm:$0xff]   ;;  %v5479_v4 = vld [vmem:[%s7514_s1 + $0xb88] ss:$16 sps:$4 sm:$0xff]  }
 0x166   :  { %v5484_v5 = vld [vmem:[%s7514_s1 + $0xba4] ss:$16 sps:$4 sm:$0xff]   ;;  %v5487_v6 = vld [vmem:[%s7514_s1 + $0xbac] ss:$16 sps:$4 sm:$0xff]   ;;  %v5482_v7 = vld [vmem:[%s7514_s1 + $0xba0] ss:$16 sps:$4 sm:$0xff]  }
 0x167   :  { %3385 = vmatpush1.bf16.msra.mxu0 %v5458_v55  ;;  %3713 = vmatpush1.bf16.msra.mxu1 %v5461_v56  ;;  %v5485_v8 = vld [vmem:[%s7514_s1 + $0xba8] ss:$16 sps:$4 sm:$0xff]   ;;  %v5490_v9 = vld [vmem:[%s7514_s1 + $0xbc4] ss:$16 sps:$4 sm:$0xff]   ;;  %v5493_v10 = vld [vmem:[%s7514_s1 + $0xbcc] ss:$16 sps:$4 sm:$0xff]  }
 0x168   :  { %3386 = vmatprep.subr.bf16.mxu0 %v5466_v57  ;;  %3714 = vmatprep.subr.bf16.mxu1 %v5469_v58  ;;  %v5488_v12 = vld [vmem:[%s7514_s1 + $0xbc0] ss:$16 sps:$4 sm:$0xff]   ;;  %v5491_v13 = vld [vmem:[%s7514_s1 + $0xbc8] ss:$16 sps:$4 sm:$0xff]   ;;  %v5496_v15 = vld [vmem:[%s7514_s1 + $0xbe4] ss:$16 sps:$4 sm:$0xff]  }
 0x169   :  { %v5499_v11 = vld [vmem:[%s7514_s1 + $0xbec] ss:$16 sps:$4 sm:$0xff]   ;;  %v5494_v17 = vld [vmem:[%s7514_s1 + $0xbe0] ss:$16 sps:$4 sm:$0xff]   ;;  %v5497_v14 = vld [vmem:[%s7514_s1 + $0xbe8] ss:$16 sps:$4 sm:$0xff]  }
 0x16a   :  { %v5504_v19 = vld [vmem:[%s7514_s1 + $0xc04] ss:$16 sps:$4 sm:$0xff]   ;;  %v5507_v20 = vld [vmem:[%s7514_s1 + $0xc0c] ss:$16 sps:$4 sm:$0xff]   ;;  %v5502_v22 = vld [vmem:[%s7514_s1 + $0xc00] ss:$16 sps:$4 sm:$0xff]  }
 0x16b   :  { %3387 = vmatpush1.bf16.msra.mxu0 %v5464_v59  ;;  %3715 = vmatpush1.bf16.msra.mxu1 %v5467_v60  ;;  %v7003_v16 = vld [vmem:[%s7513_s0 + $0x30] sm:$0xff]  ;;  %v5505_v23 = vld [vmem:[%s7514_s1 + $0xc08] ss:$16 sps:$4 sm:$0xff]   ;;  %v5513_v24 = vld [vmem:[%s7514_s1 + $0xc2c] ss:$16 sps:$4 sm:$0xff]  }
 0x16c   :  { %3388 = vmatprep.subr.bf16.mxu0 %v5472_v61  ;;  %3716 = vmatprep.subr.bf16.mxu1 %v5475_v62  ;;  %v5510_v18 = vld [vmem:[%s7514_s1 + $0xc24] ss:$16 sps:$4 sm:$0xff]   ;;  %v4265_v25 = vcombine.high %v7003_v16, %v7003_v16  ;;  %v5508_v26 = vld [vmem:[%s7514_s1 + $0xc20] ss:$16 sps:$4 sm:$0xff]   ;;  %v5511_v27 = vld [vmem:[%s7514_s1 + $0xc28] ss:$16 sps:$4 sm:$0xff]  }
 0x16d   :  { %v5516_v28 = vld [vmem:[%s7514_s1 + $0xc44] ss:$16 sps:$4 sm:$0xff]   ;;  %v5519_v29 = vld [vmem:[%s7514_s1 + $0xc4c] ss:$16 sps:$4 sm:$0xff]   ;;  %v5514_v30 = vld [vmem:[%s7514_s1 + $0xc40] ss:$16 sps:$4 sm:$0xff]  }
 0x16e   :  { %v5517_v31 = vld [vmem:[%s7514_s1 + $0xc48] ss:$16 sps:$4 sm:$0xff]   ;;  %v5522_v32 = vld [vmem:[%s7514_s1 + $0xc64] ss:$16 sps:$4 sm:$0xff]   ;;  %v5525_v33 = vld [vmem:[%s7514_s1 + $0xc6c] ss:$16 sps:$4 sm:$0xff]  }
 0x16f   :  { %3389 = vmatpush1.bf16.msra.mxu0 %v5470_v63  ;;  %3717 = vmatpush1.bf16.msra.mxu1 %v5473_v0  ;;  %v5520_v34 = vld [vmem:[%s7514_s1 + $0xc60] ss:$16 sps:$4 sm:$0xff]   ;;  %v5523_v35 = vld [vmem:[%s7514_s1 + $0xc68] ss:$16 sps:$4 sm:$0xff]   ;;  %v5528_v36 = vld [vmem:[%s7514_s1 + $0xc84] ss:$16 sps:$4 sm:$0xff]  }
 0x170   :  { %3390 = vmatprep.subr.bf16.mxu0 %v5478_v1  ;;  %3718 = vmatprep.subr.bf16.mxu1 %v5481_v2  ;;  %v5531_v37 = vld [vmem:[%s7514_s1 + $0xc8c] ss:$16 sps:$4 sm:$0xff]   ;;  %v5526_v38 = vld [vmem:[%s7514_s1 + $0xc80] ss:$16 sps:$4 sm:$0xff]   ;;  %v5529_v39 = vld [vmem:[%s7514_s1 + $0xc88] ss:$16 sps:$4 sm:$0xff]  }
 0x171   :  { %v5534_v40 = vld [vmem:[%s7514_s1 + $0xca4] ss:$16 sps:$4 sm:$0xff]   ;;  %v5537_v41 = vld [vmem:[%s7514_s1 + $0xcac] ss:$16 sps:$4 sm:$0xff]   ;;  %v5532_v42 = vld [vmem:[%s7514_s1 + $0xca0] ss:$16 sps:$4 sm:$0xff]  }
 0x172   :  { %v5535_v43 = vld [vmem:[%s7514_s1 + $0xca8] ss:$16 sps:$4 sm:$0xff]   ;;  %v5540_v44 = vld [vmem:[%s7514_s1 + $0xcc4] ss:$16 sps:$4 sm:$0xff]   ;;  %v5543_v45 = vld [vmem:[%s7514_s1 + $0xccc] ss:$16 sps:$4 sm:$0xff]  }
 0x173   :  { %3391 = vmatpush1.bf16.msra.mxu0 %v5476_v3  ;;  %3719 = vmatpush1.bf16.msra.mxu1 %v5479_v4  ;;  %v5538_v46 = vld [vmem:[%s7514_s1 + $0xcc0] ss:$16 sps:$4 sm:$0xff]   ;;  %v5541_v47 = vld [vmem:[%s7514_s1 + $0xcc8] ss:$16 sps:$4 sm:$0xff]   ;;  %v5546_v48 = vld [vmem:[%s7514_s1 + $0xce4] ss:$16 sps:$4 sm:$0xff]  }
 0x174   :  { %3392 = vmatprep.subr.bf16.mxu0 %v5484_v5  ;;  %3720 = vmatprep.subr.bf16.mxu1 %v5487_v6  ;;  %v5549_v49 = vld [vmem:[%s7514_s1 + $0xcec] ss:$16 sps:$4 sm:$0xff]   ;;  %v5544_v50 = vld [vmem:[%s7514_s1 + $0xce0] ss:$16 sps:$4 sm:$0xff]   ;;  %v5547_v51 = vld [vmem:[%s7514_s1 + $0xce8] ss:$16 sps:$4 sm:$0xff]  }
 0x175   :  { %v5552_v52 = vld [vmem:[%s7514_s1 + $0xd04] ss:$16 sps:$4 sm:$0xff]   ;;  %v5555_v53 = vld [vmem:[%s7514_s1 + $0xd0c] ss:$16 sps:$4 sm:$0xff]   ;;  %v5550_v54 = vld [vmem:[%s7514_s1 + $0xd00] ss:$16 sps:$4 sm:$0xff]  }
 0x176   :  { %v5553_v55 = vld [vmem:[%s7514_s1 + $0xd08] ss:$16 sps:$4 sm:$0xff]   ;;  %v5558_v56 = vld [vmem:[%s7514_s1 + $0xd24] ss:$16 sps:$4 sm:$0xff]   ;;  %v5561_v57 = vld [vmem:[%s7514_s1 + $0xd2c] ss:$16 sps:$4 sm:$0xff]  }
 0x177   :  { %3393 = vmatpush1.bf16.msra.mxu0 %v5482_v7  ;;  %3721 = vmatpush1.bf16.msra.mxu1 %v5485_v8  ;;  %v5556_v58 = vld [vmem:[%s7514_s1 + $0xd20] ss:$16 sps:$4 sm:$0xff]   ;;  %v5559_v59 = vld [vmem:[%s7514_s1 + $0xd28] ss:$16 sps:$4 sm:$0xff]   ;;  %v5564_v60 = vld [vmem:[%s7514_s1 + $0xd44] ss:$16 sps:$4 sm:$0xff]  }
 0x178   :  { %3394 = vmatprep.subr.bf16.mxu0 %v5490_v9  ;;  %3722 = vmatprep.subr.bf16.mxu1 %v5493_v10  ;;  %v5567_v61 = vld [vmem:[%s7514_s1 + $0xd4c] ss:$16 sps:$4 sm:$0xff]   ;;  %v5562_v62 = vld [vmem:[%s7514_s1 + $0xd40] ss:$16 sps:$4 sm:$0xff]   ;;  %v5565_v63 = vld [vmem:[%s7514_s1 + $0xd48] ss:$16 sps:$4 sm:$0xff]  }
 0x179   :  { %v5570_v0 = vld [vmem:[%s7514_s1 + $0xd64] ss:$16 sps:$4 sm:$0xff]   ;;  %v5573_v1 = vld [vmem:[%s7514_s1 + $0xd6c] ss:$16 sps:$4 sm:$0xff]   ;;  %v5568_v2 = vld [vmem:[%s7514_s1 + $0xd60] ss:$16 sps:$4 sm:$0xff]  }
 0x17a   :  { %v5571_v3 = vld [vmem:[%s7514_s1 + $0xd68] ss:$16 sps:$4 sm:$0xff]   ;;  %v5576_v4 = vld [vmem:[%s7514_s1 + $0xd84] ss:$16 sps:$4 sm:$0xff]   ;;  %v5579_v5 = vld [vmem:[%s7514_s1 + $0xd8c] ss:$16 sps:$4 sm:$0xff]  }
 0x17b   :  { %3395 = vmatpush1.bf16.msra.mxu0 %v5488_v12  ;;  %3723 = vmatpush1.bf16.msra.mxu1 %v5491_v13  ;;  %v5574_v6 = vld [vmem:[%s7514_s1 + $0xd80] ss:$16 sps:$4 sm:$0xff]   ;;  %v5577_v7 = vld [vmem:[%s7514_s1 + $0xd88] ss:$16 sps:$4 sm:$0xff]   ;;  %v5582_v8 = vld [vmem:[%s7514_s1 + $0xda4] ss:$16 sps:$4 sm:$0xff]  }
 0x17c   :  { %3396 = vmatprep.subr.bf16.mxu0 %v5496_v15  ;;  %3724 = vmatprep.subr.bf16.mxu1 %v5499_v11  ;;  %v5585_v9 = vld [vmem:[%s7514_s1 + $0xdac] ss:$16 sps:$4 sm:$0xff]   ;;  %v5580_v10 = vld [vmem:[%s7514_s1 + $0xda0] ss:$16 sps:$4 sm:$0xff]   ;;  %v5583_v12 = vld [vmem:[%s7514_s1 + $0xda8] ss:$16 sps:$4 sm:$0xff]  }
 0x17d   :  { %v5588_v13 = vld [vmem:[%s7514_s1 + $0xdc4] ss:$16 sps:$4 sm:$0xff]   ;;  %v5591_v15 = vld [vmem:[%s7514_s1 + $0xdcc] ss:$16 sps:$4 sm:$0xff]   ;;  %v5586_v11 = vld [vmem:[%s7514_s1 + $0xdc0] ss:$16 sps:$4 sm:$0xff]  }
 0x17f   :  { %3397 = vmatpush1.bf16.msra.mxu0 %v5494_v17  ;;  %3725 = vmatpush1.bf16.msra.mxu1 %v5497_v14  ;;  %v5589_v17 = vld [vmem:[%s7514_s1 + $0xdc8] ss:$16 sps:$4 sm:$0xff]   ;;  %v5594_v14 = vld [vmem:[%s7514_s1 + $0xde4] ss:$16 sps:$4 sm:$0xff]  }
 0x180   :  { %3407 = vmatprep.subr.bf16.mxu0 %v5504_v19  ;;  %3735 = vmatprep.subr.bf16.mxu1 %v5507_v20  ;;  %v5597_v19 = vld [vmem:[%s7514_s1 + $0xdec] ss:$16 sps:$4 sm:$0xff]   ;;  %v5592_v20 = vld [vmem:[%s7514_s1 + $0xde0] ss:$16 sps:$4 sm:$0xff]  }
 0x182   :  { %3399 = vmatmul.mubr.bf16.vlgmr.msra.gmra.mrb[0].mxu0 %v4262_v21  ;;  %3727 = vmatmul.mubr.bf16.vlgmr.msra.gmra.mrb[0].mxu1 %v4262_v21  ;;  %v5595_v21 = vld [vmem:[%s7514_s1 + $0xde8] ss:$16 sps:$4 sm:$0xff]  }
 0x183   :  { %3408 = vmatpush1.bf16.msra.mxu0 %v5502_v22  ;;  %3736 = vmatpush1.bf16.msra.mxu1 %v5505_v23  ;;  %v5602_v22 = vld [vmem:[%s7514_s1 + $0xe04] ss:$16 sps:$4 sm:$0xff]   ;;  %v5605_v23 = vld [vmem:[%s7514_s1 + $0xe0c] ss:$16 sps:$4 sm:$0xff]  }
 0x184   :  { %3409 = vmatprep.subr.bf16.mxu0 %v5510_v18  ;;  %3737 = vmatprep.subr.bf16.mxu1 %v5513_v24  ;;  %v4264_v18 = vcombine.low %v7003_v16, %v7003_v16  ;;  %v7204_v24 = vld [vmem:[%s7513_s0 + $0x38] sm:$0xff]  ;;  %v5608_v16 = vld [vmem:[%s7514_s1 + $0xe24] ss:$16 sps:$4 sm:$0xff]  }
 0x185   :  { %3439 = vmatprep.mubr.bf16.mxu0 %v4265_v25  ;;  %3767 = vmatprep.mubr.bf16.mxu1 %v4265_v25  ;;  %v5600_v25 = vld [vmem:[%s7514_s1 + $0xe00] ss:$16 sps:$4 sm:$0xff]  }
 0x187   :  { %3410 = vmatpush1.bf16.msra.mxu0 %v5508_v26  ;;  %3738 = vmatpush1.bf16.msra.mxu1 %v5511_v27  ;;  %v5603_v26 = vld [vmem:[%s7514_s1 + $0xe08] ss:$16 sps:$4 sm:$0xff]   ;;  %v5611_v27 = vld [vmem:[%s7514_s1 + $0xe2c] ss:$16 sps:$4 sm:$0xff]  }
 0x188   :  { %3411 = vmatprep.subr.bf16.mxu0 %v5516_v28  ;;  %3739 = vmatprep.subr.bf16.mxu1 %v5519_v29  ;;  %v4267_v28 = vcombine.high %v7204_v24, %v7204_v24  ;;  %v5606_v29 = vld [vmem:[%s7514_s1 + $0xe20] ss:$16 sps:$4 sm:$0xff]  }
 0x18b   :  { %3412 = vmatpush1.bf16.msra.mxu0 %v5514_v30  ;;  %3740 = vmatpush1.bf16.msra.mxu1 %v5517_v31  ;;  %v5609_v30 = vld [vmem:[%s7514_s1 + $0xe28] ss:$16 sps:$4 sm:$0xff]   ;;  %v5614_v31 = vld [vmem:[%s7514_s1 + $0xe44] ss:$16 sps:$4 sm:$0xff]  }
 0x18c   :  { %3413 = vmatprep.subr.bf16.mxu0 %v5522_v32  ;;  %3741 = vmatprep.subr.bf16.mxu1 %v5525_v33  ;;  %v5617_v32 = vld [vmem:[%s7514_s1 + $0xe4c] ss:$16 sps:$4 sm:$0xff]   ;;  %v5612_v33 = vld [vmem:[%s7514_s1 + $0xe40] ss:$16 sps:$4 sm:$0xff]  }
 0x18f   :  { %3414 = vmatpush1.bf16.msra.mxu0 %v5520_v34  ;;  %3742 = vmatpush1.bf16.msra.mxu1 %v5523_v35  ;;  %v5615_v34 = vld [vmem:[%s7514_s1 + $0xe48] ss:$16 sps:$4 sm:$0xff]   ;;  %v5620_v35 = vld [vmem:[%s7514_s1 + $0xe64] ss:$16 sps:$4 sm:$0xff]  }
 0x190   :  { %3415 = vmatprep.subr.bf16.mxu0 %v5528_v36  ;;  %3743 = vmatprep.subr.bf16.mxu1 %v5531_v37  ;;  %v5623_v36 = vld [vmem:[%s7514_s1 + $0xe6c] ss:$16 sps:$4 sm:$0xff]   ;;  %v5618_v37 = vld [vmem:[%s7514_s1 + $0xe60] ss:$16 sps:$4 sm:$0xff]  }
 0x193   :  { %3416 = vmatpush1.bf16.msra.mxu0 %v5526_v38  ;;  %3744 = vmatpush1.bf16.msra.mxu1 %v5529_v39  ;;  %v5621_v38 = vld [vmem:[%s7514_s1 + $0xe68] ss:$16 sps:$4 sm:$0xff]   ;;  %v5626_v39 = vld [vmem:[%s7514_s1 + $0xe84] ss:$16 sps:$4 sm:$0xff]  }
 0x194   :  { %3417 = vmatprep.subr.bf16.mxu0 %v5534_v40  ;;  %3745 = vmatprep.subr.bf16.mxu1 %v5537_v41  ;;  %v5629_v40 = vld [vmem:[%s7514_s1 + $0xe8c] ss:$16 sps:$4 sm:$0xff]   ;;  %v5624_v41 = vld [vmem:[%s7514_s1 + $0xe80] ss:$16 sps:$4 sm:$0xff]  }
 0x197   :  { %3418 = vmatpush1.bf16.msra.mxu0 %v5532_v42  ;;  %3746 = vmatpush1.bf16.msra.mxu1 %v5535_v43  ;;  %v5627_v42 = vld [vmem:[%s7514_s1 + $0xe88] ss:$16 sps:$4 sm:$0xff]   ;;  %v5632_v43 = vld [vmem:[%s7514_s1 + $0xea4] ss:$16 sps:$4 sm:$0xff]  }
 0x198   :  { %3419 = vmatprep.subr.bf16.mxu0 %v5540_v44  ;;  %3747 = vmatprep.subr.bf16.mxu1 %v5543_v45  ;;  %v5635_v44 = vld [vmem:[%s7514_s1 + $0xeac] ss:$16 sps:$4 sm:$0xff]   ;;  %v5630_v45 = vld [vmem:[%s7514_s1 + $0xea0] ss:$16 sps:$4 sm:$0xff]  }
 0x19b   :  { %3420 = vmatpush1.bf16.msra.mxu0 %v5538_v46  ;;  %3748 = vmatpush1.bf16.msra.mxu1 %v5541_v47  ;;  %v5633_v46 = vld [vmem:[%s7514_s1 + $0xea8] ss:$16 sps:$4 sm:$0xff]   ;;  %v5638_v47 = vld [vmem:[%s7514_s1 + $0xec4] ss:$16 sps:$4 sm:$0xff]  }
 0x19c   :  { %3421 = vmatprep.subr.bf16.mxu0 %v5546_v48  ;;  %3749 = vmatprep.subr.bf16.mxu1 %v5549_v49  ;;  %v5641_v48 = vld [vmem:[%s7514_s1 + $0xecc] ss:$16 sps:$4 sm:$0xff]   ;;  %v5636_v49 = vld [vmem:[%s7514_s1 + $0xec0] ss:$16 sps:$4 sm:$0xff]  }
 0x19f   :  { %3422 = vmatpush1.bf16.msra.mxu0 %v5544_v50  ;;  %3750 = vmatpush1.bf16.msra.mxu1 %v5547_v51  ;;  %v5639_v50 = vld [vmem:[%s7514_s1 + $0xec8] ss:$16 sps:$4 sm:$0xff]   ;;  %v5644_v51 = vld [vmem:[%s7514_s1 + $0xee4] ss:$16 sps:$4 sm:$0xff]  }
 0x1a0   :  { %3423 = vmatprep.subr.bf16.mxu0 %v5552_v52  ;;  %3751 = vmatprep.subr.bf16.mxu1 %v5555_v53  ;;  %v5647_v52 = vld [vmem:[%s7514_s1 + $0xeec] ss:$16 sps:$4 sm:$0xff]   ;;  %v5642_v53 = vld [vmem:[%s7514_s1 + $0xee0] ss:$16 sps:$4 sm:$0xff]  }
 0x1a3   :  { %3424 = vmatpush1.bf16.msra.mxu0 %v5550_v54  ;;  %3752 = vmatpush1.bf16.msra.mxu1 %v5553_v55  ;;  %v5645_v54 = vld [vmem:[%s7514_s1 + $0xee8] ss:$16 sps:$4 sm:$0xff]   ;;  %v5650_v55 = vld [vmem:[%s7514_s1 + $0xf04] ss:$16 sps:$4 sm:$0xff]  }
 0x1a4   :  { %3425 = vmatprep.subr.bf16.mxu0 %v5558_v56  ;;  %3753 = vmatprep.subr.bf16.mxu1 %v5561_v57  ;;  %v5653_v56 = vld [vmem:[%s7514_s1 + $0xf0c] ss:$16 sps:$4 sm:$0xff]   ;;  %v5648_v57 = vld [vmem:[%s7514_s1 + $0xf00] ss:$16 sps:$4 sm:$0xff]  }
 0x1a7   :  { %3426 = vmatpush1.bf16.msra.mxu0 %v5556_v58  ;;  %3754 = vmatpush1.bf16.msra.mxu1 %v5559_v59  ;;  %v5651_v58 = vld [vmem:[%s7514_s1 + $0xf08] ss:$16 sps:$4 sm:$0xff]   ;;  %v5656_v59 = vld [vmem:[%s7514_s1 + $0xf24] ss:$16 sps:$4 sm:$0xff]  }
 0x1a8   :  { %3427 = vmatprep.subr.bf16.mxu0 %v5564_v60  ;;  %3755 = vmatprep.subr.bf16.mxu1 %v5567_v61  ;;  %v5659_v60 = vld [vmem:[%s7514_s1 + $0xf2c] ss:$16 sps:$4 sm:$0xff]   ;;  %v5654_v61 = vld [vmem:[%s7514_s1 + $0xf20] ss:$16 sps:$4 sm:$0xff]  }
 0x1ab   :  { %3428 = vmatpush1.bf16.msra.mxu0 %v5562_v62  ;;  %3756 = vmatpush1.bf16.msra.mxu1 %v5565_v63  ;;  %v5657_v62 = vld [vmem:[%s7514_s1 + $0xf28] ss:$16 sps:$4 sm:$0xff]   ;;  %v5662_v63 = vld [vmem:[%s7514_s1 + $0xf44] ss:$16 sps:$4 sm:$0xff]  }
 0x1ac   :  { %3429 = vmatprep.subr.bf16.mxu0 %v5570_v0  ;;  %3757 = vmatprep.subr.bf16.mxu1 %v5573_v1  ;;  %v5665_v0 = vld [vmem:[%s7514_s1 + $0xf4c] ss:$16 sps:$4 sm:$0xff]   ;;  %v5660_v1 = vld [vmem:[%s7514_s1 + $0xf40] ss:$16 sps:$4 sm:$0xff]  }
 0x1af   :  { %3430 = vmatpush1.bf16.msra.mxu0 %v5568_v2  ;;  %3758 = vmatpush1.bf16.msra.mxu1 %v5571_v3  ;;  %v5663_v2 = vld [vmem:[%s7514_s1 + $0xf48] ss:$16 sps:$4 sm:$0xff]   ;;  %v5668_v3 = vld [vmem:[%s7514_s1 + $0xf64] ss:$16 sps:$4 sm:$0xff]  }
 0x1b0   :  { %3431 = vmatprep.subr.bf16.mxu0 %v5576_v4  ;;  %3759 = vmatprep.subr.bf16.mxu1 %v5579_v5  ;;  %v5671_v4 = vld [vmem:[%s7514_s1 + $0xf6c] ss:$16 sps:$4 sm:$0xff]   ;;  %v5666_v5 = vld [vmem:[%s7514_s1 + $0xf60] ss:$16 sps:$4 sm:$0xff]  }
 0x1b3   :  { %3432 = vmatpush1.bf16.msra.mxu0 %v5574_v6  ;;  %3760 = vmatpush1.bf16.msra.mxu1 %v5577_v7  ;;  %v5669_v6 = vld [vmem:[%s7514_s1 + $0xf68] ss:$16 sps:$4 sm:$0xff]   ;;  %v5674_v7 = vld [vmem:[%s7514_s1 + $0xf84] ss:$16 sps:$4 sm:$0xff]  }
 0x1b4   :  { %3433 = vmatprep.subr.bf16.mxu0 %v5582_v8  ;;  %3761 = vmatprep.subr.bf16.mxu1 %v5585_v9  ;;  %v5677_v8 = vld [vmem:[%s7514_s1 + $0xf8c] ss:$16 sps:$4 sm:$0xff]   ;;  %v5672_v9 = vld [vmem:[%s7514_s1 + $0xf80] ss:$16 sps:$4 sm:$0xff]  }
 0x1b7   :  { %3434 = vmatpush1.bf16.msra.mxu0 %v5580_v10  ;;  %3762 = vmatpush1.bf16.msra.mxu1 %v5583_v12  ;;  %v5675_v10 = vld [vmem:[%s7514_s1 + $0xf88] ss:$16 sps:$4 sm:$0xff]   ;;  %v5680_v12 = vld [vmem:[%s7514_s1 + $0xfa4] ss:$16 sps:$4 sm:$0xff]  }
 0x1b8   :  { %3435 = vmatprep.subr.bf16.mxu0 %v5588_v13  ;;  %3763 = vmatprep.subr.bf16.mxu1 %v5591_v15  ;;  %v5683_v13 = vld [vmem:[%s7514_s1 + $0xfac] ss:$16 sps:$4 sm:$0xff]   ;;  %v5678_v15 = vld [vmem:[%s7514_s1 + $0xfa0] ss:$16 sps:$4 sm:$0xff]  }
 0x1bb   :  { %3436 = vmatpush1.bf16.msra.mxu0 %v5586_v11  ;;  %3764 = vmatpush1.bf16.msra.mxu1 %v5589_v17  ;;  %v5681_v11 = vld [vmem:[%s7514_s1 + $0xfa8] ss:$16 sps:$4 sm:$0xff]   ;;  %v5686_v17 = vld [vmem:[%s7514_s1 + $0xfc4] ss:$16 sps:$4 sm:$0xff]  }
 0x1bc   :  { %3437 = vmatprep.subr.bf16.mxu0 %v5594_v14  ;;  %3765 = vmatprep.subr.bf16.mxu1 %v5597_v19  ;;  %v5689_v14 = vld [vmem:[%s7514_s1 + $0xfcc] ss:$16 sps:$4 sm:$0xff]   ;;  %v5684_v19 = vld [vmem:[%s7514_s1 + $0xfc0] ss:$16 sps:$4 sm:$0xff]  }
 0x1bf   :  { %3438 = vmatpush1.bf16.msra.mxu0 %v5592_v20  ;;  %3766 = vmatpush1.bf16.msra.mxu1 %v5595_v21  ;;  %v5687_v20 = vld [vmem:[%s7514_s1 + $0xfc8] ss:$16 sps:$4 sm:$0xff]   ;;  %v5692_v21 = vld [vmem:[%s7514_s1 + $0xfe4] ss:$16 sps:$4 sm:$0xff]  }
 0x1c0   :  { %3448 = vmatprep.subr.bf16.mxu0 %v5602_v22  ;;  %3776 = vmatprep.subr.bf16.mxu1 %v5605_v23  ;;  %v5695_v22 = vld [vmem:[%s7514_s1 + $0xfec] ss:$16 sps:$4 sm:$0xff]   ;;  %v5690_v23 = vld [vmem:[%s7514_s1 + $0xfe0] ss:$16 sps:$4 sm:$0xff]  }
 0x1c2   :  { %3440 = vmatmul.mubr.bf16.vlgmr.msra.gmra.mrb[0].mxu0 %v4264_v18  ;;  %3768 = vmatmul.mubr.bf16.vlgmr.msra.gmra.mrb[0].mxu1 %v4264_v18  ;;  %v5693_v18 = vld [vmem:[%s7514_s1 + $0xfe8] ss:$16 sps:$4 sm:$0xff]  }
 0x1c3   :  { %3449 = vmatpush1.bf16.msra.mxu0 %v5600_v25  ;;  %3777 = vmatpush1.bf16.msra.mxu1 %v5603_v26  ;;  %v5698_v25 = vld [vmem:[%s7517_s4 + $0x40] sm:$0xff]  }
 0x1c4   :  { %3450 = vmatprep.subr.bf16.mxu0 %v5608_v16  ;;  %3778 = vmatprep.subr.bf16.mxu1 %v5611_v27  ;;  %v5699_v26 = vld [vmem:[%s7517_s4 + $0xc0] sm:$0xff]   ;;  %v4266_v16 = vcombine.low %v7204_v24, %v7204_v24  ;;  %v5703_v24 = vld [vmem:[%s7517_s4 + $0xc8] sm:$0xff]  }
 0x1c5   :  { %3480 = vmatprep.mubr.bf16.mxu0 %v4267_v28  ;;  %3808 = vmatprep.mubr.bf16.mxu1 %v4267_v28  ;;  %v5700_v27 = vld [vmem:[%s7517_s4] sm:$0xff]  }
 0x1c6   :  { %v5701_v28 = vld [vmem:[%s7517_s4 + $0x80] sm:$0xff]  }
 0x1c7   :  { %3451 = vmatpush1.bf16.msra.mxu0 %v5606_v29  ;;  %3779 = vmatpush1.bf16.msra.mxu1 %v5609_v30  ;;  %v5702_v29 = vld [vmem:[%s7517_s4 + $0x48] sm:$0xff]  }
 0x1c8   :  { %3452 = vmatprep.subr.bf16.mxu0 %v5614_v31  ;;  %3780 = vmatprep.subr.bf16.mxu1 %v5617_v32  ;;  %v5704_v30 = vld [vmem:[%s7517_s4 + $0x8] sm:$0xff]   ;;  %v5706_v32 = vld [vmem:[%s7517_s4 + $0x50] sm:$0xff]  }
 0x1c9   :  { %v5705_v31 = vld [vmem:[%s7517_s4 + $0x88] sm:$0xff]  }
 0x1cb   :  { %3453 = vmatpush1.bf16.msra.mxu0 %v5612_v33  ;;  %3781 = vmatpush1.bf16.msra.mxu1 %v5615_v34  ;;  %v5707_v33 = vld [vmem:[%s7517_s4 + $0xd0] sm:$0xff]  }
 0x1cc   :  { %3454 = vmatprep.subr.bf16.mxu0 %v5620_v35  ;;  %3782 = vmatprep.subr.bf16.mxu1 %v5623_v36  ;;  %v5708_v34 = vld [vmem:[%s7517_s4 + $0x10] sm:$0xff]   ;;  %v5710_v36 = vld [vmem:[%s7517_s4 + $0x58] sm:$0xff]  }
 0x1cd   :  { %v5709_v35 = vld [vmem:[%s7517_s4 + $0x90] sm:$0xff]  }
 0x1cf   :  { %3455 = vmatpush1.bf16.msra.mxu0 %v5618_v37  ;;  %3783 = vmatpush1.bf16.msra.mxu1 %v5621_v38  ;;  %v5711_v37 = vld [vmem:[%s7517_s4 + $0xd8] sm:$0xff]  }
 0x1d0   :  { %3456 = vmatprep.subr.bf16.mxu0 %v5626_v39  ;;  %3784 = vmatprep.subr.bf16.mxu1 %v5629_v40  ;;  %v5712_v38 = vld [vmem:[%s7517_s4 + $0x18] sm:$0xff]   ;;  %v5714_v40 = vld [vmem:[%s7517_s4 + $0x60] sm:$0xff]  }
 0x1d1   :  { %v5713_v39 = vld [vmem:[%s7517_s4 + $0x98] sm:$0xff]  }
 0x1d3   :  { %3457 = vmatpush1.bf16.msra.mxu0 %v5624_v41  ;;  %3785 = vmatpush1.bf16.msra.mxu1 %v5627_v42  ;;  %v5715_v41 = vld [vmem:[%s7517_s4 + $0xe0] sm:$0xff]  }
 0x1d4   :  { %3458 = vmatprep.subr.bf16.mxu0 %v5632_v43  ;;  %3786 = vmatprep.subr.bf16.mxu1 %v5635_v44  ;;  %v5716_v42 = vld [vmem:[%s7517_s4 + $0x20] sm:$0xff]   ;;  %v5718_v44 = vld [vmem:[%s7517_s4 + $0x68] sm:$0xff]  }
 0x1d5   :  { %v5717_v43 = vld [vmem:[%s7517_s4 + $0xa0] sm:$0xff]  }
 0x1d7   :  { %3459 = vmatpush1.bf16.msra.mxu0 %v5630_v45  ;;  %3787 = vmatpush1.bf16.msra.mxu1 %v5633_v46  ;;  %v5719_v45 = vld [vmem:[%s7517_s4 + $0xe8] sm:$0xff]  }
 0x1d8   :  { %3460 = vmatprep.subr.bf16.mxu0 %v5638_v47  ;;  %3788 = vmatprep.subr.bf16.mxu1 %v5641_v48  ;;  %v5720_v46 = vld [vmem:[%s7517_s4 + $0x28] sm:$0xff]   ;;  %v5722_v48 = vld [vmem:[%s7517_s4 + $0x70] sm:$0xff]  }
 0x1d9   :  { %v5721_v47 = vld [vmem:[%s7517_s4 + $0xa8] sm:$0xff]  }
 0x1db   :  { %3461 = vmatpush1.bf16.msra.mxu0 %v5636_v49  ;;  %3789 = vmatpush1.bf16.msra.mxu1 %v5639_v50  ;;  %v5723_v49 = vld [vmem:[%s7517_s4 + $0xf0] sm:$0xff]  }
 0x1dc   :  { %3462 = vmatprep.subr.bf16.mxu0 %v5644_v51  ;;  %3790 = vmatprep.subr.bf16.mxu1 %v5647_v52  ;;  %v5724_v50 = vld [vmem:[%s7517_s4 + $0x30] sm:$0xff]   ;;  %v5726_v52 = vld [vmem:[%s7517_s4 + $0x78] sm:$0xff]  }
 0x1dd   :  { %v5725_v51 = vld [vmem:[%s7517_s4 + $0xb0] sm:$0xff]  }
 0x1df   :  { %3463 = vmatpush1.bf16.msra.mxu0 %v5642_v53  ;;  %3791 = vmatpush1.bf16.msra.mxu1 %v5645_v54  ;;  %v5727_v53 = vld [vmem:[%s7517_s4 + $0xf8] sm:$0xff]  }
 0x1e0   :  { %3464 = vmatprep.subr.bf16.mxu0 %v5650_v55  ;;  %3792 = vmatprep.subr.bf16.mxu1 %v5653_v56  ;;  %v5728_v54 = vld [vmem:[%s7517_s4 + $0x38] sm:$0xff]   ;;  %v3819_v56 = vlaneseq }
 0x1e1   :  { %v5729_v55 = vld [vmem:[%s7517_s4 + $0xb8] sm:$0xff]   ;;  %s5758_s4 = smov [#allocation2]  }
 0x1e3   :  { %3465 = vmatpush1.bf16.msra.mxu0 %v5648_v57  ;;  %3793 = vmatpush1.bf16.msra.mxu1 %v5651_v58  ;;  %v3820_v57 = vshrl.u32 %v3819_v56, 7 }
 0x1e4   :  { %3466 = vmatprep.subr.bf16.mxu0 %v5656_v59  ;;  %3794 = vmatprep.subr.bf16.mxu1 %v5659_v60  ;;  %v3817_v60 = vld [vmem:[%s7515_s2] sm:$0xf] }
 0x1e5   :  { %v3821_v58 = vsub.s32 0, %v3820_v57  ;;  %v3829_v59 = vsub.s32 2, %v3820_v57 }
 0x1e7   :  { %3467 = vmatpush1.bf16.msra.mxu0 %v5654_v61  ;;  %3795 = vmatpush1.bf16.msra.mxu1 %v5657_v62  ;;  %v3825_v61 = vsub.s32 1, %v3820_v57  ;;  %v3833_v62 = vsub.s32 3, %v3820_v57 }
 0x1e8   :  { %3468 = vmatprep.subr.bf16.mxu0 %v5662_v63  ;;  %3796 = vmatprep.subr.bf16.mxu1 %v5665_v0  ;;  %v3843_v63 = vld [vmem:[%s7516_s3] sm:$0xf]  ;;  %v3822_v0 = vrot.slane %v3817_v60, %v3821_v58 }
 0x1eb   :  { %3469 = vmatpush1.bf16.msra.mxu0 %v5660_v1  ;;  %3797 = vmatpush1.bf16.msra.mxu1 %v5663_v2  ;;  %v3830_v1 = vrot.slane %v3817_v60, %v3829_v59  ;;  %v3826_v2 = vrot.slane %v3817_v60, %v3825_v61 }
 0x1ec   :  { %3470 = vmatprep.subr.bf16.mxu0 %v5668_v3  ;;  %3798 = vmatprep.subr.bf16.mxu1 %v5671_v4  ;;  %v3834_v3 = vrot.slane %v3817_v60, %v3833_v62  ;;  %v3848_v4 = vrot.slane %v3843_v63, %v3821_v58 }
 0x1ef   :  { %3471 = vmatpush1.bf16.msra.mxu0 %v5666_v5  ;;  %3799 = vmatpush1.bf16.msra.mxu1 %v5669_v6  ;;  %v3856_v5 = vrot.slane %v3843_v63, %v3829_v59 }
 0x1f0   :  { %3472 = vmatprep.subr.bf16.mxu0 %v5674_v7  ;;  %3800 = vmatprep.subr.bf16.mxu1 %v5677_v8  ;;  %v3852_v8 = vrot.slane %v3843_v63, %v3825_v61 }
 0x1f3   :  { %3473 = vmatpush1.bf16.msra.mxu0 %v5672_v9  ;;  %3801 = vmatpush1.bf16.msra.mxu1 %v5675_v10  ;;  %v3860_v9 = vrot.slane %v3843_v63, %v3833_v62 }
 0x1f4   :  { %3474 = vmatprep.subr.bf16.mxu0 %v5680_v12  ;;  %3802 = vmatprep.subr.bf16.mxu1 %v5683_v13 }
 0x1f7   :  { %3475 = vmatpush1.bf16.msra.mxu0 %v5678_v15  ;;  %3803 = vmatpush1.bf16.msra.mxu1 %v5681_v11 }
 0x1f8   :  { %3476 = vmatprep.subr.bf16.mxu0 %v5686_v17  ;;  %3804 = vmatprep.subr.bf16.mxu1 %v5689_v14 }
 0x1fb   :  { %3477 = vmatpush1.bf16.msra.mxu0 %v5684_v19  ;;  %3805 = vmatpush1.bf16.msra.mxu1 %v5687_v20 }
 0x1fc   :  { %3478 = vmatprep.subr.bf16.mxu0 %v5692_v21  ;;  %3806 = vmatprep.subr.bf16.mxu1 %v5695_v22 }
 0x1ff   :  { %3479 = vmatpush1.bf16.msra.mxu0 %v5690_v23  ;;  %3807 = vmatpush1.bf16.msra.mxu1 %v5693_v18 }
 0x200   :  { %4813 = vmatprep.subr.bf16.mxu0 %v5698_v25  ;;  %4835 = vmatprep.subr.bf16.mxu1 %v5699_v26 }
 0x202   :  { %3481 = vmatmul.mubr.bf16.vlgmr.msra.gmra.mrb[0].mxu0 %v4266_v16  ;;  %3809 = vmatmul.mubr.bf16.vlgmr.msra.gmra.mrb[0].mxu1 %v4266_v16 }
 0x203   :  { %4814 = vmatpush3.bf16.msra.mxu0 %v5700_v27  ;;  %4836 = vmatpush3.bf16.msra.mxu1 %v5701_v28 }
 0x204   :  { %4815 = vmatprep.subr.bf16.mxu0 %v5702_v29  ;;  %4837 = vmatprep.subr.bf16.mxu1 %v5703_v24 }
 0x207   :  { %4816 = vmatpush3.bf16.msra.mxu0 %v5704_v30  ;;  %4838 = vmatpush3.bf16.msra.mxu1 %v5705_v31 }
 0x208   :  { %4817 = vmatprep.subr.bf16.mxu0 %v5706_v32  ;;  %4839 = vmatprep.subr.bf16.mxu1 %v5707_v33 }
 0x20b   :  { %4818 = vmatpush3.bf16.msra.mxu0 %v5708_v34  ;;  %4840 = vmatpush3.bf16.msra.mxu1 %v5709_v35  ;;  %v4780_v34 = vld [vmem:[%s7518_s5] ss:$0 sm:$0xff]  ;;  %s4244_s5 = sshll.u32 %s5758_s4, 4  ;;  %s4245_s5 = int_to_ptr.vmem [resolvable:$true] %s4244_s5 }
 0x20c   :  { %4819 = vmatprep.subr.bf16.mxu0 %v5710_v36  ;;  %4841 = vmatprep.subr.bf16.mxu1 %v5711_v37  ;;  %s5734_s14 = scalar_lea.vmem %s4245_s5, 128  ;;  %p5739_p1 = scmp.lt.s32.totalorder %s4245_s5, %s4245_s5 }
 0x20d   :  { %p5735_p0 = scmp.ne.s32.totalorder %s4245_s5, %s5734_s14  ;;  %p5740_p2 = scmp.lt.s32.totalorder %s5734_s14, %s5734_s14 }
 0x20f   :  { %4820 = vmatpush3.bf16.msra.mxu0 %v5712_v38  ;;  %4842 = vmatpush3.bf16.msra.mxu1 %v5713_v39  ;;  %p5741_p3 = por %p5740_p2, %p5739_p1 }
 0x210   :  { %4821 = vmatprep.subr.bf16.mxu0 %v5714_v40  ;;  %4843 = vmatprep.subr.bf16.mxu1 %v5715_v41 }
 0x211   :  { %p5742_p4 = pnand %p5741_p3, %p5735_p0 }
 0x213   :  { %4822 = vmatpush3.bf16.msra.mxu0 %v5716_v42  ;;  %4844 = vmatpush3.bf16.msra.mxu1 %v5717_v43  ;;  %v4222_v43 = vand.u32 127, %v3819_v56 }
 0x214   :  { %4823 = vmatprep.subr.bf16.mxu0 %v5718_v44  ;;  %4845 = vmatprep.subr.bf16.mxu1 %v5719_v45 }
 0x215   :  { %vm4223_vm0 = vcmp.lt.s32.totalorder %v4222_v43, 10 }
 0x217   :  { %4824 = vmatpush3.bf16.msra.mxu0 %v5720_v46  ;;  %4846 = vmatpush3.bf16.msra.mxu1 %v5721_v47 }
 0x218   :  { %4825 = vmatprep.subr.bf16.mxu0 %v5722_v48  ;;  %4847 = vmatprep.subr.bf16.mxu1 %v5723_v49 }
 0x21b   :  { %4826 = vmatpush3.bf16.msra.mxu0 %v5724_v50  ;;  %4848 = vmatpush3.bf16.msra.mxu1 %v5725_v51 }
 0x21c   :  { %4827 = vmatprep.subr.bf16.mxu0 %v5726_v52  ;;  %4849 = vmatprep.subr.bf16.mxu1 %v5727_v53 }
 0x21f   :  { %4828 = vmatpush3.bf16.msra.mxu0 %v5728_v54  ;;  %4850 = vmatpush3.bf16.msra.mxu1 %v5729_v55 }
 0x2d5   :  { %v3482_v6 = vpop.f32.mrb[0].mxu0  ;;  %v3810_v7 = vpop.f32.mrb[0].mxu1 }
 0x2d6   :  { %v3839_v10 = vmul.f32 %v3822_v0, %v3482_v6  ;;  %v3841_v12 = vmul.f32 %v3830_v1, %v3810_v7  ;;  %v3484_v13 = vpop.f32.mrb[1].mxu0  ;;  %v3812_v15 = vpop.f32.mrb[1].mxu1 }
 0x2d7   :  { %v3840_v11 = vmul.f32 %v3826_v2, %v3484_v13  ;;  %v3842_v17 = vmul.f32 %v3834_v3, %v3812_v15  ;;  %v3486_v14 = vpop.f32.mrb[2].mxu0  ;;  %v3814_v19 = vpop.f32.mrb[2].mxu1 }
 0x2d8   :  { %v3865_v20 = vadd.f32 %v3848_v4, %v3839_v10  ;;  %v3867_v21 = vadd.f32 %v3856_v5, %v3841_v12  ;;  %v3487_v22 = vpop.f32.mrb[3].mxu0  ;;  %v3815_v23 = vpop.f32.mrb[3].mxu1 }
 0x2d9   :  { %v3866_v18 = vadd.f32 %v3852_v8, %v3840_v11  ;;  %v3868_v25 = vadd.f32 %v3860_v9, %v3842_v17 }
 0x2da   :  { %v3869_v26 = vmax.f32 %v3865_v20, 0.0  ;;  %v3871_v16 = vmax.f32 %v3867_v21, 0.0 }
 0x2db   :  { %v3870_v27 = vmax.f32 %v3866_v18, 0.0  ;;  %v3872_v28 = vmax.f32 %v3868_v25, 0.0 }
 0x2dc   :  { %v3873_v30 = vpack.c.bf16 %v3869_v26, %v3869_v26  ;;  %v3875_v31 = vpack.c.bf16 %v3871_v16, %v3871_v16 }
 0x2dd   :  { %v3874_v29 = vpack.c.bf16 %v3870_v27, %v3870_v27  ;;  %v3876_v24 = vpack.c.bf16 %v3872_v28, %v3872_v28 }
 0x2df   :  { %4172 = vmatprep.mubr.bf16.mxu0 %v3874_v29  ;;  %4212 = vmatprep.mubr.bf16.mxu1 %v3876_v24 }
 0x2e0   :  { %4173 = vmatmul.mubr.bf16.vlgmr.msra.gmra.mrb[4].mxu0 %v3873_v30  ;;  %4213 = vmatmul.mubr.bf16.vlgmr.msra.gmra.mrb[4].mxu1 %v3875_v31 }
 0x3b3   :  { %v4829_v32 = vpop.f32.mrb[4].mxu0  ;;  %v4851_v33 = vpop.f32.mrb[4].mxu1 }
 0x3b4   :  { %v4830_v35 = vpop.f32.mrb[5].mxu0  ;;  %v4852_v36 = vpop.f32.mrb[5].mxu1 }
 0x3b5   :  { %v4831_v37 = vadd.f32 %v4830_v35, %v4829_v32  ;;  %v4853_v38 = vadd.f32 %v4852_v36, %v4851_v33  ;;  %v4832_v39 = vpop.f32.mrb[6].mxu0  ;;  %v4854_v40 = vpop.f32.mrb[6].mxu1 }
 0x3b6   :  { %v4833_v41 = vpop.f32.mrb[7].mxu0  ;;  %v4855_v42 = vpop.f32.mrb[7].mxu1 }
 0x3b7   :  { %v4175_v44 = vadd.f32 %v4831_v37, %v4780_v34 }
 0x3b9   :  { %v4215_v45 = vadd.f32 %v4853_v38, %v4175_v44 }
 0x3bb   :  { %v4220_v46 = vmax.f32 %v4215_v45, 0.0 }
 0x3bd   :  { %v4224_v47 = vsel %vm4223_vm0, %v4220_v46, -inf }
 0x3be   :  { %4225 = vmax.xlane.f32.xlu0 %v4224_v47 }
 0x44b   :  { %v4226_v48 = vpop.xlane.xlu0 %4225 }
 0x44c   :  { %v4227_v49 = vsub.f32 %v4224_v47, %v4226_v48 }
 0x44e   :  { %v4228_v50 = vmul.f32 1.442695, %v4227_v49 }
 0x450   :  { %5730 = vpow2.f32 %v4228_v50 }
 0x45a   :  { %v5731_v51 = vpop.eup %5730 }
 0x45b   :  { %v4230_v52 = vsel %vm4223_vm0, %v5731_v51, 0.0 }
 0x45c   :  { %4231 = vadd.xlane.f32.xlu0 %v4230_v52 }
 0x4e9   :  { %v4232_v53 = vpop.xlane.xlu0 %4231 }
 0x4ea   :  { %5732 = vlog2.f32 %v4232_v53 }
 0x4f4   :  { %v5733_v54 = vpop.eup %5732 }
 0x4f5   :  { %v4234_v55 = vmul.f32 0.6931472, %v5733_v54 }
 0x4f7   :  { %v4235_v56 = vadd.f32 %v4234_v55, %v4226_v48 }
 0x4f9   :  { %v4236_v57 = vsub.f32 %v4220_v46, %v4235_v56 }
 0x4fb   :  { %4237 = vst [vmem:[#allocation2] sm:$0xff] %v4236_v57 }
 0x4fc   :  { %5745 = shalt.err (!%p5742_p4)
}
 0x4fd   :  { %s5746_s17 = scalar_lea.hbm %s7519_s6, 128 }
 0x4fe   :  { %p5747_p5 = scmp.ne.s32.totalorder %s7519_s6, %s5746_s17  ;;  %p5750_p6 = scmp.lt.u32.totalorder %s5746_s17, %s7519_s6 }
 0x500   :  { %p5752_p7 = pnand %p5750_p6, %p5747_p5 }
 0x502   :  { %5755 = shalt.err (!%p5752_p7)
}
 0x503   :  { %4247 = dma.vmem_to_hbm [thread:$0]  %s4245_s5, 128, %s7519_s6, [#allocation3]  }
 0x504   :  { %5756 = dma.done.wait [#allocation3], 128  }
 0x505   :  { %5757 = vsyncadd [#allocation3], 4294967168 }
 0x506   :  { %4251 = vsyncpa [#allocation3], 1 }

// kernel: mlp_forward.2
= control target key start
LH: loop header
LB: loop body
LE: loop exit
PB: predicated region body
PF: predicated region fallthrough
CT: control target
= control target key end

     0   :  { %9 = vsyncpa [#allocation3], 0  ;;  %s15863_s0 = inlined_call_operand.vmem [shape: bf16[8,3072], index: 0, kind: input, shape index: {}]   ;;  %s15864_s1 = inlined_call_operand.hbm [shape: bf16[3072,2048], index: 1, kind: input, shape index: {}]   ;;  %s15865_s2 = inlined_call_operand.hbm [shape: f32[1,2048], index: 2, kind: input, shape index: {}]   ;;  %s15866_s3 = inlined_call_operand.hbm [shape: f32[1,2048], index: 3, kind: input, shape index: {}]   ;;  %s15867_s4 = inlined_call_operand.vmem [shape: bf16[8,2048], index: 4, kind: output, shape index: {}]  }
   0x1   :  { %11 = vsyncpa [#allocation3 + $0x1], 0 }
   0x2   :  { %12 = vsyncpa [#allocation5], 0 }
   0x3   :  { %14 = vsyncpa [#allocation5 + $0x1], 0  ;;  %s13836_s15 = smov 0   ;;  %s13838_s16 = smov 0  }
   0x4   :  { %s13840_s17 = smov 0   ;;  %s13842_s18 = smov 0  }
   0x5 LB: > { %s13855_s19 = sadd.s32 4294967295, %s13803_s18   ;;  %s13858_s20 = sadd.s32 1, %s13803_s18   ;;  %s13803_s18 = sphi %s13842_s18, %s15881_s18   ;;  %s13799_s17 = sphi %s13840_s17, %s15880_s17   ;;  %s13795_s16 = sphi %s13838_s16, %s15879_s16   ;;  %s13791_s15 = sphi %s13836_s15, %s15878_s15  }
   0x6   : > { %s45_s21 = ssub.s32 %s13803_s18, %s13858_s20  ;;  %s48_s22 = sadd.s32 1, %s13799_s17 }
   0x7   : > { %p46_p0 = scmp.eq.s32.totalorder %s45_s21, 0  ;;  %p55_p1 = scmp.ne.s32.totalorder %s13799_s17, %s13795_s16 }
   0x8   : > { %p56_p2 = scmp.eq.s32.totalorder %s13803_s18, 0  ;;  %p61_p3 = scmp.ne.s32.totalorder %s13795_s16, %s13791_s15 }
   0x9   : > { %s13868_s23 = scalar_select %p46_p0, %s13799_s17, %s48_s22  }
   0xa   : > { %p57_p4 = por %p56_p2, %p55_p1  ;;  %p62_p5 = scmp.eq.s32.totalorder %s13855_s19, 0 }
   0xb   : > { %p13613_p6 = scmp.lt.s32.totalorder %s13803_s18, 2  ;;  %s13877_s25 = sand.u32 1, %s13799_s17  }
   0xc   : > { %p13872_p7 = por %p62_p5, %p61_p3  ;;  %s13595_s26 = smul.u32 12288, %s13877_s25 }
   0xd   : > { %p13880_p8 = pnand %p13613_p6, %p57_p4  ;;  %s187_s28 = sand.u32 1, %s13803_s18  }
   0xe   : > { %s15870_s24 = scalar_select %p13872_p7, 1, 0 }
   0xf   : > { %s15871_s27 = scalar_select %p13880_p8, 1, 0 }
  0x10   : > { %s170_s29 = scalar_lea.vmem [#allocation2], %s13595_s26  ;;  %s11835_s5 = sshll.u32 %s13877_s25, 3 }
  0x11   : > { %s177_s30 = sshll.u32 %s170_s29, 4  ;;  %s13413_s6 = sshll.u32 %s13803_s18, 7  ;;  %s13885_s30 = int_to_ptr.vmem [resolvable:$true] %s177_s30 }
  0x12   : > { %s13894_s9 = scalar_lea.hbm %s15865_s2, %s13413_s6  ;;  %s191_s10 = scalar_lea.vmem [#allocation4], %s11835_s5 }
  0x13   : > { %s199_s11 = sshll.u32 %s191_s10, 4  ;;  %s13900_s12 = scalar_lea.sflag [#allocation5], %s187_s28  ;;  %s13898_s11 = int_to_ptr.vmem [resolvable:$true] %s199_s11 }
  0x14   : > { %s13675_s13 = scalar_lea.hbm %s13894_s9, 128  ;;  %p13906_p10 = pneg %p13880_p8 }
  0x15   : > { %p13676_p9 = scmp.ne.s32.totalorder %s13894_s9, %s13675_s13  ;;  %s13680_s22 = scalar_lea.hbm %s15865_s2, 256 }
  0x16   : > { %p13681_p13 = scmp.lt.u32.totalorder %s13894_s9, %s15865_s2  ;;  %p13682_p0 = scmp.lt.u32.totalorder %s13680_s22, %s13675_s13 }
  0x17   : > { %p13678_p11 = pnand %p13906_p10, %p13676_p9  ;;  %p13684_p2 = scmp.lt.u32.totalorder %s13675_s13, %s13894_s9 }
  0x18   : > { %p13683_p1 = por %p13682_p0, %p13681_p13 }
  0x19   : > { %p13679_p12 = pneg %p13678_p11 }
  0x1a   : > { %p13685_p3 = por %p13684_p2, %p13683_p1 }
  0x1c   : > { %p13686_p4 = pnand %p13685_p3, %p13679_p12 }
  0x1e   : > { %13689 = shalt.err (!%p13686_p4)
}
  0x1f   : > { %s13690_s28 = scalar_lea.vmem %s13898_s11, 128  ;;  %s13805_s7 = smov [#allocation4]  }
  0x20   : > { %p13691_p5 = scmp.ne.s32.totalorder %s13898_s11, %s13690_s28  ;;  %s13695_s8 = sshll.u32 %s13805_s7, 4  ;;  %s13696_s8 = int_to_ptr.vmem [resolvable:$false] %s13695_s8 }
  0x21   : > { %s13697_s10 = scalar_lea.vmem %s13696_s8, 256  ;;  %p13698_p11 = scmp.lt.s32.totalorder %s13898_s11, %s13696_s8 }
  0x22   : > { %p13693_p6 = pnand %p13691_p5, %p13906_p10  ;;  %p13699_p7 = scmp.lt.s32.totalorder %s13697_s10, %s13690_s28 }
  0x24   : > { %p13694_p9 = pneg %p13693_p6  ;;  %p13700_p13 = por %p13699_p7, %p13698_p11 }
  0x26   : > { %p13701_p0 = pnand %p13700_p13, %p13694_p9 }
  0x28   : > { %13704 = shalt.err (!%p13701_p0)
}
  0x29   : > { %13609 = dma.hbm_to_vmem [thread:$0]  (!%p13880_p8), %s13894_s9, 128, %s13898_s11, %s13900_s12  }
  0x2a   : > { %s13935_s21 = scalar_lea.hbm %s15866_s3, %s13413_s6  ;;  %p11841_p7 = scmp.ge.s32.totalorder %s13803_s18, 1 }
  0x2b   : > { %p223_p12 = scmp.lt.s32.totalorder %s13803_s18, 3  ;;  %s13412_s22 = sshll.u32 %s13803_s18, 9 }
  0x2c   : > { %s13943_s28 = scalar_lea.hbm %s15864_s1, %s13412_s22  ;;  %s13951_s11 = scalar_lea.vmem [#allocation6], %s11835_s5 }
  0x2d   : > { %p13945_p1 = pnand %p11841_p7, %p223_p12  ;;  %s218_s6 = sshll.u32 %s13951_s11, 4  ;;  %s219_s6 = int_to_ptr.vmem [resolvable:$true] %s218_s6 }
  0x2e   : > { %s167_s7 = scalar_lea.sflag [#allocation3], %s13877_s25  ;;  %s13705_s18 = scalar_lea.hbm %s13943_s28, 196608 }
  0x2f   : > { %s15873_s9 = scalar_select %p13945_p1, 1, 0 }
  0x30   : > { %p13706_p2 = scmp.ne.s32.totalorder %s13943_s28, %s13705_s18  ;;  %s13710_s13 = scalar_lea.hbm %s15864_s1, 393216 }
  0x31   : > { %p13711_p5 = scmp.lt.u32.totalorder %s13943_s28, %s15864_s1  ;;  %p13712_p6 = scmp.lt.u32.totalorder %s13710_s13, %s13705_s18 }
  0x32   : > { %p13708_p3 = pnand %p13706_p2, %p13906_p10  ;;  %p13714_p11 = scmp.lt.u32.totalorder %s13705_s18, %s13943_s28 }
  0x33   : > { %p13713_p9 = por %p13712_p6, %p13711_p5 }
  0x34   : > { %p13709_p4 = pneg %p13708_p3 }
  0x35   : > { %p13715_p13 = por %p13714_p11, %p13713_p9 }
  0x37   : > { %p13716_p0 = pnand %p13715_p13, %p13709_p4 }
  0x39   : > { %13719 = shalt.err (!%p13716_p0)
}
  0x3a   : > { %s13720_s5 = scalar_lea.vmem %s13885_s30, 196608  ;;  %s13806_s26 = smov [#allocation2]  }
  0x3b   : > { %p13721_p7 = scmp.ne.s32.totalorder %s13885_s30, %s13720_s5  ;;  %s13725_s29 = sshll.u32 %s13806_s26, 4  ;;  %s13726_s29 = int_to_ptr.vmem [resolvable:$false] %s13725_s29 }
  0x3c   : > { %s13727_s8 = scalar_lea.vmem %s13726_s29, 393216  ;;  %p13728_p3 = scmp.lt.s32.totalorder %s13885_s30, %s13726_s29 }
  0x3d   : > { %p13723_p12 = pnand %p13721_p7, %p13906_p10  ;;  %p13729_p1 = scmp.lt.s32.totalorder %s13727_s8, %s13720_s5 }
  0x3f   : > { %p13724_p2 = pneg %p13723_p12  ;;  %p13730_p5 = por %p13729_p1, %p13728_p3 }
  0x41   : > { %p13731_p6 = pnand %p13730_p5, %p13724_p2 }
  0x43   : > { %13734 = shalt.err (!%p13731_p6)
}
  0x44   : > { %s13807_s18 = smov 1024   ;;  %s13808_s10 = smov 512  }
  0x45   : > { %s13809_s13 = smov 32   ;;  %s13735_s15 = scalar_lea.hbm %s13935_s21, 128 }
  0x46   : > { %13606 = dma.hbm_to_vmem [thread:$0]  (!%p13880_p8), %s13943_s28, 196608, %s13885_s30, %s167_s7, %s13807_s18, %s13808_s10, %s13809_s13  }
  0x47   : > { %p13736_p1 = scmp.ne.s32.totalorder %s13935_s21, %s13735_s15  ;;  %s13740_s26 = scalar_lea.hbm %s15866_s3, 256 }
  0x48   : > { %p13741_p11 = scmp.lt.u32.totalorder %s13935_s21, %s15866_s3  ;;  %p13742_p13 = scmp.lt.u32.totalorder %s13740_s26, %s13735_s15 }
  0x49   : > { %p13738_p4 = pnand %p13736_p1, %p13906_p10  ;;  %p13744_p7 = scmp.lt.u32.totalorder %s13735_s15, %s13935_s21 }
  0x4a   : > { %p13743_p0 = por %p13742_p13, %p13741_p11 }
  0x4b   : > { %p13739_p9 = pneg %p13738_p4 }
  0x4c   : > { %p13745_p12 = por %p13744_p7, %p13743_p0 }
  0x4e   : > { %p13746_p2 = pnand %p13745_p12, %p13739_p9 }
  0x50   : > { %13749 = shalt.err (!%p13746_p2)
}
  0x51   : > { %s13750_s25 = scalar_lea.vmem %s219_s6, 128  ;;  %s13810_s30 = smov [#allocation6]  }
  0x52   : > { %p13751_p3 = scmp.ne.s32.totalorder %s219_s6, %s13750_s25  ;;  %s13755_s28 = sshll.u32 %s13810_s30, 4  ;;  %s13756_s28 = int_to_ptr.vmem [resolvable:$false] %s13755_s28 }
  0x53   : > { %s13757_s11 = scalar_lea.vmem %s13756_s28, 256  ;;  %p13758_p1 = scmp.lt.s32.totalorder %s219_s6, %s13756_s28 }
  0x54   : > { %p13753_p5 = pnand %p13751_p3, %p13906_p10  ;;  %p13759_p4 = scmp.lt.s32.totalorder %s13757_s11, %s13750_s25 }
  0x56   : > { %p13754_p6 = pneg %p13753_p5  ;;  %p13760_p8 = por %p13759_p4, %p13758_p1 }
  0x58   : > { %p13761_p11 = pnand %p13760_p8, %p13754_p6 }
  0x5a   : > { %13764 = shalt.err (!%p13761_p11)
}
  0x5b   : > { %p15874_p13 = scmp.ne.s32.totalorder %s15871_s27, 0  ;;  %p15875_p9 = scmp.ne.s32.totalorder %s15873_s9, 0 }
  0x5c   : > { %s14001_s14 = sand.u32 (!%p15875_p9), 1, %s13795_s16   ;;  %p15876_p8 = scmp.ne.s32.totalorder (!%p15875_p9), %s15870_s24, 0 }
  0x5d   : > { %13612 = dma.hbm_to_vmem [thread:$0]  (!%p15874_p13), %s13935_s21, 128, %s219_s6, %s13900_s12  }
  0x5e   : > { %227 = sbr.rel (%p15875_p9) target bundleno = 1867 (0x74b), region = 36  ;;  %s230_s18 = scalar_lea.sflag (!%p15875_p9), [#allocation3], %s14001_s14 }
  0x5f   : > { %s13596_s7 = smul.u32 (!%p15875_p9), 12288, %s14001_s14 }
  0x61   : > { %s14005_s10 = scalar_lea.vmem (!%p15875_p9), [#allocation2], %s13596_s7 }
  0x65   : > { %13782 = dma.done.wait (%p15876_p8), %s230_s18, 196608  }
  0x66   : > { %13784 = vsyncadd (%p15876_p8), %s230_s18, 4294770688  ;;  %s238_s27 = sand.u32 1, %s13855_s19   ;;  %s11842_s12 = sshll.u32 %s14001_s14, 3 }
  0x67   : > { %s239_s21 = scalar_lea.sflag [#allocation5], %s238_s27  ;;  %s14015_s9 = scalar_lea.vmem [#allocation4], %s11842_s12 }
  0x68   : > { %13786 = dma.done.wait (%p15876_p8), %s239_s21, 256  }
  0x69   : > { %13788 = vsyncadd (%p15876_p8), %s239_s21, 4294967040  ;;  %v307_v0 = vld [vmem:[%s14005_s10] sm:$0xff]  ;;  %v308_v2 = vld [vmem:[%s14005_s10 + $0x8] sm:$0xff]  ;;  %s11844_s29 = sshll.u32 %s13855_s19, 3  ;;  %s15233_s8 = scalar_lea.vmem [#allocation6], %s11842_s12 }
  0x6a   : > { %v311_v1 = vld [vmem:[%s14005_s10 + $0x20] sm:$0xff]  ;;  %v312_v4 = vld [vmem:[%s14005_s10 + $0x28] sm:$0xff]  ;;  %p15238_p10 = scmp.lt.s32.totalorder %s11844_s29, 15 }
  0x6b   : > { %v11871_v3 = vcombine.high %v307_v0, %v311_v1  ;;  %v11870_v5 = vcombine.low %v307_v0, %v311_v1  ;;  %v315_v6 = vld [vmem:[%s14005_s10 + $0x40] sm:$0xff]  ;;  %v11873_v8 = vcombine.high %v308_v2, %v312_v4  ;;  %v11872_v9 = vcombine.low %v308_v2, %v312_v4  ;;  %v316_v11 = vld [vmem:[%s14005_s10 + $0x48] sm:$0xff] }
  0x6c   : > { %v319_v7 = vld [vmem:[%s14005_s10 + $0x60] sm:$0xff]  ;;  %v320_v12 = vld [vmem:[%s14005_s10 + $0x68] sm:$0xff]  ;;  %s15883_s29 = smov (!%p15238_p10, %s11844_s29), 15 }
  0x6d   : > { %v11879_v10 = vcombine.high %v315_v6, %v319_v7  ;;  %v323_v13 = vld [vmem:[%s14005_s10 + $0x80] sm:$0xff]  ;;  %9607 = vmatprep.subr.bf16.mxu0 %v11871_v3  ;;  %v11881_v14 = vcombine.high %v316_v11, %v320_v12  ;;  %v324_v16 = vld [vmem:[%s14005_s10 + $0x88] sm:$0xff]  ;;  %10099 = vmatprep.subr.bf16.mxu1 %v11873_v8  ;;  %v11878_v18 = vcombine.low %v315_v6, %v319_v7  ;;  %s11845_s19 = sshll.u32 %s15883_s29, 2 }
  0x6e   : > { %v327_v15 = vld [vmem:[%s14005_s10 + $0xa0] sm:$0xff]  ;;  %v328_v17 = vld [vmem:[%s14005_s10 + $0xa8] sm:$0xff]  ;;  %9608 = vmatpush1.bf16.msra.mxu0 %v11870_v5  ;;  %10100 = vmatpush1.bf16.msra.mxu1 %v11872_v9  ;;  %v11880_v19 = vcombine.low %v316_v11, %v320_v12  ;;  %s15264_s30 = scalar_lea.vmem %s15867_s4, %s11845_s19 }
  0x6f   : > { %9609 = vmatprep.subr.bf16.mxu0 %v11879_v10  ;;  %v11887_v20 = vcombine.high %v323_v13, %v327_v15  ;;  %10101 = vmatprep.subr.bf16.mxu1 %v11881_v14  ;;  %v11889_v21 = vcombine.high %v324_v16, %v328_v17  ;;  %v331_v22 = vld [vmem:[%s14005_s10 + $0xc0] sm:$0xff]  ;;  %v332_v24 = vld [vmem:[%s14005_s10 + $0xc8] sm:$0xff]  ;;  %v11886_v26 = vcombine.low %v323_v13, %v327_v15 }
  0x70   : > { %v335_v23 = vld [vmem:[%s14005_s10 + $0xe0] sm:$0xff]  ;;  %v336_v25 = vld [vmem:[%s14005_s10 + $0xe8] sm:$0xff]  ;;  %v11888_v27 = vcombine.low %v324_v16, %v328_v17 }
  0x71   : > { %v11895_v28 = vcombine.high %v331_v22, %v335_v23  ;;  %v11897_v29 = vcombine.high %v332_v24, %v336_v25  ;;  %v339_v30 = vld [vmem:[%s14005_s10 + $0x100] sm:$0xff]  ;;  %v340_v32 = vld [vmem:[%s14005_s10 + $0x108] sm:$0xff]  ;;  %v11894_v34 = vcombine.low %v331_v22, %v335_v23  ;;  %v11896_v35 = vcombine.low %v332_v24, %v336_v25 }
  0x72   : > { %9610 = vmatpush1.bf16.msra.mxu0 %v11878_v18  ;;  %10102 = vmatpush1.bf16.msra.mxu1 %v11880_v19  ;;  %v343_v31 = vld [vmem:[%s14005_s10 + $0x120] sm:$0xff]  ;;  %v344_v33 = vld [vmem:[%s14005_s10 + $0x128] sm:$0xff] }
  0x73   : > { %9611 = vmatprep.subr.bf16.mxu0 %v11887_v20  ;;  %10103 = vmatprep.subr.bf16.mxu1 %v11889_v21  ;;  %v11903_v36 = vcombine.high %v339_v30, %v343_v31  ;;  %v11905_v37 = vcombine.high %v340_v32, %v344_v33  ;;  %v347_v38 = vld [vmem:[%s14005_s10 + $0x140] sm:$0xff]  ;;  %v348_v40 = vld [vmem:[%s14005_s10 + $0x148] sm:$0xff]  ;;  %v11902_v42 = vcombine.low %v339_v30, %v343_v31 }
  0x74   : > { %v351_v39 = vld [vmem:[%s14005_s10 + $0x160] sm:$0xff]  ;;  %v352_v41 = vld [vmem:[%s14005_s10 + $0x168] sm:$0xff]  ;;  %v11904_v43 = vcombine.low %v340_v32, %v344_v33 }
  0x75   : > { %v11911_v44 = vcombine.high %v347_v38, %v351_v39  ;;  %v11913_v45 = vcombine.high %v348_v40, %v352_v41  ;;  %v355_v46 = vld [vmem:[%s14005_s10 + $0x180] sm:$0xff]  ;;  %v356_v48 = vld [vmem:[%s14005_s10 + $0x188] sm:$0xff]  ;;  %v11910_v50 = vcombine.low %v347_v38, %v351_v39  ;;  %v11912_v51 = vcombine.low %v348_v40, %v352_v41 }
  0x76   : > { %9612 = vmatpush1.bf16.msra.mxu0 %v11886_v26  ;;  %10104 = vmatpush1.bf16.msra.mxu1 %v11888_v27  ;;  %v359_v47 = vld [vmem:[%s14005_s10 + $0x1a0] sm:$0xff]  ;;  %v360_v49 = vld [vmem:[%s14005_s10 + $0x1a8] sm:$0xff] }
  0x77   : > { %9613 = vmatprep.subr.bf16.mxu0 %v11895_v28  ;;  %10105 = vmatprep.subr.bf16.mxu1 %v11897_v29  ;;  %v11919_v52 = vcombine.high %v355_v46, %v359_v47  ;;  %v14052_v53 = vld [vmem:[%s15863_s0] sm:$0xff]  ;;  %v11921_v54 = vcombine.high %v356_v48, %v360_v49  ;;  %v364_v58 = vld [vmem:[%s14005_s10 + $0x1c8] sm:$0xff]  ;;  %v11918_v60 = vcombine.low %v355_v46, %v359_v47 }
  0x78   : > { %v363_v55 = vld [vmem:[%s14005_s10 + $0x1c0] sm:$0xff]  ;;  %v14058_v57 = vcombine.high %v14052_v53, %v14052_v53  ;;  %v368_v59 = vld [vmem:[%s14005_s10 + $0x1e8] sm:$0xff]  ;;  %v11920_v61 = vcombine.low %v356_v48, %v360_v49 }
  0x79   : > { %v367_v56 = vld [vmem:[%s14005_s10 + $0x1e0] sm:$0xff]  ;;  %v11929_v63 = vcombine.high %v364_v58, %v368_v59  ;;  %v372_v2 = vld [vmem:[%s14005_s10 + $0x208] sm:$0xff]  ;;  %v11928_v5 = vcombine.low %v364_v58, %v368_v59 }
  0x7a   : > { %9614 = vmatpush1.bf16.msra.mxu0 %v11894_v34  ;;  %10106 = vmatpush1.bf16.msra.mxu1 %v11896_v35  ;;  %v11927_v62 = vcombine.high %v363_v55, %v367_v56  ;;  %v371_v0 = vld [vmem:[%s14005_s10 + $0x200] sm:$0xff]  ;;  %v376_v3 = vld [vmem:[%s14005_s10 + $0x228] sm:$0xff]  ;;  %v11926_v4 = vcombine.low %v363_v55, %v367_v56 }
  0x7b   : > { %9615 = vmatprep.subr.bf16.mxu0 %v11903_v36  ;;  %10107 = vmatprep.subr.bf16.mxu1 %v11905_v37  ;;  %v375_v1 = vld [vmem:[%s14005_s10 + $0x220] sm:$0xff]  ;;  %v11937_v7 = vcombine.high %v372_v2, %v376_v3  ;;  %v380_v10 = vld [vmem:[%s14005_s10 + $0x248] sm:$0xff]  ;;  %v11936_v13 = vcombine.low %v372_v2, %v376_v3 }
  0x7c   : > { %9639 = vmatprep.mubr.bf16.mxu0 %v14058_v57  ;;  %10131 = vmatprep.mubr.bf16.mxu1 %v14058_v57  ;;  %v11935_v6 = vcombine.high %v371_v0, %v375_v1  ;;  %v379_v8 = vld [vmem:[%s14005_s10 + $0x240] sm:$0xff]  ;;  %v384_v11 = vld [vmem:[%s14005_s10 + $0x268] sm:$0xff]  ;;  %v11934_v12 = vcombine.low %v371_v0, %v375_v1 }
  0x7d   : > { %v383_v9 = vld [vmem:[%s14005_s10 + $0x260] sm:$0xff]  ;;  %v11945_v15 = vcombine.high %v380_v10, %v384_v11  ;;  %v388_v18 = vld [vmem:[%s14005_s10 + $0x288] sm:$0xff]  ;;  %v11944_v21 = vcombine.low %v380_v10, %v384_v11 }
  0x7e   : > { %9616 = vmatpush1.bf16.msra.mxu0 %v11902_v42  ;;  %10108 = vmatpush1.bf16.msra.mxu1 %v11904_v43  ;;  %v11943_v14 = vcombine.high %v379_v8, %v383_v9  ;;  %v387_v16 = vld [vmem:[%s14005_s10 + $0x280] sm:$0xff]  ;;  %v392_v19 = vld [vmem:[%s14005_s10 + $0x2a8] sm:$0xff]  ;;  %v11942_v20 = vcombine.low %v379_v8, %v383_v9 }
  0x7f   : > { %9617 = vmatprep.subr.bf16.mxu0 %v11911_v44  ;;  %10109 = vmatprep.subr.bf16.mxu1 %v11913_v45  ;;  %v391_v17 = vld [vmem:[%s14005_s10 + $0x2a0] sm:$0xff]  ;;  %v11953_v23 = vcombine.high %v388_v18, %v392_v19  ;;  %v396_v26 = vld [vmem:[%s14005_s10 + $0x2c8] sm:$0xff]  ;;  %v11952_v29 = vcombine.low %v388_v18, %v392_v19 }
  0x80   : > { %v11951_v22 = vcombine.high %v387_v16, %v391_v17  ;;  %v395_v24 = vld [vmem:[%s14005_s10 + $0x2c0] sm:$0xff]  ;;  %v400_v27 = vld [vmem:[%s14005_s10 + $0x2e8] sm:$0xff]  ;;  %v11950_v28 = vcombine.low %v387_v16, %v391_v17 }
  0x81   : > { %v399_v25 = vld [vmem:[%s14005_s10 + $0x2e0] sm:$0xff]  ;;  %v11961_v31 = vcombine.high %v396_v26, %v400_v27  ;;  %v404_v34 = vld [vmem:[%s14005_s10 + $0x308] sm:$0xff]  ;;  %v11960_v37 = vcombine.low %v396_v26, %v400_v27 }
  0x82   : > { %9618 = vmatpush1.bf16.msra.mxu0 %v11910_v50  ;;  %10110 = vmatpush1.bf16.msra.mxu1 %v11912_v51  ;;  %v11959_v30 = vcombine.high %v395_v24, %v399_v25  ;;  %v403_v32 = vld [vmem:[%s14005_s10 + $0x300] sm:$0xff]  ;;  %v408_v35 = vld [vmem:[%s14005_s10 + $0x328] sm:$0xff]  ;;  %v11958_v36 = vcombine.low %v395_v24, %v399_v25 }
  0x83   : > { %9619 = vmatprep.subr.bf16.mxu0 %v11919_v52  ;;  %10111 = vmatprep.subr.bf16.mxu1 %v11921_v54  ;;  %v407_v33 = vld [vmem:[%s14005_s10 + $0x320] sm:$0xff]  ;;  %v11969_v39 = vcombine.high %v404_v34, %v408_v35  ;;  %v412_v42 = vld [vmem:[%s14005_s10 + $0x348] sm:$0xff]  ;;  %v11968_v45 = vcombine.low %v404_v34, %v408_v35 }
  0x84   : > { %v11967_v38 = vcombine.high %v403_v32, %v407_v33  ;;  %v411_v40 = vld [vmem:[%s14005_s10 + $0x340] sm:$0xff]  ;;  %v416_v43 = vld [vmem:[%s14005_s10 + $0x368] sm:$0xff]  ;;  %v11966_v44 = vcombine.low %v403_v32, %v407_v33 }
  0x85   : > { %v415_v41 = vld [vmem:[%s14005_s10 + $0x360] sm:$0xff]  ;;  %v11977_v47 = vcombine.high %v412_v42, %v416_v43  ;;  %v420_v50 = vld [vmem:[%s14005_s10 + $0x388] sm:$0xff]  ;;  %v11976_v54 = vcombine.low %v412_v42, %v416_v43 }
  0x86   : > { %9620 = vmatpush1.bf16.msra.mxu0 %v11918_v60  ;;  %10112 = vmatpush1.bf16.msra.mxu1 %v11920_v61  ;;  %v11975_v46 = vcombine.high %v411_v40, %v415_v41  ;;  %v419_v48 = vld [vmem:[%s14005_s10 + $0x380] sm:$0xff]  ;;  %v424_v51 = vld [vmem:[%s14005_s10 + $0x3a8] sm:$0xff]  ;;  %v11974_v52 = vcombine.low %v411_v40, %v415_v41 }
  0x87   : > { %9621 = vmatprep.subr.bf16.mxu0 %v11927_v62  ;;  %10113 = vmatprep.subr.bf16.mxu1 %v11929_v63  ;;  %v423_v49 = vld [vmem:[%s14005_s10 + $0x3a0] sm:$0xff]  ;;  %v11985_v56 = vcombine.high %v420_v50, %v424_v51  ;;  %v428_v60 = vld [vmem:[%s14005_s10 + $0x3c8] sm:$0xff]  ;;  %v11984_v63 = vcombine.low %v420_v50, %v424_v51 }
  0x88   : > { %v11983_v55 = vcombine.high %v419_v48, %v423_v49  ;;  %v427_v58 = vld [vmem:[%s14005_s10 + $0x3c0] sm:$0xff]  ;;  %v432_v61 = vld [vmem:[%s14005_s10 + $0x3e8] sm:$0xff]  ;;  %v11982_v62 = vcombine.low %v419_v48, %v423_v49 }
  0x89   : > { %v431_v59 = vld [vmem:[%s14005_s10 + $0x3e0] sm:$0xff]  ;;  %v11993_v1 = vcombine.high %v428_v60, %v432_v61 }
  0x8a   : > { %9622 = vmatpush1.bf16.msra.mxu0 %v11926_v4  ;;  %10114 = vmatpush1.bf16.msra.mxu1 %v11928_v5  ;;  %v11991_v0 = vcombine.high %v427_v58, %v431_v59  ;;  %v435_v2 = vld [vmem:[%s14005_s10 + $0x400] sm:$0xff]  ;;  %v436_v4 = vld [vmem:[%s14005_s10 + $0x408] sm:$0xff] }
  0x8b   : > { %9623 = vmatprep.subr.bf16.mxu0 %v11935_v6  ;;  %10115 = vmatprep.subr.bf16.mxu1 %v11937_v7  ;;  %v439_v3 = vld [vmem:[%s14005_s10 + $0x420] sm:$0xff]  ;;  %v440_v5 = vld [vmem:[%s14005_s10 + $0x428] sm:$0xff]  ;;  %v11990_v6 = vcombine.low %v427_v58, %v431_v59  ;;  %v11992_v7 = vcombine.low %v428_v60, %v432_v61 }
  0x8c   : > { %v11999_v8 = vcombine.high %v435_v2, %v439_v3  ;;  %v12001_v9 = vcombine.high %v436_v4, %v440_v5  ;;  %v443_v10 = vld [vmem:[%s14005_s10 + $0x440] sm:$0xff]  ;;  %v11998_v16 = vcombine.low %v435_v2, %v439_v3  ;;  %v12000_v17 = vcombine.low %v436_v4, %v440_v5 }
  0x8d   : > { %v447_v11 = vld [vmem:[%s14005_s10 + $0x460] sm:$0xff] }
  0x8e   : > { %9624 = vmatpush1.bf16.msra.mxu0 %v11934_v12  ;;  %10116 = vmatpush1.bf16.msra.mxu1 %v11936_v13  ;;  %v14104_v12 = vcombine.low %v14052_v53, %v14052_v53  ;;  %v444_v13 = vld [vmem:[%s14005_s10 + $0x448] sm:$0xff]  ;;  %v12007_v18 = vcombine.high %v443_v10, %v447_v11  ;;  %v451_v53 = vld [vmem:[%s14005_s10 + $0x480] sm:$0xff]  ;;  %v12006_v24 = vcombine.low %v443_v10, %v447_v11 }
  0x8f   : > { %9625 = vmatprep.subr.bf16.mxu0 %v11943_v14  ;;  %10117 = vmatprep.subr.bf16.mxu1 %v11945_v15  ;;  %v448_v14 = vld [vmem:[%s14005_s10 + $0x468] sm:$0xff] }
  0x90   : > { %v14111_v15 = vld [vmem:[%s15863_s0 + $0x8] sm:$0xff]  ;;  %v12009_v19 = vcombine.high %v444_v13, %v448_v14  ;;  %v12008_v25 = vcombine.low %v444_v13, %v448_v14 }
  0x92   : > { %9626 = vmatpush1.bf16.msra.mxu0 %v11942_v20  ;;  %10118 = vmatpush1.bf16.msra.mxu1 %v11944_v21  ;;  %v455_v20 = vld [vmem:[%s14005_s10 + $0x4a0] sm:$0xff]  ;;  %v14117_v21 = vcombine.high %v14111_v15, %v14111_v15 }
  0x93   : > { %9627 = vmatprep.subr.bf16.mxu0 %v11951_v22  ;;  %10119 = vmatprep.subr.bf16.mxu1 %v11953_v23  ;;  %v452_v22 = vld [vmem:[%s14005_s10 + $0x488] sm:$0xff]  ;;  %v12015_v26 = vcombine.high %v451_v53, %v455_v20  ;;  %v12014_v32 = vcombine.low %v451_v53, %v455_v20 }
  0x94   : > { %v456_v23 = vld [vmem:[%s14005_s10 + $0x4a8] sm:$0xff] }
  0x95   : > { %v12017_v27 = vcombine.high %v452_v22, %v456_v23  ;;  %v12016_v33 = vcombine.low %v452_v22, %v456_v23 }
  0x96   : > { %9628 = vmatpush1.bf16.msra.mxu0 %v11950_v28  ;;  %10120 = vmatpush1.bf16.msra.mxu1 %v11952_v29  ;;  %v459_v28 = vld [vmem:[%s14005_s10 + $0x4c0] sm:$0xff] }
  0x97   : > { %9629 = vmatprep.subr.bf16.mxu0 %v11959_v30  ;;  %10121 = vmatprep.subr.bf16.mxu1 %v11961_v31  ;;  %v463_v29 = vld [vmem:[%s14005_s10 + $0x4e0] sm:$0xff]  ;;  %v460_v30 = vld [vmem:[%s14005_s10 + $0x4c8] sm:$0xff] }
  0x98   : > { %v464_v31 = vld [vmem:[%s14005_s10 + $0x4e8] sm:$0xff]  ;;  %v12023_v34 = vcombine.high %v459_v28, %v463_v29  ;;  %v12022_v40 = vcombine.low %v459_v28, %v463_v29 }
  0x99   : > { %v12025_v35 = vcombine.high %v460_v30, %v464_v31  ;;  %v12024_v41 = vcombine.low %v460_v30, %v464_v31 }
  0x9a   : > { %9630 = vmatpush1.bf16.msra.mxu0 %v11958_v36  ;;  %10122 = vmatpush1.bf16.msra.mxu1 %v11960_v37  ;;  %v467_v36 = vld [vmem:[%s14005_s10 + $0x500] sm:$0xff] }
  0x9b   : > { %9631 = vmatprep.subr.bf16.mxu0 %v11967_v38  ;;  %10123 = vmatprep.subr.bf16.mxu1 %v11969_v39  ;;  %v471_v37 = vld [vmem:[%s14005_s10 + $0x520] sm:$0xff]  ;;  %v468_v38 = vld [vmem:[%s14005_s10 + $0x508] sm:$0xff] }
  0x9c   : > { %v472_v39 = vld [vmem:[%s14005_s10 + $0x528] sm:$0xff]  ;;  %v12031_v42 = vcombine.high %v467_v36, %v471_v37  ;;  %v12030_v48 = vcombine.low %v467_v36, %v471_v37 }
  0x9d   : > { %v12033_v43 = vcombine.high %v468_v38, %v472_v39  ;;  %v12032_v49 = vcombine.low %v468_v38, %v472_v39 }
  0x9e   : > { %9632 = vmatpush1.bf16.msra.mxu0 %v11966_v44  ;;  %10124 = vmatpush1.bf16.msra.mxu1 %v11968_v45  ;;  %v475_v44 = vld [vmem:[%s14005_s10 + $0x540] sm:$0xff] }
  0x9f   : > { %9633 = vmatprep.subr.bf16.mxu0 %v11975_v46  ;;  %10125 = vmatprep.subr.bf16.mxu1 %v11977_v47  ;;  %v479_v45 = vld [vmem:[%s14005_s10 + $0x560] sm:$0xff]  ;;  %v476_v46 = vld [vmem:[%s14005_s10 + $0x548] sm:$0xff] }
  0xa0   : > { %v480_v47 = vld [vmem:[%s14005_s10 + $0x568] sm:$0xff]  ;;  %v12039_v50 = vcombine.high %v475_v44, %v479_v45  ;;  %v12038_v58 = vcombine.low %v475_v44, %v479_v45 }
  0xa1   : > { %v12041_v51 = vcombine.high %v476_v46, %v480_v47  ;;  %v12040_v59 = vcombine.low %v476_v46, %v480_v47 }
  0xa2   : > { %9634 = vmatpush1.bf16.msra.mxu0 %v11974_v52  ;;  %10126 = vmatpush1.bf16.msra.mxu1 %v11976_v54  ;;  %v483_v52 = vld [vmem:[%s14005_s10 + $0x580] sm:$0xff] }
  0xa3   : > { %9635 = vmatprep.subr.bf16.mxu0 %v11983_v55  ;;  %10127 = vmatprep.subr.bf16.mxu1 %v11985_v56  ;;  %v487_v54 = vld [vmem:[%s14005_s10 + $0x5a0] sm:$0xff]  ;;  %v484_v55 = vld [vmem:[%s14005_s10 + $0x588] sm:$0xff] }
  0xa4   : > { %v488_v56 = vld [vmem:[%s14005_s10 + $0x5a8] sm:$0xff]  ;;  %v12047_v60 = vcombine.high %v483_v52, %v487_v54  ;;  %v12046_v2 = vcombine.low %v483_v52, %v487_v54 }
  0xa5   : > { %v12049_v61 = vcombine.high %v484_v55, %v488_v56  ;;  %v12048_v3 = vcombine.low %v484_v55, %v488_v56 }
  0xa6   : > { %9636 = vmatpush1.bf16.msra.mxu0 %v11982_v62  ;;  %10128 = vmatpush1.bf16.msra.mxu1 %v11984_v63  ;;  %v491_v62 = vld [vmem:[%s14005_s10 + $0x5c0] sm:$0xff] }
  0xa7   : > { %9637 = vmatprep.subr.bf16.mxu0 %v11991_v0  ;;  %10129 = vmatprep.subr.bf16.mxu1 %v11993_v1  ;;  %v495_v63 = vld [vmem:[%s14005_s10 + $0x5e0] sm:$0xff]  ;;  %v492_v0 = vld [vmem:[%s14005_s10 + $0x5c8] sm:$0xff] }
  0xa8   : > { %v496_v1 = vld [vmem:[%s14005_s10 + $0x5e8] sm:$0xff]  ;;  %v12055_v4 = vcombine.high %v491_v62, %v495_v63  ;;  %v12054_v10 = vcombine.low %v491_v62, %v495_v63 }
  0xa9   : > { %v12057_v5 = vcombine.high %v492_v0, %v496_v1  ;;  %v12056_v11 = vcombine.low %v492_v0, %v496_v1 }
  0xaa   : > { %9638 = vmatpush1.bf16.msra.mxu0 %v11990_v6  ;;  %10130 = vmatpush1.bf16.msra.mxu1 %v11992_v7  ;;  %v499_v6 = vld [vmem:[%s14005_s10 + $0x600] sm:$0xff] }
  0xab   : > { %9648 = vmatprep.subr.bf16.mxu0 %v11999_v8  ;;  %10140 = vmatprep.subr.bf16.mxu1 %v12001_v9  ;;  %v503_v7 = vld [vmem:[%s14005_s10 + $0x620] sm:$0xff]  ;;  %v500_v8 = vld [vmem:[%s14005_s10 + $0x608] sm:$0xff] }
  0xac   : > { %v504_v9 = vld [vmem:[%s14005_s10 + $0x628] sm:$0xff]  ;;  %v12063_v13 = vcombine.high %v499_v6, %v503_v7  ;;  %v12062_v53 = vcombine.low %v499_v6, %v503_v7 }
  0xad   : > { %9640 = vmatmul.mubr.bf16.vlgmr.msra.gmra.mrb[0].mxu0 %v14104_v12  ;;  %10132 = vmatmul.mubr.bf16.vlgmr.msra.gmra.mrb[0].mxu1 %v14104_v12  ;;  %v12065_v14 = vcombine.high %v500_v8, %v504_v9  ;;  %v12064_v20 = vcombine.low %v500_v8, %v504_v9 }
  0xae   : > { %9649 = vmatpush1.bf16.msra.mxu0 %v11998_v16  ;;  %10141 = vmatpush1.bf16.msra.mxu1 %v12000_v17  ;;  %v507_v16 = vld [vmem:[%s14005_s10 + $0x640] sm:$0xff] }
  0xaf   : > { %9650 = vmatprep.subr.bf16.mxu0 %v12007_v18  ;;  %10142 = vmatprep.subr.bf16.mxu1 %v12009_v19  ;;  %v511_v17 = vld [vmem:[%s14005_s10 + $0x660] sm:$0xff]  ;;  %v508_v18 = vld [vmem:[%s14005_s10 + $0x648] sm:$0xff] }
  0xb0   : > { %9680 = vmatprep.mubr.bf16.mxu0 %v14117_v21  ;;  %10172 = vmatprep.mubr.bf16.mxu1 %v14117_v21  ;;  %v512_v19 = vld [vmem:[%s14005_s10 + $0x668] sm:$0xff]  ;;  %v12071_v22 = vcombine.high %v507_v16, %v511_v17  ;;  %v12070_v28 = vcombine.low %v507_v16, %v511_v17 }
  0xb1   : > { %v12073_v23 = vcombine.high %v508_v18, %v512_v19  ;;  %v12072_v29 = vcombine.low %v508_v18, %v512_v19 }
  0xb2   : > { %9651 = vmatpush1.bf16.msra.mxu0 %v12006_v24  ;;  %10143 = vmatpush1.bf16.msra.mxu1 %v12008_v25  ;;  %v515_v24 = vld [vmem:[%s14005_s10 + $0x680] sm:$0xff] }
  0xb3   : > { %9652 = vmatprep.subr.bf16.mxu0 %v12015_v26  ;;  %10144 = vmatprep.subr.bf16.mxu1 %v12017_v27  ;;  %v519_v25 = vld [vmem:[%s14005_s10 + $0x6a0] sm:$0xff]  ;;  %v516_v26 = vld [vmem:[%s14005_s10 + $0x688] sm:$0xff] }
  0xb4   : > { %v520_v27 = vld [vmem:[%s14005_s10 + $0x6a8] sm:$0xff]  ;;  %v12079_v30 = vcombine.high %v515_v24, %v519_v25  ;;  %v12078_v36 = vcombine.low %v515_v24, %v519_v25  ;;  %v14192_v25 = vld [vmem:[%s15863_s0 + $0x10] sm:$0xff] }
  0xb5   : > { %v12081_v31 = vcombine.high %v516_v26, %v520_v27  ;;  %v12080_v37 = vcombine.low %v516_v26, %v520_v27  ;;  %v576_v24 = vld [vmem:[%s14005_s10 + $0x868] sm:$0xff] }
  0xb6   : > { %9653 = vmatpush1.bf16.msra.mxu0 %v12014_v32  ;;  %10145 = vmatpush1.bf16.msra.mxu1 %v12016_v33  ;;  %v523_v32 = vld [vmem:[%s14005_s10 + $0x6c0] sm:$0xff] }
  0xb7   : > { %9654 = vmatprep.subr.bf16.mxu0 %v12023_v34  ;;  %10146 = vmatprep.subr.bf16.mxu1 %v12025_v35  ;;  %v527_v33 = vld [vmem:[%s14005_s10 + $0x6e0] sm:$0xff]  ;;  %v524_v34 = vld [vmem:[%s14005_s10 + $0x6c8] sm:$0xff] }
  0xb8   : > { %v528_v35 = vld [vmem:[%s14005_s10 + $0x6e8] sm:$0xff]  ;;  %v12087_v38 = vcombine.high %v523_v32, %v527_v33  ;;  %v12086_v44 = vcombine.low %v523_v32, %v527_v33 }
  0xb9   : > { %v12089_v39 = vcombine.high %v524_v34, %v528_v35  ;;  %v12088_v45 = vcombine.low %v524_v34, %v528_v35  ;;  %v580_v32 = vld [vmem:[%s14005_s10 + $0x888] sm:$0xff] }
  0xba   : > { %9655 = vmatpush1.bf16.msra.mxu0 %v12022_v40  ;;  %10147 = vmatpush1.bf16.msra.mxu1 %v12024_v41  ;;  %v531_v40 = vld [vmem:[%s14005_s10 + $0x700] sm:$0xff]  ;;  %v584_v33 = vld [vmem:[%s14005_s10 + $0x8a8] sm:$0xff] }
  0xbb   : > { %9656 = vmatprep.subr.bf16.mxu0 %v12031_v42  ;;  %10148 = vmatprep.subr.bf16.mxu1 %v12033_v43  ;;  %v535_v41 = vld [vmem:[%s14005_s10 + $0x720] sm:$0xff]  ;;  %v532_v42 = vld [vmem:[%s14005_s10 + $0x708] sm:$0xff] }
  0xbc   : > { %v536_v43 = vld [vmem:[%s14005_s10 + $0x728] sm:$0xff]  ;;  %v12095_v46 = vcombine.high %v531_v40, %v535_v41  ;;  %v12094_v52 = vcombine.low %v531_v40, %v535_v41 }
  0xbd   : > { %v12097_v47 = vcombine.high %v532_v42, %v536_v43  ;;  %v12096_v54 = vcombine.low %v532_v42, %v536_v43  ;;  %v588_v40 = vld [vmem:[%s14005_s10 + $0x8c8] sm:$0xff]  ;;  %v12144_v43 = vcombine.low %v580_v32, %v584_v33 }
  0xbe   : > { %9657 = vmatpush1.bf16.msra.mxu0 %v12030_v48  ;;  %10149 = vmatpush1.bf16.msra.mxu1 %v12032_v49  ;;  %v539_v48 = vld [vmem:[%s14005_s10 + $0x740] sm:$0xff]  ;;  %v592_v41 = vld [vmem:[%s14005_s10 + $0x8e8] sm:$0xff] }
  0xbf   : > { %9658 = vmatprep.subr.bf16.mxu0 %v12039_v50  ;;  %10150 = vmatprep.subr.bf16.mxu1 %v12041_v51  ;;  %v543_v49 = vld [vmem:[%s14005_s10 + $0x760] sm:$0xff]  ;;  %v540_v50 = vld [vmem:[%s14005_s10 + $0x748] sm:$0xff] }
  0xc0   : > { %v544_v51 = vld [vmem:[%s14005_s10 + $0x768] sm:$0xff]  ;;  %v12103_v55 = vcombine.high %v539_v48, %v543_v49  ;;  %v12102_v62 = vcombine.low %v539_v48, %v543_v49 }
  0xc1   : > { %v12105_v56 = vcombine.high %v540_v50, %v544_v51  ;;  %v12104_v63 = vcombine.low %v540_v50, %v544_v51  ;;  %v596_v48 = vld [vmem:[%s14005_s10 + $0x908] sm:$0xff]  ;;  %v12152_v51 = vcombine.low %v588_v40, %v592_v41 }
  0xc2   : > { %9659 = vmatpush1.bf16.msra.mxu0 %v12038_v58  ;;  %10151 = vmatpush1.bf16.msra.mxu1 %v12040_v59  ;;  %v547_v58 = vld [vmem:[%s14005_s10 + $0x780] sm:$0xff]  ;;  %v600_v49 = vld [vmem:[%s14005_s10 + $0x928] sm:$0xff] }
  0xc3   : > { %9660 = vmatprep.subr.bf16.mxu0 %v12047_v60  ;;  %10152 = vmatprep.subr.bf16.mxu1 %v12049_v61  ;;  %v551_v59 = vld [vmem:[%s14005_s10 + $0x7a0] sm:$0xff]  ;;  %v548_v60 = vld [vmem:[%s14005_s10 + $0x788] sm:$0xff] }
  0xc4   : > { %v552_v61 = vld [vmem:[%s14005_s10 + $0x7a8] sm:$0xff]  ;;  %v12111_v0 = vcombine.high %v547_v58, %v551_v59  ;;  %v12110_v6 = vcombine.low %v547_v58, %v551_v59 }
  0xc5   : > { %v12113_v1 = vcombine.high %v548_v60, %v552_v61  ;;  %v12112_v7 = vcombine.low %v548_v60, %v552_v61  ;;  %v604_v58 = vld [vmem:[%s14005_s10 + $0x948] sm:$0xff]  ;;  %v12160_v61 = vcombine.low %v596_v48, %v600_v49 }
  0xc6   : > { %9661 = vmatpush1.bf16.msra.mxu0 %v12046_v2  ;;  %10153 = vmatpush1.bf16.msra.mxu1 %v12048_v3  ;;  %v555_v2 = vld [vmem:[%s14005_s10 + $0x7c0] sm:$0xff]  ;;  %v608_v59 = vld [vmem:[%s14005_s10 + $0x968] sm:$0xff] }
  0xc7   : > { %9662 = vmatprep.subr.bf16.mxu0 %v12055_v4  ;;  %10154 = vmatprep.subr.bf16.mxu1 %v12057_v5  ;;  %v559_v3 = vld [vmem:[%s14005_s10 + $0x7e0] sm:$0xff]  ;;  %v556_v4 = vld [vmem:[%s14005_s10 + $0x7c8] sm:$0xff] }
  0xc8   : > { %v560_v5 = vld [vmem:[%s14005_s10 + $0x7e8] sm:$0xff]  ;;  %v12119_v8 = vcombine.high %v555_v2, %v559_v3  ;;  %v12118_v16 = vcombine.low %v555_v2, %v559_v3 }
  0xc9   : > { %v12121_v9 = vcombine.high %v556_v4, %v560_v5  ;;  %v12120_v17 = vcombine.low %v556_v4, %v560_v5  ;;  %v612_v2 = vld [vmem:[%s14005_s10 + $0x988] sm:$0xff]  ;;  %v12168_v5 = vcombine.low %v604_v58, %v608_v59 }
  0xca   : > { %9663 = vmatpush1.bf16.msra.mxu0 %v12054_v10  ;;  %10155 = vmatpush1.bf16.msra.mxu1 %v12056_v11  ;;  %v563_v10 = vld [vmem:[%s14005_s10 + $0x800] sm:$0xff]  ;;  %v616_v3 = vld [vmem:[%s14005_s10 + $0x9a8] sm:$0xff] }
  0xcb   : > { %9664 = vmatprep.subr.bf16.mxu0 %v12063_v13  ;;  %10156 = vmatprep.subr.bf16.mxu1 %v12065_v14  ;;  %v567_v11 = vld [vmem:[%s14005_s10 + $0x820] sm:$0xff]  ;;  %v564_v13 = vld [vmem:[%s14005_s10 + $0x808] sm:$0xff] }
  0xcc   : > { %v568_v14 = vld [vmem:[%s14005_s10 + $0x828] sm:$0xff]  ;;  %v12127_v18 = vcombine.high %v563_v10, %v567_v11  ;;  %v12126_v26 = vcombine.low %v563_v10, %v567_v11 }
  0xcd   : > { %v12129_v19 = vcombine.high %v564_v13, %v568_v14  ;;  %v12128_v27 = vcombine.low %v564_v13, %v568_v14  ;;  %v620_v10 = vld [vmem:[%s14005_s10 + $0x9c8] sm:$0xff]  ;;  %v12176_v14 = vcombine.low %v612_v2, %v616_v3 }
  0xce   : > { %9665 = vmatpush1.bf16.msra.mxu0 %v12062_v53  ;;  %10157 = vmatpush1.bf16.msra.mxu1 %v12064_v20  ;;  %v571_v53 = vld [vmem:[%s14005_s10 + $0x840] sm:$0xff]  ;;  %v624_v11 = vld [vmem:[%s14005_s10 + $0x9e8] sm:$0xff] }
  0xcf   : > { %9666 = vmatprep.subr.bf16.mxu0 %v12071_v22  ;;  %10158 = vmatprep.subr.bf16.mxu1 %v12073_v23  ;;  %v575_v20 = vld [vmem:[%s14005_s10 + $0x860] sm:$0xff]  ;;  %v14185_v22 = vcombine.low %v14111_v15, %v14111_v15  ;;  %v572_v23 = vld [vmem:[%s14005_s10 + $0x848] sm:$0xff] }
  0xd0   : > { %v579_v15 = vld [vmem:[%s14005_s10 + $0x880] sm:$0xff]  ;;  %v12134_v34 = vcombine.low %v571_v53, %v575_v20  ;;  %v12136_v35 = vcombine.low %v572_v23, %v576_v24 }
  0xd2   : > { %9667 = vmatpush1.bf16.msra.mxu0 %v12070_v28  ;;  %10159 = vmatpush1.bf16.msra.mxu1 %v12072_v29  ;;  %v12135_v28 = vcombine.high %v571_v53, %v575_v20  ;;  %v12137_v29 = vcombine.high %v572_v23, %v576_v24  ;;  %v628_v53 = vld [vmem:[%s14005_s10 + $0xa08] sm:$0xff]  ;;  %v12184_v24 = vcombine.low %v620_v10, %v624_v11 }
  0xd3   : > { %9668 = vmatprep.subr.bf16.mxu0 %v12079_v30  ;;  %10160 = vmatprep.subr.bf16.mxu1 %v12081_v31  ;;  %v583_v30 = vld [vmem:[%s14005_s10 + $0x8a0] sm:$0xff]  ;;  %v14198_v31 = vcombine.high %v14192_v25, %v14192_v25  ;;  %v632_v20 = vld [vmem:[%s14005_s10 + $0xa28] sm:$0xff] }
  0xd4   : > { %v12142_v42 = vcombine.low %v579_v15, %v583_v30 }
  0xd6   : > { %9669 = vmatpush1.bf16.msra.mxu0 %v12078_v36  ;;  %10161 = vmatpush1.bf16.msra.mxu1 %v12080_v37  ;;  %v12143_v36 = vcombine.high %v579_v15, %v583_v30  ;;  %v12145_v37 = vcombine.high %v580_v32, %v584_v33  ;;  %v636_v15 = vld [vmem:[%s14005_s10 + $0xa48] sm:$0xff]  ;;  %v12192_v33 = vcombine.low %v628_v53, %v632_v20 }
  0xd7   : > { %9670 = vmatprep.subr.bf16.mxu0 %v12087_v38  ;;  %10162 = vmatprep.subr.bf16.mxu1 %v12089_v39  ;;  %v587_v38 = vld [vmem:[%s14005_s10 + $0x8c0] sm:$0xff]  ;;  %v640_v30 = vld [vmem:[%s14005_s10 + $0xa68] sm:$0xff] }
  0xd8   : > { %v591_v39 = vld [vmem:[%s14005_s10 + $0x8e0] sm:$0xff] }
  0xd9   : > { %v12150_v50 = vcombine.low %v587_v38, %v591_v39 }
  0xda   : > { %9671 = vmatpush1.bf16.msra.mxu0 %v12086_v44  ;;  %10163 = vmatpush1.bf16.msra.mxu1 %v12088_v45  ;;  %v12151_v44 = vcombine.high %v587_v38, %v591_v39  ;;  %v12153_v45 = vcombine.high %v588_v40, %v592_v41  ;;  %v644_v38 = vld [vmem:[%s14005_s10 + $0xa88] sm:$0xff]  ;;  %v12200_v41 = vcombine.low %v636_v15, %v640_v30 }
  0xdb   : > { %9672 = vmatprep.subr.bf16.mxu0 %v12095_v46  ;;  %10164 = vmatprep.subr.bf16.mxu1 %v12097_v47  ;;  %v595_v46 = vld [vmem:[%s14005_s10 + $0x900] sm:$0xff]  ;;  %v648_v39 = vld [vmem:[%s14005_s10 + $0xaa8] sm:$0xff] }
  0xdc   : > { %v599_v47 = vld [vmem:[%s14005_s10 + $0x920] sm:$0xff] }
  0xdd   : > { %v12158_v60 = vcombine.low %v595_v46, %v599_v47 }
  0xde   : > { %9673 = vmatpush1.bf16.msra.mxu0 %v12094_v52  ;;  %10165 = vmatpush1.bf16.msra.mxu1 %v12096_v54  ;;  %v12159_v52 = vcombine.high %v595_v46, %v599_v47  ;;  %v12161_v54 = vcombine.high %v596_v48, %v600_v49  ;;  %v652_v46 = vld [vmem:[%s14005_s10 + $0xac8] sm:$0xff]  ;;  %v12208_v49 = vcombine.low %v644_v38, %v648_v39 }
  0xdf   : > { %9674 = vmatprep.subr.bf16.mxu0 %v12103_v55  ;;  %10166 = vmatprep.subr.bf16.mxu1 %v12105_v56  ;;  %v603_v55 = vld [vmem:[%s14005_s10 + $0x940] sm:$0xff]  ;;  %v656_v47 = vld [vmem:[%s14005_s10 + $0xae8] sm:$0xff] }
  0xe0   : > { %v607_v56 = vld [vmem:[%s14005_s10 + $0x960] sm:$0xff] }
  0xe1   : > { %v12166_v4 = vcombine.low %v603_v55, %v607_v56 }
  0xe2   : > { %9675 = vmatpush1.bf16.msra.mxu0 %v12102_v62  ;;  %10167 = vmatpush1.bf16.msra.mxu1 %v12104_v63  ;;  %v12167_v62 = vcombine.high %v603_v55, %v607_v56  ;;  %v12169_v63 = vcombine.high %v604_v58, %v608_v59  ;;  %v660_v55 = vld [vmem:[%s14005_s10 + $0xb08] sm:$0xff]  ;;  %v12216_v59 = vcombine.low %v652_v46, %v656_v47 }
  0xe3   : > { %9676 = vmatprep.subr.bf16.mxu0 %v12111_v0  ;;  %10168 = vmatprep.subr.bf16.mxu1 %v12113_v1  ;;  %v611_v0 = vld [vmem:[%s14005_s10 + $0x980] sm:$0xff]  ;;  %v664_v56 = vld [vmem:[%s14005_s10 + $0xb28] sm:$0xff] }
  0xe4   : > { %v615_v1 = vld [vmem:[%s14005_s10 + $0x9a0] sm:$0xff] }
  0xe5   : > { %v12174_v13 = vcombine.low %v611_v0, %v615_v1 }
  0xe6   : > { %9677 = vmatpush1.bf16.msra.mxu0 %v12110_v6  ;;  %10169 = vmatpush1.bf16.msra.mxu1 %v12112_v7  ;;  %v12175_v6 = vcombine.high %v611_v0, %v615_v1  ;;  %v12177_v7 = vcombine.high %v612_v2, %v616_v3  ;;  %v668_v0 = vld [vmem:[%s14005_s10 + $0xb48] sm:$0xff]  ;;  %v12224_v3 = vcombine.low %v660_v55, %v664_v56 }
  0xe7   : > { %9678 = vmatprep.subr.bf16.mxu0 %v12119_v8  ;;  %10170 = vmatprep.subr.bf16.mxu1 %v12121_v9  ;;  %v619_v8 = vld [vmem:[%s14005_s10 + $0x9c0] sm:$0xff]  ;;  %v672_v1 = vld [vmem:[%s14005_s10 + $0xb68] sm:$0xff] }
  0xe8   : > { %v623_v9 = vld [vmem:[%s14005_s10 + $0x9e0] sm:$0xff] }
  0xe9   : > { %v12182_v23 = vcombine.low %v619_v8, %v623_v9 }
  0xea   : > { %9679 = vmatpush1.bf16.msra.mxu0 %v12118_v16  ;;  %10171 = vmatpush1.bf16.msra.mxu1 %v12120_v17  ;;  %v12183_v16 = vcombine.high %v619_v8, %v623_v9  ;;  %v12185_v17 = vcombine.high %v620_v10, %v624_v11  ;;  %v676_v8 = vld [vmem:[%s14005_s10 + $0xb88] sm:$0xff]  ;;  %v12232_v11 = vcombine.low %v668_v0, %v672_v1 }
  0xeb   : > { %9689 = vmatprep.subr.bf16.mxu0 %v12127_v18  ;;  %10181 = vmatprep.subr.bf16.mxu1 %v12129_v19  ;;  %v627_v18 = vld [vmem:[%s14005_s10 + $0xa00] sm:$0xff]  ;;  %v680_v9 = vld [vmem:[%s14005_s10 + $0xba8] sm:$0xff] }
  0xec   : > { %v631_v19 = vld [vmem:[%s14005_s10 + $0xa20] sm:$0xff] }
  0xed   : > { %9681 = vmatmul.mubr.bf16.vlgmr.msra.gmra.mrb[0].mxu0 %v14185_v22  ;;  %10173 = vmatmul.mubr.bf16.vlgmr.msra.gmra.mrb[0].mxu1 %v14185_v22  ;;  %v12190_v32 = vcombine.low %v627_v18, %v631_v19 }
  0xee   : > { %9690 = vmatpush1.bf16.msra.mxu0 %v12126_v26  ;;  %10182 = vmatpush1.bf16.msra.mxu1 %v12128_v27  ;;  %v12191_v26 = vcombine.high %v627_v18, %v631_v19  ;;  %v12193_v27 = vcombine.high %v628_v53, %v632_v20  ;;  %v684_v18 = vld [vmem:[%s14005_s10 + $0xbc8] sm:$0xff]  ;;  %v12240_v20 = vcombine.low %v676_v8, %v680_v9 }
  0xef   : > { %9691 = vmatprep.subr.bf16.mxu0 %v12135_v28  ;;  %10183 = vmatprep.subr.bf16.mxu1 %v12137_v29  ;;  %v635_v28 = vld [vmem:[%s14005_s10 + $0xa40] sm:$0xff]  ;;  %v688_v19 = vld [vmem:[%s14005_s10 + $0xbe8] sm:$0xff] }
  0xf0   : > { %9721 = vmatprep.mubr.bf16.mxu0 %v14198_v31  ;;  %10213 = vmatprep.mubr.bf16.mxu1 %v14198_v31  ;;  %v639_v29 = vld [vmem:[%s14005_s10 + $0xa60] sm:$0xff] }
  0xf1   : > { %v12198_v40 = vcombine.low %v635_v28, %v639_v29 }
  0xf2   : > { %9692 = vmatpush1.bf16.msra.mxu0 %v12134_v34  ;;  %10184 = vmatpush1.bf16.msra.mxu1 %v12136_v35  ;;  %v12199_v34 = vcombine.high %v635_v28, %v639_v29  ;;  %v12201_v35 = vcombine.high %v636_v15, %v640_v30  ;;  %v692_v28 = vld [vmem:[%s14005_s10 + $0xc08] sm:$0xff]  ;;  %v12248_v30 = vcombine.low %v684_v18, %v688_v19 }
  0xf3   : > { %9693 = vmatprep.subr.bf16.mxu0 %v12143_v36  ;;  %10185 = vmatprep.subr.bf16.mxu1 %v12145_v37  ;;  %v643_v36 = vld [vmem:[%s14005_s10 + $0xa80] sm:$0xff]  ;;  %v696_v29 = vld [vmem:[%s14005_s10 + $0xc28] sm:$0xff] }
  0xf4   : > { %v647_v37 = vld [vmem:[%s14005_s10 + $0xaa0] sm:$0xff] }
  0xf5   : > { %v12206_v48 = vcombine.low %v643_v36, %v647_v37 }
  0xf6   : > { %9694 = vmatpush1.bf16.msra.mxu0 %v12142_v42  ;;  %10186 = vmatpush1.bf16.msra.mxu1 %v12144_v43  ;;  %v12207_v42 = vcombine.high %v643_v36, %v647_v37  ;;  %v12209_v43 = vcombine.high %v644_v38, %v648_v39  ;;  %v14266_v36 = vcombine.low %v14192_v25, %v14192_v25  ;;  %v700_v37 = vld [vmem:[%s14005_s10 + $0xc48] sm:$0xff]  ;;  %v14273_v39 = vld [vmem:[%s15863_s0 + $0x18] sm:$0xff]  ;;  %v707_v25 = vld [vmem:[%s14005_s10 + $0xc80] sm:$0xff] }
  0xf7   : > { %9695 = vmatprep.subr.bf16.mxu0 %v12151_v44  ;;  %10187 = vmatprep.subr.bf16.mxu1 %v12153_v45  ;;  %v651_v44 = vld [vmem:[%s14005_s10 + $0xac0] sm:$0xff]  ;;  %v704_v38 = vld [vmem:[%s14005_s10 + $0xc68] sm:$0xff] }
  0xf8   : > { %v655_v45 = vld [vmem:[%s14005_s10 + $0xae0] sm:$0xff] }
  0xf9   : > { %v12214_v58 = vcombine.low %v651_v44, %v655_v45 }
  0xfa   : > { %9696 = vmatpush1.bf16.msra.mxu0 %v12150_v50  ;;  %10188 = vmatpush1.bf16.msra.mxu1 %v12152_v51  ;;  %v12215_v50 = vcombine.high %v651_v44, %v655_v45  ;;  %v12217_v51 = vcombine.high %v652_v46, %v656_v47  ;;  %v711_v44 = vld [vmem:[%s14005_s10 + $0xca0] sm:$0xff]  ;;  %v14279_v45 = vcombine.high %v14273_v39, %v14273_v39  ;;  %v708_v46 = vld [vmem:[%s14005_s10 + $0xc88] sm:$0xff] }
  0xfb   : > { %9697 = vmatprep.subr.bf16.mxu0 %v12159_v52  ;;  %10189 = vmatprep.subr.bf16.mxu1 %v12161_v54  ;;  %v659_v52 = vld [vmem:[%s14005_s10 + $0xb00] sm:$0xff]  ;;  %v712_v47 = vld [vmem:[%s14005_s10 + $0xca8] sm:$0xff] }
  0xfc   : > { %v663_v54 = vld [vmem:[%s14005_s10 + $0xb20] sm:$0xff] }
  0xfd   : > { %v12222_v2 = vcombine.low %v659_v52, %v663_v54 }
  0xfe   : > { %9698 = vmatpush1.bf16.msra.mxu0 %v12158_v60  ;;  %10190 = vmatpush1.bf16.msra.mxu1 %v12160_v61  ;;  %v12223_v60 = vcombine.high %v659_v52, %v663_v54  ;;  %v12225_v61 = vcombine.high %v660_v55, %v664_v56  ;;  %v715_v52 = vld [vmem:[%s14005_s10 + $0xcc0] sm:$0xff]  ;;  %v716_v55 = vld [vmem:[%s14005_s10 + $0xcc8] sm:$0xff] }
  0xff   : > { %9699 = vmatprep.subr.bf16.mxu0 %v12167_v62  ;;  %10191 = vmatprep.subr.bf16.mxu1 %v12169_v63  ;;  %v667_v62 = vld [vmem:[%s14005_s10 + $0xb40] sm:$0xff]  ;;  %v720_v56 = vld [vmem:[%s14005_s10 + $0xce8] sm:$0xff] }
 0x100   : > { %v671_v63 = vld [vmem:[%s14005_s10 + $0xb60] sm:$0xff] }
 0x101   : > { %v12230_v10 = vcombine.low %v667_v62, %v671_v63  ;;  %v719_v54 = vld [vmem:[%s14005_s10 + $0xce0] sm:$0xff] }
 0x102   : > { %9700 = vmatpush1.bf16.msra.mxu0 %v12166_v4  ;;  %10192 = vmatpush1.bf16.msra.mxu1 %v12168_v5  ;;  %v12231_v4 = vcombine.high %v667_v62, %v671_v63  ;;  %v12233_v5 = vcombine.high %v668_v0, %v672_v1  ;;  %v723_v62 = vld [vmem:[%s14005_s10 + $0xd00] sm:$0xff]  ;;  %v724_v0 = vld [vmem:[%s14005_s10 + $0xd08] sm:$0xff] }
 0x103   : > { %9701 = vmatprep.subr.bf16.mxu0 %v12175_v6  ;;  %10193 = vmatprep.subr.bf16.mxu1 %v12177_v7  ;;  %v675_v6 = vld [vmem:[%s14005_s10 + $0xb80] sm:$0xff]  ;;  %v728_v1 = vld [vmem:[%s14005_s10 + $0xd28] sm:$0xff] }
 0x104   : > { %v679_v7 = vld [vmem:[%s14005_s10 + $0xba0] sm:$0xff] }
 0x105   : > { %v12238_v53 = vcombine.low %v675_v6, %v679_v7  ;;  %v727_v63 = vld [vmem:[%s14005_s10 + $0xd20] sm:$0xff] }
 0x106   : > { %9702 = vmatpush1.bf16.msra.mxu0 %v12174_v13  ;;  %10194 = vmatpush1.bf16.msra.mxu1 %v12176_v14  ;;  %v12239_v13 = vcombine.high %v675_v6, %v679_v7  ;;  %v12241_v14 = vcombine.high %v676_v8, %v680_v9  ;;  %v731_v6 = vld [vmem:[%s14005_s10 + $0xd40] sm:$0xff]  ;;  %v732_v8 = vld [vmem:[%s14005_s10 + $0xd48] sm:$0xff] }
 0x107   : > { %9703 = vmatprep.subr.bf16.mxu0 %v12183_v16  ;;  %10195 = vmatprep.subr.bf16.mxu1 %v12185_v17  ;;  %v683_v16 = vld [vmem:[%s14005_s10 + $0xbc0] sm:$0xff]  ;;  %v736_v9 = vld [vmem:[%s14005_s10 + $0xd68] sm:$0xff] }
 0x108   : > { %v687_v17 = vld [vmem:[%s14005_s10 + $0xbe0] sm:$0xff] }
 0x109   : > { %v12246_v15 = vcombine.low %v683_v16, %v687_v17  ;;  %v735_v7 = vld [vmem:[%s14005_s10 + $0xd60] sm:$0xff] }
 0x10a   : > { %9704 = vmatpush1.bf16.msra.mxu0 %v12182_v23  ;;  %10196 = vmatpush1.bf16.msra.mxu1 %v12184_v24  ;;  %v12247_v23 = vcombine.high %v683_v16, %v687_v17  ;;  %v12249_v24 = vcombine.high %v684_v18, %v688_v19  ;;  %v739_v16 = vld [vmem:[%s14005_s10 + $0xd80] sm:$0xff]  ;;  %v740_v18 = vld [vmem:[%s14005_s10 + $0xd88] sm:$0xff] }
 0x10b   : > { %9705 = vmatprep.subr.bf16.mxu0 %v12191_v26  ;;  %10197 = vmatprep.subr.bf16.mxu1 %v12193_v27  ;;  %v691_v26 = vld [vmem:[%s14005_s10 + $0xc00] sm:$0xff]  ;;  %v744_v19 = vld [vmem:[%s14005_s10 + $0xda8] sm:$0xff] }
 0x10c   : > { %v695_v27 = vld [vmem:[%s14005_s10 + $0xc20] sm:$0xff] }
 0x10d   : > { %v743_v17 = vld [vmem:[%s14005_s10 + $0xda0] sm:$0xff] }
 0x10e   : > { %9706 = vmatpush1.bf16.msra.mxu0 %v12190_v32  ;;  %10198 = vmatpush1.bf16.msra.mxu1 %v12192_v33  ;;  %v12255_v32 = vcombine.high %v691_v26, %v695_v27  ;;  %v12257_v33 = vcombine.high %v692_v28, %v696_v29 }
 0x10f   : > { %9707 = vmatprep.subr.bf16.mxu0 %v12199_v34  ;;  %10199 = vmatprep.subr.bf16.mxu1 %v12201_v35  ;;  %v699_v34 = vld [vmem:[%s14005_s10 + $0xc40] sm:$0xff] }
 0x110   : > { %v703_v35 = vld [vmem:[%s14005_s10 + $0xc60] sm:$0xff] }
 0x112   : > { %9708 = vmatpush1.bf16.msra.mxu0 %v12198_v40  ;;  %10200 = vmatpush1.bf16.msra.mxu1 %v12200_v41  ;;  %v12254_v40 = vcombine.low %v691_v26, %v695_v27  ;;  %v12256_v41 = vcombine.low %v692_v28, %v696_v29  ;;  %v747_v26 = vld [vmem:[%s14005_s10 + $0xdc0] sm:$0xff]  ;;  %v748_v28 = vld [vmem:[%s14005_s10 + $0xdc8] sm:$0xff] }
 0x113   : > { %9709 = vmatprep.subr.bf16.mxu0 %v12207_v42  ;;  %10201 = vmatprep.subr.bf16.mxu1 %v12209_v43  ;;  %v12263_v42 = vcombine.high %v699_v34, %v703_v35  ;;  %v12265_v43 = vcombine.high %v700_v37, %v704_v38  ;;  %v751_v27 = vld [vmem:[%s14005_s10 + $0xde0] sm:$0xff]  ;;  %v752_v29 = vld [vmem:[%s14005_s10 + $0xde8] sm:$0xff] }
 0x116   : > { %9710 = vmatpush1.bf16.msra.mxu0 %v12206_v48  ;;  %10202 = vmatpush1.bf16.msra.mxu1 %v12208_v49  ;;  %v12262_v48 = vcombine.low %v699_v34, %v703_v35  ;;  %v12264_v49 = vcombine.low %v700_v37, %v704_v38  ;;  %v755_v34 = vld [vmem:[%s14005_s10 + $0xe00] sm:$0xff]  ;;  %v756_v37 = vld [vmem:[%s14005_s10 + $0xe08] sm:$0xff] }
 0x117   : > { %9711 = vmatprep.subr.bf16.mxu0 %v12215_v50  ;;  %10203 = vmatprep.subr.bf16.mxu1 %v12217_v51  ;;  %v12271_v50 = vcombine.high %v707_v25, %v711_v44  ;;  %v12273_v51 = vcombine.high %v708_v46, %v712_v47  ;;  %v759_v35 = vld [vmem:[%s14005_s10 + $0xe20] sm:$0xff]  ;;  %v760_v38 = vld [vmem:[%s14005_s10 + $0xe28] sm:$0xff] }
 0x11a   : > { %9712 = vmatpush1.bf16.msra.mxu0 %v12214_v58  ;;  %10204 = vmatpush1.bf16.msra.mxu1 %v12216_v59  ;;  %v12270_v58 = vcombine.low %v707_v25, %v711_v44  ;;  %v12272_v59 = vcombine.low %v708_v46, %v712_v47  ;;  %v763_v25 = vld [vmem:[%s14005_s10 + $0xe40] sm:$0xff]  ;;  %v764_v46 = vld [vmem:[%s14005_s10 + $0xe48] sm:$0xff] }
 0x11b   : > { %9713 = vmatprep.subr.bf16.mxu0 %v12223_v60  ;;  %10205 = vmatprep.subr.bf16.mxu1 %v12225_v61  ;;  %v12279_v60 = vcombine.high %v715_v52, %v719_v54  ;;  %v12281_v61 = vcombine.high %v716_v55, %v720_v56  ;;  %v767_v44 = vld [vmem:[%s14005_s10 + $0xe60] sm:$0xff]  ;;  %v768_v47 = vld [vmem:[%s14005_s10 + $0xe68] sm:$0xff] }
 0x11e   : > { %9714 = vmatpush1.bf16.msra.mxu0 %v12222_v2  ;;  %10206 = vmatpush1.bf16.msra.mxu1 %v12224_v3  ;;  %v12278_v2 = vcombine.low %v715_v52, %v719_v54  ;;  %v12280_v3 = vcombine.low %v716_v55, %v720_v56  ;;  %v771_v52 = vld [vmem:[%s14005_s10 + $0xe80] sm:$0xff]  ;;  %v772_v55 = vld [vmem:[%s14005_s10 + $0xe88] sm:$0xff] }
 0x11f   : > { %9715 = vmatprep.subr.bf16.mxu0 %v12231_v4  ;;  %10207 = vmatprep.subr.bf16.mxu1 %v12233_v5  ;;  %v12287_v4 = vcombine.high %v723_v62, %v727_v63  ;;  %v12289_v5 = vcombine.high %v724_v0, %v728_v1  ;;  %v775_v54 = vld [vmem:[%s14005_s10 + $0xea0] sm:$0xff]  ;;  %v776_v56 = vld [vmem:[%s14005_s10 + $0xea8] sm:$0xff] }
 0x122   : > { %9716 = vmatpush1.bf16.msra.mxu0 %v12230_v10  ;;  %10208 = vmatpush1.bf16.msra.mxu1 %v12232_v11  ;;  %v12286_v10 = vcombine.low %v723_v62, %v727_v63  ;;  %v12288_v11 = vcombine.low %v724_v0, %v728_v1  ;;  %v779_v62 = vld [vmem:[%s14005_s10 + $0xec0] sm:$0xff]  ;;  %v780_v0 = vld [vmem:[%s14005_s10 + $0xec8] sm:$0xff] }
 0x123   : > { %9717 = vmatprep.subr.bf16.mxu0 %v12239_v13  ;;  %10209 = vmatprep.subr.bf16.mxu1 %v12241_v14  ;;  %v12295_v13 = vcombine.high %v731_v6, %v735_v7  ;;  %v12297_v14 = vcombine.high %v732_v8, %v736_v9  ;;  %v783_v63 = vld [vmem:[%s14005_s10 + $0xee0] sm:$0xff]  ;;  %v784_v1 = vld [vmem:[%s14005_s10 + $0xee8] sm:$0xff] }
 0x126   : > { %9718 = vmatpush1.bf16.msra.mxu0 %v12238_v53  ;;  %10210 = vmatpush1.bf16.msra.mxu1 %v12240_v20  ;;  %v12294_v53 = vcombine.low %v731_v6, %v735_v7  ;;  %v12296_v20 = vcombine.low %v732_v8, %v736_v9  ;;  %v787_v6 = vld [vmem:[%s14005_s10 + $0xf00] sm:$0xff]  ;;  %v788_v8 = vld [vmem:[%s14005_s10 + $0xf08] sm:$0xff] }
 0x127   : > { %9719 = vmatprep.subr.bf16.mxu0 %v12247_v23  ;;  %10211 = vmatprep.subr.bf16.mxu1 %v12249_v24  ;;  %v12303_v23 = vcombine.high %v739_v16, %v743_v17  ;;  %v12305_v24 = vcombine.high %v740_v18, %v744_v19  ;;  %v791_v7 = vld [vmem:[%s14005_s10 + $0xf20] sm:$0xff]  ;;  %v792_v9 = vld [vmem:[%s14005_s10 + $0xf28] sm:$0xff] }
 0x12a   : > { %9720 = vmatpush1.bf16.msra.mxu0 %v12246_v15  ;;  %10212 = vmatpush1.bf16.msra.mxu1 %v12248_v30  ;;  %v12302_v15 = vcombine.low %v739_v16, %v743_v17  ;;  %v12304_v30 = vcombine.low %v740_v18, %v744_v19  ;;  %v795_v16 = vld [vmem:[%s14005_s10 + $0xf40] sm:$0xff]  ;;  %v796_v18 = vld [vmem:[%s14005_s10 + $0xf48] sm:$0xff] }
 0x12b   : > { %9730 = vmatprep.subr.bf16.mxu0 %v12255_v32  ;;  %10222 = vmatprep.subr.bf16.mxu1 %v12257_v33  ;;  %v12311_v32 = vcombine.high %v747_v26, %v751_v27  ;;  %v12313_v33 = vcombine.high %v748_v28, %v752_v29  ;;  %v799_v17 = vld [vmem:[%s14005_s10 + $0xf60] sm:$0xff]  ;;  %v800_v19 = vld [vmem:[%s14005_s10 + $0xf68] sm:$0xff] }
 0x12d   : > { %9722 = vmatmul.mubr.bf16.vlgmr.msra.gmra.mrb[0].mxu0 %v14266_v36  ;;  %10214 = vmatmul.mubr.bf16.vlgmr.msra.gmra.mrb[0].mxu1 %v14266_v36 }
 0x12e   : > { %9731 = vmatpush1.bf16.msra.mxu0 %v12254_v40  ;;  %10223 = vmatpush1.bf16.msra.mxu1 %v12256_v41  ;;  %v12310_v40 = vcombine.low %v747_v26, %v751_v27  ;;  %v12312_v41 = vcombine.low %v748_v28, %v752_v29  ;;  %v803_v26 = vld [vmem:[%s14005_s10 + $0xf80] sm:$0xff]  ;;  %v804_v28 = vld [vmem:[%s14005_s10 + $0xf88] sm:$0xff] }
 0x12f   : > { %9732 = vmatprep.subr.bf16.mxu0 %v12263_v42  ;;  %10224 = vmatprep.subr.bf16.mxu1 %v12265_v43  ;;  %v12319_v42 = vcombine.high %v755_v34, %v759_v35  ;;  %v12321_v43 = vcombine.high %v756_v37, %v760_v38  ;;  %v807_v27 = vld [vmem:[%s14005_s10 + $0xfa0] sm:$0xff]  ;;  %v808_v29 = vld [vmem:[%s14005_s10 + $0xfa8] sm:$0xff] }
 0x130   : > { %9762 = vmatprep.mubr.bf16.mxu0 %v14279_v45  ;;  %10254 = vmatprep.mubr.bf16.mxu1 %v14279_v45 }
 0x132   : > { %9733 = vmatpush1.bf16.msra.mxu0 %v12262_v48  ;;  %10225 = vmatpush1.bf16.msra.mxu1 %v12264_v49  ;;  %v12318_v48 = vcombine.low %v755_v34, %v759_v35  ;;  %v12320_v49 = vcombine.low %v756_v37, %v760_v38  ;;  %v811_v34 = vld [vmem:[%s14005_s10 + $0xfc0] sm:$0xff]  ;;  %v812_v37 = vld [vmem:[%s14005_s10 + $0xfc8] sm:$0xff] }
 0x133   : > { %9734 = vmatprep.subr.bf16.mxu0 %v12271_v50  ;;  %10226 = vmatprep.subr.bf16.mxu1 %v12273_v51  ;;  %v12327_v50 = vcombine.high %v763_v25, %v767_v44  ;;  %v12329_v51 = vcombine.high %v764_v46, %v768_v47  ;;  %v815_v35 = vld [vmem:[%s14005_s10 + $0xfe0] sm:$0xff]  ;;  %v816_v38 = vld [vmem:[%s14005_s10 + $0xfe8] sm:$0xff] }
 0x136   : > { %9735 = vmatpush1.bf16.msra.mxu0 %v12270_v58  ;;  %10227 = vmatpush1.bf16.msra.mxu1 %v12272_v59  ;;  %v12326_v58 = vcombine.low %v763_v25, %v767_v44  ;;  %v12328_v59 = vcombine.low %v764_v46, %v768_v47  ;;  %v819_v25 = vld [vmem:[%s14005_s10 + $0x1000] sm:$0xff]  ;;  %v820_v46 = vld [vmem:[%s14005_s10 + $0x1008] sm:$0xff] }
 0x137   : > { %9736 = vmatprep.subr.bf16.mxu0 %v12279_v60  ;;  %10228 = vmatprep.subr.bf16.mxu1 %v12281_v61  ;;  %v12335_v60 = vcombine.high %v771_v52, %v775_v54  ;;  %v12337_v61 = vcombine.high %v772_v55, %v776_v56  ;;  %v823_v44 = vld [vmem:[%s14005_s10 + $0x1020] sm:$0xff]  ;;  %v824_v47 = vld [vmem:[%s14005_s10 + $0x1028] sm:$0xff] }
 0x13a   : > { %9737 = vmatpush1.bf16.msra.mxu0 %v12278_v2  ;;  %10229 = vmatpush1.bf16.msra.mxu1 %v12280_v3  ;;  %v12334_v2 = vcombine.low %v771_v52, %v775_v54  ;;  %v12336_v3 = vcombine.low %v772_v55, %v776_v56  ;;  %v827_v52 = vld [vmem:[%s14005_s10 + $0x1040] sm:$0xff]  ;;  %v14347_v55 = vcombine.low %v14273_v39, %v14273_v39  ;;  %v828_v56 = vld [vmem:[%s14005_s10 + $0x1048] sm:$0xff] }
 0x13b   : > { %9738 = vmatprep.subr.bf16.mxu0 %v12287_v4  ;;  %10230 = vmatprep.subr.bf16.mxu1 %v12289_v5  ;;  %v12343_v4 = vcombine.high %v779_v62, %v783_v63  ;;  %v12345_v5 = vcombine.high %v780_v0, %v784_v1  ;;  %v831_v54 = vld [vmem:[%s14005_s10 + $0x1060] sm:$0xff] }
 0x13c   : > { %v835_v39 = vld [vmem:[%s14005_s10 + $0x1080] sm:$0xff] }
 0x13e   : > { %9739 = vmatpush1.bf16.msra.mxu0 %v12286_v10  ;;  %10231 = vmatpush1.bf16.msra.mxu1 %v12288_v11  ;;  %v12342_v10 = vcombine.low %v779_v62, %v783_v63  ;;  %v12344_v11 = vcombine.low %v780_v0, %v784_v1  ;;  %v12391_v62 = vcombine.high %v827_v52, %v831_v54  ;;  %v839_v0 = vld [vmem:[%s14005_s10 + $0x10a0] sm:$0xff] }
 0x13f   : > { %9740 = vmatprep.subr.bf16.mxu0 %v12295_v13  ;;  %10232 = vmatprep.subr.bf16.mxu1 %v12297_v14  ;;  %v12351_v13 = vcombine.high %v787_v6, %v791_v7  ;;  %v12353_v14 = vcombine.high %v788_v8, %v792_v9 }
 0x142   : > { %9741 = vmatpush1.bf16.msra.mxu0 %v12294_v53  ;;  %10233 = vmatpush1.bf16.msra.mxu1 %v12296_v20  ;;  %v12350_v53 = vcombine.low %v787_v6, %v791_v7  ;;  %v12352_v20 = vcombine.low %v788_v8, %v792_v9  ;;  %v12399_v6 = vcombine.high %v835_v39, %v839_v0  ;;  %v843_v8 = vld [vmem:[%s14005_s10 + $0x10c0] sm:$0xff] }
 0x143   : > { %9742 = vmatprep.subr.bf16.mxu0 %v12303_v23  ;;  %10234 = vmatprep.subr.bf16.mxu1 %v12305_v24  ;;  %v12359_v23 = vcombine.high %v795_v16, %v799_v17  ;;  %v12361_v24 = vcombine.high %v796_v18, %v800_v19  ;;  %v847_v9 = vld [vmem:[%s14005_s10 + $0x10e0] sm:$0xff] }
 0x146   : > { %9743 = vmatpush1.bf16.msra.mxu0 %v12302_v15  ;;  %10235 = vmatpush1.bf16.msra.mxu1 %v12304_v30  ;;  %v12358_v15 = vcombine.low %v795_v16, %v799_v17  ;;  %v12360_v30 = vcombine.low %v796_v18, %v800_v19  ;;  %v12407_v16 = vcombine.high %v843_v8, %v847_v9  ;;  %v851_v18 = vld [vmem:[%s14005_s10 + $0x1100] sm:$0xff] }
 0x147   : > { %9744 = vmatprep.subr.bf16.mxu0 %v12311_v32  ;;  %10236 = vmatprep.subr.bf16.mxu1 %v12313_v33  ;;  %v12367_v32 = vcombine.high %v803_v26, %v807_v27  ;;  %v12369_v33 = vcombine.high %v804_v28, %v808_v29  ;;  %v855_v19 = vld [vmem:[%s14005_s10 + $0x1120] sm:$0xff] }
 0x14a   : > { %9745 = vmatpush1.bf16.msra.mxu0 %v12310_v40  ;;  %10237 = vmatpush1.bf16.msra.mxu1 %v12312_v41  ;;  %v12366_v40 = vcombine.low %v803_v26, %v807_v27  ;;  %v12368_v41 = vcombine.low %v804_v28, %v808_v29  ;;  %v12415_v26 = vcombine.high %v851_v18, %v855_v19  ;;  %v859_v28 = vld [vmem:[%s14005_s10 + $0x1140] sm:$0xff] }
 0x14b   : > { %9746 = vmatprep.subr.bf16.mxu0 %v12319_v42  ;;  %10238 = vmatprep.subr.bf16.mxu1 %v12321_v43  ;;  %v12375_v42 = vcombine.high %v811_v34, %v815_v35  ;;  %v12377_v43 = vcombine.high %v812_v37, %v816_v38  ;;  %v863_v29 = vld [vmem:[%s14005_s10 + $0x1160] sm:$0xff] }
 0x14e   : > { %9747 = vmatpush1.bf16.msra.mxu0 %v12318_v48  ;;  %10239 = vmatpush1.bf16.msra.mxu1 %v12320_v49  ;;  %v12374_v48 = vcombine.low %v811_v34, %v815_v35  ;;  %v12376_v49 = vcombine.low %v812_v37, %v816_v38  ;;  %v12423_v34 = vcombine.high %v859_v28, %v863_v29  ;;  %v867_v37 = vld [vmem:[%s14005_s10 + $0x1180] sm:$0xff] }
 0x14f   : > { %9748 = vmatprep.subr.bf16.mxu0 %v12327_v50  ;;  %10240 = vmatprep.subr.bf16.mxu1 %v12329_v51  ;;  %v12383_v50 = vcombine.high %v819_v25, %v823_v44  ;;  %v12385_v51 = vcombine.high %v820_v46, %v824_v47  ;;  %v871_v38 = vld [vmem:[%s14005_s10 + $0x11a0] sm:$0xff] }
 0x152   : > { %9749 = vmatpush1.bf16.msra.mxu0 %v12326_v58  ;;  %10241 = vmatpush1.bf16.msra.mxu1 %v12328_v59  ;;  %v832_v58 = vld [vmem:[%s14005_s10 + $0x1068] sm:$0xff]  ;;  %v14354_v59 = vld [vmem:[%s15863_s0 + $0x20] sm:$0xff] }
 0x153   : > { %9750 = vmatprep.subr.bf16.mxu0 %v12335_v60  ;;  %10242 = vmatprep.subr.bf16.mxu1 %v12337_v61  ;;  %v12382_v60 = vcombine.low %v819_v25, %v823_v44  ;;  %v12384_v61 = vcombine.low %v820_v46, %v824_v47  ;;  %v12393_v63 = vcombine.high %v828_v56, %v832_v58  ;;  %v875_v46 = vld [vmem:[%s14005_s10 + $0x11c0] sm:$0xff] }
 0x154   : > { %v14360_v1 = vcombine.high %v14354_v59, %v14354_v59  ;;  %v12431_v25 = vcombine.high %v867_v37, %v871_v38  ;;  %v879_v47 = vld [vmem:[%s14005_s10 + $0x11e0] sm:$0xff] }
 0x156   : > { %9751 = vmatpush1.bf16.msra.mxu0 %v12334_v2  ;;  %10243 = vmatpush1.bf16.msra.mxu1 %v12336_v3  ;;  %v836_v2 = vld [vmem:[%s14005_s10 + $0x1088] sm:$0xff] }
 0x157   : > { %9752 = vmatprep.subr.bf16.mxu0 %v12343_v4  ;;  %10244 = vmatprep.subr.bf16.mxu1 %v12345_v5  ;;  %v840_v3 = vld [vmem:[%s14005_s10 + $0x10a8] sm:$0xff]  ;;  %v12390_v4 = vcombine.low %v827_v52, %v831_v54  ;;  %v12392_v5 = vcombine.low %v828_v56, %v832_v58  ;;  %v12439_v52 = vcombine.high %v875_v46, %v879_v47  ;;  %v883_v56 = vld [vmem:[%s14005_s10 + $0x1200] sm:$0xff] }
 0x158   : > { %v12401_v7 = vcombine.high %v836_v2, %v840_v3  ;;  %v887_v58 = vld [vmem:[%s14005_s10 + $0x1220] sm:$0xff] }
 0x15a   : > { %9753 = vmatpush1.bf16.msra.mxu0 %v12342_v10  ;;  %10245 = vmatpush1.bf16.msra.mxu1 %v12344_v11  ;;  %v844_v10 = vld [vmem:[%s14005_s10 + $0x10c8] sm:$0xff] }
 0x15b   : > { %9754 = vmatprep.subr.bf16.mxu0 %v12351_v13  ;;  %10246 = vmatprep.subr.bf16.mxu1 %v12353_v14  ;;  %v848_v11 = vld [vmem:[%s14005_s10 + $0x10e8] sm:$0xff]  ;;  %v12398_v13 = vcombine.low %v835_v39, %v839_v0  ;;  %v12400_v14 = vcombine.low %v836_v2, %v840_v3  ;;  %v12447_v39 = vcombine.high %v883_v56, %v887_v58  ;;  %v891_v2 = vld [vmem:[%s14005_s10 + $0x1240] sm:$0xff] }
 0x15c   : > { %v12409_v17 = vcombine.high %v844_v10, %v848_v11  ;;  %v895_v3 = vld [vmem:[%s14005_s10 + $0x1260] sm:$0xff] }
 0x15e   : > { %9755 = vmatpush1.bf16.msra.mxu0 %v12350_v53  ;;  %10247 = vmatpush1.bf16.msra.mxu1 %v12352_v20  ;;  %v852_v53 = vld [vmem:[%s14005_s10 + $0x1108] sm:$0xff] }
 0x15f   : > { %9756 = vmatprep.subr.bf16.mxu0 %v12359_v23  ;;  %10248 = vmatprep.subr.bf16.mxu1 %v12361_v24  ;;  %v856_v20 = vld [vmem:[%s14005_s10 + $0x1128] sm:$0xff]  ;;  %v12406_v23 = vcombine.low %v843_v8, %v847_v9  ;;  %v12408_v24 = vcombine.low %v844_v10, %v848_v11  ;;  %v12455_v8 = vcombine.high %v891_v2, %v895_v3  ;;  %v899_v10 = vld [vmem:[%s14005_s10 + $0x1280] sm:$0xff] }
 0x160   : > { %v12417_v27 = vcombine.high %v852_v53, %v856_v20  ;;  %v903_v11 = vld [vmem:[%s14005_s10 + $0x12a0] sm:$0xff] }
 0x162   : > { %9757 = vmatpush1.bf16.msra.mxu0 %v12358_v15  ;;  %10249 = vmatpush1.bf16.msra.mxu1 %v12360_v30  ;;  %v860_v15 = vld [vmem:[%s14005_s10 + $0x1148] sm:$0xff] }
 0x163   : > { %9758 = vmatprep.subr.bf16.mxu0 %v12367_v32  ;;  %10250 = vmatprep.subr.bf16.mxu1 %v12369_v33  ;;  %v864_v30 = vld [vmem:[%s14005_s10 + $0x1168] sm:$0xff]  ;;  %v12414_v32 = vcombine.low %v851_v18, %v855_v19  ;;  %v12416_v33 = vcombine.low %v852_v53, %v856_v20  ;;  %v12463_v18 = vcombine.high %v899_v10, %v903_v11  ;;  %v907_v53 = vld [vmem:[%s14005_s10 + $0x12c0] sm:$0xff] }
 0x164   : > { %v12425_v35 = vcombine.high %v860_v15, %v864_v30  ;;  %v911_v20 = vld [vmem:[%s14005_s10 + $0x12e0] sm:$0xff] }
 0x166   : > { %9759 = vmatpush1.bf16.msra.mxu0 %v12366_v40  ;;  %10251 = vmatpush1.bf16.msra.mxu1 %v12368_v41  ;;  %v868_v40 = vld [vmem:[%s14005_s10 + $0x1188] sm:$0xff] }
 0x167   : > { %9760 = vmatprep.subr.bf16.mxu0 %v12375_v42  ;;  %10252 = vmatprep.subr.bf16.mxu1 %v12377_v43  ;;  %v872_v41 = vld [vmem:[%s14005_s10 + $0x11a8] sm:$0xff]  ;;  %v12422_v42 = vcombine.low %v859_v28, %v863_v29  ;;  %v12424_v43 = vcombine.low %v860_v15, %v864_v30  ;;  %v12471_v28 = vcombine.high %v907_v53, %v911_v20  ;;  %v915_v15 = vld [vmem:[%s14005_s10 + $0x1300] sm:$0xff] }
 0x168   : > { %v12433_v44 = vcombine.high %v868_v40, %v872_v41  ;;  %v919_v30 = vld [vmem:[%s14005_s10 + $0x1320] sm:$0xff] }
 0x16a   : > { %9761 = vmatpush1.bf16.msra.mxu0 %v12374_v48  ;;  %10253 = vmatpush1.bf16.msra.mxu1 %v12376_v49  ;;  %v876_v48 = vld [vmem:[%s14005_s10 + $0x11c8] sm:$0xff] }
 0x16b   : > { %9771 = vmatprep.subr.bf16.mxu0 %v12383_v50  ;;  %10263 = vmatprep.subr.bf16.mxu1 %v12385_v51  ;;  %v880_v49 = vld [vmem:[%s14005_s10 + $0x11e8] sm:$0xff]  ;;  %v12430_v50 = vcombine.low %v867_v37, %v871_v38  ;;  %v12432_v51 = vcombine.low %v868_v40, %v872_v41  ;;  %v12479_v37 = vcombine.high %v915_v15, %v919_v30  ;;  %v923_v40 = vld [vmem:[%s14005_s10 + $0x1340] sm:$0xff] }
 0x16c   : > { %v12441_v54 = vcombine.high %v876_v48, %v880_v49  ;;  %v927_v41 = vld [vmem:[%s14005_s10 + $0x1360] sm:$0xff] }
 0x16d   : > { %9763 = vmatmul.mubr.bf16.vlgmr.msra.gmra.mrb[0].mxu0 %v14347_v55  ;;  %10255 = vmatmul.mubr.bf16.vlgmr.msra.gmra.mrb[0].mxu1 %v14347_v55 }
 0x16e   : > { %9772 = vmatpush1.bf16.msra.mxu0 %v12382_v60  ;;  %10264 = vmatpush1.bf16.msra.mxu1 %v12384_v61  ;;  %v884_v60 = vld [vmem:[%s14005_s10 + $0x1208] sm:$0xff] }
 0x16f   : > { %9773 = vmatprep.subr.bf16.mxu0 %v12391_v62  ;;  %10265 = vmatprep.subr.bf16.mxu1 %v12393_v63  ;;  %v888_v61 = vld [vmem:[%s14005_s10 + $0x1228] sm:$0xff]  ;;  %v12438_v62 = vcombine.low %v875_v46, %v879_v47  ;;  %v12440_v63 = vcombine.low %v876_v48, %v880_v49  ;;  %v12487_v46 = vcombine.high %v923_v40, %v927_v41  ;;  %v931_v48 = vld [vmem:[%s14005_s10 + $0x1380] sm:$0xff] }
 0x170   : > { %9803 = vmatprep.mubr.bf16.mxu0 %v14360_v1  ;;  %10295 = vmatprep.mubr.bf16.mxu1 %v14360_v1  ;;  %v12449_v0 = vcombine.high %v884_v60, %v888_v61  ;;  %v935_v49 = vld [vmem:[%s14005_s10 + $0x13a0] sm:$0xff] }
 0x172   : > { %9774 = vmatpush1.bf16.msra.mxu0 %v12390_v4  ;;  %10266 = vmatpush1.bf16.msra.mxu1 %v12392_v5  ;;  %v892_v4 = vld [vmem:[%s14005_s10 + $0x1248] sm:$0xff] }
 0x173   : > { %9775 = vmatprep.subr.bf16.mxu0 %v12399_v6  ;;  %10267 = vmatprep.subr.bf16.mxu1 %v12401_v7  ;;  %v896_v5 = vld [vmem:[%s14005_s10 + $0x1268] sm:$0xff]  ;;  %v12446_v6 = vcombine.low %v883_v56, %v887_v58  ;;  %v12448_v7 = vcombine.low %v884_v60, %v888_v61  ;;  %v12495_v56 = vcombine.high %v931_v48, %v935_v49  ;;  %v939_v60 = vld [vmem:[%s14005_s10 + $0x13c0] sm:$0xff] }
 0x174   : > { %v12457_v9 = vcombine.high %v892_v4, %v896_v5  ;;  %v943_v61 = vld [vmem:[%s14005_s10 + $0x13e0] sm:$0xff] }
 0x176   : > { %9776 = vmatpush1.bf16.msra.mxu0 %v12398_v13  ;;  %10268 = vmatpush1.bf16.msra.mxu1 %v12400_v14  ;;  %v900_v13 = vld [vmem:[%s14005_s10 + $0x1288] sm:$0xff] }
 0x177   : > { %9777 = vmatprep.subr.bf16.mxu0 %v12407_v16  ;;  %10269 = vmatprep.subr.bf16.mxu1 %v12409_v17  ;;  %v904_v14 = vld [vmem:[%s14005_s10 + $0x12a8] sm:$0xff]  ;;  %v12454_v16 = vcombine.low %v891_v2, %v895_v3  ;;  %v12456_v17 = vcombine.low %v892_v4, %v896_v5  ;;  %v12503_v2 = vcombine.high %v939_v60, %v943_v61  ;;  %v947_v4 = vld [vmem:[%s14005_s10 + $0x1400] sm:$0xff] }
 0x178   : > { %v12465_v19 = vcombine.high %v900_v13, %v904_v14  ;;  %v951_v5 = vld [vmem:[%s14005_s10 + $0x1420] sm:$0xff] }
 0x17a   : > { %9778 = vmatpush1.bf16.msra.mxu0 %v12406_v23  ;;  %10270 = vmatpush1.bf16.msra.mxu1 %v12408_v24  ;;  %v908_v23 = vld [vmem:[%s14005_s10 + $0x12c8] sm:$0xff] }
 0x17b   : > { %9779 = vmatprep.subr.bf16.mxu0 %v12415_v26  ;;  %10271 = vmatprep.subr.bf16.mxu1 %v12417_v27  ;;  %v912_v24 = vld [vmem:[%s14005_s10 + $0x12e8] sm:$0xff]  ;;  %v12462_v26 = vcombine.low %v899_v10, %v903_v11  ;;  %v12464_v27 = vcombine.low %v900_v13, %v904_v14  ;;  %v12511_v10 = vcombine.high %v947_v4, %v951_v5  ;;  %v955_v13 = vld [vmem:[%s14005_s10 + $0x1440] sm:$0xff] }
 0x17c   : > { %v12473_v29 = vcombine.high %v908_v23, %v912_v24  ;;  %v959_v14 = vld [vmem:[%s14005_s10 + $0x1460] sm:$0xff] }
 0x17e   : > { %9780 = vmatpush1.bf16.msra.mxu0 %v12414_v32  ;;  %10272 = vmatpush1.bf16.msra.mxu1 %v12416_v33  ;;  %v916_v32 = vld [vmem:[%s14005_s10 + $0x1308] sm:$0xff] }
 0x17f   : > { %9781 = vmatprep.subr.bf16.mxu0 %v12423_v34  ;;  %10273 = vmatprep.subr.bf16.mxu1 %v12425_v35  ;;  %v920_v33 = vld [vmem:[%s14005_s10 + $0x1328] sm:$0xff]  ;;  %v12470_v34 = vcombine.low %v907_v53, %v911_v20  ;;  %v12472_v35 = vcombine.low %v908_v23, %v912_v24  ;;  %v12510_v53 = vcombine.low %v947_v4, %v951_v5 }
 0x180   : > { %v12481_v38 = vcombine.high %v916_v32, %v920_v33  ;;  %v12519_v23 = vcombine.high %v955_v13, %v959_v14 }
 0x182   : > { %9782 = vmatpush1.bf16.msra.mxu0 %v12422_v42  ;;  %10274 = vmatpush1.bf16.msra.mxu1 %v12424_v43  ;;  %v924_v42 = vld [vmem:[%s14005_s10 + $0x1348] sm:$0xff] }
 0x183   : > { %9783 = vmatprep.subr.bf16.mxu0 %v12431_v25  ;;  %10275 = vmatprep.subr.bf16.mxu1 %v12433_v44  ;;  %v928_v43 = vld [vmem:[%s14005_s10 + $0x1368] sm:$0xff]  ;;  %v12478_v25 = vcombine.low %v915_v15, %v919_v30  ;;  %v12480_v44 = vcombine.low %v916_v32, %v920_v33  ;;  %v12518_v15 = vcombine.low %v955_v13, %v959_v14 }
 0x184   : > { %v12489_v47 = vcombine.high %v924_v42, %v928_v43 }
 0x186   : > { %9784 = vmatpush1.bf16.msra.mxu0 %v12430_v50  ;;  %10276 = vmatpush1.bf16.msra.mxu1 %v12432_v51  ;;  %v932_v50 = vld [vmem:[%s14005_s10 + $0x1388] sm:$0xff] }
 0x187   : > { %9785 = vmatprep.subr.bf16.mxu0 %v12439_v52  ;;  %10277 = vmatprep.subr.bf16.mxu1 %v12441_v54  ;;  %v936_v51 = vld [vmem:[%s14005_s10 + $0x13a8] sm:$0xff]  ;;  %v12486_v52 = vcombine.low %v923_v40, %v927_v41  ;;  %v12488_v54 = vcombine.low %v924_v42, %v928_v43 }
 0x188   : > { %v12497_v58 = vcombine.high %v932_v50, %v936_v51 }
 0x18a   : > { %9786 = vmatpush1.bf16.msra.mxu0 %v12438_v62  ;;  %10278 = vmatpush1.bf16.msra.mxu1 %v12440_v63  ;;  %v940_v62 = vld [vmem:[%s14005_s10 + $0x13c8] sm:$0xff] }
 0x18b   : > { %9787 = vmatprep.subr.bf16.mxu0 %v12447_v39  ;;  %10279 = vmatprep.subr.bf16.mxu1 %v12449_v0  ;;  %v944_v63 = vld [vmem:[%s14005_s10 + $0x13e8] sm:$0xff]  ;;  %v12494_v39 = vcombine.low %v931_v48, %v935_v49  ;;  %v12496_v0 = vcombine.low %v932_v50, %v936_v51 }
 0x18c   : > { %v12505_v3 = vcombine.high %v940_v62, %v944_v63 }
 0x18e   : > { %9788 = vmatpush1.bf16.msra.mxu0 %v12446_v6  ;;  %10280 = vmatpush1.bf16.msra.mxu1 %v12448_v7  ;;  %v948_v6 = vld [vmem:[%s14005_s10 + $0x1408] sm:$0xff] }
 0x18f   : > { %9789 = vmatprep.subr.bf16.mxu0 %v12455_v8  ;;  %10281 = vmatprep.subr.bf16.mxu1 %v12457_v9  ;;  %v952_v7 = vld [vmem:[%s14005_s10 + $0x1428] sm:$0xff]  ;;  %v12502_v8 = vcombine.low %v939_v60, %v943_v61  ;;  %v12504_v9 = vcombine.low %v940_v62, %v944_v63 }
 0x190   : > { %v12513_v11 = vcombine.high %v948_v6, %v952_v7  ;;  %v12512_v20 = vcombine.low %v948_v6, %v952_v7 }
 0x192   : > { %9790 = vmatpush1.bf16.msra.mxu0 %v12454_v16  ;;  %10282 = vmatpush1.bf16.msra.mxu1 %v12456_v17  ;;  %v14428_v16 = vcombine.low %v14354_v59, %v14354_v59  ;;  %v956_v17 = vld [vmem:[%s14005_s10 + $0x1448] sm:$0xff]  ;;  %v963_v59 = vld [vmem:[%s14005_s10 + $0x1480] sm:$0xff] }
 0x193   : > { %9791 = vmatprep.subr.bf16.mxu0 %v12463_v18  ;;  %10283 = vmatprep.subr.bf16.mxu1 %v12465_v19  ;;  %v960_v18 = vld [vmem:[%s14005_s10 + $0x1468] sm:$0xff] }
 0x194   : > { %v14435_v19 = vld [vmem:[%s15863_s0 + $0x28] sm:$0xff]  ;;  %v12521_v24 = vcombine.high %v956_v17, %v960_v18  ;;  %v12520_v30 = vcombine.low %v956_v17, %v960_v18 }
 0x196   : > { %9792 = vmatpush1.bf16.msra.mxu0 %v12462_v26  ;;  %10284 = vmatpush1.bf16.msra.mxu1 %v12464_v27  ;;  %v967_v26 = vld [vmem:[%s14005_s10 + $0x14a0] sm:$0xff]  ;;  %v14441_v27 = vcombine.high %v14435_v19, %v14435_v19 }
 0x197   : > { %9793 = vmatprep.subr.bf16.mxu0 %v12471_v28  ;;  %10285 = vmatprep.subr.bf16.mxu1 %v12473_v29  ;;  %v964_v28 = vld [vmem:[%s14005_s10 + $0x1488] sm:$0xff]  ;;  %v12527_v32 = vcombine.high %v963_v59, %v967_v26  ;;  %v12526_v40 = vcombine.low %v963_v59, %v967_v26 }
 0x198   : > { %v968_v29 = vld [vmem:[%s14005_s10 + $0x14a8] sm:$0xff] }
 0x199   : > { %v12529_v33 = vcombine.high %v964_v28, %v968_v29  ;;  %v12528_v41 = vcombine.low %v964_v28, %v968_v29 }
 0x19a   : > { %9794 = vmatpush1.bf16.msra.mxu0 %v12470_v34  ;;  %10286 = vmatpush1.bf16.msra.mxu1 %v12472_v35  ;;  %v971_v34 = vld [vmem:[%s14005_s10 + $0x14c0] sm:$0xff] }
 0x19b   : > { %9795 = vmatprep.subr.bf16.mxu0 %v12479_v37  ;;  %10287 = vmatprep.subr.bf16.mxu1 %v12481_v38  ;;  %v975_v35 = vld [vmem:[%s14005_s10 + $0x14e0] sm:$0xff]  ;;  %v972_v37 = vld [vmem:[%s14005_s10 + $0x14c8] sm:$0xff] }
 0x19c   : > { %v976_v38 = vld [vmem:[%s14005_s10 + $0x14e8] sm:$0xff]  ;;  %v12535_v42 = vcombine.high %v971_v34, %v975_v35  ;;  %v12534_v48 = vcombine.low %v971_v34, %v975_v35 }
 0x19d   : > { %v12537_v43 = vcombine.high %v972_v37, %v976_v38  ;;  %v12536_v49 = vcombine.low %v972_v37, %v976_v38 }
 0x19e   : > { %9796 = vmatpush1.bf16.msra.mxu0 %v12478_v25  ;;  %10288 = vmatpush1.bf16.msra.mxu1 %v12480_v44  ;;  %v979_v25 = vld [vmem:[%s14005_s10 + $0x1500] sm:$0xff] }
 0x19f   : > { %9797 = vmatprep.subr.bf16.mxu0 %v12487_v46  ;;  %10289 = vmatprep.subr.bf16.mxu1 %v12489_v47  ;;  %v983_v44 = vld [vmem:[%s14005_s10 + $0x1520] sm:$0xff]  ;;  %v980_v46 = vld [vmem:[%s14005_s10 + $0x1508] sm:$0xff] }
 0x1a0   : > { %v984_v47 = vld [vmem:[%s14005_s10 + $0x1528] sm:$0xff]  ;;  %v12543_v50 = vcombine.high %v979_v25, %v983_v44  ;;  %v12542_v60 = vcombine.low %v979_v25, %v983_v44 }
 0x1a1   : > { %v12545_v51 = vcombine.high %v980_v46, %v984_v47  ;;  %v12544_v61 = vcombine.low %v980_v46, %v984_v47 }
 0x1a2   : > { %9798 = vmatpush1.bf16.msra.mxu0 %v12486_v52  ;;  %10290 = vmatpush1.bf16.msra.mxu1 %v12488_v54  ;;  %v987_v52 = vld [vmem:[%s14005_s10 + $0x1540] sm:$0xff] }
 0x1a3   : > { %9799 = vmatprep.subr.bf16.mxu0 %v12495_v56  ;;  %10291 = vmatprep.subr.bf16.mxu1 %v12497_v58  ;;  %v991_v54 = vld [vmem:[%s14005_s10 + $0x1560] sm:$0xff]  ;;  %v988_v56 = vld [vmem:[%s14005_s10 + $0x1548] sm:$0xff] }
 0x1a4   : > { %v992_v58 = vld [vmem:[%s14005_s10 + $0x1568] sm:$0xff]  ;;  %v12551_v62 = vcombine.high %v987_v52, %v991_v54  ;;  %v12550_v4 = vcombine.low %v987_v52, %v991_v54 }
 0x1a5   : > { %v12553_v63 = vcombine.high %v988_v56, %v992_v58  ;;  %v12552_v5 = vcombine.low %v988_v56, %v992_v58 }
 0x1a6   : > { %9800 = vmatpush1.bf16.msra.mxu0 %v12494_v39  ;;  %10292 = vmatpush1.bf16.msra.mxu1 %v12496_v0  ;;  %v995_v39 = vld [vmem:[%s14005_s10 + $0x1580] sm:$0xff] }
 0x1a7   : > { %9801 = vmatprep.subr.bf16.mxu0 %v12503_v2  ;;  %10293 = vmatprep.subr.bf16.mxu1 %v12505_v3  ;;  %v999_v0 = vld [vmem:[%s14005_s10 + $0x15a0] sm:$0xff]  ;;  %v996_v2 = vld [vmem:[%s14005_s10 + $0x1588] sm:$0xff] }
 0x1a8   : > { %v1000_v3 = vld [vmem:[%s14005_s10 + $0x15a8] sm:$0xff]  ;;  %v12559_v6 = vcombine.high %v995_v39, %v999_v0  ;;  %v12558_v13 = vcombine.low %v995_v39, %v999_v0 }
 0x1a9   : > { %v12561_v7 = vcombine.high %v996_v2, %v1000_v3  ;;  %v12560_v14 = vcombine.low %v996_v2, %v1000_v3 }
 0x1aa   : > { %9802 = vmatpush1.bf16.msra.mxu0 %v12502_v8  ;;  %10294 = vmatpush1.bf16.msra.mxu1 %v12504_v9  ;;  %v1003_v8 = vld [vmem:[%s14005_s10 + $0x15c0] sm:$0xff] }
 0x1ab   : > { %9812 = vmatprep.subr.bf16.mxu0 %v12511_v10  ;;  %10304 = vmatprep.subr.bf16.mxu1 %v12513_v11  ;;  %v1007_v9 = vld [vmem:[%s14005_s10 + $0x15e0] sm:$0xff]  ;;  %v1004_v10 = vld [vmem:[%s14005_s10 + $0x15c8] sm:$0xff] }
 0x1ac   : > { %v1008_v11 = vld [vmem:[%s14005_s10 + $0x15e8] sm:$0xff]  ;;  %v12567_v17 = vcombine.high %v1003_v8, %v1007_v9  ;;  %v12566_v59 = vcombine.low %v1003_v8, %v1007_v9 }
 0x1ad   : > { %9804 = vmatmul.mubr.bf16.vlgmr.msra.gmra.mrb[0].mxu0 %v14428_v16  ;;  %10296 = vmatmul.mubr.bf16.vlgmr.msra.gmra.mrb[0].mxu1 %v14428_v16  ;;  %v12569_v18 = vcombine.high %v1004_v10, %v1008_v11  ;;  %v12568_v26 = vcombine.low %v1004_v10, %v1008_v11 }
 0x1ae   : > { %9813 = vmatpush1.bf16.msra.mxu0 %v12510_v53  ;;  %10305 = vmatpush1.bf16.msra.mxu1 %v12512_v20  ;;  %v1011_v53 = vld [vmem:[%s14005_s10 + $0x1600] sm:$0xff] }
 0x1af   : > { %9814 = vmatprep.subr.bf16.mxu0 %v12519_v23  ;;  %10306 = vmatprep.subr.bf16.mxu1 %v12521_v24  ;;  %v1015_v20 = vld [vmem:[%s14005_s10 + $0x1620] sm:$0xff]  ;;  %v1012_v23 = vld [vmem:[%s14005_s10 + $0x1608] sm:$0xff] }
 0x1b0   : > { %9844 = vmatprep.mubr.bf16.mxu0 %v14441_v27  ;;  %10336 = vmatprep.mubr.bf16.mxu1 %v14441_v27  ;;  %v1016_v24 = vld [vmem:[%s14005_s10 + $0x1628] sm:$0xff]  ;;  %v12575_v28 = vcombine.high %v1011_v53, %v1015_v20  ;;  %v12574_v34 = vcombine.low %v1011_v53, %v1015_v20 }
 0x1b1   : > { %v12577_v29 = vcombine.high %v1012_v23, %v1016_v24  ;;  %v12576_v35 = vcombine.low %v1012_v23, %v1016_v24 }
 0x1b2   : > { %9815 = vmatpush1.bf16.msra.mxu0 %v12518_v15  ;;  %10307 = vmatpush1.bf16.msra.mxu1 %v12520_v30  ;;  %v1019_v15 = vld [vmem:[%s14005_s10 + $0x1640] sm:$0xff] }
 0x1b3   : > { %9816 = vmatprep.subr.bf16.mxu0 %v12527_v32  ;;  %10308 = vmatprep.subr.bf16.mxu1 %v12529_v33  ;;  %v1023_v30 = vld [vmem:[%s14005_s10 + $0x1660] sm:$0xff]  ;;  %v1020_v32 = vld [vmem:[%s14005_s10 + $0x1648] sm:$0xff] }
 0x1b4   : > { %v1024_v33 = vld [vmem:[%s14005_s10 + $0x1668] sm:$0xff]  ;;  %v12583_v37 = vcombine.high %v1019_v15, %v1023_v30  ;;  %v12582_v25 = vcombine.low %v1019_v15, %v1023_v30 }
 0x1b5   : > { %v12585_v38 = vcombine.high %v1020_v32, %v1024_v33  ;;  %v12584_v44 = vcombine.low %v1020_v32, %v1024_v33 }
 0x1b6   : > { %9817 = vmatpush1.bf16.msra.mxu0 %v12526_v40  ;;  %10309 = vmatpush1.bf16.msra.mxu1 %v12528_v41  ;;  %v1027_v40 = vld [vmem:[%s14005_s10 + $0x1680] sm:$0xff] }
 0x1b7   : > { %9818 = vmatprep.subr.bf16.mxu0 %v12535_v42  ;;  %10310 = vmatprep.subr.bf16.mxu1 %v12537_v43  ;;  %v1031_v41 = vld [vmem:[%s14005_s10 + $0x16a0] sm:$0xff]  ;;  %v1028_v42 = vld [vmem:[%s14005_s10 + $0x1688] sm:$0xff] }
 0x1b8   : > { %v1032_v43 = vld [vmem:[%s14005_s10 + $0x16a8] sm:$0xff]  ;;  %v12591_v46 = vcombine.high %v1027_v40, %v1031_v41  ;;  %v12590_v52 = vcombine.low %v1027_v40, %v1031_v41 }
 0x1b9   : > { %v12593_v47 = vcombine.high %v1028_v42, %v1032_v43  ;;  %v12592_v54 = vcombine.low %v1028_v42, %v1032_v43 }
 0x1ba   : > { %9819 = vmatpush1.bf16.msra.mxu0 %v12534_v48  ;;  %10311 = vmatpush1.bf16.msra.mxu1 %v12536_v49  ;;  %v1035_v48 = vld [vmem:[%s14005_s10 + $0x16c0] sm:$0xff] }
 0x1bb   : > { %9820 = vmatprep.subr.bf16.mxu0 %v12543_v50  ;;  %10312 = vmatprep.subr.bf16.mxu1 %v12545_v51  ;;  %v1039_v49 = vld [vmem:[%s14005_s10 + $0x16e0] sm:$0xff]  ;;  %v1036_v50 = vld [vmem:[%s14005_s10 + $0x16c8] sm:$0xff] }
 0x1bc   : > { %v1040_v51 = vld [vmem:[%s14005_s10 + $0x16e8] sm:$0xff]  ;;  %v12599_v56 = vcombine.high %v1035_v48, %v1039_v49  ;;  %v12598_v39 = vcombine.low %v1035_v48, %v1039_v49  ;;  %v14516_v49 = vld [vmem:[%s15863_s0 + $0x30] sm:$0xff] }
 0x1bd   : > { %v12601_v58 = vcombine.high %v1036_v50, %v1040_v51  ;;  %v12600_v0 = vcombine.low %v1036_v50, %v1040_v51  ;;  %v1088_v48 = vld [vmem:[%s14005_s10 + $0x1868] sm:$0xff] }
 0x1be   : > { %9821 = vmatpush1.bf16.msra.mxu0 %v12542_v60  ;;  %10313 = vmatpush1.bf16.msra.mxu1 %v12544_v61  ;;  %v1043_v60 = vld [vmem:[%s14005_s10 + $0x1700] sm:$0xff] }
 0x1bf   : > { %9822 = vmatprep.subr.bf16.mxu0 %v12551_v62  ;;  %10314 = vmatprep.subr.bf16.mxu1 %v12553_v63  ;;  %v1047_v61 = vld [vmem:[%s14005_s10 + $0x1720] sm:$0xff]  ;;  %v1044_v62 = vld [vmem:[%s14005_s10 + $0x1708] sm:$0xff] }
 0x1c0   : > { %v1048_v63 = vld [vmem:[%s14005_s10 + $0x1728] sm:$0xff]  ;;  %v12607_v2 = vcombine.high %v1043_v60, %v1047_v61  ;;  %v12606_v8 = vcombine.low %v1043_v60, %v1047_v61 }
 0x1c1   : > { %v12609_v3 = vcombine.high %v1044_v62, %v1048_v63  ;;  %v12608_v9 = vcombine.low %v1044_v62, %v1048_v63  ;;  %v1092_v60 = vld [vmem:[%s14005_s10 + $0x1888] sm:$0xff] }
 0x1c2   : > { %9823 = vmatpush1.bf16.msra.mxu0 %v12550_v4  ;;  %10315 = vmatpush1.bf16.msra.mxu1 %v12552_v5  ;;  %v1051_v4 = vld [vmem:[%s14005_s10 + $0x1740] sm:$0xff]  ;;  %v1096_v61 = vld [vmem:[%s14005_s10 + $0x18a8] sm:$0xff] }
 0x1c3   : > { %9824 = vmatprep.subr.bf16.mxu0 %v12559_v6  ;;  %10316 = vmatprep.subr.bf16.mxu1 %v12561_v7  ;;  %v1055_v5 = vld [vmem:[%s14005_s10 + $0x1760] sm:$0xff]  ;;  %v1052_v6 = vld [vmem:[%s14005_s10 + $0x1748] sm:$0xff] }
 0x1c4   : > { %v1056_v7 = vld [vmem:[%s14005_s10 + $0x1768] sm:$0xff]  ;;  %v12615_v10 = vcombine.high %v1051_v4, %v1055_v5  ;;  %v12614_v53 = vcombine.low %v1051_v4, %v1055_v5 }
 0x1c5   : > { %v12617_v11 = vcombine.high %v1052_v6, %v1056_v7  ;;  %v12616_v20 = vcombine.low %v1052_v6, %v1056_v7  ;;  %v1100_v4 = vld [vmem:[%s14005_s10 + $0x18c8] sm:$0xff]  ;;  %v12656_v7 = vcombine.low %v1092_v60, %v1096_v61 }
 0x1c6   : > { %9825 = vmatpush1.bf16.msra.mxu0 %v12558_v13  ;;  %10317 = vmatpush1.bf16.msra.mxu1 %v12560_v14  ;;  %v1059_v13 = vld [vmem:[%s14005_s10 + $0x1780] sm:$0xff]  ;;  %v1104_v5 = vld [vmem:[%s14005_s10 + $0x18e8] sm:$0xff] }
 0x1c7   : > { %9826 = vmatprep.subr.bf16.mxu0 %v12567_v17  ;;  %10318 = vmatprep.subr.bf16.mxu1 %v12569_v18  ;;  %v1063_v14 = vld [vmem:[%s14005_s10 + $0x17a0] sm:$0xff]  ;;  %v1060_v17 = vld [vmem:[%s14005_s10 + $0x1788] sm:$0xff] }
 0x1c8   : > { %v1064_v18 = vld [vmem:[%s14005_s10 + $0x17a8] sm:$0xff]  ;;  %v12623_v23 = vcombine.high %v1059_v13, %v1063_v14  ;;  %v12622_v15 = vcombine.low %v1059_v13, %v1063_v14 }
 0x1c9   : > { %v12625_v24 = vcombine.high %v1060_v17, %v1064_v18  ;;  %v12624_v30 = vcombine.low %v1060_v17, %v1064_v18  ;;  %v1108_v13 = vld [vmem:[%s14005_s10 + $0x1908] sm:$0xff]  ;;  %v12664_v18 = vcombine.low %v1100_v4, %v1104_v5 }
 0x1ca   : > { %9827 = vmatpush1.bf16.msra.mxu0 %v12566_v59  ;;  %10319 = vmatpush1.bf16.msra.mxu1 %v12568_v26  ;;  %v1067_v59 = vld [vmem:[%s14005_s10 + $0x17c0] sm:$0xff]  ;;  %v1112_v14 = vld [vmem:[%s14005_s10 + $0x1928] sm:$0xff] }
 0x1cb   : > { %9828 = vmatprep.subr.bf16.mxu0 %v12575_v28  ;;  %10320 = vmatprep.subr.bf16.mxu1 %v12577_v29  ;;  %v1071_v26 = vld [vmem:[%s14005_s10 + $0x17e0] sm:$0xff]  ;;  %v1068_v28 = vld [vmem:[%s14005_s10 + $0x17c8] sm:$0xff] }
 0x1cc   : > { %v1072_v29 = vld [vmem:[%s14005_s10 + $0x17e8] sm:$0xff]  ;;  %v12631_v32 = vcombine.high %v1067_v59, %v1071_v26  ;;  %v12630_v40 = vcombine.low %v1067_v59, %v1071_v26 }
 0x1cd   : > { %v12633_v33 = vcombine.high %v1068_v28, %v1072_v29  ;;  %v12632_v41 = vcombine.low %v1068_v28, %v1072_v29  ;;  %v1116_v59 = vld [vmem:[%s14005_s10 + $0x1948] sm:$0xff]  ;;  %v12672_v29 = vcombine.low %v1108_v13, %v1112_v14 }
 0x1ce   : > { %9829 = vmatpush1.bf16.msra.mxu0 %v12574_v34  ;;  %10321 = vmatpush1.bf16.msra.mxu1 %v12576_v35  ;;  %v1075_v34 = vld [vmem:[%s14005_s10 + $0x1800] sm:$0xff]  ;;  %v1120_v26 = vld [vmem:[%s14005_s10 + $0x1968] sm:$0xff] }
 0x1cf   : > { %9830 = vmatprep.subr.bf16.mxu0 %v12583_v37  ;;  %10322 = vmatprep.subr.bf16.mxu1 %v12585_v38  ;;  %v1079_v35 = vld [vmem:[%s14005_s10 + $0x1820] sm:$0xff]  ;;  %v1076_v37 = vld [vmem:[%s14005_s10 + $0x1808] sm:$0xff] }
 0x1d0   : > { %v1080_v38 = vld [vmem:[%s14005_s10 + $0x1828] sm:$0xff]  ;;  %v12639_v42 = vcombine.high %v1075_v34, %v1079_v35  ;;  %v12638_v50 = vcombine.low %v1075_v34, %v1079_v35 }
 0x1d1   : > { %v12641_v43 = vcombine.high %v1076_v37, %v1080_v38  ;;  %v12640_v51 = vcombine.low %v1076_v37, %v1080_v38  ;;  %v1124_v34 = vld [vmem:[%s14005_s10 + $0x1988] sm:$0xff]  ;;  %v12680_v38 = vcombine.low %v1116_v59, %v1120_v26 }
 0x1d2   : > { %9831 = vmatpush1.bf16.msra.mxu0 %v12582_v25  ;;  %10323 = vmatpush1.bf16.msra.mxu1 %v12584_v44  ;;  %v1083_v25 = vld [vmem:[%s14005_s10 + $0x1840] sm:$0xff]  ;;  %v1128_v35 = vld [vmem:[%s14005_s10 + $0x19a8] sm:$0xff] }
 0x1d3   : > { %9832 = vmatprep.subr.bf16.mxu0 %v12591_v46  ;;  %10324 = vmatprep.subr.bf16.mxu1 %v12593_v47  ;;  %v1087_v44 = vld [vmem:[%s14005_s10 + $0x1860] sm:$0xff]  ;;  %v14509_v46 = vcombine.low %v14435_v19, %v14435_v19  ;;  %v1084_v47 = vld [vmem:[%s14005_s10 + $0x1848] sm:$0xff] }
 0x1d4   : > { %v1091_v19 = vld [vmem:[%s14005_s10 + $0x1880] sm:$0xff]  ;;  %v12646_v62 = vcombine.low %v1083_v25, %v1087_v44  ;;  %v12648_v63 = vcombine.low %v1084_v47, %v1088_v48 }
 0x1d6   : > { %9833 = vmatpush1.bf16.msra.mxu0 %v12590_v52  ;;  %10325 = vmatpush1.bf16.msra.mxu1 %v12592_v54  ;;  %v12647_v52 = vcombine.high %v1083_v25, %v1087_v44  ;;  %v12649_v54 = vcombine.high %v1084_v47, %v1088_v48  ;;  %v1132_v25 = vld [vmem:[%s14005_s10 + $0x19c8] sm:$0xff]  ;;  %v12688_v48 = vcombine.low %v1124_v34, %v1128_v35 }
 0x1d7   : > { %9834 = vmatprep.subr.bf16.mxu0 %v12599_v56  ;;  %10326 = vmatprep.subr.bf16.mxu1 %v12601_v58  ;;  %v1095_v56 = vld [vmem:[%s14005_s10 + $0x18a0] sm:$0xff]  ;;  %v14522_v58 = vcombine.high %v14516_v49, %v14516_v49  ;;  %v1136_v44 = vld [vmem:[%s14005_s10 + $0x19e8] sm:$0xff] }
 0x1d8   : > { %v12654_v6 = vcombine.low %v1091_v19, %v1095_v56 }
 0x1da   : > { %9835 = vmatpush1.bf16.msra.mxu0 %v12598_v39  ;;  %10327 = vmatpush1.bf16.msra.mxu1 %v12600_v0  ;;  %v12655_v39 = vcombine.high %v1091_v19, %v1095_v56  ;;  %v12657_v0 = vcombine.high %v1092_v60, %v1096_v61  ;;  %v1140_v19 = vld [vmem:[%s14005_s10 + $0x1a08] sm:$0xff]  ;;  %v12696_v61 = vcombine.low %v1132_v25, %v1136_v44 }
 0x1db   : > { %9836 = vmatprep.subr.bf16.mxu0 %v12607_v2  ;;  %10328 = vmatprep.subr.bf16.mxu1 %v12609_v3  ;;  %v1099_v2 = vld [vmem:[%s14005_s10 + $0x18c0] sm:$0xff]  ;;  %v1144_v56 = vld [vmem:[%s14005_s10 + $0x1a28] sm:$0xff] }
 0x1dc   : > { %v1103_v3 = vld [vmem:[%s14005_s10 + $0x18e0] sm:$0xff] }
 0x1dd   : > { %v12662_v17 = vcombine.low %v1099_v2, %v1103_v3 }
 0x1de   : > { %9837 = vmatpush1.bf16.msra.mxu0 %v12606_v8  ;;  %10329 = vmatpush1.bf16.msra.mxu1 %v12608_v9  ;;  %v12663_v8 = vcombine.high %v1099_v2, %v1103_v3  ;;  %v12665_v9 = vcombine.high %v1100_v4, %v1104_v5  ;;  %v1148_v2 = vld [vmem:[%s14005_s10 + $0x1a48] sm:$0xff]  ;;  %v12704_v5 = vcombine.low %v1140_v19, %v1144_v56 }
 0x1df   : > { %9838 = vmatprep.subr.bf16.mxu0 %v12615_v10  ;;  %10330 = vmatprep.subr.bf16.mxu1 %v12617_v11  ;;  %v1107_v10 = vld [vmem:[%s14005_s10 + $0x1900] sm:$0xff]  ;;  %v1152_v3 = vld [vmem:[%s14005_s10 + $0x1a68] sm:$0xff] }
 0x1e0   : > { %v1111_v11 = vld [vmem:[%s14005_s10 + $0x1920] sm:$0xff] }
 0x1e1   : > { %v12670_v28 = vcombine.low %v1107_v10, %v1111_v11 }
 0x1e2   : > { %9839 = vmatpush1.bf16.msra.mxu0 %v12614_v53  ;;  %10331 = vmatpush1.bf16.msra.mxu1 %v12616_v20  ;;  %v12671_v53 = vcombine.high %v1107_v10, %v1111_v11  ;;  %v12673_v20 = vcombine.high %v1108_v13, %v1112_v14  ;;  %v1156_v10 = vld [vmem:[%s14005_s10 + $0x1a88] sm:$0xff]  ;;  %v12712_v14 = vcombine.low %v1148_v2, %v1152_v3 }
 0x1e3   : > { %9840 = vmatprep.subr.bf16.mxu0 %v12623_v23  ;;  %10332 = vmatprep.subr.bf16.mxu1 %v12625_v24  ;;  %v1115_v23 = vld [vmem:[%s14005_s10 + $0x1940] sm:$0xff]  ;;  %v1160_v11 = vld [vmem:[%s14005_s10 + $0x1aa8] sm:$0xff] }
 0x1e4   : > { %v1119_v24 = vld [vmem:[%s14005_s10 + $0x1960] sm:$0xff] }
 0x1e5   : > { %v12678_v37 = vcombine.low %v1115_v23, %v1119_v24 }
 0x1e6   : > { %9841 = vmatpush1.bf16.msra.mxu0 %v12622_v15  ;;  %10333 = vmatpush1.bf16.msra.mxu1 %v12624_v30  ;;  %v12679_v15 = vcombine.high %v1115_v23, %v1119_v24  ;;  %v12681_v30 = vcombine.high %v1116_v59, %v1120_v26  ;;  %v1164_v23 = vld [vmem:[%s14005_s10 + $0x1ac8] sm:$0xff]  ;;  %v12720_v26 = vcombine.low %v1156_v10, %v1160_v11 }
 0x1e7   : > { %9842 = vmatprep.subr.bf16.mxu0 %v12631_v32  ;;  %10334 = vmatprep.subr.bf16.mxu1 %v12633_v33  ;;  %v1123_v32 = vld [vmem:[%s14005_s10 + $0x1980] sm:$0xff]  ;;  %v1168_v24 = vld [vmem:[%s14005_s10 + $0x1ae8] sm:$0xff] }
 0x1e8   : > { %v1127_v33 = vld [vmem:[%s14005_s10 + $0x19a0] sm:$0xff] }
 0x1e9   : > { %v12686_v47 = vcombine.low %v1123_v32, %v1127_v33 }
 0x1ea   : > { %9843 = vmatpush1.bf16.msra.mxu0 %v12630_v40  ;;  %10335 = vmatpush1.bf16.msra.mxu1 %v12632_v41  ;;  %v12687_v40 = vcombine.high %v1123_v32, %v1127_v33  ;;  %v12689_v41 = vcombine.high %v1124_v34, %v1128_v35  ;;  %v1172_v32 = vld [vmem:[%s14005_s10 + $0x1b08] sm:$0xff]  ;;  %v12728_v35 = vcombine.low %v1164_v23, %v1168_v24 }
 0x1eb   : > { %9853 = vmatprep.subr.bf16.mxu0 %v12639_v42  ;;  %10345 = vmatprep.subr.bf16.mxu1 %v12641_v43  ;;  %v1131_v42 = vld [vmem:[%s14005_s10 + $0x19c0] sm:$0xff]  ;;  %v1176_v33 = vld [vmem:[%s14005_s10 + $0x1b28] sm:$0xff] }
 0x1ec   : > { %v1135_v43 = vld [vmem:[%s14005_s10 + $0x19e0] sm:$0xff] }
 0x1ed   : > { %9845 = vmatmul.mubr.bf16.vlgmr.msra.gmra.mrb[0].mxu0 %v14509_v46  ;;  %10337 = vmatmul.mubr.bf16.vlgmr.msra.gmra.mrb[0].mxu1 %v14509_v46  ;;  %v12694_v60 = vcombine.low %v1131_v42, %v1135_v43 }
 0x1ee   : > { %9854 = vmatpush1.bf16.msra.mxu0 %v12638_v50  ;;  %10346 = vmatpush1.bf16.msra.mxu1 %v12640_v51  ;;  %v12695_v50 = vcombine.high %v1131_v42, %v1135_v43  ;;  %v12697_v51 = vcombine.high %v1132_v25, %v1136_v44  ;;  %v1180_v42 = vld [vmem:[%s14005_s10 + $0x1b48] sm:$0xff]  ;;  %v12736_v44 = vcombine.low %v1172_v32, %v1176_v33 }
 0x1ef   : > { %9855 = vmatprep.subr.bf16.mxu0 %v12647_v52  ;;  %10347 = vmatprep.subr.bf16.mxu1 %v12649_v54  ;;  %v1139_v52 = vld [vmem:[%s14005_s10 + $0x1a00] sm:$0xff]  ;;  %v1184_v43 = vld [vmem:[%s14005_s10 + $0x1b68] sm:$0xff] }
 0x1f0   : > { %9885 = vmatprep.mubr.bf16.mxu0 %v14522_v58  ;;  %10377 = vmatprep.mubr.bf16.mxu1 %v14522_v58  ;;  %v1143_v54 = vld [vmem:[%s14005_s10 + $0x1a20] sm:$0xff] }
 0x1f1   : > { %v12702_v4 = vcombine.low %v1139_v52, %v1143_v54 }
 0x1f2   : > { %9856 = vmatpush1.bf16.msra.mxu0 %v12646_v62  ;;  %10348 = vmatpush1.bf16.msra.mxu1 %v12648_v63  ;;  %v12703_v62 = vcombine.high %v1139_v52, %v1143_v54  ;;  %v12705_v63 = vcombine.high %v1140_v19, %v1144_v56  ;;  %v1188_v52 = vld [vmem:[%s14005_s10 + $0x1b88] sm:$0xff]  ;;  %v12744_v56 = vcombine.low %v1180_v42, %v1184_v43 }
 0x1f3   : > { %9857 = vmatprep.subr.bf16.mxu0 %v12655_v39  ;;  %10349 = vmatprep.subr.bf16.mxu1 %v12657_v0  ;;  %v1147_v39 = vld [vmem:[%s14005_s10 + $0x1a40] sm:$0xff]  ;;  %v1192_v54 = vld [vmem:[%s14005_s10 + $0x1ba8] sm:$0xff] }
 0x1f4   : > { %v1151_v0 = vld [vmem:[%s14005_s10 + $0x1a60] sm:$0xff] }
 0x1f5   : > { %v12710_v13 = vcombine.low %v1147_v39, %v1151_v0 }
 0x1f6   : > { %9858 = vmatpush1.bf16.msra.mxu0 %v12654_v6  ;;  %10350 = vmatpush1.bf16.msra.mxu1 %v12656_v7  ;;  %v12711_v6 = vcombine.high %v1147_v39, %v1151_v0  ;;  %v12713_v7 = vcombine.high %v1148_v2, %v1152_v3  ;;  %v1196_v39 = vld [vmem:[%s14005_s10 + $0x1bc8] sm:$0xff]  ;;  %v12752_v3 = vcombine.low %v1188_v52, %v1192_v54 }
 0x1f7   : > { %9859 = vmatprep.subr.bf16.mxu0 %v12663_v8  ;;  %10351 = vmatprep.subr.bf16.mxu1 %v12665_v9  ;;  %v1155_v8 = vld [vmem:[%s14005_s10 + $0x1a80] sm:$0xff]  ;;  %v1200_v0 = vld [vmem:[%s14005_s10 + $0x1be8] sm:$0xff] }
 0x1f8   : > { %v1159_v9 = vld [vmem:[%s14005_s10 + $0x1aa0] sm:$0xff] }
 0x1f9   : > { %v12718_v59 = vcombine.low %v1155_v8, %v1159_v9 }
 0x1fa   : > { %9860 = vmatpush1.bf16.msra.mxu0 %v12662_v17  ;;  %10352 = vmatpush1.bf16.msra.mxu1 %v12664_v18  ;;  %v12719_v17 = vcombine.high %v1155_v8, %v1159_v9  ;;  %v12721_v18 = vcombine.high %v1156_v10, %v1160_v11  ;;  %v1204_v8 = vld [vmem:[%s14005_s10 + $0x1c08] sm:$0xff]  ;;  %v12760_v11 = vcombine.low %v1196_v39, %v1200_v0 }
 0x1fb   : > { %9861 = vmatprep.subr.bf16.mxu0 %v12671_v53  ;;  %10353 = vmatprep.subr.bf16.mxu1 %v12673_v20  ;;  %v1163_v53 = vld [vmem:[%s14005_s10 + $0x1ac0] sm:$0xff]  ;;  %v1208_v9 = vld [vmem:[%s14005_s10 + $0x1c28] sm:$0xff] }
 0x1fc   : > { %v1167_v20 = vld [vmem:[%s14005_s10 + $0x1ae0] sm:$0xff] }
 0x1fd   : > { %v12726_v34 = vcombine.low %v1163_v53, %v1167_v20 }
 0x1fe   : > { %9862 = vmatpush1.bf16.msra.mxu0 %v12670_v28  ;;  %10354 = vmatpush1.bf16.msra.mxu1 %v12672_v29  ;;  %v12727_v28 = vcombine.high %v1163_v53, %v1167_v20  ;;  %v12729_v29 = vcombine.high %v1164_v23, %v1168_v24  ;;  %v14590_v53 = vcombine.low %v14516_v49, %v14516_v49  ;;  %v1212_v20 = vld [vmem:[%s14005_s10 + $0x1c48] sm:$0xff]  ;;  %v14597_v24 = vld [vmem:[%s15863_s0 + $0x38] sm:$0xff]  ;;  %v1219_v49 = vld [vmem:[%s14005_s10 + $0x1c80] sm:$0xff] }
 0x1ff   : > { %9863 = vmatprep.subr.bf16.mxu0 %v12679_v15  ;;  %10355 = vmatprep.subr.bf16.mxu1 %v12681_v30  ;;  %v1171_v15 = vld [vmem:[%s14005_s10 + $0x1b00] sm:$0xff]  ;;  %v1216_v23 = vld [vmem:[%s14005_s10 + $0x1c68] sm:$0xff] }
 0x200   : > { %v1175_v30 = vld [vmem:[%s14005_s10 + $0x1b20] sm:$0xff] }
 0x201   : > { %v12734_v25 = vcombine.low %v1171_v15, %v1175_v30 }
 0x202   : > { %9864 = vmatpush1.bf16.msra.mxu0 %v12678_v37  ;;  %10356 = vmatpush1.bf16.msra.mxu1 %v12680_v38  ;;  %v12735_v37 = vcombine.high %v1171_v15, %v1175_v30  ;;  %v12737_v38 = vcombine.high %v1172_v32, %v1176_v33  ;;  %v1223_v15 = vld [vmem:[%s14005_s10 + $0x1ca0] sm:$0xff]  ;;  %v14603_v30 = vcombine.high %v14597_v24, %v14597_v24  ;;  %v1220_v32 = vld [vmem:[%s14005_s10 + $0x1c88] sm:$0xff] }
 0x203   : > { %9865 = vmatprep.subr.bf16.mxu0 %v12687_v40  ;;  %10357 = vmatprep.subr.bf16.mxu1 %v12689_v41  ;;  %v1179_v40 = vld [vmem:[%s14005_s10 + $0x1b40] sm:$0xff]  ;;  %v1224_v33 = vld [vmem:[%s14005_s10 + $0x1ca8] sm:$0xff] }
 0x204   : > { %v1183_v41 = vld [vmem:[%s14005_s10 + $0x1b60] sm:$0xff] }
 0x205   : > { %v12742_v19 = vcombine.low %v1179_v40, %v1183_v41 }
 0x206   : > { %9866 = vmatpush1.bf16.msra.mxu0 %v12686_v47  ;;  %10358 = vmatpush1.bf16.msra.mxu1 %v12688_v48  ;;  %v12743_v47 = vcombine.high %v1179_v40, %v1183_v41  ;;  %v12745_v48 = vcombine.high %v1180_v42, %v1184_v43  ;;  %v1227_v40 = vld [vmem:[%s14005_s10 + $0x1cc0] sm:$0xff]  ;;  %v1228_v42 = vld [vmem:[%s14005_s10 + $0x1cc8] sm:$0xff] }
 0x207   : > { %9867 = vmatprep.subr.bf16.mxu0 %v12695_v50  ;;  %10359 = vmatprep.subr.bf16.mxu1 %v12697_v51  ;;  %v1187_v50 = vld [vmem:[%s14005_s10 + $0x1b80] sm:$0xff]  ;;  %v1232_v43 = vld [vmem:[%s14005_s10 + $0x1ce8] sm:$0xff] }
 0x208   : > { %v1191_v51 = vld [vmem:[%s14005_s10 + $0x1ba0] sm:$0xff] }
 0x209   : > { %v12750_v2 = vcombine.low %v1187_v50, %v1191_v51  ;;  %v1231_v41 = vld [vmem:[%s14005_s10 + $0x1ce0] sm:$0xff] }
 0x20a   : > { %9868 = vmatpush1.bf16.msra.mxu0 %v12694_v60  ;;  %10360 = vmatpush1.bf16.msra.mxu1 %v12696_v61  ;;  %v12751_v60 = vcombine.high %v1187_v50, %v1191_v51  ;;  %v12753_v61 = vcombine.high %v1188_v52, %v1192_v54  ;;  %v1235_v50 = vld [vmem:[%s14005_s10 + $0x1d00] sm:$0xff]  ;;  %v1236_v52 = vld [vmem:[%s14005_s10 + $0x1d08] sm:$0xff] }
 0x20b   : > { %9869 = vmatprep.subr.bf16.mxu0 %v12703_v62  ;;  %10361 = vmatprep.subr.bf16.mxu1 %v12705_v63  ;;  %v1195_v62 = vld [vmem:[%s14005_s10 + $0x1bc0] sm:$0xff]  ;;  %v1240_v54 = vld [vmem:[%s14005_s10 + $0x1d28] sm:$0xff] }
 0x20c   : > { %v1199_v63 = vld [vmem:[%s14005_s10 + $0x1be0] sm:$0xff] }
 0x20d   : > { %v12758_v10 = vcombine.low %v1195_v62, %v1199_v63  ;;  %v1239_v51 = vld [vmem:[%s14005_s10 + $0x1d20] sm:$0xff] }
 0x20e   : > { %9870 = vmatpush1.bf16.msra.mxu0 %v12702_v4  ;;  %10362 = vmatpush1.bf16.msra.mxu1 %v12704_v5  ;;  %v12759_v4 = vcombine.high %v1195_v62, %v1199_v63  ;;  %v12761_v5 = vcombine.high %v1196_v39, %v1200_v0  ;;  %v1243_v62 = vld [vmem:[%s14005_s10 + $0x1d40] sm:$0xff]  ;;  %v1244_v39 = vld [vmem:[%s14005_s10 + $0x1d48] sm:$0xff] }
 0x20f   : > { %9871 = vmatprep.subr.bf16.mxu0 %v12711_v6  ;;  %10363 = vmatprep.subr.bf16.mxu1 %v12713_v7  ;;  %v1203_v6 = vld [vmem:[%s14005_s10 + $0x1c00] sm:$0xff]  ;;  %v1248_v0 = vld [vmem:[%s14005_s10 + $0x1d68] sm:$0xff] }
 0x210   : > { %v1207_v7 = vld [vmem:[%s14005_s10 + $0x1c20] sm:$0xff] }
 0x211   : > { %v1247_v63 = vld [vmem:[%s14005_s10 + $0x1d60] sm:$0xff] }
 0x212   : > { %9872 = vmatpush1.bf16.msra.mxu0 %v12710_v13  ;;  %10364 = vmatpush1.bf16.msra.mxu1 %v12712_v14  ;;  %v12767_v13 = vcombine.high %v1203_v6, %v1207_v7  ;;  %v12769_v14 = vcombine.high %v1204_v8, %v1208_v9 }
 0x213   : > { %9873 = vmatprep.subr.bf16.mxu0 %v12719_v17  ;;  %10365 = vmatprep.subr.bf16.mxu1 %v12721_v18  ;;  %v1211_v17 = vld [vmem:[%s14005_s10 + $0x1c40] sm:$0xff] }
 0x214   : > { %v1215_v18 = vld [vmem:[%s14005_s10 + $0x1c60] sm:$0xff] }
 0x216   : > { %9874 = vmatpush1.bf16.msra.mxu0 %v12718_v59  ;;  %10366 = vmatpush1.bf16.msra.mxu1 %v12720_v26  ;;  %v12766_v59 = vcombine.low %v1203_v6, %v1207_v7  ;;  %v12768_v26 = vcombine.low %v1204_v8, %v1208_v9  ;;  %v1251_v6 = vld [vmem:[%s14005_s10 + $0x1d80] sm:$0xff]  ;;  %v1252_v8 = vld [vmem:[%s14005_s10 + $0x1d88] sm:$0xff] }
 0x217   : > { %9875 = vmatprep.subr.bf16.mxu0 %v12727_v28  ;;  %10367 = vmatprep.subr.bf16.mxu1 %v12729_v29  ;;  %v12775_v28 = vcombine.high %v1211_v17, %v1215_v18  ;;  %v12777_v29 = vcombine.high %v1212_v20, %v1216_v23  ;;  %v1255_v7 = vld [vmem:[%s14005_s10 + $0x1da0] sm:$0xff]  ;;  %v1256_v9 = vld [vmem:[%s14005_s10 + $0x1da8] sm:$0xff] }
 0x21a   : > { %9876 = vmatpush1.bf16.msra.mxu0 %v12726_v34  ;;  %10368 = vmatpush1.bf16.msra.mxu1 %v12728_v35  ;;  %v12774_v34 = vcombine.low %v1211_v17, %v1215_v18  ;;  %v12776_v35 = vcombine.low %v1212_v20, %v1216_v23  ;;  %v1259_v17 = vld [vmem:[%s14005_s10 + $0x1dc0] sm:$0xff]  ;;  %v1260_v20 = vld [vmem:[%s14005_s10 + $0x1dc8] sm:$0xff] }
 0x21b   : > { %9877 = vmatprep.subr.bf16.mxu0 %v12735_v37  ;;  %10369 = vmatprep.subr.bf16.mxu1 %v12737_v38  ;;  %v12783_v37 = vcombine.high %v1219_v49, %v1223_v15  ;;  %v12785_v38 = vcombine.high %v1220_v32, %v1224_v33  ;;  %v1263_v18 = vld [vmem:[%s14005_s10 + $0x1de0] sm:$0xff]  ;;  %v1264_v23 = vld [vmem:[%s14005_s10 + $0x1de8] sm:$0xff] }
 0x21e   : > { %9878 = vmatpush1.bf16.msra.mxu0 %v12734_v25  ;;  %10370 = vmatpush1.bf16.msra.mxu1 %v12736_v44  ;;  %v12782_v25 = vcombine.low %v1219_v49, %v1223_v15  ;;  %v12784_v44 = vcombine.low %v1220_v32, %v1224_v33  ;;  %v1267_v49 = vld [vmem:[%s14005_s10 + $0x1e00] sm:$0xff]  ;;  %v1268_v32 = vld [vmem:[%s14005_s10 + $0x1e08] sm:$0xff] }
 0x21f   : > { %9879 = vmatprep.subr.bf16.mxu0 %v12743_v47  ;;  %10371 = vmatprep.subr.bf16.mxu1 %v12745_v48  ;;  %v12791_v47 = vcombine.high %v1227_v40, %v1231_v41  ;;  %v12793_v48 = vcombine.high %v1228_v42, %v1232_v43  ;;  %v1271_v15 = vld [vmem:[%s14005_s10 + $0x1e20] sm:$0xff]  ;;  %v1272_v33 = vld [vmem:[%s14005_s10 + $0x1e28] sm:$0xff] }
 0x222   : > { %9880 = vmatpush1.bf16.msra.mxu0 %v12742_v19  ;;  %10372 = vmatpush1.bf16.msra.mxu1 %v12744_v56  ;;  %v12790_v19 = vcombine.low %v1227_v40, %v1231_v41  ;;  %v12792_v56 = vcombine.low %v1228_v42, %v1232_v43  ;;  %v1275_v40 = vld [vmem:[%s14005_s10 + $0x1e40] sm:$0xff]  ;;  %v1276_v42 = vld [vmem:[%s14005_s10 + $0x1e48] sm:$0xff] }
 0x223   : > { %9881 = vmatprep.subr.bf16.mxu0 %v12751_v60  ;;  %10373 = vmatprep.subr.bf16.mxu1 %v12753_v61  ;;  %v12799_v60 = vcombine.high %v1235_v50, %v1239_v51  ;;  %v12801_v61 = vcombine.high %v1236_v52, %v1240_v54  ;;  %v1279_v41 = vld [vmem:[%s14005_s10 + $0x1e60] sm:$0xff]  ;;  %v1280_v43 = vld [vmem:[%s14005_s10 + $0x1e68] sm:$0xff] }
 0x226   : > { %9882 = vmatpush1.bf16.msra.mxu0 %v12750_v2  ;;  %10374 = vmatpush1.bf16.msra.mxu1 %v12752_v3  ;;  %v12798_v2 = vcombine.low %v1235_v50, %v1239_v51  ;;  %v12800_v3 = vcombine.low %v1236_v52, %v1240_v54  ;;  %v1283_v50 = vld [vmem:[%s14005_s10 + $0x1e80] sm:$0xff]  ;;  %v1284_v52 = vld [vmem:[%s14005_s10 + $0x1e88] sm:$0xff] }
 0x227   : > { %9883 = vmatprep.subr.bf16.mxu0 %v12759_v4  ;;  %10375 = vmatprep.subr.bf16.mxu1 %v12761_v5  ;;  %v12807_v4 = vcombine.high %v1243_v62, %v1247_v63  ;;  %v12809_v5 = vcombine.high %v1244_v39, %v1248_v0  ;;  %v1287_v51 = vld [vmem:[%s14005_s10 + $0x1ea0] sm:$0xff]  ;;  %v1288_v54 = vld [vmem:[%s14005_s10 + $0x1ea8] sm:$0xff] }
 0x22a   : > { %9884 = vmatpush1.bf16.msra.mxu0 %v12758_v10  ;;  %10376 = vmatpush1.bf16.msra.mxu1 %v12760_v11  ;;  %v12806_v10 = vcombine.low %v1243_v62, %v1247_v63  ;;  %v12808_v11 = vcombine.low %v1244_v39, %v1248_v0  ;;  %v1291_v62 = vld [vmem:[%s14005_s10 + $0x1ec0] sm:$0xff]  ;;  %v1292_v39 = vld [vmem:[%s14005_s10 + $0x1ec8] sm:$0xff] }
 0x22b   : > { %9894 = vmatprep.subr.bf16.mxu0 %v12767_v13  ;;  %10386 = vmatprep.subr.bf16.mxu1 %v12769_v14  ;;  %v12815_v13 = vcombine.high %v1251_v6, %v1255_v7  ;;  %v12817_v14 = vcombine.high %v1252_v8, %v1256_v9  ;;  %v1295_v63 = vld [vmem:[%s14005_s10 + $0x1ee0] sm:$0xff]  ;;  %v1296_v0 = vld [vmem:[%s14005_s10 + $0x1ee8] sm:$0xff] }
 0x22d   : > { %9886 = vmatmul.mubr.bf16.vlgmr.msra.gmra.mrb[0].mxu0 %v14590_v53  ;;  %10378 = vmatmul.mubr.bf16.vlgmr.msra.gmra.mrb[0].mxu1 %v14590_v53 }
 0x22e   : > { %9895 = vmatpush1.bf16.msra.mxu0 %v12766_v59  ;;  %10387 = vmatpush1.bf16.msra.mxu1 %v12768_v26  ;;  %v12814_v59 = vcombine.low %v1251_v6, %v1255_v7  ;;  %v12816_v26 = vcombine.low %v1252_v8, %v1256_v9  ;;  %v1299_v6 = vld [vmem:[%s14005_s10 + $0x1f00] sm:$0xff]  ;;  %v1300_v8 = vld [vmem:[%s14005_s10 + $0x1f08] sm:$0xff] }
 0x22f   : > { %9896 = vmatprep.subr.bf16.mxu0 %v12775_v28  ;;  %10388 = vmatprep.subr.bf16.mxu1 %v12777_v29  ;;  %v12823_v28 = vcombine.high %v1259_v17, %v1263_v18  ;;  %v12825_v29 = vcombine.high %v1260_v20, %v1264_v23  ;;  %v1303_v7 = vld [vmem:[%s14005_s10 + $0x1f20] sm:$0xff]  ;;  %v1304_v9 = vld [vmem:[%s14005_s10 + $0x1f28] sm:$0xff] }
 0x230   : > { %9926 = vmatprep.mubr.bf16.mxu0 %v14603_v30  ;;  %10418 = vmatprep.mubr.bf16.mxu1 %v14603_v30 }
 0x232   : > { %9897 = vmatpush1.bf16.msra.mxu0 %v12774_v34  ;;  %10389 = vmatpush1.bf16.msra.mxu1 %v12776_v35  ;;  %v12822_v34 = vcombine.low %v1259_v17, %v1263_v18  ;;  %v12824_v35 = vcombine.low %v1260_v20, %v1264_v23  ;;  %v1307_v17 = vld [vmem:[%s14005_s10 + $0x1f40] sm:$0xff]  ;;  %v1308_v20 = vld [vmem:[%s14005_s10 + $0x1f48] sm:$0xff] }
 0x233   : > { %9898 = vmatprep.subr.bf16.mxu0 %v12783_v37  ;;  %10390 = vmatprep.subr.bf16.mxu1 %v12785_v38  ;;  %v12831_v37 = vcombine.high %v1267_v49, %v1271_v15  ;;  %v12833_v38 = vcombine.high %v1268_v32, %v1272_v33  ;;  %v1311_v18 = vld [vmem:[%s14005_s10 + $0x1f60] sm:$0xff]  ;;  %v1312_v23 = vld [vmem:[%s14005_s10 + $0x1f68] sm:$0xff] }
 0x236   : > { %9899 = vmatpush1.bf16.msra.mxu0 %v12782_v25  ;;  %10391 = vmatpush1.bf16.msra.mxu1 %v12784_v44  ;;  %v12830_v25 = vcombine.low %v1267_v49, %v1271_v15  ;;  %v12832_v44 = vcombine.low %v1268_v32, %v1272_v33  ;;  %v1315_v49 = vld [vmem:[%s14005_s10 + $0x1f80] sm:$0xff]  ;;  %v1316_v32 = vld [vmem:[%s14005_s10 + $0x1f88] sm:$0xff] }
 0x237   : > { %9900 = vmatprep.subr.bf16.mxu0 %v12791_v47  ;;  %10392 = vmatprep.subr.bf16.mxu1 %v12793_v48  ;;  %v12839_v47 = vcombine.high %v1275_v40, %v1279_v41  ;;  %v12841_v48 = vcombine.high %v1276_v42, %v1280_v43  ;;  %v1319_v15 = vld [vmem:[%s14005_s10 + $0x1fa0] sm:$0xff]  ;;  %v1320_v33 = vld [vmem:[%s14005_s10 + $0x1fa8] sm:$0xff] }
 0x23a   : > { %9901 = vmatpush1.bf16.msra.mxu0 %v12790_v19  ;;  %10393 = vmatpush1.bf16.msra.mxu1 %v12792_v56  ;;  %v12838_v19 = vcombine.low %v1275_v40, %v1279_v41  ;;  %v12840_v56 = vcombine.low %v1276_v42, %v1280_v43  ;;  %v1323_v40 = vld [vmem:[%s14005_s10 + $0x1fc0] sm:$0xff]  ;;  %v1324_v42 = vld [vmem:[%s14005_s10 + $0x1fc8] sm:$0xff] }
 0x23b   : > { %9902 = vmatprep.subr.bf16.mxu0 %v12799_v60  ;;  %10394 = vmatprep.subr.bf16.mxu1 %v12801_v61  ;;  %v12847_v60 = vcombine.high %v1283_v50, %v1287_v51  ;;  %v12849_v61 = vcombine.high %v1284_v52, %v1288_v54  ;;  %v1327_v41 = vld [vmem:[%s14005_s10 + $0x1fe0] sm:$0xff]  ;;  %v1328_v43 = vld [vmem:[%s14005_s10 + $0x1fe8] sm:$0xff] }
 0x23e   : > { %9903 = vmatpush1.bf16.msra.mxu0 %v12798_v2  ;;  %10395 = vmatpush1.bf16.msra.mxu1 %v12800_v3  ;;  %v12846_v2 = vcombine.low %v1283_v50, %v1287_v51  ;;  %v12848_v3 = vcombine.low %v1284_v52, %v1288_v54  ;;  %v1331_v50 = vld [vmem:[%s14005_s10 + $0x2000] sm:$0xff]  ;;  %v1332_v52 = vld [vmem:[%s14005_s10 + $0x2008] sm:$0xff] }
 0x23f   : > { %9904 = vmatprep.subr.bf16.mxu0 %v12807_v4  ;;  %10396 = vmatprep.subr.bf16.mxu1 %v12809_v5  ;;  %v12855_v4 = vcombine.high %v1291_v62, %v1295_v63  ;;  %v12857_v5 = vcombine.high %v1292_v39, %v1296_v0  ;;  %v1335_v51 = vld [vmem:[%s14005_s10 + $0x2020] sm:$0xff]  ;;  %v1336_v54 = vld [vmem:[%s14005_s10 + $0x2028] sm:$0xff] }
 0x242   : > { %9905 = vmatpush1.bf16.msra.mxu0 %v12806_v10  ;;  %10397 = vmatpush1.bf16.msra.mxu1 %v12808_v11  ;;  %v12854_v10 = vcombine.low %v1291_v62, %v1295_v63  ;;  %v12856_v11 = vcombine.low %v1292_v39, %v1296_v0  ;;  %v1339_v62 = vld [vmem:[%s14005_s10 + $0x2040] sm:$0xff]  ;;  %v14671_v39 = vcombine.low %v14597_v24, %v14597_v24  ;;  %v1340_v0 = vld [vmem:[%s14005_s10 + $0x2048] sm:$0xff] }
 0x243   : > { %9906 = vmatprep.subr.bf16.mxu0 %v12815_v13  ;;  %10398 = vmatprep.subr.bf16.mxu1 %v12817_v14  ;;  %v12863_v13 = vcombine.high %v1299_v6, %v1303_v7  ;;  %v12865_v14 = vcombine.high %v1300_v8, %v1304_v9  ;;  %v1343_v63 = vld [vmem:[%s14005_s10 + $0x2060] sm:$0xff] }
 0x244   : > { %v1347_v24 = vld [vmem:[%s14005_s10 + $0x2080] sm:$0xff] }
 0x246   : > { %9907 = vmatpush1.bf16.msra.mxu0 %v12814_v59  ;;  %10399 = vmatpush1.bf16.msra.mxu1 %v12816_v26  ;;  %v12862_v59 = vcombine.low %v1299_v6, %v1303_v7  ;;  %v12864_v26 = vcombine.low %v1300_v8, %v1304_v9  ;;  %v12903_v6 = vcombine.high %v1339_v62, %v1343_v63  ;;  %v1351_v8 = vld [vmem:[%s14005_s10 + $0x20a0] sm:$0xff] }
 0x247   : > { %9908 = vmatprep.subr.bf16.mxu0 %v12823_v28  ;;  %10400 = vmatprep.subr.bf16.mxu1 %v12825_v29  ;;  %v12871_v28 = vcombine.high %v1307_v17, %v1311_v18  ;;  %v12873_v29 = vcombine.high %v1308_v20, %v1312_v23 }
 0x24a   : > { %9909 = vmatpush1.bf16.msra.mxu0 %v12822_v34  ;;  %10401 = vmatpush1.bf16.msra.mxu1 %v12824_v35  ;;  %v12870_v34 = vcombine.low %v1307_v17, %v1311_v18  ;;  %v12872_v35 = vcombine.low %v1308_v20, %v1312_v23  ;;  %v12911_v17 = vcombine.high %v1347_v24, %v1351_v8  ;;  %v1355_v20 = vld [vmem:[%s14005_s10 + $0x20c0] sm:$0xff] }
 0x24b   : > { %9910 = vmatprep.subr.bf16.mxu0 %v12831_v37  ;;  %10402 = vmatprep.subr.bf16.mxu1 %v12833_v38  ;;  %v12879_v37 = vcombine.high %v1315_v49, %v1319_v15  ;;  %v12881_v38 = vcombine.high %v1316_v32, %v1320_v33  ;;  %v1359_v23 = vld [vmem:[%s14005_s10 + $0x20e0] sm:$0xff] }
 0x24e   : > { %9911 = vmatpush1.bf16.msra.mxu0 %v12830_v25  ;;  %10403 = vmatpush1.bf16.msra.mxu1 %v12832_v44  ;;  %v12878_v25 = vcombine.low %v1315_v49, %v1319_v15  ;;  %v12880_v44 = vcombine.low %v1316_v32, %v1320_v33  ;;  %v12919_v49 = vcombine.high %v1355_v20, %v1359_v23  ;;  %v1363_v32 = vld [vmem:[%s14005_s10 + $0x2100] sm:$0xff] }
 0x24f   : > { %9912 = vmatprep.subr.bf16.mxu0 %v12839_v47  ;;  %10404 = vmatprep.subr.bf16.mxu1 %v12841_v48  ;;  %v12887_v47 = vcombine.high %v1323_v40, %v1327_v41  ;;  %v12889_v48 = vcombine.high %v1324_v42, %v1328_v43  ;;  %v1367_v33 = vld [vmem:[%s14005_s10 + $0x2120] sm:$0xff] }
 0x252   : > { %9913 = vmatpush1.bf16.msra.mxu0 %v12838_v19  ;;  %10405 = vmatpush1.bf16.msra.mxu1 %v12840_v56  ;;  %v12886_v19 = vcombine.low %v1323_v40, %v1327_v41  ;;  %v12888_v56 = vcombine.low %v1324_v42, %v1328_v43  ;;  %v12927_v40 = vcombine.high %v1363_v32, %v1367_v33  ;;  %v1371_v42 = vld [vmem:[%s14005_s10 + $0x2140] sm:$0xff] }
 0x253   : > { %9914 = vmatprep.subr.bf16.mxu0 %v12847_v60  ;;  %10406 = vmatprep.subr.bf16.mxu1 %v12849_v61  ;;  %v12895_v60 = vcombine.high %v1331_v50, %v1335_v51  ;;  %v12897_v61 = vcombine.high %v1332_v52, %v1336_v54  ;;  %v1375_v43 = vld [vmem:[%s14005_s10 + $0x2160] sm:$0xff] }
 0x256   : > { %9915 = vmatpush1.bf16.msra.mxu0 %v12846_v2  ;;  %10407 = vmatpush1.bf16.msra.mxu1 %v12848_v3  ;;  %v1344_v2 = vld [vmem:[%s14005_s10 + $0x2068] sm:$0xff]  ;;  %v14678_v3 = vld [vmem:[%s15863_s0 + $0x40] sm:$0xff] }
 0x257   : > { %9916 = vmatprep.subr.bf16.mxu0 %v12855_v4  ;;  %10408 = vmatprep.subr.bf16.mxu1 %v12857_v5  ;;  %v12894_v4 = vcombine.low %v1331_v50, %v1335_v51  ;;  %v12896_v5 = vcombine.low %v1332_v52, %v1336_v54  ;;  %v12905_v7 = vcombine.high %v1340_v0, %v1344_v2  ;;  %v1379_v52 = vld [vmem:[%s14005_s10 + $0x2180] sm:$0xff] }
 0x258   : > { %v14684_v9 = vcombine.high %v14678_v3, %v14678_v3  ;;  %v12935_v50 = vcombine.high %v1371_v42, %v1375_v43  ;;  %v1383_v54 = vld [vmem:[%s14005_s10 + $0x21a0] sm:$0xff] }
 0x25a   : > { %9917 = vmatpush1.bf16.msra.mxu0 %v12854_v10  ;;  %10409 = vmatpush1.bf16.msra.mxu1 %v12856_v11  ;;  %v1348_v10 = vld [vmem:[%s14005_s10 + $0x2088] sm:$0xff] }
 0x25b   : > { %9918 = vmatprep.subr.bf16.mxu0 %v12863_v13  ;;  %10410 = vmatprep.subr.bf16.mxu1 %v12865_v14  ;;  %v1352_v11 = vld [vmem:[%s14005_s10 + $0x20a8] sm:$0xff]  ;;  %v12902_v13 = vcombine.low %v1339_v62, %v1343_v63  ;;  %v12904_v14 = vcombine.low %v1340_v0, %v1344_v2  ;;  %v12943_v62 = vcombine.high %v1379_v52, %v1383_v54  ;;  %v1387_v0 = vld [vmem:[%s14005_s10 + $0x21c0] sm:$0xff] }
 0x25c   : > { %v12913_v18 = vcombine.high %v1348_v10, %v1352_v11  ;;  %v1391_v2 = vld [vmem:[%s14005_s10 + $0x21e0] sm:$0xff] }
 0x25e   : > { %9919 = vmatpush1.bf16.msra.mxu0 %v12862_v59  ;;  %10411 = vmatpush1.bf16.msra.mxu1 %v12864_v26  ;;  %v1356_v59 = vld [vmem:[%s14005_s10 + $0x20c8] sm:$0xff] }
 0x25f   : > { %9920 = vmatprep.subr.bf16.mxu0 %v12871_v28  ;;  %10412 = vmatprep.subr.bf16.mxu1 %v12873_v29  ;;  %v1360_v26 = vld [vmem:[%s14005_s10 + $0x20e8] sm:$0xff]  ;;  %v12910_v28 = vcombine.low %v1347_v24, %v1351_v8  ;;  %v12912_v29 = vcombine.low %v1348_v10, %v1352_v11  ;;  %v12951_v24 = vcombine.high %v1387_v0, %v1391_v2  ;;  %v1395_v10 = vld [vmem:[%s14005_s10 + $0x2200] sm:$0xff] }
 0x260   : > { %v12921_v15 = vcombine.high %v1356_v59, %v1360_v26  ;;  %v1399_v11 = vld [vmem:[%s14005_s10 + $0x2220] sm:$0xff] }
 0x262   : > { %9921 = vmatpush1.bf16.msra.mxu0 %v12870_v34  ;;  %10413 = vmatpush1.bf16.msra.mxu1 %v12872_v35  ;;  %v1364_v34 = vld [vmem:[%s14005_s10 + $0x2108] sm:$0xff] }
 0x263   : > { %9922 = vmatprep.subr.bf16.mxu0 %v12879_v37  ;;  %10414 = vmatprep.subr.bf16.mxu1 %v12881_v38  ;;  %v1368_v35 = vld [vmem:[%s14005_s10 + $0x2128] sm:$0xff]  ;;  %v12918_v37 = vcombine.low %v1355_v20, %v1359_v23  ;;  %v12920_v38 = vcombine.low %v1356_v59, %v1360_v26  ;;  %v12959_v20 = vcombine.high %v1395_v10, %v1399_v11  ;;  %v1403_v59 = vld [vmem:[%s14005_s10 + $0x2240] sm:$0xff] }
 0x264   : > { %v12929_v41 = vcombine.high %v1364_v34, %v1368_v35  ;;  %v1407_v26 = vld [vmem:[%s14005_s10 + $0x2260] sm:$0xff] }
 0x266   : > { %9923 = vmatpush1.bf16.msra.mxu0 %v12878_v25  ;;  %10415 = vmatpush1.bf16.msra.mxu1 %v12880_v44  ;;  %v1372_v25 = vld [vmem:[%s14005_s10 + $0x2148] sm:$0xff] }
 0x267   : > { %9924 = vmatprep.subr.bf16.mxu0 %v12887_v47  ;;  %10416 = vmatprep.subr.bf16.mxu1 %v12889_v48  ;;  %v1376_v44 = vld [vmem:[%s14005_s10 + $0x2168] sm:$0xff]  ;;  %v12926_v47 = vcombine.low %v1363_v32, %v1367_v33  ;;  %v12928_v48 = vcombine.low %v1364_v34, %v1368_v35  ;;  %v12967_v32 = vcombine.high %v1403_v59, %v1407_v26  ;;  %v1411_v34 = vld [vmem:[%s14005_s10 + $0x2280] sm:$0xff] }
 0x268   : > { %v12937_v51 = vcombine.high %v1372_v25, %v1376_v44  ;;  %v1415_v35 = vld [vmem:[%s14005_s10 + $0x22a0] sm:$0xff] }
 0x26a   : > { %9925 = vmatpush1.bf16.msra.mxu0 %v12886_v19  ;;  %10417 = vmatpush1.bf16.msra.mxu1 %v12888_v56  ;;  %v1380_v19 = vld [vmem:[%s14005_s10 + $0x2188] sm:$0xff] }
 0x26b   : > { %9935 = vmatprep.subr.bf16.mxu0 %v12895_v60  ;;  %10427 = vmatprep.subr.bf16.mxu1 %v12897_v61  ;;  %v1384_v56 = vld [vmem:[%s14005_s10 + $0x21a8] sm:$0xff]  ;;  %v12934_v60 = vcombine.low %v1371_v42, %v1375_v43  ;;  %v12936_v61 = vcombine.low %v1372_v25, %v1376_v44  ;;  %v12975_v42 = vcombine.high %v1411_v34, %v1415_v35  ;;  %v1419_v25 = vld [vmem:[%s14005_s10 + $0x22c0] sm:$0xff] }
 0x26c   : > { %v12945_v63 = vcombine.high %v1380_v19, %v1384_v56  ;;  %v1423_v44 = vld [vmem:[%s14005_s10 + $0x22e0] sm:$0xff] }
 0x26d   : > { %9927 = vmatmul.mubr.bf16.vlgmr.msra.gmra.mrb[0].mxu0 %v14671_v39  ;;  %10419 = vmatmul.mubr.bf16.vlgmr.msra.gmra.mrb[0].mxu1 %v14671_v39 }
 0x26e   : > { %9936 = vmatpush1.bf16.msra.mxu0 %v12894_v4  ;;  %10428 = vmatpush1.bf16.msra.mxu1 %v12896_v5  ;;  %v1388_v4 = vld [vmem:[%s14005_s10 + $0x21c8] sm:$0xff] }
 0x26f   : > { %9937 = vmatprep.subr.bf16.mxu0 %v12903_v6  ;;  %10429 = vmatprep.subr.bf16.mxu1 %v12905_v7  ;;  %v1392_v5 = vld [vmem:[%s14005_s10 + $0x21e8] sm:$0xff]  ;;  %v12942_v6 = vcombine.low %v1379_v52, %v1383_v54  ;;  %v12944_v7 = vcombine.low %v1380_v19, %v1384_v56  ;;  %v12983_v52 = vcombine.high %v1419_v25, %v1423_v44  ;;  %v1427_v19 = vld [vmem:[%s14005_s10 + $0x2300] sm:$0xff] }
 0x270   : > { %9967 = vmatprep.mubr.bf16.mxu0 %v14684_v9  ;;  %10459 = vmatprep.mubr.bf16.mxu1 %v14684_v9  ;;  %v12953_v8 = vcombine.high %v1388_v4, %v1392_v5  ;;  %v1431_v56 = vld [vmem:[%s14005_s10 + $0x2320] sm:$0xff] }
 0x272   : > { %9938 = vmatpush1.bf16.msra.mxu0 %v12902_v13  ;;  %10430 = vmatpush1.bf16.msra.mxu1 %v12904_v14  ;;  %v1396_v13 = vld [vmem:[%s14005_s10 + $0x2208] sm:$0xff] }
 0x273   : > { %9939 = vmatprep.subr.bf16.mxu0 %v12911_v17  ;;  %10431 = vmatprep.subr.bf16.mxu1 %v12913_v18  ;;  %v1400_v14 = vld [vmem:[%s14005_s10 + $0x2228] sm:$0xff]  ;;  %v12950_v17 = vcombine.low %v1387_v0, %v1391_v2  ;;  %v12952_v18 = vcombine.low %v1388_v4, %v1392_v5  ;;  %v12991_v0 = vcombine.high %v1427_v19, %v1431_v56  ;;  %v1435_v4 = vld [vmem:[%s14005_s10 + $0x2340] sm:$0xff] }
 0x274   : > { %v12961_v23 = vcombine.high %v1396_v13, %v1400_v14  ;;  %v1439_v5 = vld [vmem:[%s14005_s10 + $0x2360] sm:$0xff] }
 0x276   : > { %9940 = vmatpush1.bf16.msra.mxu0 %v12910_v28  ;;  %10432 = vmatpush1.bf16.msra.mxu1 %v12912_v29  ;;  %v1404_v28 = vld [vmem:[%s14005_s10 + $0x2248] sm:$0xff] }
 0x277   : > { %9941 = vmatprep.subr.bf16.mxu0 %v12919_v49  ;;  %10433 = vmatprep.subr.bf16.mxu1 %v12921_v15  ;;  %v1408_v29 = vld [vmem:[%s14005_s10 + $0x2268] sm:$0xff]  ;;  %v12958_v49 = vcombine.low %v1395_v10, %v1399_v11  ;;  %v12960_v15 = vcombine.low %v1396_v13, %v1400_v14  ;;  %v12999_v10 = vcombine.high %v1435_v4, %v1439_v5  ;;  %v1443_v13 = vld [vmem:[%s14005_s10 + $0x2380] sm:$0xff] }
 0x278   : > { %v12969_v33 = vcombine.high %v1404_v28, %v1408_v29  ;;  %v1447_v14 = vld [vmem:[%s14005_s10 + $0x23a0] sm:$0xff] }
 0x27a   : > { %9942 = vmatpush1.bf16.msra.mxu0 %v12918_v37  ;;  %10434 = vmatpush1.bf16.msra.mxu1 %v12920_v38  ;;  %v1412_v37 = vld [vmem:[%s14005_s10 + $0x2288] sm:$0xff] }
 0x27b   : > { %9943 = vmatprep.subr.bf16.mxu0 %v12927_v40  ;;  %10435 = vmatprep.subr.bf16.mxu1 %v12929_v41  ;;  %v1416_v38 = vld [vmem:[%s14005_s10 + $0x22a8] sm:$0xff]  ;;  %v12966_v40 = vcombine.low %v1403_v59, %v1407_v26  ;;  %v12968_v41 = vcombine.low %v1404_v28, %v1408_v29  ;;  %v13007_v59 = vcombine.high %v1443_v13, %v1447_v14  ;;  %v1451_v28 = vld [vmem:[%s14005_s10 + $0x23c0] sm:$0xff] }
 0x27c   : > { %v12977_v43 = vcombine.high %v1412_v37, %v1416_v38  ;;  %v1455_v29 = vld [vmem:[%s14005_s10 + $0x23e0] sm:$0xff] }
 0x27e   : > { %9944 = vmatpush1.bf16.msra.mxu0 %v12926_v47  ;;  %10436 = vmatpush1.bf16.msra.mxu1 %v12928_v48  ;;  %v1420_v47 = vld [vmem:[%s14005_s10 + $0x22c8] sm:$0xff] }
 0x27f   : > { %9945 = vmatprep.subr.bf16.mxu0 %v12935_v50  ;;  %10437 = vmatprep.subr.bf16.mxu1 %v12937_v51  ;;  %v1424_v48 = vld [vmem:[%s14005_s10 + $0x22e8] sm:$0xff]  ;;  %v12974_v50 = vcombine.low %v1411_v34, %v1415_v35  ;;  %v12976_v51 = vcombine.low %v1412_v37, %v1416_v38  ;;  %v13015_v34 = vcombine.high %v1451_v28, %v1455_v29  ;;  %v1459_v37 = vld [vmem:[%s14005_s10 + $0x2400] sm:$0xff] }
 0x280   : > { %v12985_v54 = vcombine.high %v1420_v47, %v1424_v48  ;;  %v1463_v38 = vld [vmem:[%s14005_s10 + $0x2420] sm:$0xff] }
 0x282   : > { %9946 = vmatpush1.bf16.msra.mxu0 %v12934_v60  ;;  %10438 = vmatpush1.bf16.msra.mxu1 %v12936_v61  ;;  %v1428_v60 = vld [vmem:[%s14005_s10 + $0x2308] sm:$0xff] }
 0x283   : > { %9947 = vmatprep.subr.bf16.mxu0 %v12943_v62  ;;  %10439 = vmatprep.subr.bf16.mxu1 %v12945_v63  ;;  %v1432_v61 = vld [vmem:[%s14005_s10 + $0x2328] sm:$0xff]  ;;  %v12982_v62 = vcombine.low %v1419_v25, %v1423_v44  ;;  %v12984_v63 = vcombine.low %v1420_v47, %v1424_v48  ;;  %v13023_v25 = vcombine.high %v1459_v37, %v1463_v38  ;;  %v1467_v47 = vld [vmem:[%s14005_s10 + $0x2440] sm:$0xff] }
 0x284   : > { %v12993_v2 = vcombine.high %v1428_v60, %v1432_v61  ;;  %v1471_v48 = vld [vmem:[%s14005_s10 + $0x2460] sm:$0xff] }
 0x286   : > { %9948 = vmatpush1.bf16.msra.mxu0 %v12942_v6  ;;  %10440 = vmatpush1.bf16.msra.mxu1 %v12944_v7  ;;  %v1436_v6 = vld [vmem:[%s14005_s10 + $0x2348] sm:$0xff] }
 0x287   : > { %9949 = vmatprep.subr.bf16.mxu0 %v12951_v24  ;;  %10441 = vmatprep.subr.bf16.mxu1 %v12953_v8  ;;  %v1440_v7 = vld [vmem:[%s14005_s10 + $0x2368] sm:$0xff]  ;;  %v12990_v24 = vcombine.low %v1427_v19, %v1431_v56  ;;  %v12992_v8 = vcombine.low %v1428_v60, %v1432_v61  ;;  %v13022_v19 = vcombine.low %v1459_v37, %v1463_v38 }
 0x288   : > { %v13001_v11 = vcombine.high %v1436_v6, %v1440_v7  ;;  %v13031_v60 = vcombine.high %v1467_v47, %v1471_v48 }
 0x28a   : > { %9950 = vmatpush1.bf16.msra.mxu0 %v12950_v17  ;;  %10442 = vmatpush1.bf16.msra.mxu1 %v12952_v18  ;;  %v1444_v17 = vld [vmem:[%s14005_s10 + $0x2388] sm:$0xff] }
 0x28b   : > { %9951 = vmatprep.subr.bf16.mxu0 %v12959_v20  ;;  %10443 = vmatprep.subr.bf16.mxu1 %v12961_v23  ;;  %v1448_v18 = vld [vmem:[%s14005_s10 + $0x23a8] sm:$0xff]  ;;  %v12998_v20 = vcombine.low %v1435_v4, %v1439_v5  ;;  %v13000_v23 = vcombine.low %v1436_v6, %v1440_v7  ;;  %v13030_v4 = vcombine.low %v1467_v47, %v1471_v48 }
 0x28c   : > { %v13009_v26 = vcombine.high %v1444_v17, %v1448_v18 }
 0x28e   : > { %9952 = vmatpush1.bf16.msra.mxu0 %v12958_v49  ;;  %10444 = vmatpush1.bf16.msra.mxu1 %v12960_v15  ;;  %v1452_v49 = vld [vmem:[%s14005_s10 + $0x23c8] sm:$0xff] }
 0x28f   : > { %9953 = vmatprep.subr.bf16.mxu0 %v12967_v32  ;;  %10445 = vmatprep.subr.bf16.mxu1 %v12969_v33  ;;  %v1456_v15 = vld [vmem:[%s14005_s10 + $0x23e8] sm:$0xff]  ;;  %v13006_v32 = vcombine.low %v1443_v13, %v1447_v14  ;;  %v13008_v33 = vcombine.low %v1444_v17, %v1448_v18 }
 0x290   : > { %v13017_v35 = vcombine.high %v1452_v49, %v1456_v15 }
 0x292   : > { %9954 = vmatpush1.bf16.msra.mxu0 %v12966_v40  ;;  %10446 = vmatpush1.bf16.msra.mxu1 %v12968_v41  ;;  %v1460_v40 = vld [vmem:[%s14005_s10 + $0x2408] sm:$0xff] }
 0x293   : > { %9955 = vmatprep.subr.bf16.mxu0 %v12975_v42  ;;  %10447 = vmatprep.subr.bf16.mxu1 %v12977_v43  ;;  %v1464_v41 = vld [vmem:[%s14005_s10 + $0x2428] sm:$0xff]  ;;  %v13014_v42 = vcombine.low %v1451_v28, %v1455_v29  ;;  %v13016_v43 = vcombine.low %v1452_v49, %v1456_v15 }
 0x294   : > { %v13025_v44 = vcombine.high %v1460_v40, %v1464_v41  ;;  %v13024_v56 = vcombine.low %v1460_v40, %v1464_v41 }
 0x296   : > { %9956 = vmatpush1.bf16.msra.mxu0 %v12974_v50  ;;  %10448 = vmatpush1.bf16.msra.mxu1 %v12976_v51  ;;  %v14752_v50 = vcombine.low %v14678_v3, %v14678_v3  ;;  %v1468_v51 = vld [vmem:[%s14005_s10 + $0x2448] sm:$0xff]  ;;  %v1475_v3 = vld [vmem:[%s14005_s10 + $0x2480] sm:$0xff] }
 0x297   : > { %9957 = vmatprep.subr.bf16.mxu0 %v12983_v52  ;;  %10449 = vmatprep.subr.bf16.mxu1 %v12985_v54  ;;  %v1472_v52 = vld [vmem:[%s14005_s10 + $0x2468] sm:$0xff] }
 0x298   : > { %v14759_v54 = vld [vmem:[%s15863_s0 + $0x48] sm:$0xff]  ;;  %v13033_v61 = vcombine.high %v1468_v51, %v1472_v52  ;;  %v13032_v5 = vcombine.low %v1468_v51, %v1472_v52 }
 0x29a   : > { %9958 = vmatpush1.bf16.msra.mxu0 %v12982_v62  ;;  %10450 = vmatpush1.bf16.msra.mxu1 %v12984_v63  ;;  %v1479_v62 = vld [vmem:[%s14005_s10 + $0x24a0] sm:$0xff]  ;;  %v14765_v63 = vcombine.high %v14759_v54, %v14759_v54 }
 0x29b   : > { %9959 = vmatprep.subr.bf16.mxu0 %v12991_v0  ;;  %10451 = vmatprep.subr.bf16.mxu1 %v12993_v2  ;;  %v1476_v0 = vld [vmem:[%s14005_s10 + $0x2488] sm:$0xff]  ;;  %v13039_v6 = vcombine.high %v1475_v3, %v1479_v62  ;;  %v13038_v13 = vcombine.low %v1475_v3, %v1479_v62 }
 0x29c   : > { %v1480_v2 = vld [vmem:[%s14005_s10 + $0x24a8] sm:$0xff] }
 0x29d   : > { %v13041_v7 = vcombine.high %v1476_v0, %v1480_v2  ;;  %v13040_v14 = vcombine.low %v1476_v0, %v1480_v2 }
 0x29e   : > { %9960 = vmatpush1.bf16.msra.mxu0 %v12990_v24  ;;  %10452 = vmatpush1.bf16.msra.mxu1 %v12992_v8  ;;  %v1483_v24 = vld [vmem:[%s14005_s10 + $0x24c0] sm:$0xff] }
 0x29f   : > { %9961 = vmatprep.subr.bf16.mxu0 %v12999_v10  ;;  %10453 = vmatprep.subr.bf16.mxu1 %v13001_v11  ;;  %v1487_v8 = vld [vmem:[%s14005_s10 + $0x24e0] sm:$0xff]  ;;  %v1484_v10 = vld [vmem:[%s14005_s10 + $0x24c8] sm:$0xff] }
 0x2a0   : > { %v1488_v11 = vld [vmem:[%s14005_s10 + $0x24e8] sm:$0xff]  ;;  %v13047_v17 = vcombine.high %v1483_v24, %v1487_v8  ;;  %v13046_v28 = vcombine.low %v1483_v24, %v1487_v8 }
 0x2a1   : > { %v13049_v18 = vcombine.high %v1484_v10, %v1488_v11  ;;  %v13048_v29 = vcombine.low %v1484_v10, %v1488_v11 }
 0x2a2   : > { %9962 = vmatpush1.bf16.msra.mxu0 %v12998_v20  ;;  %10454 = vmatpush1.bf16.msra.mxu1 %v13000_v23  ;;  %v1491_v20 = vld [vmem:[%s14005_s10 + $0x2500] sm:$0xff] }
 0x2a3   : > { %9963 = vmatprep.subr.bf16.mxu0 %v13007_v59  ;;  %10455 = vmatprep.subr.bf16.mxu1 %v13009_v26  ;;  %v1495_v23 = vld [vmem:[%s14005_s10 + $0x2520] sm:$0xff]  ;;  %v1492_v59 = vld [vmem:[%s14005_s10 + $0x2508] sm:$0xff] }
 0x2a4   : > { %v1496_v26 = vld [vmem:[%s14005_s10 + $0x2528] sm:$0xff]  ;;  %v13055_v49 = vcombine.high %v1491_v20, %v1495_v23  ;;  %v13054_v37 = vcombine.low %v1491_v20, %v1495_v23 }
 0x2a5   : > { %v13057_v15 = vcombine.high %v1492_v59, %v1496_v26  ;;  %v13056_v38 = vcombine.low %v1492_v59, %v1496_v26 }
 0x2a6   : > { %9964 = vmatpush1.bf16.msra.mxu0 %v13006_v32  ;;  %10456 = vmatpush1.bf16.msra.mxu1 %v13008_v33  ;;  %v1499_v32 = vld [vmem:[%s14005_s10 + $0x2540] sm:$0xff] }
 0x2a7   : > { %9965 = vmatprep.subr.bf16.mxu0 %v13015_v34  ;;  %10457 = vmatprep.subr.bf16.mxu1 %v13017_v35  ;;  %v1503_v33 = vld [vmem:[%s14005_s10 + $0x2560] sm:$0xff]  ;;  %v1500_v34 = vld [vmem:[%s14005_s10 + $0x2548] sm:$0xff] }
 0x2a8   : > { %v1504_v35 = vld [vmem:[%s14005_s10 + $0x2568] sm:$0xff]  ;;  %v13063_v40 = vcombine.high %v1499_v32, %v1503_v33  ;;  %v13062_v47 = vcombine.low %v1499_v32, %v1503_v33 }
 0x2a9   : > { %v13065_v41 = vcombine.high %v1500_v34, %v1504_v35  ;;  %v13064_v48 = vcombine.low %v1500_v34, %v1504_v35 }
 0x2aa   : > { %9966 = vmatpush1.bf16.msra.mxu0 %v13014_v42  ;;  %10458 = vmatpush1.bf16.msra.mxu1 %v13016_v43  ;;  %v1507_v42 = vld [vmem:[%s14005_s10 + $0x2580] sm:$0xff] }
 0x2ab   : > { %9976 = vmatprep.subr.bf16.mxu0 %v13023_v25  ;;  %10468 = vmatprep.subr.bf16.mxu1 %v13025_v44  ;;  %v1511_v43 = vld [vmem:[%s14005_s10 + $0x25a0] sm:$0xff]  ;;  %v1508_v25 = vld [vmem:[%s14005_s10 + $0x2588] sm:$0xff] }
 0x2ac   : > { %v1512_v44 = vld [vmem:[%s14005_s10 + $0x25a8] sm:$0xff]  ;;  %v13071_v51 = vcombine.high %v1507_v42, %v1511_v43  ;;  %v13070_v3 = vcombine.low %v1507_v42, %v1511_v43 }
 0x2ad   : > { %9968 = vmatmul.mubr.bf16.vlgmr.msra.gmra.mrb[0].mxu0 %v14752_v50  ;;  %10460 = vmatmul.mubr.bf16.vlgmr.msra.gmra.mrb[0].mxu1 %v14752_v50  ;;  %v13073_v52 = vcombine.high %v1508_v25, %v1512_v44  ;;  %v13072_v62 = vcombine.low %v1508_v25, %v1512_v44 }
 0x2ae   : > { %9977 = vmatpush1.bf16.msra.mxu0 %v13022_v19  ;;  %10469 = vmatpush1.bf16.msra.mxu1 %v13024_v56  ;;  %v1515_v19 = vld [vmem:[%s14005_s10 + $0x25c0] sm:$0xff] }
 0x2af   : > { %9978 = vmatprep.subr.bf16.mxu0 %v13031_v60  ;;  %10470 = vmatprep.subr.bf16.mxu1 %v13033_v61  ;;  %v1519_v56 = vld [vmem:[%s14005_s10 + $0x25e0] sm:$0xff]  ;;  %v1516_v60 = vld [vmem:[%s14005_s10 + $0x25c8] sm:$0xff] }
 0x2b0   : > { %10008 = vmatprep.mubr.bf16.mxu0 %v14765_v63  ;;  %10500 = vmatprep.mubr.bf16.mxu1 %v14765_v63  ;;  %v1520_v61 = vld [vmem:[%s14005_s10 + $0x25e8] sm:$0xff]  ;;  %v13079_v0 = vcombine.high %v1515_v19, %v1519_v56  ;;  %v13078_v24 = vcombine.low %v1515_v19, %v1519_v56 }
 0x2b1   : > { %v13081_v2 = vcombine.high %v1516_v60, %v1520_v61  ;;  %v13080_v8 = vcombine.low %v1516_v60, %v1520_v61 }
 0x2b2   : > { %9979 = vmatpush1.bf16.msra.mxu0 %v13030_v4  ;;  %10471 = vmatpush1.bf16.msra.mxu1 %v13032_v5  ;;  %v1523_v4 = vld [vmem:[%s14005_s10 + $0x2600] sm:$0xff] }
 0x2b3   : > { %9980 = vmatprep.subr.bf16.mxu0 %v13039_v6  ;;  %10472 = vmatprep.subr.bf16.mxu1 %v13041_v7  ;;  %v1527_v5 = vld [vmem:[%s14005_s10 + $0x2620] sm:$0xff]  ;;  %v1524_v6 = vld [vmem:[%s14005_s10 + $0x2608] sm:$0xff] }
 0x2b4   : > { %v1528_v7 = vld [vmem:[%s14005_s10 + $0x2628] sm:$0xff]  ;;  %v13087_v10 = vcombine.high %v1523_v4, %v1527_v5  ;;  %v13086_v20 = vcombine.low %v1523_v4, %v1527_v5 }
 0x2b5   : > { %v13089_v11 = vcombine.high %v1524_v6, %v1528_v7  ;;  %v13088_v23 = vcombine.low %v1524_v6, %v1528_v7 }
 0x2b6   : > { %9981 = vmatpush1.bf16.msra.mxu0 %v13038_v13  ;;  %10473 = vmatpush1.bf16.msra.mxu1 %v13040_v14  ;;  %v1531_v13 = vld [vmem:[%s14005_s10 + $0x2640] sm:$0xff] }
 0x2b7   : > { %9982 = vmatprep.subr.bf16.mxu0 %v13047_v17  ;;  %10474 = vmatprep.subr.bf16.mxu1 %v13049_v18  ;;  %v1535_v14 = vld [vmem:[%s14005_s10 + $0x2660] sm:$0xff]  ;;  %v1532_v17 = vld [vmem:[%s14005_s10 + $0x2648] sm:$0xff] }
 0x2b8   : > { %v1536_v18 = vld [vmem:[%s14005_s10 + $0x2668] sm:$0xff]  ;;  %v13095_v59 = vcombine.high %v1531_v13, %v1535_v14  ;;  %v13094_v32 = vcombine.low %v1531_v13, %v1535_v14 }
 0x2b9   : > { %v13097_v26 = vcombine.high %v1532_v17, %v1536_v18  ;;  %v13096_v33 = vcombine.low %v1532_v17, %v1536_v18 }
 0x2ba   : > { %9983 = vmatpush1.bf16.msra.mxu0 %v13046_v28  ;;  %10475 = vmatpush1.bf16.msra.mxu1 %v13048_v29  ;;  %v1539_v28 = vld [vmem:[%s14005_s10 + $0x2680] sm:$0xff] }
 0x2bb   : > { %9984 = vmatprep.subr.bf16.mxu0 %v13055_v49  ;;  %10476 = vmatprep.subr.bf16.mxu1 %v13057_v15  ;;  %v1543_v29 = vld [vmem:[%s14005_s10 + $0x26a0] sm:$0xff]  ;;  %v1540_v49 = vld [vmem:[%s14005_s10 + $0x2688] sm:$0xff] }
 0x2bc   : > { %v1544_v15 = vld [vmem:[%s14005_s10 + $0x26a8] sm:$0xff]  ;;  %v13103_v34 = vcombine.high %v1539_v28, %v1543_v29  ;;  %v13102_v42 = vcombine.low %v1539_v28, %v1543_v29 }
 0x2bd   : > { %v13105_v35 = vcombine.high %v1540_v49, %v1544_v15  ;;  %v13104_v43 = vcombine.low %v1540_v49, %v1544_v15 }
 0x2be   : > { %9985 = vmatpush1.bf16.msra.mxu0 %v13054_v37  ;;  %10477 = vmatpush1.bf16.msra.mxu1 %v13056_v38  ;;  %v1547_v37 = vld [vmem:[%s14005_s10 + $0x26c0] sm:$0xff] }
 0x2bf   : > { %9986 = vmatprep.subr.bf16.mxu0 %v13063_v40  ;;  %10478 = vmatprep.subr.bf16.mxu1 %v13065_v41  ;;  %v1551_v38 = vld [vmem:[%s14005_s10 + $0x26e0] sm:$0xff]  ;;  %v1548_v40 = vld [vmem:[%s14005_s10 + $0x26c8] sm:$0xff] }
 0x2c0   : > { %v1552_v41 = vld [vmem:[%s14005_s10 + $0x26e8] sm:$0xff]  ;;  %v13111_v25 = vcombine.high %v1547_v37, %v1551_v38  ;;  %v13110_v19 = vcombine.low %v1547_v37, %v1551_v38 }
 0x2c1   : > { %v13113_v44 = vcombine.high %v1548_v40, %v1552_v41  ;;  %v13112_v56 = vcombine.low %v1548_v40, %v1552_v41 }
 0x2c2   : > { %9987 = vmatpush1.bf16.msra.mxu0 %v13062_v47  ;;  %10479 = vmatpush1.bf16.msra.mxu1 %v13064_v48  ;;  %v1555_v47 = vld [vmem:[%s14005_s10 + $0x2700] sm:$0xff] }
 0x2c3   : > { %9988 = vmatprep.subr.bf16.mxu0 %v13071_v51  ;;  %10480 = vmatprep.subr.bf16.mxu1 %v13073_v52  ;;  %v1559_v48 = vld [vmem:[%s14005_s10 + $0x2720] sm:$0xff]  ;;  %v1556_v51 = vld [vmem:[%s14005_s10 + $0x2708] sm:$0xff] }
 0x2c4   : > { %v1560_v52 = vld [vmem:[%s14005_s10 + $0x2728] sm:$0xff]  ;;  %v13119_v60 = vcombine.high %v1555_v47, %v1559_v48  ;;  %v13118_v4 = vcombine.low %v1555_v47, %v1559_v48  ;;  %v14840_v48 = vld [vmem:[%s15863_s0 + $0x50] sm:$0xff] }
 0x2c5   : > { %v13121_v61 = vcombine.high %v1556_v51, %v1560_v52  ;;  %v13120_v5 = vcombine.low %v1556_v51, %v1560_v52  ;;  %v1600_v47 = vld [vmem:[%s14005_s10 + $0x2868] sm:$0xff] }
 0x2c6   : > { %9989 = vmatpush1.bf16.msra.mxu0 %v13070_v3  ;;  %10481 = vmatpush1.bf16.msra.mxu1 %v13072_v62  ;;  %v1563_v3 = vld [vmem:[%s14005_s10 + $0x2740] sm:$0xff] }
 0x2c7   : > { %9990 = vmatprep.subr.bf16.mxu0 %v13079_v0  ;;  %10482 = vmatprep.subr.bf16.mxu1 %v13081_v2  ;;  %v1567_v62 = vld [vmem:[%s14005_s10 + $0x2760] sm:$0xff]  ;;  %v1564_v0 = vld [vmem:[%s14005_s10 + $0x2748] sm:$0xff] }
 0x2c8   : > { %v1568_v2 = vld [vmem:[%s14005_s10 + $0x2768] sm:$0xff]  ;;  %v13127_v6 = vcombine.high %v1563_v3, %v1567_v62  ;;  %v13126_v13 = vcombine.low %v1563_v3, %v1567_v62 }
 0x2c9   : > { %v13129_v7 = vcombine.high %v1564_v0, %v1568_v2  ;;  %v13128_v14 = vcombine.low %v1564_v0, %v1568_v2  ;;  %v1604_v3 = vld [vmem:[%s14005_s10 + $0x2888] sm:$0xff] }
 0x2ca   : > { %9991 = vmatpush1.bf16.msra.mxu0 %v13078_v24  ;;  %10483 = vmatpush1.bf16.msra.mxu1 %v13080_v8  ;;  %v1571_v24 = vld [vmem:[%s14005_s10 + $0x2780] sm:$0xff]  ;;  %v1608_v62 = vld [vmem:[%s14005_s10 + $0x28a8] sm:$0xff] }
 0x2cb   : > { %9992 = vmatprep.subr.bf16.mxu0 %v13087_v10  ;;  %10484 = vmatprep.subr.bf16.mxu1 %v13089_v11  ;;  %v1575_v8 = vld [vmem:[%s14005_s10 + $0x27a0] sm:$0xff]  ;;  %v1572_v10 = vld [vmem:[%s14005_s10 + $0x2788] sm:$0xff] }
 0x2cc   : > { %v1576_v11 = vld [vmem:[%s14005_s10 + $0x27a8] sm:$0xff]  ;;  %v13135_v17 = vcombine.high %v1571_v24, %v1575_v8  ;;  %v13134_v28 = vcombine.low %v1571_v24, %v1575_v8 }
 0x2cd   : > { %v13137_v18 = vcombine.high %v1572_v10, %v1576_v11  ;;  %v13136_v29 = vcombine.low %v1572_v10, %v1576_v11  ;;  %v1612_v24 = vld [vmem:[%s14005_s10 + $0x28c8] sm:$0xff]  ;;  %v13168_v11 = vcombine.low %v1604_v3, %v1608_v62 }
 0x2ce   : > { %9993 = vmatpush1.bf16.msra.mxu0 %v13086_v20  ;;  %10485 = vmatpush1.bf16.msra.mxu1 %v13088_v23  ;;  %v1579_v20 = vld [vmem:[%s14005_s10 + $0x27c0] sm:$0xff]  ;;  %v1616_v8 = vld [vmem:[%s14005_s10 + $0x28e8] sm:$0xff] }
 0x2cf   : > { %9994 = vmatprep.subr.bf16.mxu0 %v13095_v59  ;;  %10486 = vmatprep.subr.bf16.mxu1 %v13097_v26  ;;  %v1583_v23 = vld [vmem:[%s14005_s10 + $0x27e0] sm:$0xff]  ;;  %v1580_v59 = vld [vmem:[%s14005_s10 + $0x27c8] sm:$0xff] }
 0x2d0   : > { %v1584_v26 = vld [vmem:[%s14005_s10 + $0x27e8] sm:$0xff]  ;;  %v13143_v49 = vcombine.high %v1579_v20, %v1583_v23  ;;  %v13142_v37 = vcombine.low %v1579_v20, %v1583_v23 }
 0x2d1   : > { %v13145_v15 = vcombine.high %v1580_v59, %v1584_v26  ;;  %v13144_v38 = vcombine.low %v1580_v59, %v1584_v26  ;;  %v1620_v20 = vld [vmem:[%s14005_s10 + $0x2908] sm:$0xff]  ;;  %v13176_v26 = vcombine.low %v1612_v24, %v1616_v8 }
 0x2d2   : > { %9995 = vmatpush1.bf16.msra.mxu0 %v13094_v32  ;;  %10487 = vmatpush1.bf16.msra.mxu1 %v13096_v33  ;;  %v1587_v32 = vld [vmem:[%s14005_s10 + $0x2800] sm:$0xff]  ;;  %v1624_v23 = vld [vmem:[%s14005_s10 + $0x2928] sm:$0xff] }
 0x2d3   : > { %9996 = vmatprep.subr.bf16.mxu0 %v13103_v34  ;;  %10488 = vmatprep.subr.bf16.mxu1 %v13105_v35  ;;  %v1591_v33 = vld [vmem:[%s14005_s10 + $0x2820] sm:$0xff]  ;;  %v1588_v34 = vld [vmem:[%s14005_s10 + $0x2808] sm:$0xff] }
 0x2d4   : > { %v1592_v35 = vld [vmem:[%s14005_s10 + $0x2828] sm:$0xff]  ;;  %v13151_v40 = vcombine.high %v1587_v32, %v1591_v33  ;;  %v13150_v51 = vcombine.low %v1587_v32, %v1591_v33 }
 0x2d5   : > { %v13153_v41 = vcombine.high %v1588_v34, %v1592_v35  ;;  %v13152_v52 = vcombine.low %v1588_v34, %v1592_v35  ;;  %v1628_v32 = vld [vmem:[%s14005_s10 + $0x2948] sm:$0xff]  ;;  %v13184_v35 = vcombine.low %v1620_v20, %v1624_v23 }
 0x2d6   : > { %9997 = vmatpush1.bf16.msra.mxu0 %v13102_v42  ;;  %10489 = vmatpush1.bf16.msra.mxu1 %v13104_v43  ;;  %v1595_v42 = vld [vmem:[%s14005_s10 + $0x2840] sm:$0xff]  ;;  %v1632_v33 = vld [vmem:[%s14005_s10 + $0x2968] sm:$0xff] }
 0x2d7   : > { %9998 = vmatprep.subr.bf16.mxu0 %v13111_v25  ;;  %10490 = vmatprep.subr.bf16.mxu1 %v13113_v44  ;;  %v1599_v43 = vld [vmem:[%s14005_s10 + $0x2860] sm:$0xff]  ;;  %v14833_v25 = vcombine.low %v14759_v54, %v14759_v54  ;;  %v1596_v44 = vld [vmem:[%s14005_s10 + $0x2848] sm:$0xff] }
 0x2d8   : > { %v1603_v54 = vld [vmem:[%s14005_s10 + $0x2880] sm:$0xff]  ;;  %v13158_v0 = vcombine.low %v1595_v42, %v1599_v43  ;;  %v13160_v2 = vcombine.low %v1596_v44, %v1600_v47 }
 0x2da   : > { %9999 = vmatpush1.bf16.msra.mxu0 %v13110_v19  ;;  %10491 = vmatpush1.bf16.msra.mxu1 %v13112_v56  ;;  %v13159_v19 = vcombine.high %v1595_v42, %v1599_v43  ;;  %v13161_v56 = vcombine.high %v1596_v44, %v1600_v47  ;;  %v1636_v42 = vld [vmem:[%s14005_s10 + $0x2988] sm:$0xff]  ;;  %v13192_v47 = vcombine.low %v1628_v32, %v1632_v33 }
 0x2db   : > { %10000 = vmatprep.subr.bf16.mxu0 %v13119_v60  ;;  %10492 = vmatprep.subr.bf16.mxu1 %v13121_v61  ;;  %v1607_v60 = vld [vmem:[%s14005_s10 + $0x28a0] sm:$0xff]  ;;  %v14846_v61 = vcombine.high %v14840_v48, %v14840_v48  ;;  %v1640_v43 = vld [vmem:[%s14005_s10 + $0x29a8] sm:$0xff] }
 0x2dc   : > { %v13166_v10 = vcombine.low %v1603_v54, %v1607_v60 }
 0x2de   : > { %10001 = vmatpush1.bf16.msra.mxu0 %v13118_v4  ;;  %10493 = vmatpush1.bf16.msra.mxu1 %v13120_v5  ;;  %v13167_v4 = vcombine.high %v1603_v54, %v1607_v60  ;;  %v13169_v5 = vcombine.high %v1604_v3, %v1608_v62  ;;  %v1644_v54 = vld [vmem:[%s14005_s10 + $0x29c8] sm:$0xff]  ;;  %v13200_v62 = vcombine.low %v1636_v42, %v1640_v43 }
 0x2df   : > { %10002 = vmatprep.subr.bf16.mxu0 %v13127_v6  ;;  %10494 = vmatprep.subr.bf16.mxu1 %v13129_v7  ;;  %v1611_v6 = vld [vmem:[%s14005_s10 + $0x28c0] sm:$0xff]  ;;  %v1648_v60 = vld [vmem:[%s14005_s10 + $0x29e8] sm:$0xff] }
 0x2e0   : > { %v1615_v7 = vld [vmem:[%s14005_s10 + $0x28e0] sm:$0xff] }
 0x2e1   : > { %v13174_v59 = vcombine.low %v1611_v6, %v1615_v7 }
 0x2e2   : > { %10003 = vmatpush1.bf16.msra.mxu0 %v13126_v13  ;;  %10495 = vmatpush1.bf16.msra.mxu1 %v13128_v14  ;;  %v13175_v13 = vcombine.high %v1611_v6, %v1615_v7  ;;  %v13177_v14 = vcombine.high %v1612_v24, %v1616_v8  ;;  %v1652_v6 = vld [vmem:[%s14005_s10 + $0x2a08] sm:$0xff]  ;;  %v13208_v8 = vcombine.low %v1644_v54, %v1648_v60 }
 0x2e3   : > { %10004 = vmatprep.subr.bf16.mxu0 %v13135_v17  ;;  %10496 = vmatprep.subr.bf16.mxu1 %v13137_v18  ;;  %v1619_v17 = vld [vmem:[%s14005_s10 + $0x2900] sm:$0xff]  ;;  %v1656_v7 = vld [vmem:[%s14005_s10 + $0x2a28] sm:$0xff] }
 0x2e4   : > { %v1623_v18 = vld [vmem:[%s14005_s10 + $0x2920] sm:$0xff] }
 0x2e5   : > { %v13182_v34 = vcombine.low %v1619_v17, %v1623_v18 }
 0x2e6   : > { %10005 = vmatpush1.bf16.msra.mxu0 %v13134_v28  ;;  %10497 = vmatpush1.bf16.msra.mxu1 %v13136_v29  ;;  %v13183_v28 = vcombine.high %v1619_v17, %v1623_v18  ;;  %v13185_v29 = vcombine.high %v1620_v20, %v1624_v23  ;;  %v1660_v17 = vld [vmem:[%s14005_s10 + $0x2a48] sm:$0xff]  ;;  %v13216_v23 = vcombine.low %v1652_v6, %v1656_v7 }
 0x2e7   : > { %10006 = vmatprep.subr.bf16.mxu0 %v13143_v49  ;;  %10498 = vmatprep.subr.bf16.mxu1 %v13145_v15  ;;  %v1627_v49 = vld [vmem:[%s14005_s10 + $0x2940] sm:$0xff]  ;;  %v1664_v18 = vld [vmem:[%s14005_s10 + $0x2a68] sm:$0xff] }
 0x2e8   : > { %v1631_v15 = vld [vmem:[%s14005_s10 + $0x2960] sm:$0xff] }
 0x2e9   : > { %v13190_v44 = vcombine.low %v1627_v49, %v1631_v15 }
 0x2ea   : > { %10007 = vmatpush1.bf16.msra.mxu0 %v13142_v37  ;;  %10499 = vmatpush1.bf16.msra.mxu1 %v13144_v38  ;;  %v13191_v37 = vcombine.high %v1627_v49, %v1631_v15  ;;  %v13193_v38 = vcombine.high %v1628_v32, %v1632_v33  ;;  %v1668_v49 = vld [vmem:[%s14005_s10 + $0x2a88] sm:$0xff]  ;;  %v13224_v33 = vcombine.low %v1660_v17, %v1664_v18 }
 0x2eb   : > { %10017 = vmatprep.subr.bf16.mxu0 %v13151_v40  ;;  %10509 = vmatprep.subr.bf16.mxu1 %v13153_v41  ;;  %v1635_v40 = vld [vmem:[%s14005_s10 + $0x2980] sm:$0xff]  ;;  %v1672_v15 = vld [vmem:[%s14005_s10 + $0x2aa8] sm:$0xff] }
 0x2ec   : > { %v1639_v41 = vld [vmem:[%s14005_s10 + $0x29a0] sm:$0xff] }
 0x2ed   : > { %10009 = vmatmul.mubr.bf16.vlgmr.msra.gmra.mrb[0].mxu0 %v14833_v25  ;;  %10501 = vmatmul.mubr.bf16.vlgmr.msra.gmra.mrb[0].mxu1 %v14833_v25  ;;  %v13198_v3 = vcombine.low %v1635_v40, %v1639_v41 }
 0x2ee   : > { %10018 = vmatpush1.bf16.msra.mxu0 %v13150_v51  ;;  %10510 = vmatpush1.bf16.msra.mxu1 %v13152_v52  ;;  %v13199_v51 = vcombine.high %v1635_v40, %v1639_v41  ;;  %v13201_v52 = vcombine.high %v1636_v42, %v1640_v43  ;;  %v1676_v40 = vld [vmem:[%s14005_s10 + $0x2ac8] sm:$0xff]  ;;  %v13232_v43 = vcombine.low %v1668_v49, %v1672_v15 }
 0x2ef   : > { %10019 = vmatprep.subr.bf16.mxu0 %v13159_v19  ;;  %10511 = vmatprep.subr.bf16.mxu1 %v13161_v56  ;;  %v1643_v19 = vld [vmem:[%s14005_s10 + $0x29c0] sm:$0xff]  ;;  %v1680_v41 = vld [vmem:[%s14005_s10 + $0x2ae8] sm:$0xff] }
 0x2f0   : > { %10049 = vmatprep.mubr.bf16.mxu0 %v14846_v61  ;;  %10541 = vmatprep.mubr.bf16.mxu1 %v14846_v61  ;;  %v1647_v56 = vld [vmem:[%s14005_s10 + $0x29e0] sm:$0xff] }
 0x2f1   : > { %v13206_v24 = vcombine.low %v1643_v19, %v1647_v56 }
 0x2f2   : > { %10020 = vmatpush1.bf16.msra.mxu0 %v13158_v0  ;;  %10512 = vmatpush1.bf16.msra.mxu1 %v13160_v2  ;;  %v13207_v0 = vcombine.high %v1643_v19, %v1647_v56  ;;  %v13209_v2 = vcombine.high %v1644_v54, %v1648_v60  ;;  %v1684_v19 = vld [vmem:[%s14005_s10 + $0x2b08] sm:$0xff]  ;;  %v13240_v60 = vcombine.low %v1676_v40, %v1680_v41 }
 0x2f3   : > { %10021 = vmatprep.subr.bf16.mxu0 %v13167_v4  ;;  %10513 = vmatprep.subr.bf16.mxu1 %v13169_v5  ;;  %v1651_v4 = vld [vmem:[%s14005_s10 + $0x2a00] sm:$0xff]  ;;  %v1688_v56 = vld [vmem:[%s14005_s10 + $0x2b28] sm:$0xff] }
 0x2f4   : > { %v1655_v5 = vld [vmem:[%s14005_s10 + $0x2a20] sm:$0xff] }
 0x2f5   : > { %v13214_v20 = vcombine.low %v1651_v4, %v1655_v5 }
 0x2f6   : > { %10022 = vmatpush1.bf16.msra.mxu0 %v13166_v10  ;;  %10514 = vmatpush1.bf16.msra.mxu1 %v13168_v11  ;;  %v13215_v10 = vcombine.high %v1651_v4, %v1655_v5  ;;  %v13217_v11 = vcombine.high %v1652_v6, %v1656_v7  ;;  %v1692_v4 = vld [vmem:[%s14005_s10 + $0x2b48] sm:$0xff]  ;;  %v13248_v7 = vcombine.low %v1684_v19, %v1688_v56 }
 0x2f7   : > { %10023 = vmatprep.subr.bf16.mxu0 %v13175_v13  ;;  %10515 = vmatprep.subr.bf16.mxu1 %v13177_v14  ;;  %v1659_v13 = vld [vmem:[%s14005_s10 + $0x2a40] sm:$0xff]  ;;  %v1696_v5 = vld [vmem:[%s14005_s10 + $0x2b68] sm:$0xff] }
 0x2f8   : > { %v1663_v14 = vld [vmem:[%s14005_s10 + $0x2a60] sm:$0xff] }
 0x2f9   : > { %v13222_v32 = vcombine.low %v1659_v13, %v1663_v14 }
 0x2fa   : > { %10024 = vmatpush1.bf16.msra.mxu0 %v13174_v59  ;;  %10516 = vmatpush1.bf16.msra.mxu1 %v13176_v26  ;;  %v13223_v59 = vcombine.high %v1659_v13, %v1663_v14  ;;  %v13225_v26 = vcombine.high %v1660_v17, %v1664_v18  ;;  %v1700_v13 = vld [vmem:[%s14005_s10 + $0x2b88] sm:$0xff]  ;;  %v13256_v18 = vcombine.low %v1692_v4, %v1696_v5 }
 0x2fb   : > { %10025 = vmatprep.subr.bf16.mxu0 %v13183_v28  ;;  %10517 = vmatprep.subr.bf16.mxu1 %v13185_v29  ;;  %v1667_v28 = vld [vmem:[%s14005_s10 + $0x2a80] sm:$0xff]  ;;  %v1704_v14 = vld [vmem:[%s14005_s10 + $0x2ba8] sm:$0xff] }
 0x2fc   : > { %v1671_v29 = vld [vmem:[%s14005_s10 + $0x2aa0] sm:$0xff] }
 0x2fd   : > { %v13230_v42 = vcombine.low %v1667_v28, %v1671_v29 }
 0x2fe   : > { %10026 = vmatpush1.bf16.msra.mxu0 %v13182_v34  ;;  %10518 = vmatpush1.bf16.msra.mxu1 %v13184_v35  ;;  %v13231_v34 = vcombine.high %v1667_v28, %v1671_v29  ;;  %v13233_v35 = vcombine.high %v1668_v49, %v1672_v15  ;;  %v1708_v28 = vld [vmem:[%s14005_s10 + $0x2bc8] sm:$0xff]  ;;  %v13264_v15 = vcombine.low %v1700_v13, %v1704_v14 }
 0x2ff   : > { %10027 = vmatprep.subr.bf16.mxu0 %v13191_v37  ;;  %10519 = vmatprep.subr.bf16.mxu1 %v13193_v38  ;;  %v1675_v37 = vld [vmem:[%s14005_s10 + $0x2ac0] sm:$0xff]  ;;  %v1712_v29 = vld [vmem:[%s14005_s10 + $0x2be8] sm:$0xff] }
 0x300   : > { %v1679_v38 = vld [vmem:[%s14005_s10 + $0x2ae0] sm:$0xff] }
 0x301   : > { %v13238_v54 = vcombine.low %v1675_v37, %v1679_v38 }
 0x302   : > { %10028 = vmatpush1.bf16.msra.mxu0 %v13190_v44  ;;  %10520 = vmatpush1.bf16.msra.mxu1 %v13192_v47  ;;  %v13239_v44 = vcombine.high %v1675_v37, %v1679_v38  ;;  %v13241_v47 = vcombine.high %v1676_v40, %v1680_v41  ;;  %v1716_v37 = vld [vmem:[%s14005_s10 + $0x2c08] sm:$0xff]  ;;  %v13272_v41 = vcombine.low %v1708_v28, %v1712_v29 }
 0x303   : > { %10029 = vmatprep.subr.bf16.mxu0 %v13199_v51  ;;  %10521 = vmatprep.subr.bf16.mxu1 %v13201_v52  ;;  %v1683_v51 = vld [vmem:[%s14005_s10 + $0x2b00] sm:$0xff]  ;;  %v1720_v38 = vld [vmem:[%s14005_s10 + $0x2c28] sm:$0xff] }
 0x304   : > { %v1687_v52 = vld [vmem:[%s14005_s10 + $0x2b20] sm:$0xff] }
 0x305   : > { %v13246_v6 = vcombine.low %v1683_v51, %v1687_v52 }
 0x306   : > { %10030 = vmatpush1.bf16.msra.mxu0 %v13198_v3  ;;  %10522 = vmatpush1.bf16.msra.mxu1 %v13200_v62  ;;  %v13247_v3 = vcombine.high %v1683_v51, %v1687_v52  ;;  %v13249_v62 = vcombine.high %v1684_v19, %v1688_v56  ;;  %v14914_v51 = vcombine.low %v14840_v48, %v14840_v48  ;;  %v1724_v52 = vld [vmem:[%s14005_s10 + $0x2c48] sm:$0xff]  ;;  %v14921_v56 = vld [vmem:[%s15863_s0 + $0x58] sm:$0xff]  ;;  %v1731_v48 = vld [vmem:[%s14005_s10 + $0x2c80] sm:$0xff] }
 0x307   : > { %10031 = vmatprep.subr.bf16.mxu0 %v13207_v0  ;;  %10523 = vmatprep.subr.bf16.mxu1 %v13209_v2  ;;  %v1691_v0 = vld [vmem:[%s14005_s10 + $0x2b40] sm:$0xff]  ;;  %v1728_v19 = vld [vmem:[%s14005_s10 + $0x2c68] sm:$0xff] }
 0x308   : > { %v1695_v2 = vld [vmem:[%s14005_s10 + $0x2b60] sm:$0xff] }
 0x309   : > { %v13254_v17 = vcombine.low %v1691_v0, %v1695_v2 }
 0x30a   : > { %10032 = vmatpush1.bf16.msra.mxu0 %v13206_v24  ;;  %10524 = vmatpush1.bf16.msra.mxu1 %v13208_v8  ;;  %v13255_v24 = vcombine.high %v1691_v0, %v1695_v2  ;;  %v13257_v8 = vcombine.high %v1692_v4, %v1696_v5  ;;  %v1735_v0 = vld [vmem:[%s14005_s10 + $0x2ca0] sm:$0xff]  ;;  %v14927_v2 = vcombine.high %v14921_v56, %v14921_v56  ;;  %v1732_v4 = vld [vmem:[%s14005_s10 + $0x2c88] sm:$0xff] }
 0x30b   : > { %10033 = vmatprep.subr.bf16.mxu0 %v13215_v10  ;;  %10525 = vmatprep.subr.bf16.mxu1 %v13217_v11  ;;  %v1699_v10 = vld [vmem:[%s14005_s10 + $0x2b80] sm:$0xff]  ;;  %v1736_v5 = vld [vmem:[%s14005_s10 + $0x2ca8] sm:$0xff] }
 0x30c   : > { %v1703_v11 = vld [vmem:[%s14005_s10 + $0x2ba0] sm:$0xff] }
 0x30d   : > { %v13262_v49 = vcombine.low %v1699_v10, %v1703_v11 }
 0x30e   : > { %10034 = vmatpush1.bf16.msra.mxu0 %v13214_v20  ;;  %10526 = vmatpush1.bf16.msra.mxu1 %v13216_v23  ;;  %v13263_v20 = vcombine.high %v1699_v10, %v1703_v11  ;;  %v13265_v23 = vcombine.high %v1700_v13, %v1704_v14  ;;  %v1739_v10 = vld [vmem:[%s14005_s10 + $0x2cc0] sm:$0xff]  ;;  %v1740_v13 = vld [vmem:[%s14005_s10 + $0x2cc8] sm:$0xff] }
 0x30f   : > { %10035 = vmatprep.subr.bf16.mxu0 %v13223_v59  ;;  %10527 = vmatprep.subr.bf16.mxu1 %v13225_v26  ;;  %v1707_v59 = vld [vmem:[%s14005_s10 + $0x2bc0] sm:$0xff]  ;;  %v1744_v14 = vld [vmem:[%s14005_s10 + $0x2ce8] sm:$0xff] }
 0x310   : > { %v1711_v26 = vld [vmem:[%s14005_s10 + $0x2be0] sm:$0xff] }
 0x311   : > { %v13270_v40 = vcombine.low %v1707_v59, %v1711_v26  ;;  %v1743_v11 = vld [vmem:[%s14005_s10 + $0x2ce0] sm:$0xff] }
 0x312   : > { %10036 = vmatpush1.bf16.msra.mxu0 %v13222_v32  ;;  %10528 = vmatpush1.bf16.msra.mxu1 %v13224_v33  ;;  %v13271_v32 = vcombine.high %v1707_v59, %v1711_v26  ;;  %v13273_v33 = vcombine.high %v1708_v28, %v1712_v29  ;;  %v1747_v59 = vld [vmem:[%s14005_s10 + $0x2d00] sm:$0xff]  ;;  %v1748_v28 = vld [vmem:[%s14005_s10 + $0x2d08] sm:$0xff] }
 0x313   : > { %10037 = vmatprep.subr.bf16.mxu0 %v13231_v34  ;;  %10529 = vmatprep.subr.bf16.mxu1 %v13233_v35  ;;  %v1715_v34 = vld [vmem:[%s14005_s10 + $0x2c00] sm:$0xff]  ;;  %v1752_v29 = vld [vmem:[%s14005_s10 + $0x2d28] sm:$0xff] }
 0x314   : > { %v1719_v35 = vld [vmem:[%s14005_s10 + $0x2c20] sm:$0xff] }
 0x315   : > { %v1751_v26 = vld [vmem:[%s14005_s10 + $0x2d20] sm:$0xff] }
 0x316   : > { %10038 = vmatpush1.bf16.msra.mxu0 %v13230_v42  ;;  %10530 = vmatpush1.bf16.msra.mxu1 %v13232_v43  ;;  %v13279_v42 = vcombine.high %v1715_v34, %v1719_v35  ;;  %v13281_v43 = vcombine.high %v1716_v37, %v1720_v38 }
 0x317   : > { %10039 = vmatprep.subr.bf16.mxu0 %v13239_v44  ;;  %10531 = vmatprep.subr.bf16.mxu1 %v13241_v47  ;;  %v1723_v44 = vld [vmem:[%s14005_s10 + $0x2c40] sm:$0xff] }
 0x318   : > { %v1727_v47 = vld [vmem:[%s14005_s10 + $0x2c60] sm:$0xff] }
 0x31a   : > { %10040 = vmatpush1.bf16.msra.mxu0 %v13238_v54  ;;  %10532 = vmatpush1.bf16.msra.mxu1 %v13240_v60  ;;  %v13278_v54 = vcombine.low %v1715_v34, %v1719_v35  ;;  %v13280_v60 = vcombine.low %v1716_v37, %v1720_v38  ;;  %v1755_v34 = vld [vmem:[%s14005_s10 + $0x2d40] sm:$0xff]  ;;  %v1756_v37 = vld [vmem:[%s14005_s10 + $0x2d48] sm:$0xff] }
 0x31b   : > { %10041 = vmatprep.subr.bf16.mxu0 %v13247_v3  ;;  %10533 = vmatprep.subr.bf16.mxu1 %v13249_v62  ;;  %v13287_v3 = vcombine.high %v1723_v44, %v1727_v47  ;;  %v13289_v62 = vcombine.high %v1724_v52, %v1728_v19  ;;  %v1759_v35 = vld [vmem:[%s14005_s10 + $0x2d60] sm:$0xff]  ;;  %v1760_v38 = vld [vmem:[%s14005_s10 + $0x2d68] sm:$0xff] }
 0x31e   : > { %10042 = vmatpush1.bf16.msra.mxu0 %v13246_v6  ;;  %10534 = vmatpush1.bf16.msra.mxu1 %v13248_v7  ;;  %v13286_v6 = vcombine.low %v1723_v44, %v1727_v47  ;;  %v13288_v7 = vcombine.low %v1724_v52, %v1728_v19  ;;  %v1763_v44 = vld [vmem:[%s14005_s10 + $0x2d80] sm:$0xff]  ;;  %v1764_v52 = vld [vmem:[%s14005_s10 + $0x2d88] sm:$0xff] }
 0x31f   : > { %10043 = vmatprep.subr.bf16.mxu0 %v13255_v24  ;;  %10535 = vmatprep.subr.bf16.mxu1 %v13257_v8  ;;  %v13295_v24 = vcombine.high %v1731_v48, %v1735_v0  ;;  %v13297_v8 = vcombine.high %v1732_v4, %v1736_v5  ;;  %v1767_v47 = vld [vmem:[%s14005_s10 + $0x2da0] sm:$0xff]  ;;  %v1768_v19 = vld [vmem:[%s14005_s10 + $0x2da8] sm:$0xff] }
 0x322   : > { %10044 = vmatpush1.bf16.msra.mxu0 %v13254_v17  ;;  %10536 = vmatpush1.bf16.msra.mxu1 %v13256_v18  ;;  %v13294_v17 = vcombine.low %v1731_v48, %v1735_v0  ;;  %v13296_v18 = vcombine.low %v1732_v4, %v1736_v5  ;;  %v1771_v48 = vld [vmem:[%s14005_s10 + $0x2dc0] sm:$0xff]  ;;  %v1772_v4 = vld [vmem:[%s14005_s10 + $0x2dc8] sm:$0xff] }
 0x323   : > { %10045 = vmatprep.subr.bf16.mxu0 %v13263_v20  ;;  %10537 = vmatprep.subr.bf16.mxu1 %v13265_v23  ;;  %v13303_v20 = vcombine.high %v1739_v10, %v1743_v11  ;;  %v13305_v23 = vcombine.high %v1740_v13, %v1744_v14  ;;  %v1775_v0 = vld [vmem:[%s14005_s10 + $0x2de0] sm:$0xff]  ;;  %v1776_v5 = vld [vmem:[%s14005_s10 + $0x2de8] sm:$0xff] }
 0x326   : > { %10046 = vmatpush1.bf16.msra.mxu0 %v13262_v49  ;;  %10538 = vmatpush1.bf16.msra.mxu1 %v13264_v15  ;;  %v13302_v49 = vcombine.low %v1739_v10, %v1743_v11  ;;  %v13304_v15 = vcombine.low %v1740_v13, %v1744_v14  ;;  %v1779_v10 = vld [vmem:[%s14005_s10 + $0x2e00] sm:$0xff]  ;;  %v1780_v13 = vld [vmem:[%s14005_s10 + $0x2e08] sm:$0xff] }
 0x327   : > { %10047 = vmatprep.subr.bf16.mxu0 %v13271_v32  ;;  %10539 = vmatprep.subr.bf16.mxu1 %v13273_v33  ;;  %v13311_v32 = vcombine.high %v1747_v59, %v1751_v26  ;;  %v13313_v33 = vcombine.high %v1748_v28, %v1752_v29  ;;  %v1783_v11 = vld [vmem:[%s14005_s10 + $0x2e20] sm:$0xff]  ;;  %v1784_v14 = vld [vmem:[%s14005_s10 + $0x2e28] sm:$0xff] }
 0x32a   : > { %10048 = vmatpush1.bf16.msra.mxu0 %v13270_v40  ;;  %10540 = vmatpush1.bf16.msra.mxu1 %v13272_v41  ;;  %v13310_v40 = vcombine.low %v1747_v59, %v1751_v26  ;;  %v13312_v41 = vcombine.low %v1748_v28, %v1752_v29  ;;  %v1787_v59 = vld [vmem:[%s14005_s10 + $0x2e40] sm:$0xff]  ;;  %v1788_v28 = vld [vmem:[%s14005_s10 + $0x2e48] sm:$0xff] }
 0x32b   : > { %10058 = vmatprep.subr.bf16.mxu0 %v13279_v42  ;;  %10550 = vmatprep.subr.bf16.mxu1 %v13281_v43  ;;  %v13319_v42 = vcombine.high %v1755_v34, %v1759_v35  ;;  %v13321_v43 = vcombine.high %v1756_v37, %v1760_v38  ;;  %v1791_v26 = vld [vmem:[%s14005_s10 + $0x2e60] sm:$0xff]  ;;  %v1792_v29 = vld [vmem:[%s14005_s10 + $0x2e68] sm:$0xff] }
 0x32d   : > { %10050 = vmatmul.mubr.bf16.vlgmr.msra.gmra.mrb[0].mxu0 %v14914_v51  ;;  %10542 = vmatmul.mubr.bf16.vlgmr.msra.gmra.mrb[0].mxu1 %v14914_v51 }
 0x32e   : > { %10059 = vmatpush1.bf16.msra.mxu0 %v13278_v54  ;;  %10551 = vmatpush1.bf16.msra.mxu1 %v13280_v60  ;;  %v13318_v54 = vcombine.low %v1755_v34, %v1759_v35  ;;  %v13320_v60 = vcombine.low %v1756_v37, %v1760_v38  ;;  %v1795_v34 = vld [vmem:[%s14005_s10 + $0x2e80] sm:$0xff]  ;;  %v1796_v37 = vld [vmem:[%s14005_s10 + $0x2e88] sm:$0xff] }
 0x32f   : > { %10060 = vmatprep.subr.bf16.mxu0 %v13287_v3  ;;  %10552 = vmatprep.subr.bf16.mxu1 %v13289_v62  ;;  %v13327_v3 = vcombine.high %v1763_v44, %v1767_v47  ;;  %v13329_v62 = vcombine.high %v1764_v52, %v1768_v19  ;;  %v1799_v35 = vld [vmem:[%s14005_s10 + $0x2ea0] sm:$0xff]  ;;  %v1800_v38 = vld [vmem:[%s14005_s10 + $0x2ea8] sm:$0xff] }
 0x330   : > { %10090 = vmatprep.mubr.bf16.mxu0 %v14927_v2  ;;  %10582 = vmatprep.mubr.bf16.mxu1 %v14927_v2 }
 0x332   : > { %10061 = vmatpush1.bf16.msra.mxu0 %v13286_v6  ;;  %10553 = vmatpush1.bf16.msra.mxu1 %v13288_v7  ;;  %v13326_v6 = vcombine.low %v1763_v44, %v1767_v47  ;;  %v13328_v7 = vcombine.low %v1764_v52, %v1768_v19  ;;  %v1803_v44 = vld [vmem:[%s14005_s10 + $0x2ec0] sm:$0xff]  ;;  %v1804_v52 = vld [vmem:[%s14005_s10 + $0x2ec8] sm:$0xff] }
 0x333   : > { %10062 = vmatprep.subr.bf16.mxu0 %v13295_v24  ;;  %10554 = vmatprep.subr.bf16.mxu1 %v13297_v8  ;;  %v13335_v24 = vcombine.high %v1771_v48, %v1775_v0  ;;  %v13337_v8 = vcombine.high %v1772_v4, %v1776_v5  ;;  %v1807_v47 = vld [vmem:[%s14005_s10 + $0x2ee0] sm:$0xff]  ;;  %v1808_v19 = vld [vmem:[%s14005_s10 + $0x2ee8] sm:$0xff] }
 0x336   : > { %10063 = vmatpush1.bf16.msra.mxu0 %v13294_v17  ;;  %10555 = vmatpush1.bf16.msra.mxu1 %v13296_v18  ;;  %v13334_v17 = vcombine.low %v1771_v48, %v1775_v0  ;;  %v13336_v18 = vcombine.low %v1772_v4, %v1776_v5  ;;  %v1811_v48 = vld [vmem:[%s14005_s10 + $0x2f00] sm:$0xff]  ;;  %v1812_v4 = vld [vmem:[%s14005_s10 + $0x2f08] sm:$0xff] }
 0x337   : > { %10064 = vmatprep.subr.bf16.mxu0 %v13303_v20  ;;  %10556 = vmatprep.subr.bf16.mxu1 %v13305_v23  ;;  %v13343_v20 = vcombine.high %v1779_v10, %v1783_v11  ;;  %v13345_v23 = vcombine.high %v1780_v13, %v1784_v14  ;;  %v1815_v0 = vld [vmem:[%s14005_s10 + $0x2f20] sm:$0xff]  ;;  %v1816_v5 = vld [vmem:[%s14005_s10 + $0x2f28] sm:$0xff] }
 0x33a   : > { %10065 = vmatpush1.bf16.msra.mxu0 %v13302_v49  ;;  %10557 = vmatpush1.bf16.msra.mxu1 %v13304_v15  ;;  %v13342_v49 = vcombine.low %v1779_v10, %v1783_v11  ;;  %v13344_v15 = vcombine.low %v1780_v13, %v1784_v14  ;;  %v1819_v10 = vld [vmem:[%s14005_s10 + $0x2f40] sm:$0xff]  ;;  %v1820_v13 = vld [vmem:[%s14005_s10 + $0x2f48] sm:$0xff] }
 0x33b   : > { %10066 = vmatprep.subr.bf16.mxu0 %v13311_v32  ;;  %10558 = vmatprep.subr.bf16.mxu1 %v13313_v33  ;;  %v13351_v32 = vcombine.high %v1787_v59, %v1791_v26  ;;  %v13353_v33 = vcombine.high %v1788_v28, %v1792_v29  ;;  %v1823_v11 = vld [vmem:[%s14005_s10 + $0x2f60] sm:$0xff]  ;;  %v1824_v14 = vld [vmem:[%s14005_s10 + $0x2f68] sm:$0xff] }
 0x33e   : > { %10067 = vmatpush1.bf16.msra.mxu0 %v13310_v40  ;;  %10559 = vmatpush1.bf16.msra.mxu1 %v13312_v41  ;;  %v13350_v40 = vcombine.low %v1787_v59, %v1791_v26  ;;  %v13352_v41 = vcombine.low %v1788_v28, %v1792_v29  ;;  %v1827_v59 = vld [vmem:[%s14005_s10 + $0x2f80] sm:$0xff]  ;;  %v1828_v28 = vld [vmem:[%s14005_s10 + $0x2f88] sm:$0xff] }
 0x33f   : > { %10068 = vmatprep.subr.bf16.mxu0 %v13319_v42  ;;  %10560 = vmatprep.subr.bf16.mxu1 %v13321_v43  ;;  %v13359_v42 = vcombine.high %v1795_v34, %v1799_v35  ;;  %v13361_v43 = vcombine.high %v1796_v37, %v1800_v38  ;;  %v1831_v26 = vld [vmem:[%s14005_s10 + $0x2fa0] sm:$0xff]  ;;  %v1832_v29 = vld [vmem:[%s14005_s10 + $0x2fa8] sm:$0xff] }
 0x342   : > { %10069 = vmatpush1.bf16.msra.mxu0 %v13318_v54  ;;  %10561 = vmatpush1.bf16.msra.mxu1 %v13320_v60  ;;  %v13358_v54 = vcombine.low %v1795_v34, %v1799_v35  ;;  %v13360_v60 = vcombine.low %v1796_v37, %v1800_v38  ;;  %v1835_v34 = vld [vmem:[%s14005_s10 + $0x2fc0] sm:$0xff]  ;;  %v1836_v37 = vld [vmem:[%s14005_s10 + $0x2fc8] sm:$0xff] }
 0x343   : > { %10070 = vmatprep.subr.bf16.mxu0 %v13327_v3  ;;  %10562 = vmatprep.subr.bf16.mxu1 %v13329_v62  ;;  %v13367_v3 = vcombine.high %v1803_v44, %v1807_v47  ;;  %v13369_v62 = vcombine.high %v1804_v52, %v1808_v19  ;;  %v1839_v35 = vld [vmem:[%s14005_s10 + $0x2fe0] sm:$0xff]  ;;  %v1840_v38 = vld [vmem:[%s14005_s10 + $0x2fe8] sm:$0xff] }
 0x346   : > { %10071 = vmatpush1.bf16.msra.mxu0 %v13326_v6  ;;  %10563 = vmatpush1.bf16.msra.mxu1 %v13328_v7  ;;  %v13366_v6 = vcombine.low %v1803_v44, %v1807_v47  ;;  %v13368_v7 = vcombine.low %v1804_v52, %v1808_v19  ;;  %v309_v44 = vld [vmem:[%s14005_s10 + $0x10] sm:$0xff]  ;;  %v310_v52 = vld [vmem:[%s14005_s10 + $0x18] sm:$0xff] }
 0x347   : > { %10072 = vmatprep.subr.bf16.mxu0 %v13335_v24  ;;  %10564 = vmatprep.subr.bf16.mxu1 %v13337_v8  ;;  %v13375_v24 = vcombine.high %v1811_v48, %v1815_v0  ;;  %v13377_v8 = vcombine.high %v1812_v4, %v1816_v5  ;;  %v313_v47 = vld [vmem:[%s14005_s10 + $0x30] sm:$0xff]  ;;  %v314_v19 = vld [vmem:[%s14005_s10 + $0x38] sm:$0xff] }
 0x34a   : > { %10073 = vmatpush1.bf16.msra.mxu0 %v13334_v17  ;;  %10565 = vmatpush1.bf16.msra.mxu1 %v13336_v18  ;;  %v13374_v17 = vcombine.low %v1811_v48, %v1815_v0  ;;  %v13376_v18 = vcombine.low %v1812_v4, %v1816_v5  ;;  %v317_v48 = vld [vmem:[%s14005_s10 + $0x50] sm:$0xff]  ;;  %v14995_v4 = vcombine.low %v14921_v56, %v14921_v56  ;;  %v318_v5 = vld [vmem:[%s14005_s10 + $0x58] sm:$0xff] }
 0x34b   : > { %10074 = vmatprep.subr.bf16.mxu0 %v13343_v20  ;;  %10566 = vmatprep.subr.bf16.mxu1 %v13345_v23  ;;  %v13383_v20 = vcombine.high %v1819_v10, %v1823_v11  ;;  %v13385_v23 = vcombine.high %v1820_v13, %v1824_v14  ;;  %v321_v0 = vld [vmem:[%s14005_s10 + $0x70] sm:$0xff]  ;;  %v326_v56 = vld [vmem:[%s14005_s10 + $0x98] sm:$0xff] }
 0x34e   : > { %10075 = vmatpush1.bf16.msra.mxu0 %v13342_v49  ;;  %10567 = vmatpush1.bf16.msra.mxu1 %v13344_v15  ;;  %v13382_v49 = vcombine.low %v1819_v10, %v1823_v11  ;;  %v13384_v15 = vcombine.low %v1820_v13, %v1824_v14  ;;  %v325_v11 = vld [vmem:[%s14005_s10 + $0x90] sm:$0xff]  ;;  %v330_v14 = vld [vmem:[%s14005_s10 + $0xb8] sm:$0xff] }
 0x34f   : > { %10076 = vmatprep.subr.bf16.mxu0 %v13351_v32  ;;  %10568 = vmatprep.subr.bf16.mxu1 %v13353_v33  ;;  %v13391_v32 = vcombine.high %v1827_v59, %v1831_v26  ;;  %v13393_v33 = vcombine.high %v1828_v28, %v1832_v29  ;;  %v329_v13 = vld [vmem:[%s14005_s10 + $0xb0] sm:$0xff] }
 0x352   : > { %10077 = vmatpush1.bf16.msra.mxu0 %v13350_v40  ;;  %10569 = vmatpush1.bf16.msra.mxu1 %v13352_v41  ;;  %v13390_v40 = vcombine.low %v1827_v59, %v1831_v26  ;;  %v13392_v41 = vcombine.low %v1828_v28, %v1832_v29  ;;  %v333_v59 = vld [vmem:[%s14005_s10 + $0xd0] sm:$0xff]  ;;  %v334_v28 = vld [vmem:[%s14005_s10 + $0xd8] sm:$0xff] }
 0x353   : > { %10078 = vmatprep.subr.bf16.mxu0 %v13359_v42  ;;  %10570 = vmatprep.subr.bf16.mxu1 %v13361_v43  ;;  %v13399_v42 = vcombine.high %v1835_v34, %v1839_v35  ;;  %v13401_v43 = vcombine.high %v1836_v37, %v1840_v38  ;;  %v337_v26 = vld [vmem:[%s14005_s10 + $0xf0] sm:$0xff]  ;;  %v338_v29 = vld [vmem:[%s14005_s10 + $0xf8] sm:$0xff] }
 0x356   : > { %10079 = vmatpush1.bf16.msra.mxu0 %v13358_v54  ;;  %10571 = vmatpush1.bf16.msra.mxu1 %v13360_v60  ;;  %v13398_v54 = vcombine.low %v1835_v34, %v1839_v35  ;;  %v13400_v60 = vcombine.low %v1836_v37, %v1840_v38  ;;  %v341_v34 = vld [vmem:[%s14005_s10 + $0x110] sm:$0xff]  ;;  %v342_v37 = vld [vmem:[%s14005_s10 + $0x118] sm:$0xff] }
 0x357   : > { %10080 = vmatprep.subr.bf16.mxu0 %v13367_v3  ;;  %10572 = vmatprep.subr.bf16.mxu1 %v13369_v62  ;;  %v11875_v3 = vcombine.high %v309_v44, %v313_v47  ;;  %v11877_v62 = vcombine.high %v310_v52, %v314_v19  ;;  %v345_v35 = vld [vmem:[%s14005_s10 + $0x130] sm:$0xff]  ;;  %v346_v38 = vld [vmem:[%s14005_s10 + $0x138] sm:$0xff] }
 0x35a   : > { %10081 = vmatpush1.bf16.msra.mxu0 %v13366_v6  ;;  %10573 = vmatpush1.bf16.msra.mxu1 %v13368_v7  ;;  %v322_v6 = vld [vmem:[%s14005_s10 + $0x78] sm:$0xff]  ;;  %v11874_v7 = vcombine.low %v309_v44, %v313_v47  ;;  %v353_v44 = vld [vmem:[%s14005_s10 + $0x170] sm:$0xff] }
 0x35b   : > { %10082 = vmatprep.subr.bf16.mxu0 %v13375_v24  ;;  %10574 = vmatprep.subr.bf16.mxu1 %v13377_v8  ;;  %v11876_v24 = vcombine.low %v310_v52, %v314_v19  ;;  %v11883_v8 = vcombine.high %v317_v48, %v321_v0  ;;  %v11885_v10 = vcombine.high %v318_v5, %v322_v6  ;;  %v350_v47 = vld [vmem:[%s14005_s10 + $0x158] sm:$0xff] }
 0x35c   : > { %v354_v52 = vld [vmem:[%s14005_s10 + $0x178] sm:$0xff]  ;;  %v11906_v19 = vcombine.low %v341_v34, %v345_v35 }
 0x35e   : > { %10083 = vmatpush1.bf16.msra.mxu0 %v13374_v17  ;;  %10575 = vmatpush1.bf16.msra.mxu1 %v13376_v18  ;;  %v11882_v17 = vcombine.low %v317_v48, %v321_v0  ;;  %v11884_v18 = vcombine.low %v318_v5, %v322_v6  ;;  %v361_v48 = vld [vmem:[%s14005_s10 + $0x1b0] sm:$0xff]  ;;  %v358_v0 = vld [vmem:[%s14005_s10 + $0x198] sm:$0xff] }
 0x35f   : > { %10084 = vmatprep.subr.bf16.mxu0 %v13383_v20  ;;  %10576 = vmatprep.subr.bf16.mxu1 %v13385_v23  ;;  %v11891_v20 = vcombine.high %v325_v11, %v329_v13  ;;  %v11893_v23 = vcombine.high %v326_v56, %v330_v14  ;;  %v362_v5 = vld [vmem:[%s14005_s10 + $0x1b8] sm:$0xff] }
 0x362   : > { %10085 = vmatpush1.bf16.msra.mxu0 %v13382_v49  ;;  %10577 = vmatpush1.bf16.msra.mxu1 %v13384_v15  ;;  %v11890_v49 = vcombine.low %v325_v11, %v329_v13  ;;  %v11892_v15 = vcombine.low %v326_v56, %v330_v14  ;;  %v369_v11 = vld [vmem:[%s14005_s10 + $0x1f0] sm:$0xff]  ;;  %v366_v13 = vld [vmem:[%s14005_s10 + $0x1d8] sm:$0xff] }
 0x363   : > { %10086 = vmatprep.subr.bf16.mxu0 %v13391_v32  ;;  %10578 = vmatprep.subr.bf16.mxu1 %v13393_v33  ;;  %v11899_v32 = vcombine.high %v333_v59, %v337_v26  ;;  %v11901_v33 = vcombine.high %v334_v28, %v338_v29  ;;  %v370_v56 = vld [vmem:[%s14005_s10 + $0x1f8] sm:$0xff] }
 0x366   : > { %10087 = vmatpush1.bf16.msra.mxu0 %v13390_v40  ;;  %10579 = vmatpush1.bf16.msra.mxu1 %v13392_v41  ;;  %v11898_v40 = vcombine.low %v333_v59, %v337_v26  ;;  %v11907_v41 = vcombine.high %v341_v34, %v345_v35  ;;  %v377_v59 = vld [vmem:[%s14005_s10 + $0x230] sm:$0xff]  ;;  %v374_v26 = vld [vmem:[%s14005_s10 + $0x218] sm:$0xff] }
 0x367   : > { %10088 = vmatprep.subr.bf16.mxu0 %v13399_v42  ;;  %10580 = vmatprep.subr.bf16.mxu1 %v13401_v43  ;;  %v11909_v42 = vcombine.high %v342_v37, %v346_v38  ;;  %v349_v43 = vld [vmem:[%s14005_s10 + $0x150] sm:$0xff]  ;;  %v382_v35 = vld [vmem:[%s14005_s10 + $0x258] sm:$0xff] }
 0x368   : > { %v11914_v6 = vcombine.low %v349_v43, %v353_v44  ;;  %v385_v34 = vld [vmem:[%s14005_s10 + $0x270] sm:$0xff] }
 0x36a   : > { %10089 = vmatpush1.bf16.msra.mxu0 %v13398_v54  ;;  %10581 = vmatpush1.bf16.msra.mxu1 %v13400_v60  ;;  %v11908_v54 = vcombine.low %v342_v37, %v346_v38  ;;  %v11915_v60 = vcombine.high %v349_v43, %v353_v44  ;;  %v386_v37 = vld [vmem:[%s14005_s10 + $0x278] sm:$0xff]  ;;  %v393_v43 = vld [vmem:[%s14005_s10 + $0x2b0] sm:$0xff] }
 0x36b   : > { %10591 = vmatprep.subr.bf16.mxu0 %v11875_v3  ;;  %11083 = vmatprep.subr.bf16.mxu1 %v11877_v62  ;;  %v11917_v3 = vcombine.high %v350_v47, %v354_v52  ;;  %v357_v62 = vld [vmem:[%s14005_s10 + $0x190] sm:$0xff]  ;;  %v390_v44 = vld [vmem:[%s14005_s10 + $0x298] sm:$0xff] }
 0x36c   : > { %v11922_v14 = vcombine.low %v357_v62, %v361_v48 }
 0x36d   : > { %10091 = vmatmul.mubr.bf16.vlgmr.msra.gmra.mrb[0].mxu0 %v14995_v4  ;;  %10583 = vmatmul.mubr.bf16.vlgmr.msra.gmra.mrb[0].mxu1 %v14995_v4 }
 0x36e   : > { %10592 = vmatpush1.bf16.msra.mxu0 %v11874_v7  ;;  %11084 = vmatpush1.bf16.msra.mxu1 %v11876_v24  ;;  %v11916_v7 = vcombine.low %v350_v47, %v354_v52  ;;  %v11923_v24 = vcombine.high %v357_v62, %v361_v48  ;;  %v394_v47 = vld [vmem:[%s14005_s10 + $0x2b8] sm:$0xff]  ;;  %v401_v62 = vld [vmem:[%s14005_s10 + $0x2f0] sm:$0xff] }
 0x36f   : > { %10593 = vmatprep.subr.bf16.mxu0 %v11883_v8  ;;  %11085 = vmatprep.subr.bf16.mxu1 %v11885_v10  ;;  %v11925_v8 = vcombine.high %v358_v0, %v362_v5  ;;  %v365_v10 = vld [vmem:[%s14005_s10 + $0x1d0] sm:$0xff]  ;;  %v398_v48 = vld [vmem:[%s14005_s10 + $0x2d8] sm:$0xff] }
 0x370   : > { %10623 = vmatprep.mubr.bf16.mxu0 %v14058_v57  ;;  %11115 = vmatprep.mubr.bf16.mxu1 %v14058_v57  ;;  %v11900_v57 = vcombine.low %v334_v28, %v338_v29  ;;  %v378_v28 = vld [vmem:[%s14005_s10 + $0x238] sm:$0xff]  ;;  %v11930_v29 = vcombine.low %v365_v10, %v369_v11 }
 0x372   : > { %10594 = vmatpush1.bf16.msra.mxu0 %v11882_v17  ;;  %11086 = vmatpush1.bf16.msra.mxu1 %v11884_v18  ;;  %v11924_v17 = vcombine.low %v358_v0, %v362_v5  ;;  %v11931_v18 = vcombine.high %v365_v10, %v369_v11  ;;  %v402_v0 = vld [vmem:[%s14005_s10 + $0x2f8] sm:$0xff]  ;;  %v409_v10 = vld [vmem:[%s14005_s10 + $0x330] sm:$0xff] }
 0x373   : > { %10595 = vmatprep.subr.bf16.mxu0 %v11891_v20  ;;  %11087 = vmatprep.subr.bf16.mxu1 %v11893_v23  ;;  %v11933_v20 = vcombine.high %v366_v13, %v370_v56  ;;  %v373_v23 = vld [vmem:[%s14005_s10 + $0x210] sm:$0xff]  ;;  %v406_v11 = vld [vmem:[%s14005_s10 + $0x318] sm:$0xff] }
 0x374   : > { %v11938_v38 = vcombine.low %v373_v23, %v377_v59 }
 0x376   : > { %10596 = vmatpush1.bf16.msra.mxu0 %v11890_v49  ;;  %11088 = vmatpush1.bf16.msra.mxu1 %v11892_v15  ;;  %v11932_v49 = vcombine.low %v366_v13, %v370_v56  ;;  %v11939_v15 = vcombine.high %v373_v23, %v377_v59  ;;  %v410_v13 = vld [vmem:[%s14005_s10 + $0x338] sm:$0xff]  ;;  %v417_v23 = vld [vmem:[%s14005_s10 + $0x370] sm:$0xff] }
 0x377   : > { %10597 = vmatprep.subr.bf16.mxu0 %v11899_v32  ;;  %11089 = vmatprep.subr.bf16.mxu1 %v11901_v33  ;;  %v11941_v32 = vcombine.high %v374_v26, %v378_v28  ;;  %v381_v33 = vld [vmem:[%s14005_s10 + $0x250] sm:$0xff]  ;;  %v414_v59 = vld [vmem:[%s14005_s10 + $0x358] sm:$0xff] }
 0x378   : > { %v11946_v52 = vcombine.low %v381_v33, %v385_v34 }
 0x37a   : > { %10598 = vmatpush1.bf16.msra.mxu0 %v11898_v40  ;;  %11090 = vmatpush1.bf16.msra.mxu1 %v11900_v57  ;;  %v11940_v40 = vcombine.low %v374_v26, %v378_v28  ;;  %v11947_v57 = vcombine.high %v381_v33, %v385_v34  ;;  %v418_v26 = vld [vmem:[%s14005_s10 + $0x378] sm:$0xff]  ;;  %v425_v33 = vld [vmem:[%s14005_s10 + $0x3b0] sm:$0xff] }
 0x37b   : > { %10599 = vmatprep.subr.bf16.mxu0 %v11907_v41  ;;  %11091 = vmatprep.subr.bf16.mxu1 %v11909_v42  ;;  %v11949_v41 = vcombine.high %v382_v35, %v386_v37  ;;  %v389_v42 = vld [vmem:[%s14005_s10 + $0x290] sm:$0xff]  ;;  %v422_v34 = vld [vmem:[%s14005_s10 + $0x398] sm:$0xff] }
 0x37c   : > { %v11954_v5 = vcombine.low %v389_v42, %v393_v43 }
 0x37e   : > { %10600 = vmatpush1.bf16.msra.mxu0 %v11906_v19  ;;  %11092 = vmatpush1.bf16.msra.mxu1 %v11908_v54  ;;  %v11948_v19 = vcombine.low %v382_v35, %v386_v37  ;;  %v11955_v54 = vcombine.high %v389_v42, %v393_v43  ;;  %v426_v35 = vld [vmem:[%s14005_s10 + $0x3b8] sm:$0xff]  ;;  %v433_v42 = vld [vmem:[%s14005_s10 + $0x3f0] sm:$0xff] }
 0x37f   : > { %10601 = vmatprep.subr.bf16.mxu0 %v11915_v60  ;;  %11093 = vmatprep.subr.bf16.mxu1 %v11917_v3  ;;  %v11957_v60 = vcombine.high %v390_v44, %v394_v47  ;;  %v397_v3 = vld [vmem:[%s14005_s10 + $0x2d0] sm:$0xff]  ;;  %v430_v43 = vld [vmem:[%s14005_s10 + $0x3d8] sm:$0xff] }
 0x380   : > { %v11962_v56 = vcombine.low %v397_v3, %v401_v62 }
 0x382   : > { %10602 = vmatpush1.bf16.msra.mxu0 %v11914_v6  ;;  %11094 = vmatpush1.bf16.msra.mxu1 %v11916_v7  ;;  %v11956_v6 = vcombine.low %v390_v44, %v394_v47  ;;  %v11963_v7 = vcombine.high %v397_v3, %v401_v62  ;;  %v434_v44 = vld [vmem:[%s14005_s10 + $0x3f8] sm:$0xff]  ;;  %v441_v3 = vld [vmem:[%s14005_s10 + $0x430] sm:$0xff] }
 0x383   : > { %10603 = vmatprep.subr.bf16.mxu0 %v11923_v24  ;;  %11095 = vmatprep.subr.bf16.mxu1 %v11925_v8  ;;  %v11965_v24 = vcombine.high %v398_v48, %v402_v0  ;;  %v405_v8 = vld [vmem:[%s14005_s10 + $0x310] sm:$0xff]  ;;  %v438_v62 = vld [vmem:[%s14005_s10 + $0x418] sm:$0xff] }
 0x384   : > { %v11970_v28 = vcombine.low %v405_v8, %v409_v10 }
 0x386   : > { %10604 = vmatpush1.bf16.msra.mxu0 %v11922_v14  ;;  %11096 = vmatpush1.bf16.msra.mxu1 %v11924_v17  ;;  %v11964_v14 = vcombine.low %v398_v48, %v402_v0  ;;  %v11971_v17 = vcombine.high %v405_v8, %v409_v10  ;;  %v442_v48 = vld [vmem:[%s14005_s10 + $0x438] sm:$0xff]  ;;  %v449_v8 = vld [vmem:[%s14005_s10 + $0x470] sm:$0xff] }
 0x387   : > { %10605 = vmatprep.subr.bf16.mxu0 %v11931_v18  ;;  %11097 = vmatprep.subr.bf16.mxu1 %v11933_v20  ;;  %v11973_v18 = vcombine.high %v406_v11, %v410_v13  ;;  %v413_v20 = vld [vmem:[%s14005_s10 + $0x350] sm:$0xff]  ;;  %v446_v10 = vld [vmem:[%s14005_s10 + $0x458] sm:$0xff] }
 0x388   : > { %v11978_v37 = vcombine.low %v413_v20, %v417_v23 }
 0x38a   : > { %10606 = vmatpush1.bf16.msra.mxu0 %v11930_v29  ;;  %11098 = vmatpush1.bf16.msra.mxu1 %v11932_v49  ;;  %v11972_v29 = vcombine.low %v406_v11, %v410_v13  ;;  %v11979_v49 = vcombine.high %v413_v20, %v417_v23  ;;  %v450_v11 = vld [vmem:[%s14005_s10 + $0x478] sm:$0xff]  ;;  %v457_v20 = vld [vmem:[%s14005_s10 + $0x4b0] sm:$0xff] }
 0x38b   : > { %10607 = vmatprep.subr.bf16.mxu0 %v11939_v15  ;;  %11099 = vmatprep.subr.bf16.mxu1 %v11941_v32  ;;  %v11981_v15 = vcombine.high %v414_v59, %v418_v26  ;;  %v421_v32 = vld [vmem:[%s14005_s10 + $0x390] sm:$0xff]  ;;  %v454_v23 = vld [vmem:[%s14005_s10 + $0x498] sm:$0xff] }
 0x38c   : > { %v11986_v47 = vcombine.low %v421_v32, %v425_v33 }
 0x38e   : > { %10608 = vmatpush1.bf16.msra.mxu0 %v11938_v38  ;;  %11100 = vmatpush1.bf16.msra.mxu1 %v11940_v40  ;;  %v11980_v38 = vcombine.low %v414_v59, %v418_v26  ;;  %v11987_v40 = vcombine.high %v421_v32, %v425_v33  ;;  %v458_v59 = vld [vmem:[%s14005_s10 + $0x4b8] sm:$0xff]  ;;  %v465_v32 = vld [vmem:[%s14005_s10 + $0x4f0] sm:$0xff] }
 0x38f   : > { %10609 = vmatprep.subr.bf16.mxu0 %v11947_v57  ;;  %11101 = vmatprep.subr.bf16.mxu1 %v11949_v41  ;;  %v11989_v57 = vcombine.high %v422_v34, %v426_v35  ;;  %v429_v41 = vld [vmem:[%s14005_s10 + $0x3d0] sm:$0xff]  ;;  %v462_v33 = vld [vmem:[%s14005_s10 + $0x4d8] sm:$0xff] }
 0x390   : > { %v11994_v0 = vcombine.low %v429_v41, %v433_v42 }
 0x392   : > { %10610 = vmatpush1.bf16.msra.mxu0 %v11946_v52  ;;  %11102 = vmatpush1.bf16.msra.mxu1 %v11948_v19  ;;  %v11988_v52 = vcombine.low %v422_v34, %v426_v35  ;;  %v11995_v19 = vcombine.high %v429_v41, %v433_v42  ;;  %v466_v34 = vld [vmem:[%s14005_s10 + $0x4f8] sm:$0xff]  ;;  %v12020_v35 = vcombine.low %v454_v23, %v458_v59 }
 0x393   : > { %10611 = vmatprep.subr.bf16.mxu0 %v11955_v54  ;;  %11103 = vmatprep.subr.bf16.mxu1 %v11957_v60  ;;  %v11997_v54 = vcombine.high %v430_v43, %v434_v44  ;;  %v437_v60 = vld [vmem:[%s14005_s10 + $0x410] sm:$0xff]  ;;  %v470_v41 = vld [vmem:[%s14005_s10 + $0x518] sm:$0xff] }
 0x394   : > { %v12002_v13 = vcombine.low %v437_v60, %v441_v3  ;;  %v474_v42 = vld [vmem:[%s14005_s10 + $0x538] sm:$0xff] }
 0x396   : > { %10612 = vmatpush1.bf16.msra.mxu0 %v11954_v5  ;;  %11104 = vmatpush1.bf16.msra.mxu1 %v11956_v6  ;;  %v11996_v5 = vcombine.low %v430_v43, %v434_v44  ;;  %v12003_v6 = vcombine.high %v437_v60, %v441_v3  ;;  %v482_v60 = vld [vmem:[%s14005_s10 + $0x578] sm:$0xff] }
 0x397   : > { %10613 = vmatprep.subr.bf16.mxu0 %v11963_v7  ;;  %11105 = vmatprep.subr.bf16.mxu1 %v11965_v24  ;;  %v12005_v7 = vcombine.high %v438_v62, %v442_v48  ;;  %v445_v24 = vld [vmem:[%s14005_s10 + $0x450] sm:$0xff] }
 0x398   : > { %v12010_v26 = vcombine.low %v445_v24, %v449_v8 }
 0x39a   : > { %10614 = vmatpush1.bf16.msra.mxu0 %v11962_v56  ;;  %11106 = vmatpush1.bf16.msra.mxu1 %v11964_v14  ;;  %v12004_v56 = vcombine.low %v438_v62, %v442_v48  ;;  %v12011_v14 = vcombine.high %v445_v24, %v449_v8  ;;  %v12036_v62 = vcombine.low %v470_v41, %v474_v42  ;;  %v490_v24 = vld [vmem:[%s14005_s10 + $0x5b8] sm:$0xff] }
 0x39b   : > { %10615 = vmatprep.subr.bf16.mxu0 %v11971_v17  ;;  %11107 = vmatprep.subr.bf16.mxu1 %v11973_v18  ;;  %v12013_v17 = vcombine.high %v446_v10, %v450_v11  ;;  %v453_v18 = vld [vmem:[%s14005_s10 + $0x490] sm:$0xff] }
 0x39e   : > { %10616 = vmatpush1.bf16.msra.mxu0 %v11970_v28  ;;  %11108 = vmatpush1.bf16.msra.mxu1 %v11972_v29  ;;  %v12012_v28 = vcombine.low %v446_v10, %v450_v11  ;;  %v12019_v29 = vcombine.high %v453_v18, %v457_v20 }
 0x39f   : > { %10617 = vmatprep.subr.bf16.mxu0 %v11979_v49  ;;  %11109 = vmatprep.subr.bf16.mxu1 %v11981_v15  ;;  %v12021_v49 = vcombine.high %v454_v23, %v458_v59  ;;  %v461_v15 = vld [vmem:[%s14005_s10 + $0x4d0] sm:$0xff] }
 0x3a0   : > { %v12026_v43 = vcombine.low %v461_v15, %v465_v32 }
 0x3a2   : > { %10618 = vmatpush1.bf16.msra.mxu0 %v11978_v37  ;;  %11110 = vmatpush1.bf16.msra.mxu1 %v11980_v38  ;;  %v12027_v37 = vcombine.high %v461_v15, %v465_v32  ;;  %v12029_v38 = vcombine.high %v462_v33, %v466_v34  ;;  %v506_v15 = vld [vmem:[%s14005_s10 + $0x638] sm:$0xff] }
 0x3a3   : > { %10619 = vmatprep.subr.bf16.mxu0 %v11987_v40  ;;  %11111 = vmatprep.subr.bf16.mxu1 %v11989_v57  ;;  %v469_v40 = vld [vmem:[%s14005_s10 + $0x510] sm:$0xff] }
 0x3a4   : > { %v473_v57 = vld [vmem:[%s14005_s10 + $0x530] sm:$0xff] }
 0x3a5   : > { %v12035_v44 = vcombine.high %v469_v40, %v473_v57  ;;  %v12034_v3 = vcombine.low %v469_v40, %v473_v57  ;;  %v514_v40 = vld [vmem:[%s14005_s10 + $0x678] sm:$0xff] }
 0x3a6   : > { %10620 = vmatpush1.bf16.msra.mxu0 %v11986_v47  ;;  %11112 = vmatpush1.bf16.msra.mxu1 %v11988_v52  ;;  %v12037_v47 = vcombine.high %v470_v41, %v474_v42  ;;  %v477_v52 = vld [vmem:[%s14005_s10 + $0x550] sm:$0xff] }
 0x3a7   : > { %10621 = vmatprep.subr.bf16.mxu0 %v11995_v19  ;;  %11113 = vmatprep.subr.bf16.mxu1 %v11997_v54  ;;  %v481_v19 = vld [vmem:[%s14005_s10 + $0x570] sm:$0xff]  ;;  %v478_v54 = vld [vmem:[%s14005_s10 + $0x558] sm:$0xff] }
 0x3a8   : > { %v12043_v48 = vcombine.high %v477_v52, %v481_v19  ;;  %v12042_v8 = vcombine.low %v477_v52, %v481_v19  ;;  %v12044_v10 = vcombine.low %v478_v54, %v482_v60  ;;  %v522_v52 = vld [vmem:[%s14005_s10 + $0x6b8] sm:$0xff] }
 0x3aa   : > { %10622 = vmatpush1.bf16.msra.mxu0 %v11994_v0  ;;  %11114 = vmatpush1.bf16.msra.mxu1 %v11996_v5  ;;  %v12045_v0 = vcombine.high %v478_v54, %v482_v60  ;;  %v485_v5 = vld [vmem:[%s14005_s10 + $0x590] sm:$0xff] }
 0x3ab   : > { %10632 = vmatprep.subr.bf16.mxu0 %v12003_v6  ;;  %11124 = vmatprep.subr.bf16.mxu1 %v12005_v7  ;;  %v489_v6 = vld [vmem:[%s14005_s10 + $0x5b0] sm:$0xff]  ;;  %v486_v7 = vld [vmem:[%s14005_s10 + $0x598] sm:$0xff] }
 0x3ac   : > { %v12051_v11 = vcombine.high %v485_v5, %v489_v6  ;;  %v12052_v23 = vcombine.low %v486_v7, %v490_v24 }
 0x3ad   : > { %10624 = vmatmul.mubr.bf16.vlgmr.msra.gmra.mrb[4].mxu0 %v14104_v12  ;;  %11116 = vmatmul.mubr.bf16.vlgmr.msra.gmra.mrb[4].mxu1 %v14104_v12  ;;  %v12018_v12 = vcombine.low %v453_v18, %v457_v20  ;;  %v498_v18 = vld [vmem:[%s14005_s10 + $0x5f8] sm:$0xff]  ;;  %v12050_v20 = vcombine.low %v485_v5, %v489_v6 }
 0x3ae   : > { %10633 = vmatpush1.bf16.msra.mxu0 %v12002_v13  ;;  %11125 = vmatpush1.bf16.msra.mxu1 %v12004_v56  ;;  %v12053_v13 = vcombine.high %v486_v7, %v490_v24  ;;  %v493_v56 = vld [vmem:[%s14005_s10 + $0x5d0] sm:$0xff]  ;;  %v530_v5 = vld [vmem:[%s14005_s10 + $0x6f8] sm:$0xff] }
 0x3af   : > { %10634 = vmatprep.subr.bf16.mxu0 %v12011_v14  ;;  %11126 = vmatprep.subr.bf16.mxu1 %v12013_v17  ;;  %v497_v14 = vld [vmem:[%s14005_s10 + $0x5f0] sm:$0xff]  ;;  %v494_v17 = vld [vmem:[%s14005_s10 + $0x5d8] sm:$0xff] }
 0x3b0   : > { %10664 = vmatprep.mubr.bf16.mxu0 %v14117_v21  ;;  %11156 = vmatprep.mubr.bf16.mxu1 %v14117_v21  ;;  %v12028_v21 = vcombine.low %v462_v33, %v466_v34  ;;  %v12059_v59 = vcombine.high %v493_v56, %v497_v14  ;;  %v12058_v32 = vcombine.low %v493_v56, %v497_v14  ;;  %v538_v56 = vld [vmem:[%s14005_s10 + $0x738] sm:$0xff] }
 0x3b1   : > { %v12060_v33 = vcombine.low %v494_v17, %v498_v18 }
 0x3b2   : > { %10635 = vmatpush1.bf16.msra.mxu0 %v12010_v26  ;;  %11127 = vmatpush1.bf16.msra.mxu1 %v12012_v28  ;;  %v12061_v26 = vcombine.high %v494_v17, %v498_v18  ;;  %v501_v28 = vld [vmem:[%s14005_s10 + $0x610] sm:$0xff] }
 0x3b3   : > { %10636 = vmatprep.subr.bf16.mxu0 %v12019_v29  ;;  %11128 = vmatprep.subr.bf16.mxu1 %v12021_v49  ;;  %v505_v29 = vld [vmem:[%s14005_s10 + $0x630] sm:$0xff]  ;;  %v502_v49 = vld [vmem:[%s14005_s10 + $0x618] sm:$0xff] }
 0x3b4   : > { %v12067_v34 = vcombine.high %v501_v28, %v505_v29  ;;  %v12066_v57 = vcombine.low %v501_v28, %v505_v29  ;;  %v12068_v41 = vcombine.low %v502_v49, %v506_v15  ;;  %v546_v28 = vld [vmem:[%s14005_s10 + $0x778] sm:$0xff] }
 0x3b6   : > { %10637 = vmatpush1.bf16.msra.mxu0 %v12018_v12  ;;  %11129 = vmatpush1.bf16.msra.mxu1 %v12020_v35  ;;  %v12069_v12 = vcombine.high %v502_v49, %v506_v15  ;;  %v509_v35 = vld [vmem:[%s14005_s10 + $0x650] sm:$0xff] }
 0x3b7   : > { %10638 = vmatprep.subr.bf16.mxu0 %v12027_v37  ;;  %11130 = vmatprep.subr.bf16.mxu1 %v12029_v38  ;;  %v513_v37 = vld [vmem:[%s14005_s10 + $0x670] sm:$0xff]  ;;  %v510_v38 = vld [vmem:[%s14005_s10 + $0x658] sm:$0xff] }
 0x3b8   : > { %v12075_v42 = vcombine.high %v509_v35, %v513_v37  ;;  %v12074_v19 = vcombine.low %v509_v35, %v513_v37  ;;  %v12076_v54 = vcombine.low %v510_v38, %v514_v40  ;;  %v554_v35 = vld [vmem:[%s14005_s10 + $0x7b8] sm:$0xff] }
 0x3ba   : > { %10639 = vmatpush1.bf16.msra.mxu0 %v12026_v43  ;;  %11131 = vmatpush1.bf16.msra.mxu1 %v12028_v21  ;;  %v12077_v43 = vcombine.high %v510_v38, %v514_v40  ;;  %v517_v21 = vld [vmem:[%s14005_s10 + $0x690] sm:$0xff] }
 0x3bb   : > { %10640 = vmatprep.subr.bf16.mxu0 %v12035_v44  ;;  %11132 = vmatprep.subr.bf16.mxu1 %v12037_v47  ;;  %v521_v44 = vld [vmem:[%s14005_s10 + $0x6b0] sm:$0xff]  ;;  %v518_v47 = vld [vmem:[%s14005_s10 + $0x698] sm:$0xff] }
 0x3bc   : > { %v12083_v60 = vcombine.high %v517_v21, %v521_v44  ;;  %v12082_v6 = vcombine.low %v517_v21, %v521_v44  ;;  %v12084_v7 = vcombine.low %v518_v47, %v522_v52  ;;  %v562_v21 = vld [vmem:[%s14005_s10 + $0x7f8] sm:$0xff] }
 0x3be   : > { %10641 = vmatpush1.bf16.msra.mxu0 %v12034_v3  ;;  %11133 = vmatpush1.bf16.msra.mxu1 %v12036_v62  ;;  %v12085_v3 = vcombine.high %v518_v47, %v522_v52  ;;  %v525_v62 = vld [vmem:[%s14005_s10 + $0x6d0] sm:$0xff] }
 0x3bf   : > { %10642 = vmatprep.subr.bf16.mxu0 %v12043_v48  ;;  %11134 = vmatprep.subr.bf16.mxu1 %v12045_v0  ;;  %v529_v48 = vld [vmem:[%s14005_s10 + $0x6f0] sm:$0xff]  ;;  %v526_v0 = vld [vmem:[%s14005_s10 + $0x6d8] sm:$0xff] }
 0x3c0   : > { %v12091_v24 = vcombine.high %v525_v62, %v529_v48  ;;  %v12090_v14 = vcombine.low %v525_v62, %v529_v48  ;;  %v12092_v17 = vcombine.low %v526_v0, %v530_v5  ;;  %v570_v62 = vld [vmem:[%s14005_s10 + $0x838] sm:$0xff] }
 0x3c2   : > { %10643 = vmatpush1.bf16.msra.mxu0 %v12042_v8  ;;  %11135 = vmatpush1.bf16.msra.mxu1 %v12044_v10  ;;  %v12093_v8 = vcombine.high %v526_v0, %v530_v5  ;;  %v533_v10 = vld [vmem:[%s14005_s10 + $0x710] sm:$0xff] }
 0x3c3   : > { %10644 = vmatprep.subr.bf16.mxu0 %v12051_v11  ;;  %11136 = vmatprep.subr.bf16.mxu1 %v12053_v13  ;;  %v537_v11 = vld [vmem:[%s14005_s10 + $0x730] sm:$0xff]  ;;  %v534_v13 = vld [vmem:[%s14005_s10 + $0x718] sm:$0xff] }
 0x3c4   : > { %v12099_v18 = vcombine.high %v533_v10, %v537_v11  ;;  %v12098_v29 = vcombine.low %v533_v10, %v537_v11  ;;  %v12100_v49 = vcombine.low %v534_v13, %v538_v56  ;;  %v578_v10 = vld [vmem:[%s14005_s10 + $0x878] sm:$0xff] }
 0x3c6   : > { %10645 = vmatpush1.bf16.msra.mxu0 %v12050_v20  ;;  %11137 = vmatpush1.bf16.msra.mxu1 %v12052_v23  ;;  %v12101_v20 = vcombine.high %v534_v13, %v538_v56  ;;  %v541_v23 = vld [vmem:[%s14005_s10 + $0x750] sm:$0xff] }
 0x3c7   : > { %10646 = vmatprep.subr.bf16.mxu0 %v12059_v59  ;;  %11138 = vmatprep.subr.bf16.mxu1 %v12061_v26  ;;  %v545_v59 = vld [vmem:[%s14005_s10 + $0x770] sm:$0xff]  ;;  %v542_v26 = vld [vmem:[%s14005_s10 + $0x758] sm:$0xff] }
 0x3c8   : > { %v12107_v15 = vcombine.high %v541_v23, %v545_v59  ;;  %v12106_v37 = vcombine.low %v541_v23, %v545_v59  ;;  %v12108_v38 = vcombine.low %v542_v26, %v546_v28  ;;  %v586_v23 = vld [vmem:[%s14005_s10 + $0x8b8] sm:$0xff] }
 0x3ca   : > { %10647 = vmatpush1.bf16.msra.mxu0 %v12058_v32  ;;  %11139 = vmatpush1.bf16.msra.mxu1 %v12060_v33  ;;  %v12109_v32 = vcombine.high %v542_v26, %v546_v28  ;;  %v549_v33 = vld [vmem:[%s14005_s10 + $0x790] sm:$0xff] }
 0x3cb   : > { %10648 = vmatprep.subr.bf16.mxu0 %v12067_v34  ;;  %11140 = vmatprep.subr.bf16.mxu1 %v12069_v12  ;;  %v553_v34 = vld [vmem:[%s14005_s10 + $0x7b0] sm:$0xff]  ;;  %v550_v12 = vld [vmem:[%s14005_s10 + $0x798] sm:$0xff] }
 0x3cc   : > { %v12115_v40 = vcombine.high %v549_v33, %v553_v34  ;;  %v12114_v44 = vcombine.low %v549_v33, %v553_v34  ;;  %v12116_v47 = vcombine.low %v550_v12, %v554_v35  ;;  %v594_v33 = vld [vmem:[%s14005_s10 + $0x8f8] sm:$0xff] }
 0x3ce   : > { %10649 = vmatpush1.bf16.msra.mxu0 %v12066_v57  ;;  %11141 = vmatpush1.bf16.msra.mxu1 %v12068_v41  ;;  %v12117_v57 = vcombine.high %v550_v12, %v554_v35  ;;  %v557_v41 = vld [vmem:[%s14005_s10 + $0x7d0] sm:$0xff] }
 0x3cf   : > { %10650 = vmatprep.subr.bf16.mxu0 %v12075_v42  ;;  %11142 = vmatprep.subr.bf16.mxu1 %v12077_v43  ;;  %v561_v42 = vld [vmem:[%s14005_s10 + $0x7f0] sm:$0xff]  ;;  %v558_v43 = vld [vmem:[%s14005_s10 + $0x7d8] sm:$0xff] }
 0x3d0   : > { %v12123_v52 = vcombine.high %v557_v41, %v561_v42  ;;  %v12122_v48 = vcombine.low %v557_v41, %v561_v42  ;;  %v12124_v0 = vcombine.low %v558_v43, %v562_v21 }
 0x3d2   : > { %10651 = vmatpush1.bf16.msra.mxu0 %v12074_v19  ;;  %11143 = vmatpush1.bf16.msra.mxu1 %v12076_v54  ;;  %v12125_v19 = vcombine.high %v558_v43, %v562_v21  ;;  %v565_v54 = vld [vmem:[%s14005_s10 + $0x810] sm:$0xff] }
 0x3d3   : > { %10652 = vmatprep.subr.bf16.mxu0 %v12083_v60  ;;  %11144 = vmatprep.subr.bf16.mxu1 %v12085_v3  ;;  %v569_v60 = vld [vmem:[%s14005_s10 + $0x830] sm:$0xff]  ;;  %v566_v3 = vld [vmem:[%s14005_s10 + $0x818] sm:$0xff] }
 0x3d4   : > { %v12131_v5 = vcombine.high %v565_v54, %v569_v60  ;;  %v12130_v11 = vcombine.low %v565_v54, %v569_v60  ;;  %v12132_v13 = vcombine.low %v566_v3, %v570_v62  ;;  %v605_v21 = vld [vmem:[%s14005_s10 + $0x950] sm:$0xff] }
 0x3d6   : > { %10653 = vmatpush1.bf16.msra.mxu0 %v12082_v6  ;;  %11145 = vmatpush1.bf16.msra.mxu1 %v12084_v7  ;;  %v12133_v6 = vcombine.high %v566_v3, %v570_v62  ;;  %v573_v7 = vld [vmem:[%s14005_s10 + $0x850] sm:$0xff] }
 0x3d7   : > { %10654 = vmatprep.subr.bf16.mxu0 %v12091_v24  ;;  %11146 = vmatprep.subr.bf16.mxu1 %v12093_v8  ;;  %v577_v24 = vld [vmem:[%s14005_s10 + $0x870] sm:$0xff]  ;;  %v574_v8 = vld [vmem:[%s14005_s10 + $0x858] sm:$0xff] }
 0x3d8   : > { %v12139_v56 = vcombine.high %v573_v7, %v577_v24  ;;  %v12138_v59 = vcombine.low %v573_v7, %v577_v24  ;;  %v12140_v26 = vcombine.low %v574_v8, %v578_v10  ;;  %v613_v62 = vld [vmem:[%s14005_s10 + $0x990] sm:$0xff] }
 0x3da   : > { %10655 = vmatpush1.bf16.msra.mxu0 %v12090_v14  ;;  %11147 = vmatpush1.bf16.msra.mxu1 %v12092_v17  ;;  %v12141_v14 = vcombine.high %v574_v8, %v578_v10  ;;  %v581_v17 = vld [vmem:[%s14005_s10 + $0x890] sm:$0xff] }
 0x3db   : > { %10656 = vmatprep.subr.bf16.mxu0 %v12099_v18  ;;  %11148 = vmatprep.subr.bf16.mxu1 %v12101_v20  ;;  %v585_v18 = vld [vmem:[%s14005_s10 + $0x8b0] sm:$0xff]  ;;  %v582_v20 = vld [vmem:[%s14005_s10 + $0x898] sm:$0xff] }
 0x3dc   : > { %v12147_v28 = vcombine.high %v581_v17, %v585_v18  ;;  %v12148_v34 = vcombine.low %v582_v20, %v586_v23  ;;  %v621_v10 = vld [vmem:[%s14005_s10 + $0x9d0] sm:$0xff] }
 0x3de   : > { %10657 = vmatpush1.bf16.msra.mxu0 %v12098_v29  ;;  %11149 = vmatpush1.bf16.msra.mxu1 %v12100_v49  ;;  %v12149_v29 = vcombine.high %v582_v20, %v586_v23  ;;  %v589_v49 = vld [vmem:[%s14005_s10 + $0x8d0] sm:$0xff] }
 0x3df   : > { %10658 = vmatprep.subr.bf16.mxu0 %v12107_v15  ;;  %11150 = vmatprep.subr.bf16.mxu1 %v12109_v32  ;;  %v593_v15 = vld [vmem:[%s14005_s10 + $0x8f0] sm:$0xff]  ;;  %v590_v32 = vld [vmem:[%s14005_s10 + $0x8d8] sm:$0xff] }
 0x3e0   : > { %v12155_v12 = vcombine.high %v589_v49, %v593_v15  ;;  %v12157_v35 = vcombine.high %v590_v32, %v594_v33  ;;  %v12154_v41 = vcombine.low %v589_v49, %v593_v15  ;;  %v629_v23 = vld [vmem:[%s14005_s10 + $0xa10] sm:$0xff] }
 0x3e2   : > { %10659 = vmatpush1.bf16.msra.mxu0 %v12106_v37  ;;  %11151 = vmatpush1.bf16.msra.mxu1 %v12108_v38  ;;  %v597_v37 = vld [vmem:[%s14005_s10 + $0x910] sm:$0xff] }
 0x3e3   : > { %10660 = vmatprep.subr.bf16.mxu0 %v12115_v40  ;;  %11152 = vmatprep.subr.bf16.mxu1 %v12117_v57  ;;  %v601_v38 = vld [vmem:[%s14005_s10 + $0x930] sm:$0xff]  ;;  %v598_v40 = vld [vmem:[%s14005_s10 + $0x918] sm:$0xff] }
 0x3e4   : > { %v602_v57 = vld [vmem:[%s14005_s10 + $0x938] sm:$0xff]  ;;  %v12163_v42 = vcombine.high %v597_v37, %v601_v38 }
 0x3e5   : > { %v12165_v43 = vcombine.high %v598_v40, %v602_v57  ;;  %v12164_v54 = vcombine.low %v598_v40, %v602_v57  ;;  %v645_v57 = vld [vmem:[%s14005_s10 + $0xa90] sm:$0xff] }
 0x3e6   : > { %10661 = vmatpush1.bf16.msra.mxu0 %v12114_v44  ;;  %11153 = vmatpush1.bf16.msra.mxu1 %v12116_v47  ;;  %v609_v44 = vld [vmem:[%s14005_s10 + $0x970] sm:$0xff]  ;;  %v606_v47 = vld [vmem:[%s14005_s10 + $0x958] sm:$0xff] }
 0x3e7   : > { %10662 = vmatprep.subr.bf16.mxu0 %v12123_v52  ;;  %11154 = vmatprep.subr.bf16.mxu1 %v12125_v19  ;;  %v610_v52 = vld [vmem:[%s14005_s10 + $0x978] sm:$0xff]  ;;  %v12162_v19 = vcombine.low %v597_v37, %v601_v38  ;;  %v12171_v60 = vcombine.high %v605_v21, %v609_v44 }
 0x3e8   : > { %v12173_v3 = vcombine.high %v606_v47, %v610_v52  ;;  %v12172_v7 = vcombine.low %v606_v47, %v610_v52  ;;  %v653_v52 = vld [vmem:[%s14005_s10 + $0xad0] sm:$0xff] }
 0x3ea   : > { %10663 = vmatpush1.bf16.msra.mxu0 %v12122_v48  ;;  %11155 = vmatpush1.bf16.msra.mxu1 %v12124_v0  ;;  %v617_v48 = vld [vmem:[%s14005_s10 + $0x9b0] sm:$0xff]  ;;  %v614_v0 = vld [vmem:[%s14005_s10 + $0x998] sm:$0xff] }
 0x3eb   : > { %10673 = vmatprep.subr.bf16.mxu0 %v12131_v5  ;;  %11165 = vmatprep.subr.bf16.mxu1 %v12133_v6  ;;  %v618_v5 = vld [vmem:[%s14005_s10 + $0x9b8] sm:$0xff]  ;;  %v12170_v6 = vcombine.low %v605_v21, %v609_v44  ;;  %v12179_v24 = vcombine.high %v613_v62, %v617_v48 }
 0x3ec   : > { %v12181_v8 = vcombine.high %v614_v0, %v618_v5 }
 0x3ed   : > { %10665 = vmatmul.mubr.bf16.vlgmr.msra.gmra.mrb[4].mxu0 %v14185_v22  ;;  %11157 = vmatmul.mubr.bf16.vlgmr.msra.gmra.mrb[4].mxu1 %v14185_v22  ;;  %v12146_v22 = vcombine.low %v581_v17, %v585_v18  ;;  %v12180_v17 = vcombine.low %v614_v0, %v618_v5  ;;  %v661_v5 = vld [vmem:[%s14005_s10 + $0xb10] sm:$0xff] }
 0x3ee   : > { %10674 = vmatpush1.bf16.msra.mxu0 %v12130_v11  ;;  %11166 = vmatpush1.bf16.msra.mxu1 %v12132_v13  ;;  %v625_v11 = vld [vmem:[%s14005_s10 + $0x9f0] sm:$0xff]  ;;  %v622_v13 = vld [vmem:[%s14005_s10 + $0x9d8] sm:$0xff] }
 0x3ef   : > { %10675 = vmatprep.subr.bf16.mxu0 %v12139_v56  ;;  %11167 = vmatprep.subr.bf16.mxu1 %v12141_v14  ;;  %v626_v56 = vld [vmem:[%s14005_s10 + $0x9f8] sm:$0xff]  ;;  %v12178_v14 = vcombine.low %v613_v62, %v617_v48  ;;  %v12187_v18 = vcombine.high %v621_v10, %v625_v11 }
 0x3f0   : > { %10705 = vmatprep.mubr.bf16.mxu0 %v14198_v31  ;;  %11197 = vmatprep.mubr.bf16.mxu1 %v14198_v31  ;;  %v12156_v31 = vcombine.low %v590_v32, %v594_v33  ;;  %v12189_v20 = vcombine.high %v622_v13, %v626_v56  ;;  %v12188_v49 = vcombine.low %v622_v13, %v626_v56  ;;  %v637_v33 = vld [vmem:[%s14005_s10 + $0xa50] sm:$0xff] }
 0x3f1   : > { %v669_v56 = vld [vmem:[%s14005_s10 + $0xb50] sm:$0xff] }
 0x3f2   : > { %10676 = vmatpush1.bf16.msra.mxu0 %v12138_v59  ;;  %11168 = vmatpush1.bf16.msra.mxu1 %v12140_v26  ;;  %v633_v59 = vld [vmem:[%s14005_s10 + $0xa30] sm:$0xff]  ;;  %v630_v26 = vld [vmem:[%s14005_s10 + $0xa18] sm:$0xff] }
 0x3f3   : > { %10677 = vmatprep.subr.bf16.mxu0 %v12147_v28  ;;  %11169 = vmatprep.subr.bf16.mxu1 %v12149_v29  ;;  %v634_v28 = vld [vmem:[%s14005_s10 + $0xa38] sm:$0xff]  ;;  %v12186_v29 = vcombine.low %v621_v10, %v625_v11  ;;  %v12195_v15 = vcombine.high %v629_v23, %v633_v59 }
 0x3f4   : > { %v12197_v32 = vcombine.high %v630_v26, %v634_v28  ;;  %v12196_v37 = vcombine.low %v630_v26, %v634_v28  ;;  %v677_v28 = vld [vmem:[%s14005_s10 + $0xb90] sm:$0xff] }
 0x3f6   : > { %10678 = vmatpush1.bf16.msra.mxu0 %v12146_v22  ;;  %11170 = vmatpush1.bf16.msra.mxu1 %v12148_v34  ;;  %v641_v22 = vld [vmem:[%s14005_s10 + $0xa70] sm:$0xff]  ;;  %v638_v34 = vld [vmem:[%s14005_s10 + $0xa58] sm:$0xff] }
 0x3f7   : > { %10679 = vmatprep.subr.bf16.mxu0 %v12155_v12  ;;  %11171 = vmatprep.subr.bf16.mxu1 %v12157_v35  ;;  %v642_v12 = vld [vmem:[%s14005_s10 + $0xa78] sm:$0xff]  ;;  %v12194_v35 = vcombine.low %v629_v23, %v633_v59  ;;  %v12203_v38 = vcombine.high %v637_v33, %v641_v22 }
 0x3f8   : > { %v12205_v40 = vcombine.high %v638_v34, %v642_v12  ;;  %v12204_v21 = vcombine.low %v638_v34, %v642_v12  ;;  %v685_v12 = vld [vmem:[%s14005_s10 + $0xbd0] sm:$0xff] }
 0x3fa   : > { %10680 = vmatpush1.bf16.msra.mxu0 %v12154_v41  ;;  %11172 = vmatpush1.bf16.msra.mxu1 %v12156_v31  ;;  %v649_v41 = vld [vmem:[%s14005_s10 + $0xab0] sm:$0xff]  ;;  %v646_v31 = vld [vmem:[%s14005_s10 + $0xa98] sm:$0xff] }
 0x3fb   : > { %10681 = vmatprep.subr.bf16.mxu0 %v12163_v42  ;;  %11173 = vmatprep.subr.bf16.mxu1 %v12165_v43  ;;  %v650_v42 = vld [vmem:[%s14005_s10 + $0xab8] sm:$0xff]  ;;  %v12202_v43 = vcombine.low %v637_v33, %v641_v22  ;;  %v12211_v44 = vcombine.high %v645_v57, %v649_v41 }
 0x3fc   : > { %v12213_v47 = vcombine.high %v646_v31, %v650_v42  ;;  %v12212_v62 = vcombine.low %v646_v31, %v650_v42  ;;  %v693_v42 = vld [vmem:[%s14005_s10 + $0xc10] sm:$0xff] }
 0x3fe   : > { %10682 = vmatpush1.bf16.msra.mxu0 %v12162_v19  ;;  %11174 = vmatpush1.bf16.msra.mxu1 %v12164_v54  ;;  %v657_v19 = vld [vmem:[%s14005_s10 + $0xaf0] sm:$0xff]  ;;  %v654_v54 = vld [vmem:[%s14005_s10 + $0xad8] sm:$0xff] }
 0x3ff   : > { %10683 = vmatprep.subr.bf16.mxu0 %v12171_v60  ;;  %11175 = vmatprep.subr.bf16.mxu1 %v12173_v3  ;;  %v658_v60 = vld [vmem:[%s14005_s10 + $0xaf8] sm:$0xff]  ;;  %v12210_v3 = vcombine.low %v645_v57, %v649_v41  ;;  %v12219_v48 = vcombine.high %v653_v52, %v657_v19 }
 0x400   : > { %v12221_v0 = vcombine.high %v654_v54, %v658_v60  ;;  %v12220_v10 = vcombine.low %v654_v54, %v658_v60  ;;  %v701_v60 = vld [vmem:[%s14005_s10 + $0xc50] sm:$0xff] }
 0x402   : > { %10684 = vmatpush1.bf16.msra.mxu0 %v12170_v6  ;;  %11176 = vmatpush1.bf16.msra.mxu1 %v12172_v7  ;;  %v665_v6 = vld [vmem:[%s14005_s10 + $0xb30] sm:$0xff]  ;;  %v662_v7 = vld [vmem:[%s14005_s10 + $0xb18] sm:$0xff] }
 0x403   : > { %10685 = vmatprep.subr.bf16.mxu0 %v12179_v24  ;;  %11177 = vmatprep.subr.bf16.mxu1 %v12181_v8  ;;  %v666_v24 = vld [vmem:[%s14005_s10 + $0xb38] sm:$0xff]  ;;  %v12218_v8 = vcombine.low %v653_v52, %v657_v19  ;;  %v12227_v11 = vcombine.high %v661_v5, %v665_v6 }
 0x404   : > { %v12229_v13 = vcombine.high %v662_v7, %v666_v24  ;;  %v12228_v23 = vcombine.low %v662_v7, %v666_v24  ;;  %v709_v24 = vld [vmem:[%s14005_s10 + $0xc90] sm:$0xff] }
 0x406   : > { %10686 = vmatpush1.bf16.msra.mxu0 %v12178_v14  ;;  %11178 = vmatpush1.bf16.msra.mxu1 %v12180_v17  ;;  %v673_v14 = vld [vmem:[%s14005_s10 + $0xb70] sm:$0xff]  ;;  %v670_v17 = vld [vmem:[%s14005_s10 + $0xb58] sm:$0xff] }
 0x407   : > { %10687 = vmatprep.subr.bf16.mxu0 %v12187_v18  ;;  %11179 = vmatprep.subr.bf16.mxu1 %v12189_v20  ;;  %v674_v18 = vld [vmem:[%s14005_s10 + $0xb78] sm:$0xff]  ;;  %v12226_v20 = vcombine.low %v661_v5, %v665_v6  ;;  %v12235_v59 = vcombine.high %v669_v56, %v673_v14 }
 0x408   : > { %v12237_v26 = vcombine.high %v670_v17, %v674_v18  ;;  %v12236_v33 = vcombine.low %v670_v17, %v674_v18  ;;  %v717_v18 = vld [vmem:[%s14005_s10 + $0xcd0] sm:$0xff] }
 0x40a   : > { %10688 = vmatpush1.bf16.msra.mxu0 %v12186_v29  ;;  %11180 = vmatpush1.bf16.msra.mxu1 %v12188_v49  ;;  %v681_v29 = vld [vmem:[%s14005_s10 + $0xbb0] sm:$0xff]  ;;  %v678_v49 = vld [vmem:[%s14005_s10 + $0xb98] sm:$0xff] }
 0x40b   : > { %10689 = vmatprep.subr.bf16.mxu0 %v12195_v15  ;;  %11181 = vmatprep.subr.bf16.mxu1 %v12197_v32  ;;  %v682_v15 = vld [vmem:[%s14005_s10 + $0xbb8] sm:$0xff]  ;;  %v12234_v32 = vcombine.low %v669_v56, %v673_v14  ;;  %v12243_v22 = vcombine.high %v677_v28, %v681_v29 }
 0x40c   : > { %v12245_v34 = vcombine.high %v678_v49, %v682_v15  ;;  %v12244_v57 = vcombine.low %v678_v49, %v682_v15  ;;  %v725_v15 = vld [vmem:[%s14005_s10 + $0xd10] sm:$0xff] }
 0x40e   : > { %10690 = vmatpush1.bf16.msra.mxu0 %v12194_v35  ;;  %11182 = vmatpush1.bf16.msra.mxu1 %v12196_v37  ;;  %v689_v35 = vld [vmem:[%s14005_s10 + $0xbf0] sm:$0xff]  ;;  %v686_v37 = vld [vmem:[%s14005_s10 + $0xbd8] sm:$0xff] }
 0x40f   : > { %10691 = vmatprep.subr.bf16.mxu0 %v12203_v38  ;;  %11183 = vmatprep.subr.bf16.mxu1 %v12205_v40  ;;  %v690_v38 = vld [vmem:[%s14005_s10 + $0xbf8] sm:$0xff]  ;;  %v12242_v40 = vcombine.low %v677_v28, %v681_v29  ;;  %v12251_v41 = vcombine.high %v685_v12, %v689_v35 }
 0x410   : > { %v12253_v31 = vcombine.high %v686_v37, %v690_v38  ;;  %v12252_v52 = vcombine.low %v686_v37, %v690_v38  ;;  %v733_v38 = vld [vmem:[%s14005_s10 + $0xd50] sm:$0xff] }
 0x412   : > { %10692 = vmatpush1.bf16.msra.mxu0 %v12202_v43  ;;  %11184 = vmatpush1.bf16.msra.mxu1 %v12204_v21  ;;  %v697_v43 = vld [vmem:[%s14005_s10 + $0xc30] sm:$0xff]  ;;  %v694_v21 = vld [vmem:[%s14005_s10 + $0xc18] sm:$0xff] }
 0x413   : > { %10693 = vmatprep.subr.bf16.mxu0 %v12211_v44  ;;  %11185 = vmatprep.subr.bf16.mxu1 %v12213_v47  ;;  %v698_v44 = vld [vmem:[%s14005_s10 + $0xc38] sm:$0xff]  ;;  %v12250_v47 = vcombine.low %v685_v12, %v689_v35  ;;  %v12259_v19 = vcombine.high %v693_v42, %v697_v43 }
 0x414   : > { %v12261_v54 = vcombine.high %v694_v21, %v698_v44  ;;  %v12260_v5 = vcombine.low %v694_v21, %v698_v44 }
 0x416   : > { %10694 = vmatpush1.bf16.msra.mxu0 %v12210_v3  ;;  %11186 = vmatpush1.bf16.msra.mxu1 %v12212_v62  ;;  %v705_v3 = vld [vmem:[%s14005_s10 + $0xc70] sm:$0xff]  ;;  %v702_v62 = vld [vmem:[%s14005_s10 + $0xc58] sm:$0xff] }
 0x417   : > { %10695 = vmatprep.subr.bf16.mxu0 %v12219_v48  ;;  %11187 = vmatprep.subr.bf16.mxu1 %v12221_v0  ;;  %v706_v48 = vld [vmem:[%s14005_s10 + $0xc78] sm:$0xff]  ;;  %v12258_v0 = vcombine.low %v693_v42, %v697_v43  ;;  %v12267_v6 = vcombine.high %v701_v60, %v705_v3  ;;  %v11575_v43 = vld [vmem:[%s14015_s9] sm:$0xff] }
 0x418   : > { %v12269_v7 = vcombine.high %v702_v62, %v706_v48  ;;  %v12268_v56 = vcombine.low %v702_v62, %v706_v48  ;;  %v745_v62 = vld [vmem:[%s14005_s10 + $0xdb0] sm:$0xff] }
 0x41a   : > { %10696 = vmatpush1.bf16.msra.mxu0 %v12218_v8  ;;  %11188 = vmatpush1.bf16.msra.mxu1 %v12220_v10  ;;  %v713_v8 = vld [vmem:[%s14005_s10 + $0xcb0] sm:$0xff]  ;;  %v710_v10 = vld [vmem:[%s14005_s10 + $0xc98] sm:$0xff] }
 0x41b   : > { %10697 = vmatprep.subr.bf16.mxu0 %v12227_v11  ;;  %11189 = vmatprep.subr.bf16.mxu1 %v12229_v13  ;;  %v714_v11 = vld [vmem:[%s14005_s10 + $0xcb8] sm:$0xff]  ;;  %v12266_v13 = vcombine.low %v701_v60, %v705_v3  ;;  %v12275_v14 = vcombine.high %v709_v24, %v713_v8  ;;  %v741_v3 = vld [vmem:[%s14005_s10 + $0xd90] sm:$0xff] }
 0x41c   : > { %v12277_v17 = vcombine.high %v710_v10, %v714_v11  ;;  %v12276_v28 = vcombine.low %v710_v10, %v714_v11 }
 0x41e   : > { %10698 = vmatpush1.bf16.msra.mxu0 %v12226_v20  ;;  %11190 = vmatpush1.bf16.msra.mxu1 %v12228_v23  ;;  %v721_v20 = vld [vmem:[%s14005_s10 + $0xcf0] sm:$0xff]  ;;  %v718_v23 = vld [vmem:[%s14005_s10 + $0xcd8] sm:$0xff] }
 0x41f   : > { %10699 = vmatprep.subr.bf16.mxu0 %v12235_v59  ;;  %11191 = vmatprep.subr.bf16.mxu1 %v12237_v26  ;;  %v722_v59 = vld [vmem:[%s14005_s10 + $0xcf8] sm:$0xff]  ;;  %v11577_v26 = vlaneseq  ;;  %v12283_v29 = vcombine.high %v717_v18, %v721_v20 }
 0x420   : > { %v12285_v49 = vcombine.high %v718_v23, %v722_v59  ;;  %v12284_v12 = vcombine.low %v718_v23, %v722_v59  ;;  %v753_v23 = vld [vmem:[%s14005_s10 + $0xdf0] sm:$0xff] }
 0x422   : > { %10700 = vmatpush1.bf16.msra.mxu0 %v12234_v32  ;;  %11192 = vmatpush1.bf16.msra.mxu1 %v12236_v33  ;;  %v729_v32 = vld [vmem:[%s14005_s10 + $0xd30] sm:$0xff]  ;;  %v726_v33 = vld [vmem:[%s14005_s10 + $0xd18] sm:$0xff] }
 0x423   : > { %10701 = vmatprep.subr.bf16.mxu0 %v12243_v22  ;;  %11193 = vmatprep.subr.bf16.mxu1 %v12245_v34  ;;  %v730_v22 = vld [vmem:[%s14005_s10 + $0xd38] sm:$0xff]  ;;  %v15219_v34 = vshrl.u32 %v11577_v26, 7  ;;  %v12291_v35 = vcombine.high %v725_v15, %v729_v32  ;;  %v12290_v42 = vcombine.low %v725_v15, %v729_v32 }
 0x424   : > { %v12293_v37 = vcombine.high %v726_v33, %v730_v22 }
 0x425   : > { %v11587_v21 = vsub.s32 2, %v15219_v34  ;;  %v11583_v44 = vsub.s32 1, %v15219_v34 }
 0x426   : > { %10702 = vmatpush1.bf16.msra.mxu0 %v12242_v40  ;;  %11194 = vmatpush1.bf16.msra.mxu1 %v12244_v57  ;;  %v737_v40 = vld [vmem:[%s14005_s10 + $0xd70] sm:$0xff]  ;;  %v11579_v57 = vsub.s32 0, %v15219_v34 }
 0x427   : > { %10703 = vmatprep.subr.bf16.mxu0 %v12251_v41  ;;  %11195 = vmatprep.subr.bf16.mxu1 %v12253_v31  ;;  %v734_v41 = vld [vmem:[%s14005_s10 + $0xd58] sm:$0xff] }
 0x428   : > { %v738_v31 = vld [vmem:[%s14005_s10 + $0xd78] sm:$0xff]  ;;  %v11580_v48 = vrot.slane %v11575_v43, %v11579_v57 }
 0x429   : > { %v12301_v60 = vcombine.high %v734_v41, %v738_v31  ;;  %v12300_v11 = vcombine.low %v734_v41, %v738_v31 }
 0x42a   : > { %10704 = vmatpush1.bf16.msra.mxu0 %v12250_v47  ;;  %11196 = vmatpush1.bf16.msra.mxu1 %v12252_v52  ;;  %v11591_v47 = vsub.s32 3, %v15219_v34  ;;  %v12292_v52 = vcombine.low %v726_v33, %v730_v22 }
 0x42b   : > { %10714 = vmatprep.subr.bf16.mxu0 %v12259_v19  ;;  %11206 = vmatprep.subr.bf16.mxu1 %v12261_v54  ;;  %v12299_v19 = vcombine.high %v733_v38, %v737_v40  ;;  %v11625_v54 = vld [vmem:[%s15233_s8] sm:$0xff] }
 0x42c   : > { %v11630_v10 = vrot.slane %v11625_v54, %v11579_v57 }
 0x42d   : > { %10706 = vmatmul.mubr.bf16.vlgmr.msra.gmra.mrb[4].mxu0 %v14266_v36  ;;  %11198 = vmatmul.mubr.bf16.vlgmr.msra.gmra.mrb[4].mxu1 %v14266_v36  ;;  %v12274_v36 = vcombine.low %v709_v24, %v713_v8  ;;  %v11592_v24 = vrot.slane %v11575_v43, %v11591_v47  ;;  %v12298_v8 = vcombine.low %v733_v38, %v737_v40 }
 0x42e   : > { %10715 = vmatpush1.bf16.msra.mxu0 %v12258_v0  ;;  %11207 = vmatpush1.bf16.msra.mxu1 %v12260_v5  ;;  %v742_v0 = vld [vmem:[%s14005_s10 + $0xd98] sm:$0xff] }
 0x42f   : > { %10716 = vmatprep.subr.bf16.mxu0 %v12267_v6  ;;  %11208 = vmatprep.subr.bf16.mxu1 %v12269_v7  ;;  %v746_v5 = vld [vmem:[%s14005_s10 + $0xdb8] sm:$0xff]  ;;  %v11588_v6 = vrot.slane %v11575_v43, %v11587_v21  ;;  %v11584_v7 = vrot.slane %v11575_v43, %v11583_v44 }
 0x430   : > { %10746 = vmatprep.mubr.bf16.mxu0 %v14279_v45  ;;  %11238 = vmatprep.mubr.bf16.mxu1 %v14279_v45  ;;  %v12282_v45 = vcombine.low %v717_v18, %v721_v20  ;;  %v12309_v18 = vcombine.high %v742_v0, %v746_v5  ;;  %v749_v20 = vld [vmem:[%s14005_s10 + $0xdd0] sm:$0xff] }
 0x431   : > { %v12315_v57 = vcombine.high %v749_v20, %v753_v23 }
 0x432   : > { %10717 = vmatpush1.bf16.msra.mxu0 %v12266_v13  ;;  %11209 = vmatpush1.bf16.msra.mxu1 %v12268_v56  ;;  %v12307_v13 = vcombine.high %v741_v3, %v745_v62 }
 0x433   : > { %10718 = vmatprep.subr.bf16.mxu0 %v12275_v14  ;;  %11210 = vmatprep.subr.bf16.mxu1 %v12277_v17  ;;  %v11638_v14 = vrot.slane %v11625_v54, %v11587_v21  ;;  %v11634_v17 = vrot.slane %v11625_v54, %v11583_v44  ;;  %v757_v21 = vld [vmem:[%s14005_s10 + $0xe10] sm:$0xff] }
 0x434   : > { %v761_v44 = vld [vmem:[%s14005_s10 + $0xe30] sm:$0xff] }
 0x436   : > { %10719 = vmatpush1.bf16.msra.mxu0 %v12274_v36  ;;  %11211 = vmatpush1.bf16.msra.mxu1 %v12276_v28  ;;  %v11642_v28 = vrot.slane %v11625_v54, %v11591_v47  ;;  %v762_v54 = vld [vmem:[%s14005_s10 + $0xe38] sm:$0xff] }
 0x437   : > { %10720 = vmatprep.subr.bf16.mxu0 %v12283_v29  ;;  %11212 = vmatprep.subr.bf16.mxu1 %v12285_v49  ;;  %v750_v29 = vld [vmem:[%s14005_s10 + $0xdd8] sm:$0xff] }
 0x438   : > { %v754_v49 = vld [vmem:[%s14005_s10 + $0xdf8] sm:$0xff] }
 0x439   : > { %v12317_v43 = vcombine.high %v750_v29, %v754_v49 }
 0x43a   : > { %10721 = vmatpush1.bf16.msra.mxu0 %v12282_v45  ;;  %11213 = vmatpush1.bf16.msra.mxu1 %v12284_v12  ;;  %v12306_v45 = vcombine.low %v741_v3, %v745_v62  ;;  %v12308_v12 = vcombine.low %v742_v0, %v746_v5  ;;  %v12314_v62 = vcombine.low %v749_v20, %v753_v23  ;;  %v773_v20 = vld [vmem:[%s14005_s10 + $0xe90] sm:$0xff] }
 0x43b   : > { %10722 = vmatprep.subr.bf16.mxu0 %v12291_v35  ;;  %11214 = vmatprep.subr.bf16.mxu1 %v12293_v37  ;;  %v12316_v0 = vcombine.low %v750_v29, %v754_v49  ;;  %v12323_v5 = vcombine.high %v757_v21, %v761_v44  ;;  %v777_v23 = vld [vmem:[%s14005_s10 + $0xeb0] sm:$0xff] }
 0x43c   : > { %v12339_v29 = vcombine.high %v773_v20, %v777_v23 }
 0x43e   : > { %10723 = vmatpush1.bf16.msra.mxu0 %v12290_v42  ;;  %11215 = vmatpush1.bf16.msra.mxu1 %v12292_v52 }
 0x43f   : > { %10724 = vmatprep.subr.bf16.mxu0 %v12299_v19  ;;  %11216 = vmatprep.subr.bf16.mxu1 %v12301_v60  ;;  %v758_v19 = vld [vmem:[%s14005_s10 + $0xe18] sm:$0xff] }
 0x440   : > { %v10092_v56 = vpop.f32.mrb[0].mxu0  ;;  %v10584_v26 = vpop.f32.mrb[0].mxu1 }
 0x441   : > { %v11617_v59 = vmul.f32 %v11580_v48, %v10092_v56  ;;  %v10094_v36 = vpop.f32.mrb[1].mxu0  ;;  %v11619_v15 = vmul.f32 %v11588_v6, %v10584_v26  ;;  %v10586_v33 = vpop.f32.mrb[1].mxu1  ;;  %v12322_v56 = vcombine.low %v757_v21, %v761_v44  ;;  %v778_v26 = vld [vmem:[%s14005_s10 + $0xeb8] sm:$0xff]  ;;  %v797_v44 = vld [vmem:[%s14005_s10 + $0xf50] sm:$0xff] }
 0x442   : > { %v11618_v32 = vmul.f32 %v11584_v7, %v10094_v36  ;;  %v10096_v22 = vpop.f32.mrb[2].mxu0  ;;  %10725 = vmatpush1.bf16.msra.mxu0 %v12298_v8  ;;  %v11620_v37 = vmul.f32 %v11592_v24, %v10586_v33  ;;  %v10588_v38 = vpop.f32.mrb[2].mxu1  ;;  %11217 = vmatpush1.bf16.msra.mxu1 %v12300_v11  ;;  %v12325_v7 = vcombine.high %v758_v19, %v762_v54  ;;  %v765_v24 = vld [vmem:[%s14005_s10 + $0xe50] sm:$0xff]  ;;  %v766_v11 = vld [vmem:[%s14005_s10 + $0xe58] sm:$0xff] }
 0x443   : > { %v11667_v35 = vadd.f32 %v11630_v10, %v11617_v59  ;;  %v10097_v40 = vpop.f32.mrb[3].mxu0  ;;  %10726 = vmatprep.subr.bf16.mxu0 %v12307_v13  ;;  %v11669_v41 = vadd.f32 %v11638_v14, %v11619_v15  ;;  %v10589_v42 = vpop.f32.mrb[3].mxu1  ;;  %11218 = vmatprep.subr.bf16.mxu1 %v12309_v18  ;;  %v769_v8 = vld [vmem:[%s14005_s10 + $0xe70] sm:$0xff]  ;;  %v770_v13 = vld [vmem:[%s14005_s10 + $0xe78] sm:$0xff]  ;;  %v12324_v14 = vcombine.low %v758_v19, %v762_v54 }
 0x444   : > { %v11668_v31 = vadd.f32 %v11634_v17, %v11618_v32  ;;  %v11670_v52 = vadd.f32 %v11642_v28, %v11620_v37  ;;  %v12331_v17 = vcombine.high %v765_v24, %v769_v8  ;;  %v12333_v18 = vcombine.high %v766_v11, %v770_v13  ;;  %v774_v59 = vld [vmem:[%s14005_s10 + $0xe98] sm:$0xff]  ;;  %v781_v15 = vld [vmem:[%s14005_s10 + $0xed0] sm:$0xff] }
 0x445   : > { %v11675_v47 = vmax.f32 %v11667_v35, 0.0  ;;  %v11677_v60 = vmax.f32 %v11669_v41, 0.0  ;;  %v12330_v36 = vcombine.low %v765_v24, %v769_v8  ;;  %v12332_v28 = vcombine.low %v766_v11, %v770_v13  ;;  %v785_v32 = vld [vmem:[%s14005_s10 + $0xef0] sm:$0xff]  ;;  %v782_v33 = vld [vmem:[%s14005_s10 + $0xed8] sm:$0xff] }
 0x446   : > { %v11676_v3 = vmax.f32 %v11668_v31, 0.0  ;;  %10727 = vmatpush1.bf16.msra.mxu0 %v12306_v45  ;;  %v11678_v48 = vmax.f32 %v11670_v52, 0.0  ;;  %11219 = vmatpush1.bf16.msra.mxu1 %v12308_v12  ;;  %v12341_v49 = vcombine.high %v774_v59, %v778_v26  ;;  %v786_v22 = vld [vmem:[%s14005_s10 + $0xef8] sm:$0xff]  ;;  %v12338_v45 = vcombine.low %v773_v20, %v777_v23  ;;  %v789_v38 = vld [vmem:[%s14005_s10 + $0xf10] sm:$0xff] }
 0x447   : > { %10728 = vmatprep.subr.bf16.mxu0 %v12315_v57  ;;  %11220 = vmatprep.subr.bf16.mxu1 %v12317_v43  ;;  %v12340_v12 = vcombine.low %v774_v59, %v778_v26  ;;  %v12347_v35 = vcombine.high %v781_v15, %v785_v32  ;;  %v12349_v37 = vcombine.high %v782_v33, %v786_v22  ;;  %v793_v40 = vld [vmem:[%s14005_s10 + $0xf30] sm:$0xff]  ;;  %v790_v57 = vld [vmem:[%s14005_s10 + $0xf18] sm:$0xff] }
 0x448   : > { %v13415_v6 = vpack.c.bf16 %v11676_v3, %v11675_v47  ;;  %v13416_v10 = vpack.c.bf16 %v11678_v48, %v11677_v60  ;;  %v794_v41 = vld [vmem:[%s14005_s10 + $0xf38] sm:$0xff]  ;;  %v12346_v31 = vcombine.low %v781_v15, %v785_v32  ;;  %v12348_v42 = vcombine.low %v782_v33, %v786_v22  ;;  %v801_v47 = vld [vmem:[%s14005_s10 + $0xf70] sm:$0xff] }
 0x449   : > { %v12355_v43 = vcombine.high %v789_v38, %v793_v40  ;;  %v12357_v21 = vcombine.high %v790_v57, %v794_v41  ;;  %v798_v52 = vld [vmem:[%s14005_s10 + $0xf58] sm:$0xff]  ;;  %v12354_v54 = vcombine.low %v789_v38, %v793_v40  ;;  %v12356_v60 = vcombine.low %v790_v57, %v794_v41  ;;  %v805_v48 = vld [vmem:[%s14005_s10 + $0xf90] sm:$0xff] }
 0x44a   : > { %11715 = vst [vmem:[%s15264_s30] sm:$0xff] %v13415_v6  ;;  %10729 = vmatpush1.bf16.msra.mxu0 %v12314_v62  ;;  %11716 = vst [vmem:[%s15264_s30 + $0x8] sm:$0xff] %v13416_v10  ;;  %11221 = vmatpush1.bf16.msra.mxu1 %v12316_v0  ;;  %v802_v19 = vld [vmem:[%s14005_s10 + $0xf78] sm:$0xff]  ;;  %v12363_v3 = vcombine.high %v797_v44, %v801_v47  ;;  %v809_v0 = vld [vmem:[%s14005_s10 + $0xfb0] sm:$0xff] }
 0x44b   : > { %10730 = vmatprep.subr.bf16.mxu0 %v12323_v5  ;;  %11222 = vmatprep.subr.bf16.mxu1 %v12325_v7  ;;  %v12365_v62 = vcombine.high %v798_v52, %v802_v19  ;;  %v806_v5 = vld [vmem:[%s14005_s10 + $0xf98] sm:$0xff]  ;;  %v12362_v7 = vcombine.low %v797_v44, %v801_v47  ;;  %v12364_v24 = vcombine.low %v798_v52, %v802_v19  ;;  %v813_v11 = vld [vmem:[%s14005_s10 + $0xfd0] sm:$0xff] }
 0x44c   : > { %v810_v6 = vld [vmem:[%s14005_s10 + $0xfb8] sm:$0xff]  ;;  %v12371_v8 = vcombine.high %v805_v48, %v809_v0  ;;  %v817_v13 = vld [vmem:[%s14005_s10 + $0xff0] sm:$0xff] }
 0x44d   : > { %v12373_v10 = vcombine.high %v806_v5, %v810_v6  ;;  %v12379_v20 = vcombine.high %v813_v11, %v817_v13  ;;  %v821_v59 = vld [vmem:[%s14005_s10 + $0x1010] sm:$0xff] }
 0x44e   : > { %10731 = vmatpush1.bf16.msra.mxu0 %v12322_v56  ;;  %11223 = vmatpush1.bf16.msra.mxu1 %v12324_v14  ;;  %v814_v56 = vld [vmem:[%s14005_s10 + $0xfd8] sm:$0xff]  ;;  %v825_v26 = vld [vmem:[%s14005_s10 + $0x1030] sm:$0xff] }
 0x44f   : > { %10732 = vmatprep.subr.bf16.mxu0 %v12331_v17  ;;  %11224 = vmatprep.subr.bf16.mxu1 %v12333_v18  ;;  %v818_v14 = vld [vmem:[%s14005_s10 + $0xff8] sm:$0xff]  ;;  %v12370_v17 = vcombine.low %v805_v48, %v809_v0  ;;  %v12372_v18 = vcombine.low %v806_v5, %v810_v6  ;;  %v12387_v15 = vcombine.high %v821_v59, %v825_v26  ;;  %v829_v33 = vld [vmem:[%s14005_s10 + $0x1050] sm:$0xff] }
 0x450   : > { %v12381_v23 = vcombine.high %v814_v56, %v818_v14  ;;  %v833_v22 = vld [vmem:[%s14005_s10 + $0x1070] sm:$0xff]  ;;  %v854_v6 = vld [vmem:[%s14005_s10 + $0x1118] sm:$0xff] }
 0x451   : > { %v12395_v38 = vcombine.high %v829_v33, %v833_v22  ;;  %v837_v57 = vld [vmem:[%s14005_s10 + $0x1090] sm:$0xff] }
 0x452   : > { %10733 = vmatpush1.bf16.msra.mxu0 %v12330_v36  ;;  %11225 = vmatpush1.bf16.msra.mxu1 %v12332_v28  ;;  %v822_v36 = vld [vmem:[%s14005_s10 + $0x1018] sm:$0xff]  ;;  %v841_v41 = vld [vmem:[%s14005_s10 + $0x10b0] sm:$0xff] }
 0x453   : > { %10734 = vmatprep.subr.bf16.mxu0 %v12339_v29  ;;  %11226 = vmatprep.subr.bf16.mxu1 %v12341_v49  ;;  %v826_v28 = vld [vmem:[%s14005_s10 + $0x1038] sm:$0xff]  ;;  %v12378_v29 = vcombine.low %v813_v11, %v817_v13  ;;  %v12380_v49 = vcombine.low %v814_v56, %v818_v14  ;;  %v12403_v44 = vcombine.high %v837_v57, %v841_v41  ;;  %v845_v52 = vld [vmem:[%s14005_s10 + $0x10d0] sm:$0xff] }
 0x454   : > { %v12389_v32 = vcombine.high %v822_v36, %v826_v28  ;;  %v849_v19 = vld [vmem:[%s14005_s10 + $0x10f0] sm:$0xff]  ;;  %v862_v56 = vld [vmem:[%s14005_s10 + $0x1158] sm:$0xff] }
 0x455   : > { %v853_v0 = vld [vmem:[%s14005_s10 + $0x1110] sm:$0xff]  ;;  %v866_v14 = vld [vmem:[%s14005_s10 + $0x1178] sm:$0xff] }
 0x456   : > { %10735 = vmatpush1.bf16.msra.mxu0 %v12338_v45  ;;  %11227 = vmatpush1.bf16.msra.mxu1 %v12340_v12  ;;  %v830_v45 = vld [vmem:[%s14005_s10 + $0x1058] sm:$0xff]  ;;  %v857_v5 = vld [vmem:[%s14005_s10 + $0x1130] sm:$0xff] }
 0x457   : > { %10736 = vmatprep.subr.bf16.mxu0 %v12347_v35  ;;  %11228 = vmatprep.subr.bf16.mxu1 %v12349_v37  ;;  %v834_v12 = vld [vmem:[%s14005_s10 + $0x1078] sm:$0xff]  ;;  %v12386_v35 = vcombine.low %v821_v59, %v825_v26  ;;  %v12388_v37 = vcombine.low %v822_v36, %v826_v28  ;;  %v861_v11 = vld [vmem:[%s14005_s10 + $0x1150] sm:$0xff] }
 0x458   : > { %v12397_v40 = vcombine.high %v830_v45, %v834_v12  ;;  %v865_v13 = vld [vmem:[%s14005_s10 + $0x1170] sm:$0xff]  ;;  %v870_v36 = vld [vmem:[%s14005_s10 + $0x1198] sm:$0xff] }
 0x459   : > { %v869_v59 = vld [vmem:[%s14005_s10 + $0x1190] sm:$0xff]  ;;  %v874_v28 = vld [vmem:[%s14005_s10 + $0x11b8] sm:$0xff] }
 0x45a   : > { %10737 = vmatpush1.bf16.msra.mxu0 %v12346_v31  ;;  %11229 = vmatpush1.bf16.msra.mxu1 %v12348_v42  ;;  %v838_v31 = vld [vmem:[%s14005_s10 + $0x1098] sm:$0xff]  ;;  %v873_v26 = vld [vmem:[%s14005_s10 + $0x11b0] sm:$0xff] }
 0x45b   : > { %10738 = vmatprep.subr.bf16.mxu0 %v12355_v43  ;;  %11230 = vmatprep.subr.bf16.mxu1 %v12357_v21  ;;  %v842_v42 = vld [vmem:[%s14005_s10 + $0x10b8] sm:$0xff]  ;;  %v12394_v43 = vcombine.low %v829_v33, %v833_v22  ;;  %v12396_v21 = vcombine.low %v830_v45, %v834_v12  ;;  %v877_v33 = vld [vmem:[%s14005_s10 + $0x11d0] sm:$0xff] }
 0x45c   : > { %v12405_v47 = vcombine.high %v838_v31, %v842_v42  ;;  %v881_v22 = vld [vmem:[%s14005_s10 + $0x11f0] sm:$0xff]  ;;  %v878_v45 = vld [vmem:[%s14005_s10 + $0x11d8] sm:$0xff] }
 0x45d   : > { %v882_v12 = vld [vmem:[%s14005_s10 + $0x11f8] sm:$0xff] }
 0x45e   : > { %10739 = vmatpush1.bf16.msra.mxu0 %v12354_v54  ;;  %11231 = vmatpush1.bf16.msra.mxu1 %v12356_v60  ;;  %v846_v54 = vld [vmem:[%s14005_s10 + $0x10d8] sm:$0xff] }
 0x45f   : > { %10740 = vmatprep.subr.bf16.mxu0 %v12363_v3  ;;  %11232 = vmatprep.subr.bf16.mxu1 %v12365_v62  ;;  %v850_v60 = vld [vmem:[%s14005_s10 + $0x10f8] sm:$0xff]  ;;  %v12404_v3 = vcombine.low %v838_v31, %v842_v42  ;;  %v12411_v62 = vcombine.high %v845_v52, %v849_v19 }
 0x460   : > { %v12413_v48 = vcombine.high %v846_v54, %v850_v60  ;;  %v886_v31 = vld [vmem:[%s14005_s10 + $0x1218] sm:$0xff] }
 0x461   : > { %v890_v42 = vld [vmem:[%s14005_s10 + $0x1238] sm:$0xff] }
 0x462   : > { %10741 = vmatpush1.bf16.msra.mxu0 %v12362_v7  ;;  %11233 = vmatpush1.bf16.msra.mxu1 %v12364_v24  ;;  %v858_v7 = vld [vmem:[%s14005_s10 + $0x1138] sm:$0xff]  ;;  %v12410_v24 = vcombine.low %v845_v52, %v849_v19  ;;  %v893_v52 = vld [vmem:[%s14005_s10 + $0x1250] sm:$0xff] }
 0x463   : > { %10742 = vmatprep.subr.bf16.mxu0 %v12371_v8  ;;  %11234 = vmatprep.subr.bf16.mxu1 %v12373_v10  ;;  %v12419_v8 = vcombine.high %v853_v0, %v857_v5  ;;  %v12421_v10 = vcombine.high %v854_v6, %v858_v7  ;;  %v897_v19 = vld [vmem:[%s14005_s10 + $0x1270] sm:$0xff] }
 0x466   : > { %10743 = vmatpush1.bf16.msra.mxu0 %v12370_v17  ;;  %11235 = vmatpush1.bf16.msra.mxu1 %v12372_v18  ;;  %v12418_v17 = vcombine.low %v853_v0, %v857_v5  ;;  %v12420_v18 = vcombine.low %v854_v6, %v858_v7  ;;  %v901_v0 = vld [vmem:[%s14005_s10 + $0x1290] sm:$0xff]  ;;  %v902_v6 = vld [vmem:[%s14005_s10 + $0x1298] sm:$0xff] }
 0x467   : > { %10744 = vmatprep.subr.bf16.mxu0 %v12379_v20  ;;  %11236 = vmatprep.subr.bf16.mxu1 %v12381_v23  ;;  %v12427_v20 = vcombine.high %v861_v11, %v865_v13  ;;  %v12429_v23 = vcombine.high %v862_v56, %v866_v14  ;;  %v905_v5 = vld [vmem:[%s14005_s10 + $0x12b0] sm:$0xff]  ;;  %v906_v7 = vld [vmem:[%s14005_s10 + $0x12b8] sm:$0xff] }
 0x46a   : > { %10745 = vmatpush1.bf16.msra.mxu0 %v12378_v29  ;;  %11237 = vmatpush1.bf16.msra.mxu1 %v12380_v49  ;;  %v12426_v29 = vcombine.low %v861_v11, %v865_v13  ;;  %v12428_v49 = vcombine.low %v862_v56, %v866_v14  ;;  %v909_v11 = vld [vmem:[%s14005_s10 + $0x12d0] sm:$0xff]  ;;  %v910_v56 = vld [vmem:[%s14005_s10 + $0x12d8] sm:$0xff] }
 0x46b   : > { %10755 = vmatprep.subr.bf16.mxu0 %v12387_v15  ;;  %11247 = vmatprep.subr.bf16.mxu1 %v12389_v32  ;;  %v12435_v15 = vcombine.high %v869_v59, %v873_v26  ;;  %v12437_v32 = vcombine.high %v870_v36, %v874_v28  ;;  %v913_v13 = vld [vmem:[%s14005_s10 + $0x12f0] sm:$0xff]  ;;  %v914_v14 = vld [vmem:[%s14005_s10 + $0x12f8] sm:$0xff] }
 0x46d   : > { %10747 = vmatmul.mubr.bf16.vlgmr.msra.gmra.mrb[4].mxu0 %v14347_v55  ;;  %11239 = vmatmul.mubr.bf16.vlgmr.msra.gmra.mrb[4].mxu1 %v14347_v55  ;;  %v12402_v55 = vcombine.low %v837_v57, %v841_v41  ;;  %v885_v57 = vld [vmem:[%s14005_s10 + $0x1210] sm:$0xff] }
 0x46e   : > { %10756 = vmatpush1.bf16.msra.mxu0 %v12386_v35  ;;  %11248 = vmatpush1.bf16.msra.mxu1 %v12388_v37  ;;  %v12434_v35 = vcombine.low %v869_v59, %v873_v26  ;;  %v12436_v37 = vcombine.low %v870_v36, %v874_v28  ;;  %v889_v41 = vld [vmem:[%s14005_s10 + $0x1230] sm:$0xff]  ;;  %v918_v36 = vld [vmem:[%s14005_s10 + $0x1318] sm:$0xff] }
 0x46f   : > { %10757 = vmatprep.subr.bf16.mxu0 %v12395_v38  ;;  %11249 = vmatprep.subr.bf16.mxu1 %v12397_v40  ;;  %v12443_v38 = vcombine.high %v877_v33, %v881_v22  ;;  %v12445_v40 = vcombine.high %v878_v45, %v882_v12  ;;  %v917_v59 = vld [vmem:[%s14005_s10 + $0x1310] sm:$0xff]  ;;  %v922_v28 = vld [vmem:[%s14005_s10 + $0x1338] sm:$0xff] }
 0x470   : > { %10787 = vmatprep.mubr.bf16.mxu0 %v14360_v1  ;;  %11279 = vmatprep.mubr.bf16.mxu1 %v14360_v1  ;;  %v12412_v1 = vcombine.low %v846_v54, %v850_v60  ;;  %v894_v54 = vld [vmem:[%s14005_s10 + $0x1258] sm:$0xff]  ;;  %v921_v26 = vld [vmem:[%s14005_s10 + $0x1330] sm:$0xff] }
 0x471   : > { %v898_v60 = vld [vmem:[%s14005_s10 + $0x1278] sm:$0xff] }
 0x472   : > { %10758 = vmatpush1.bf16.msra.mxu0 %v12394_v43  ;;  %11250 = vmatpush1.bf16.msra.mxu1 %v12396_v21  ;;  %v12442_v43 = vcombine.low %v877_v33, %v881_v22  ;;  %v12444_v21 = vcombine.low %v878_v45, %v882_v12  ;;  %v925_v33 = vld [vmem:[%s14005_s10 + $0x1350] sm:$0xff]  ;;  %v926_v45 = vld [vmem:[%s14005_s10 + $0x1358] sm:$0xff] }
 0x473   : > { %10759 = vmatprep.subr.bf16.mxu0 %v12403_v44  ;;  %11251 = vmatprep.subr.bf16.mxu1 %v12405_v47  ;;  %v12451_v44 = vcombine.high %v885_v57, %v889_v41  ;;  %v12453_v47 = vcombine.high %v886_v31, %v890_v42  ;;  %v929_v22 = vld [vmem:[%s14005_s10 + $0x1370] sm:$0xff]  ;;  %v930_v12 = vld [vmem:[%s14005_s10 + $0x1378] sm:$0xff] }
 0x476   : > { %10760 = vmatpush1.bf16.msra.mxu0 %v12402_v55  ;;  %11252 = vmatpush1.bf16.msra.mxu1 %v12404_v3  ;;  %v12450_v55 = vcombine.low %v885_v57, %v889_v41  ;;  %v12452_v3 = vcombine.low %v886_v31, %v890_v42  ;;  %v933_v57 = vld [vmem:[%s14005_s10 + $0x1390] sm:$0xff]  ;;  %v934_v31 = vld [vmem:[%s14005_s10 + $0x1398] sm:$0xff] }
 0x477   : > { %10761 = vmatprep.subr.bf16.mxu0 %v12411_v62  ;;  %11253 = vmatprep.subr.bf16.mxu1 %v12413_v48  ;;  %v12459_v62 = vcombine.high %v893_v52, %v897_v19  ;;  %v12461_v48 = vcombine.high %v894_v54, %v898_v60  ;;  %v937_v41 = vld [vmem:[%s14005_s10 + $0x13b0] sm:$0xff]  ;;  %v938_v42 = vld [vmem:[%s14005_s10 + $0x13b8] sm:$0xff] }
 0x47a   : > { %10762 = vmatpush1.bf16.msra.mxu0 %v12410_v24  ;;  %11254 = vmatpush1.bf16.msra.mxu1 %v12412_v1  ;;  %v12458_v24 = vcombine.low %v893_v52, %v897_v19  ;;  %v12460_v1 = vcombine.low %v894_v54, %v898_v60  ;;  %v941_v52 = vld [vmem:[%s14005_s10 + $0x13d0] sm:$0xff]  ;;  %v942_v54 = vld [vmem:[%s14005_s10 + $0x13d8] sm:$0xff] }
 0x47b   : > { %10763 = vmatprep.subr.bf16.mxu0 %v12419_v8  ;;  %11255 = vmatprep.subr.bf16.mxu1 %v12421_v10  ;;  %v12467_v8 = vcombine.high %v901_v0, %v905_v5  ;;  %v12469_v10 = vcombine.high %v902_v6, %v906_v7  ;;  %v945_v19 = vld [vmem:[%s14005_s10 + $0x13f0] sm:$0xff]  ;;  %v946_v60 = vld [vmem:[%s14005_s10 + $0x13f8] sm:$0xff] }
 0x47e   : > { %10764 = vmatpush1.bf16.msra.mxu0 %v12418_v17  ;;  %11256 = vmatpush1.bf16.msra.mxu1 %v12420_v18  ;;  %v12466_v17 = vcombine.low %v901_v0, %v905_v5  ;;  %v12468_v18 = vcombine.low %v902_v6, %v906_v7  ;;  %v949_v0 = vld [vmem:[%s14005_s10 + $0x1410] sm:$0xff]  ;;  %v950_v6 = vld [vmem:[%s14005_s10 + $0x1418] sm:$0xff] }
 0x47f   : > { %10765 = vmatprep.subr.bf16.mxu0 %v12427_v20  ;;  %11257 = vmatprep.subr.bf16.mxu1 %v12429_v23  ;;  %v12475_v20 = vcombine.high %v909_v11, %v913_v13  ;;  %v12477_v23 = vcombine.high %v910_v56, %v914_v14  ;;  %v953_v5 = vld [vmem:[%s14005_s10 + $0x1430] sm:$0xff]  ;;  %v954_v7 = vld [vmem:[%s14005_s10 + $0x1438] sm:$0xff] }
 0x482   : > { %10766 = vmatpush1.bf16.msra.mxu0 %v12426_v29  ;;  %11258 = vmatpush1.bf16.msra.mxu1 %v12428_v49  ;;  %v12474_v29 = vcombine.low %v909_v11, %v913_v13  ;;  %v12476_v49 = vcombine.low %v910_v56, %v914_v14  ;;  %v957_v11 = vld [vmem:[%s14005_s10 + $0x1450] sm:$0xff]  ;;  %v958_v56 = vld [vmem:[%s14005_s10 + $0x1458] sm:$0xff] }
 0x483   : > { %10767 = vmatprep.subr.bf16.mxu0 %v12435_v15  ;;  %11259 = vmatprep.subr.bf16.mxu1 %v12437_v32  ;;  %v12483_v15 = vcombine.high %v917_v59, %v921_v26  ;;  %v12485_v32 = vcombine.high %v918_v36, %v922_v28  ;;  %v961_v13 = vld [vmem:[%s14005_s10 + $0x1470] sm:$0xff]  ;;  %v962_v14 = vld [vmem:[%s14005_s10 + $0x1478] sm:$0xff] }
 0x486   : > { %10768 = vmatpush1.bf16.msra.mxu0 %v12434_v35  ;;  %11260 = vmatpush1.bf16.msra.mxu1 %v12436_v37  ;;  %v12482_v35 = vcombine.low %v917_v59, %v921_v26  ;;  %v12484_v37 = vcombine.low %v918_v36, %v922_v28  ;;  %v965_v59 = vld [vmem:[%s14005_s10 + $0x1490] sm:$0xff]  ;;  %v966_v36 = vld [vmem:[%s14005_s10 + $0x1498] sm:$0xff] }
 0x487   : > { %10769 = vmatprep.subr.bf16.mxu0 %v12443_v38  ;;  %11261 = vmatprep.subr.bf16.mxu1 %v12445_v40  ;;  %v12491_v38 = vcombine.high %v925_v33, %v929_v22  ;;  %v12493_v40 = vcombine.high %v926_v45, %v930_v12  ;;  %v969_v26 = vld [vmem:[%s14005_s10 + $0x14b0] sm:$0xff]  ;;  %v970_v28 = vld [vmem:[%s14005_s10 + $0x14b8] sm:$0xff] }
 0x48a   : > { %10770 = vmatpush1.bf16.msra.mxu0 %v12442_v43  ;;  %11262 = vmatpush1.bf16.msra.mxu1 %v12444_v21  ;;  %v12490_v43 = vcombine.low %v925_v33, %v929_v22  ;;  %v12492_v21 = vcombine.low %v926_v45, %v930_v12  ;;  %v973_v33 = vld [vmem:[%s14005_s10 + $0x14d0] sm:$0xff]  ;;  %v974_v45 = vld [vmem:[%s14005_s10 + $0x14d8] sm:$0xff] }
 0x48b   : > { %10771 = vmatprep.subr.bf16.mxu0 %v12451_v44  ;;  %11263 = vmatprep.subr.bf16.mxu1 %v12453_v47  ;;  %v12499_v44 = vcombine.high %v933_v57, %v937_v41  ;;  %v12501_v47 = vcombine.high %v934_v31, %v938_v42  ;;  %v977_v22 = vld [vmem:[%s14005_s10 + $0x14f0] sm:$0xff]  ;;  %v978_v12 = vld [vmem:[%s14005_s10 + $0x14f8] sm:$0xff] }
 0x48e   : > { %10772 = vmatpush1.bf16.msra.mxu0 %v12450_v55  ;;  %11264 = vmatpush1.bf16.msra.mxu1 %v12452_v3  ;;  %v12498_v55 = vcombine.low %v933_v57, %v937_v41  ;;  %v12500_v3 = vcombine.low %v934_v31, %v938_v42  ;;  %v985_v57 = vld [vmem:[%s14005_s10 + $0x1530] sm:$0xff]  ;;  %v982_v41 = vld [vmem:[%s14005_s10 + $0x1518] sm:$0xff]  ;;  %v12538_v42 = vcombine.low %v973_v33, %v977_v22 }
 0x48f   : > { %10773 = vmatprep.subr.bf16.mxu0 %v12459_v62  ;;  %11265 = vmatprep.subr.bf16.mxu1 %v12461_v48  ;;  %v12507_v62 = vcombine.high %v941_v52, %v945_v19  ;;  %v12509_v48 = vcombine.high %v942_v54, %v946_v60  ;;  %v986_v31 = vld [vmem:[%s14005_s10 + $0x1538] sm:$0xff] }
 0x492   : > { %10774 = vmatpush1.bf16.msra.mxu0 %v12458_v24  ;;  %11266 = vmatpush1.bf16.msra.mxu1 %v12460_v1  ;;  %v12506_v24 = vcombine.low %v941_v52, %v945_v19  ;;  %v12508_v1 = vcombine.low %v942_v54, %v946_v60  ;;  %v990_v52 = vld [vmem:[%s14005_s10 + $0x1558] sm:$0xff]  ;;  %v12548_v60 = vcombine.low %v982_v41, %v986_v31 }
 0x493   : > { %10775 = vmatprep.subr.bf16.mxu0 %v12467_v8  ;;  %11267 = vmatprep.subr.bf16.mxu1 %v12469_v10  ;;  %v12515_v8 = vcombine.high %v949_v0, %v953_v5  ;;  %v12517_v10 = vcombine.high %v950_v6, %v954_v7  ;;  %v994_v19 = vld [vmem:[%s14005_s10 + $0x1578] sm:$0xff] }
 0x496   : > { %10776 = vmatpush1.bf16.msra.mxu0 %v12466_v17  ;;  %11268 = vmatpush1.bf16.msra.mxu1 %v12468_v18  ;;  %v12514_v17 = vcombine.low %v949_v0, %v953_v5  ;;  %v12516_v18 = vcombine.low %v950_v6, %v954_v7  ;;  %v998_v0 = vld [vmem:[%s14005_s10 + $0x1598] sm:$0xff]  ;;  %v12556_v7 = vcombine.low %v990_v52, %v994_v19 }
 0x497   : > { %10777 = vmatprep.subr.bf16.mxu0 %v12475_v20  ;;  %11269 = vmatprep.subr.bf16.mxu1 %v12477_v23  ;;  %v12523_v20 = vcombine.high %v957_v11, %v961_v13  ;;  %v12525_v23 = vcombine.high %v958_v56, %v962_v14  ;;  %v1002_v5 = vld [vmem:[%s14005_s10 + $0x15b8] sm:$0xff] }
 0x49a   : > { %10778 = vmatpush1.bf16.msra.mxu0 %v12474_v29  ;;  %11270 = vmatpush1.bf16.msra.mxu1 %v12476_v49  ;;  %v12522_v29 = vcombine.low %v957_v11, %v961_v13  ;;  %v12524_v49 = vcombine.low %v958_v56, %v962_v14  ;;  %v1006_v11 = vld [vmem:[%s14005_s10 + $0x15d8] sm:$0xff]  ;;  %v12564_v14 = vcombine.low %v998_v0, %v1002_v5 }
 0x49b   : > { %10779 = vmatprep.subr.bf16.mxu0 %v12483_v15  ;;  %11271 = vmatprep.subr.bf16.mxu1 %v12485_v32  ;;  %v12531_v15 = vcombine.high %v965_v59, %v969_v26  ;;  %v12533_v32 = vcombine.high %v966_v36, %v970_v28  ;;  %v1010_v13 = vld [vmem:[%s14005_s10 + $0x15f8] sm:$0xff] }
 0x49e   : > { %10780 = vmatpush1.bf16.msra.mxu0 %v12482_v35  ;;  %11272 = vmatpush1.bf16.msra.mxu1 %v12484_v37  ;;  %v12532_v35 = vcombine.low %v966_v36, %v970_v28  ;;  %v12539_v37 = vcombine.high %v973_v33, %v977_v22  ;;  %v12572_v28 = vcombine.low %v1006_v11, %v1010_v13  ;;  %v1022_v33 = vld [vmem:[%s14005_s10 + $0x1658] sm:$0xff] }
 0x49f   : > { %10781 = vmatprep.subr.bf16.mxu0 %v12491_v38  ;;  %11273 = vmatprep.subr.bf16.mxu1 %v12493_v40  ;;  %v12541_v38 = vcombine.high %v974_v45, %v978_v12  ;;  %v981_v40 = vld [vmem:[%s14005_s10 + $0x1510] sm:$0xff]  ;;  %v1026_v22 = vld [vmem:[%s14005_s10 + $0x1678] sm:$0xff] }
 0x4a0   : > { %v12546_v54 = vcombine.low %v981_v40, %v985_v57 }
 0x4a2   : > { %10782 = vmatpush1.bf16.msra.mxu0 %v12490_v43  ;;  %11274 = vmatpush1.bf16.msra.mxu1 %v12492_v21  ;;  %v12547_v43 = vcombine.high %v981_v40, %v985_v57  ;;  %v12549_v21 = vcombine.high %v982_v41, %v986_v31  ;;  %v1030_v40 = vld [vmem:[%s14005_s10 + $0x1698] sm:$0xff]  ;;  %v12588_v31 = vcombine.low %v1022_v33, %v1026_v22 }
 0x4a3   : > { %10783 = vmatprep.subr.bf16.mxu0 %v12499_v44  ;;  %11275 = vmatprep.subr.bf16.mxu1 %v12501_v47  ;;  %v989_v44 = vld [vmem:[%s14005_s10 + $0x1550] sm:$0xff]  ;;  %v1034_v57 = vld [vmem:[%s14005_s10 + $0x16b8] sm:$0xff] }
 0x4a4   : > { %v993_v47 = vld [vmem:[%s14005_s10 + $0x1570] sm:$0xff] }
 0x4a5   : > { %v12554_v6 = vcombine.low %v989_v44, %v993_v47 }
 0x4a6   : > { %10784 = vmatpush1.bf16.msra.mxu0 %v12498_v55  ;;  %11276 = vmatpush1.bf16.msra.mxu1 %v12500_v3  ;;  %v12555_v55 = vcombine.high %v989_v44, %v993_v47  ;;  %v12557_v3 = vcombine.high %v990_v52, %v994_v19  ;;  %v1038_v44 = vld [vmem:[%s14005_s10 + $0x16d8] sm:$0xff]  ;;  %v12596_v19 = vcombine.low %v1030_v40, %v1034_v57 }
 0x4a7   : > { %10785 = vmatprep.subr.bf16.mxu0 %v12507_v62  ;;  %11277 = vmatprep.subr.bf16.mxu1 %v12509_v48  ;;  %v997_v62 = vld [vmem:[%s14005_s10 + $0x1590] sm:$0xff]  ;;  %v1042_v47 = vld [vmem:[%s14005_s10 + $0x16f8] sm:$0xff] }
 0x4a8   : > { %v1001_v48 = vld [vmem:[%s14005_s10 + $0x15b0] sm:$0xff] }
 0x4a9   : > { %v12562_v56 = vcombine.low %v997_v62, %v1001_v48 }
 0x4aa   : > { %10786 = vmatpush1.bf16.msra.mxu0 %v12506_v24  ;;  %11278 = vmatpush1.bf16.msra.mxu1 %v12508_v1  ;;  %v12563_v24 = vcombine.high %v997_v62, %v1001_v48  ;;  %v12565_v1 = vcombine.high %v998_v0, %v1002_v5  ;;  %v1046_v62 = vld [vmem:[%s14005_s10 + $0x1718] sm:$0xff]  ;;  %v12604_v5 = vcombine.low %v1038_v44, %v1042_v47 }
 0x4ab   : > { %10796 = vmatprep.subr.bf16.mxu0 %v12515_v8  ;;  %11288 = vmatprep.subr.bf16.mxu1 %v12517_v10  ;;  %v1005_v8 = vld [vmem:[%s14005_s10 + $0x15d0] sm:$0xff]  ;;  %v1050_v48 = vld [vmem:[%s14005_s10 + $0x1738] sm:$0xff] }
 0x4ac   : > { %v1009_v10 = vld [vmem:[%s14005_s10 + $0x15f0] sm:$0xff] }
 0x4ad   : > { %10788 = vmatmul.mubr.bf16.vlgmr.msra.gmra.mrb[4].mxu0 %v14428_v16  ;;  %11280 = vmatmul.mubr.bf16.vlgmr.msra.gmra.mrb[4].mxu1 %v14428_v16  ;;  %v12530_v16 = vcombine.low %v965_v59, %v969_v26  ;;  %v1014_v59 = vld [vmem:[%s14005_s10 + $0x1618] sm:$0xff]  ;;  %v12570_v36 = vcombine.low %v1005_v8, %v1009_v10 }
 0x4ae   : > { %10797 = vmatpush1.bf16.msra.mxu0 %v12514_v17  ;;  %11289 = vmatpush1.bf16.msra.mxu1 %v12516_v18  ;;  %v12571_v17 = vcombine.high %v1005_v8, %v1009_v10  ;;  %v12573_v18 = vcombine.high %v1006_v11, %v1010_v13  ;;  %v1018_v26 = vld [vmem:[%s14005_s10 + $0x1638] sm:$0xff]  ;;  %v12612_v13 = vcombine.low %v1046_v62, %v1050_v48 }
 0x4af   : > { %10798 = vmatprep.subr.bf16.mxu0 %v12523_v20  ;;  %11290 = vmatprep.subr.bf16.mxu1 %v12525_v23  ;;  %v1013_v20 = vld [vmem:[%s14005_s10 + $0x1610] sm:$0xff]  ;;  %v1054_v8 = vld [vmem:[%s14005_s10 + $0x1758] sm:$0xff] }
 0x4b0   : > { %10828 = vmatprep.mubr.bf16.mxu0 %v14441_v27  ;;  %11320 = vmatprep.mubr.bf16.mxu1 %v14441_v27  ;;  %v12540_v27 = vcombine.low %v974_v45, %v978_v12  ;;  %v1017_v23 = vld [vmem:[%s14005_s10 + $0x1630] sm:$0xff]  ;;  %v12580_v12 = vcombine.low %v1014_v59, %v1018_v26  ;;  %v1058_v10 = vld [vmem:[%s14005_s10 + $0x1778] sm:$0xff] }
 0x4b1   : > { %v12578_v45 = vcombine.low %v1013_v20, %v1017_v23 }
 0x4b2   : > { %10799 = vmatpush1.bf16.msra.mxu0 %v12522_v29  ;;  %11291 = vmatpush1.bf16.msra.mxu1 %v12524_v49  ;;  %v12579_v29 = vcombine.high %v1013_v20, %v1017_v23  ;;  %v12581_v49 = vcombine.high %v1014_v59, %v1018_v26  ;;  %v1062_v20 = vld [vmem:[%s14005_s10 + $0x1798] sm:$0xff]  ;;  %v12620_v26 = vcombine.low %v1054_v8, %v1058_v10 }
 0x4b3   : > { %10800 = vmatprep.subr.bf16.mxu0 %v12531_v15  ;;  %11292 = vmatprep.subr.bf16.mxu1 %v12533_v32  ;;  %v1021_v15 = vld [vmem:[%s14005_s10 + $0x1650] sm:$0xff]  ;;  %v1066_v23 = vld [vmem:[%s14005_s10 + $0x17b8] sm:$0xff] }
 0x4b4   : > { %v1025_v32 = vld [vmem:[%s14005_s10 + $0x1670] sm:$0xff] }
 0x4b5   : > { %v12586_v41 = vcombine.low %v1021_v15, %v1025_v32 }
 0x4b6   : > { %10801 = vmatpush1.bf16.msra.mxu0 %v12530_v16  ;;  %11293 = vmatpush1.bf16.msra.mxu1 %v12532_v35  ;;  %v12587_v16 = vcombine.high %v1021_v15, %v1025_v32  ;;  %v12589_v35 = vcombine.high %v1022_v33, %v1026_v22  ;;  %v1070_v15 = vld [vmem:[%s14005_s10 + $0x17d8] sm:$0xff]  ;;  %v12628_v22 = vcombine.low %v1062_v20, %v1066_v23 }
 0x4b7   : > { %10802 = vmatprep.subr.bf16.mxu0 %v12539_v37  ;;  %11294 = vmatprep.subr.bf16.mxu1 %v12541_v38  ;;  %v1029_v37 = vld [vmem:[%s14005_s10 + $0x1690] sm:$0xff]  ;;  %v1074_v32 = vld [vmem:[%s14005_s10 + $0x17f8] sm:$0xff] }
 0x4b8   : > { %v1033_v38 = vld [vmem:[%s14005_s10 + $0x16b0] sm:$0xff] }
 0x4b9   : > { %v12594_v52 = vcombine.low %v1029_v37, %v1033_v38 }
 0x4ba   : > { %10803 = vmatpush1.bf16.msra.mxu0 %v12538_v42  ;;  %11295 = vmatpush1.bf16.msra.mxu1 %v12540_v27  ;;  %v12595_v42 = vcombine.high %v1029_v37, %v1033_v38  ;;  %v12597_v27 = vcombine.high %v1030_v40, %v1034_v57  ;;  %v1078_v37 = vld [vmem:[%s14005_s10 + $0x1818] sm:$0xff]  ;;  %v12636_v57 = vcombine.low %v1070_v15, %v1074_v32 }
 0x4bb   : > { %10804 = vmatprep.subr.bf16.mxu0 %v12547_v43  ;;  %11296 = vmatprep.subr.bf16.mxu1 %v12549_v21  ;;  %v1037_v43 = vld [vmem:[%s14005_s10 + $0x16d0] sm:$0xff]  ;;  %v1082_v38 = vld [vmem:[%s14005_s10 + $0x1838] sm:$0xff] }
 0x4bc   : > { %v1041_v21 = vld [vmem:[%s14005_s10 + $0x16f0] sm:$0xff] }
 0x4bd   : > { %v12602_v0 = vcombine.low %v1037_v43, %v1041_v21 }
 0x4be   : > { %10805 = vmatpush1.bf16.msra.mxu0 %v12546_v54  ;;  %11297 = vmatpush1.bf16.msra.mxu1 %v12548_v60  ;;  %v12603_v54 = vcombine.high %v1037_v43, %v1041_v21  ;;  %v12605_v60 = vcombine.high %v1038_v44, %v1042_v47  ;;  %v1086_v43 = vld [vmem:[%s14005_s10 + $0x1858] sm:$0xff]  ;;  %v12644_v47 = vcombine.low %v1078_v37, %v1082_v38 }
 0x4bf   : > { %10806 = vmatprep.subr.bf16.mxu0 %v12555_v55  ;;  %11298 = vmatprep.subr.bf16.mxu1 %v12557_v3  ;;  %v1045_v55 = vld [vmem:[%s14005_s10 + $0x1710] sm:$0xff]  ;;  %v1090_v21 = vld [vmem:[%s14005_s10 + $0x1878] sm:$0xff] }
 0x4c0   : > { %v1049_v3 = vld [vmem:[%s14005_s10 + $0x1730] sm:$0xff] }
 0x4c1   : > { %v12610_v11 = vcombine.low %v1045_v55, %v1049_v3 }
 0x4c2   : > { %10807 = vmatpush1.bf16.msra.mxu0 %v12554_v6  ;;  %11299 = vmatpush1.bf16.msra.mxu1 %v12556_v7  ;;  %v12611_v6 = vcombine.high %v1045_v55, %v1049_v3  ;;  %v12613_v7 = vcombine.high %v1046_v62, %v1050_v48  ;;  %v1094_v55 = vld [vmem:[%s14005_s10 + $0x1898] sm:$0xff]  ;;  %v12652_v48 = vcombine.low %v1086_v43, %v1090_v21 }
 0x4c3   : > { %10808 = vmatprep.subr.bf16.mxu0 %v12563_v24  ;;  %11300 = vmatprep.subr.bf16.mxu1 %v12565_v1  ;;  %v1053_v24 = vld [vmem:[%s14005_s10 + $0x1750] sm:$0xff]  ;;  %v1098_v3 = vld [vmem:[%s14005_s10 + $0x18b8] sm:$0xff] }
 0x4c4   : > { %v1057_v1 = vld [vmem:[%s14005_s10 + $0x1770] sm:$0xff] }
 0x4c5   : > { %v12618_v59 = vcombine.low %v1053_v24, %v1057_v1 }
 0x4c6   : > { %10809 = vmatpush1.bf16.msra.mxu0 %v12562_v56  ;;  %11301 = vmatpush1.bf16.msra.mxu1 %v12564_v14  ;;  %v12619_v56 = vcombine.high %v1053_v24, %v1057_v1  ;;  %v12621_v14 = vcombine.high %v1054_v8, %v1058_v10  ;;  %v1102_v24 = vld [vmem:[%s14005_s10 + $0x18d8] sm:$0xff]  ;;  %v12660_v8 = vcombine.low %v1094_v55, %v1098_v3 }
 0x4c7   : > { %10810 = vmatprep.subr.bf16.mxu0 %v12571_v17  ;;  %11302 = vmatprep.subr.bf16.mxu1 %v12573_v18  ;;  %v1061_v17 = vld [vmem:[%s14005_s10 + $0x1790] sm:$0xff]  ;;  %v1106_v1 = vld [vmem:[%s14005_s10 + $0x18f8] sm:$0xff] }
 0x4c8   : > { %v1065_v18 = vld [vmem:[%s14005_s10 + $0x17b0] sm:$0xff] }
 0x4c9   : > { %v12626_v33 = vcombine.low %v1061_v17, %v1065_v18 }
 0x4ca   : > { %10811 = vmatpush1.bf16.msra.mxu0 %v12570_v36  ;;  %11303 = vmatpush1.bf16.msra.mxu1 %v12572_v28  ;;  %v12627_v36 = vcombine.high %v1061_v17, %v1065_v18  ;;  %v12629_v28 = vcombine.high %v1062_v20, %v1066_v23  ;;  %v1114_v17 = vld [vmem:[%s14005_s10 + $0x1938] sm:$0xff] }
 0x4cb   : > { %10812 = vmatprep.subr.bf16.mxu0 %v12579_v29  ;;  %11304 = vmatprep.subr.bf16.mxu1 %v12581_v49  ;;  %v1069_v29 = vld [vmem:[%s14005_s10 + $0x17d0] sm:$0xff] }
 0x4cc   : > { %v1073_v49 = vld [vmem:[%s14005_s10 + $0x17f0] sm:$0xff] }
 0x4cd   : > { %v12634_v40 = vcombine.low %v1069_v29, %v1073_v49 }
 0x4ce   : > { %10813 = vmatpush1.bf16.msra.mxu0 %v12578_v45  ;;  %11305 = vmatpush1.bf16.msra.mxu1 %v12580_v12  ;;  %v12635_v45 = vcombine.high %v1069_v29, %v1073_v49  ;;  %v12637_v12 = vcombine.high %v1070_v15, %v1074_v32 }
 0x4cf   : > { %10814 = vmatprep.subr.bf16.mxu0 %v12587_v16  ;;  %11306 = vmatprep.subr.bf16.mxu1 %v12589_v35  ;;  %v1077_v16 = vld [vmem:[%s14005_s10 + $0x1810] sm:$0xff] }
 0x4d0   : > { %v1081_v35 = vld [vmem:[%s14005_s10 + $0x1830] sm:$0xff] }
 0x4d1   : > { %v12642_v44 = vcombine.low %v1077_v16, %v1081_v35 }
 0x4d2   : > { %10815 = vmatpush1.bf16.msra.mxu0 %v12586_v41  ;;  %11307 = vmatpush1.bf16.msra.mxu1 %v12588_v31  ;;  %v12643_v41 = vcombine.high %v1077_v16, %v1081_v35  ;;  %v12645_v31 = vcombine.high %v1078_v37, %v1082_v38 }
 0x4d3   : > { %10816 = vmatprep.subr.bf16.mxu0 %v12595_v42  ;;  %11308 = vmatprep.subr.bf16.mxu1 %v12597_v27  ;;  %v1085_v42 = vld [vmem:[%s14005_s10 + $0x1850] sm:$0xff] }
 0x4d4   : > { %v1089_v27 = vld [vmem:[%s14005_s10 + $0x1870] sm:$0xff] }
 0x4d5   : > { %v12650_v62 = vcombine.low %v1085_v42, %v1089_v27 }
 0x4d6   : > { %10817 = vmatpush1.bf16.msra.mxu0 %v12594_v52  ;;  %11309 = vmatpush1.bf16.msra.mxu1 %v12596_v19  ;;  %v12651_v52 = vcombine.high %v1085_v42, %v1089_v27  ;;  %v12653_v19 = vcombine.high %v1086_v43, %v1090_v21 }
 0x4d7   : > { %10818 = vmatprep.subr.bf16.mxu0 %v12603_v54  ;;  %11310 = vmatprep.subr.bf16.mxu1 %v12605_v60  ;;  %v1093_v54 = vld [vmem:[%s14005_s10 + $0x1890] sm:$0xff] }
 0x4d8   : > { %v1097_v60 = vld [vmem:[%s14005_s10 + $0x18b0] sm:$0xff] }
 0x4da   : > { %10819 = vmatpush1.bf16.msra.mxu0 %v12602_v0  ;;  %11311 = vmatpush1.bf16.msra.mxu1 %v12604_v5  ;;  %v12659_v0 = vcombine.high %v1093_v54, %v1097_v60  ;;  %v12661_v5 = vcombine.high %v1094_v55, %v1098_v3 }
 0x4db   : > { %10820 = vmatprep.subr.bf16.mxu0 %v12611_v6  ;;  %11312 = vmatprep.subr.bf16.mxu1 %v12613_v7  ;;  %v1101_v6 = vld [vmem:[%s14005_s10 + $0x18d0] sm:$0xff] }
 0x4dc   : > { %v1105_v7 = vld [vmem:[%s14005_s10 + $0x18f0] sm:$0xff] }
 0x4dd   : > { %v12667_v10 = vcombine.high %v1101_v6, %v1105_v7  ;;  %v12666_v18 = vcombine.low %v1101_v6, %v1105_v7 }
 0x4de   : > { %10821 = vmatpush1.bf16.msra.mxu0 %v12610_v11  ;;  %11313 = vmatpush1.bf16.msra.mxu1 %v12612_v13  ;;  %v12669_v11 = vcombine.high %v1102_v24, %v1106_v1  ;;  %v1109_v13 = vld [vmem:[%s14005_s10 + $0x1910] sm:$0xff] }
 0x4df   : > { %10822 = vmatprep.subr.bf16.mxu0 %v12619_v56  ;;  %11314 = vmatprep.subr.bf16.mxu1 %v12621_v14  ;;  %v1113_v56 = vld [vmem:[%s14005_s10 + $0x1930] sm:$0xff]  ;;  %v1110_v14 = vld [vmem:[%s14005_s10 + $0x1918] sm:$0xff] }
 0x4e0   : > { %v12675_v20 = vcombine.high %v1109_v13, %v1113_v56  ;;  %v12677_v23 = vcombine.high %v1110_v14, %v1114_v17  ;;  %v12674_v29 = vcombine.low %v1109_v13, %v1113_v56  ;;  %v12676_v49 = vcombine.low %v1110_v14, %v1114_v17 }
 0x4e2   : > { %10823 = vmatpush1.bf16.msra.mxu0 %v12618_v59  ;;  %11315 = vmatpush1.bf16.msra.mxu1 %v12620_v26  ;;  %v1117_v59 = vld [vmem:[%s14005_s10 + $0x1950] sm:$0xff] }
 0x4e3   : > { %10824 = vmatprep.subr.bf16.mxu0 %v12627_v36  ;;  %11316 = vmatprep.subr.bf16.mxu1 %v12629_v28  ;;  %v1121_v26 = vld [vmem:[%s14005_s10 + $0x1970] sm:$0xff]  ;;  %v1118_v36 = vld [vmem:[%s14005_s10 + $0x1958] sm:$0xff] }
 0x4e4   : > { %v1122_v28 = vld [vmem:[%s14005_s10 + $0x1978] sm:$0xff]  ;;  %v12683_v15 = vcombine.high %v1117_v59, %v1121_v26  ;;  %v12682_v16 = vcombine.low %v1117_v59, %v1121_v26 }
 0x4e5   : > { %v12685_v32 = vcombine.high %v1118_v36, %v1122_v28  ;;  %v12684_v35 = vcombine.low %v1118_v36, %v1122_v28 }
 0x4e6   : > { %10825 = vmatpush1.bf16.msra.mxu0 %v12626_v33  ;;  %11317 = vmatpush1.bf16.msra.mxu1 %v12628_v22  ;;  %v1125_v33 = vld [vmem:[%s14005_s10 + $0x1990] sm:$0xff] }
 0x4e7   : > { %10826 = vmatprep.subr.bf16.mxu0 %v12635_v45  ;;  %11318 = vmatprep.subr.bf16.mxu1 %v12637_v12  ;;  %v1129_v22 = vld [vmem:[%s14005_s10 + $0x19b0] sm:$0xff]  ;;  %v1126_v45 = vld [vmem:[%s14005_s10 + $0x1998] sm:$0xff] }
 0x4e8   : > { %v1130_v12 = vld [vmem:[%s14005_s10 + $0x19b8] sm:$0xff]  ;;  %v12691_v37 = vcombine.high %v1125_v33, %v1129_v22  ;;  %v12690_v42 = vcombine.low %v1125_v33, %v1129_v22 }
 0x4e9   : > { %v12693_v38 = vcombine.high %v1126_v45, %v1130_v12  ;;  %v12692_v27 = vcombine.low %v1126_v45, %v1130_v12 }
 0x4ea   : > { %10827 = vmatpush1.bf16.msra.mxu0 %v12634_v40  ;;  %11319 = vmatpush1.bf16.msra.mxu1 %v12636_v57  ;;  %v1133_v40 = vld [vmem:[%s14005_s10 + $0x19d0] sm:$0xff] }
 0x4eb   : > { %10837 = vmatprep.subr.bf16.mxu0 %v12643_v41  ;;  %11329 = vmatprep.subr.bf16.mxu1 %v12645_v31  ;;  %v1137_v57 = vld [vmem:[%s14005_s10 + $0x19f0] sm:$0xff]  ;;  %v1134_v41 = vld [vmem:[%s14005_s10 + $0x19d8] sm:$0xff] }
 0x4ec   : > { %v1138_v31 = vld [vmem:[%s14005_s10 + $0x19f8] sm:$0xff]  ;;  %v12699_v43 = vcombine.high %v1133_v40, %v1137_v57 }
 0x4ed   : > { %10829 = vmatmul.mubr.bf16.vlgmr.msra.gmra.mrb[4].mxu0 %v14509_v46  ;;  %11321 = vmatmul.mubr.bf16.vlgmr.msra.gmra.mrb[4].mxu1 %v14509_v46  ;;  %v12658_v46 = vcombine.low %v1093_v54, %v1097_v60  ;;  %v12701_v21 = vcombine.high %v1134_v41, %v1138_v31  ;;  %v12698_v54 = vcombine.low %v1133_v40, %v1137_v57 }
 0x4ee   : > { %10838 = vmatpush1.bf16.msra.mxu0 %v12642_v44  ;;  %11330 = vmatpush1.bf16.msra.mxu1 %v12644_v47  ;;  %v1141_v44 = vld [vmem:[%s14005_s10 + $0x1a10] sm:$0xff]  ;;  %v12700_v60 = vcombine.low %v1134_v41, %v1138_v31 }
 0x4ef   : > { %10839 = vmatprep.subr.bf16.mxu0 %v12651_v52  ;;  %11331 = vmatprep.subr.bf16.mxu1 %v12653_v19  ;;  %v1145_v47 = vld [vmem:[%s14005_s10 + $0x1a30] sm:$0xff]  ;;  %v1142_v52 = vld [vmem:[%s14005_s10 + $0x1a18] sm:$0xff] }
 0x4f0   : > { %10869 = vmatprep.mubr.bf16.mxu0 %v14522_v58  ;;  %11361 = vmatprep.mubr.bf16.mxu1 %v14522_v58  ;;  %v12668_v58 = vcombine.low %v1102_v24, %v1106_v1  ;;  %v1146_v19 = vld [vmem:[%s14005_s10 + $0x1a38] sm:$0xff]  ;;  %v12707_v55 = vcombine.high %v1141_v44, %v1145_v47  ;;  %v12706_v6 = vcombine.low %v1141_v44, %v1145_v47 }
 0x4f1   : > { %v12709_v3 = vcombine.high %v1142_v52, %v1146_v19  ;;  %v12708_v7 = vcombine.low %v1142_v52, %v1146_v19 }
 0x4f2   : > { %10840 = vmatpush1.bf16.msra.mxu0 %v12650_v62  ;;  %11332 = vmatpush1.bf16.msra.mxu1 %v12652_v48  ;;  %v1149_v62 = vld [vmem:[%s14005_s10 + $0x1a50] sm:$0xff] }
 0x4f3   : > { %10841 = vmatprep.subr.bf16.mxu0 %v12659_v0  ;;  %11333 = vmatprep.subr.bf16.mxu1 %v12661_v5  ;;  %v1153_v48 = vld [vmem:[%s14005_s10 + $0x1a70] sm:$0xff]  ;;  %v1150_v0 = vld [vmem:[%s14005_s10 + $0x1a58] sm:$0xff] }
 0x4f4   : > { %v1154_v5 = vld [vmem:[%s14005_s10 + $0x1a78] sm:$0xff]  ;;  %v12715_v24 = vcombine.high %v1149_v62, %v1153_v48  ;;  %v12714_v13 = vcombine.low %v1149_v62, %v1153_v48 }
 0x4f5   : > { %v12717_v1 = vcombine.high %v1150_v0, %v1154_v5  ;;  %v12716_v56 = vcombine.low %v1150_v0, %v1154_v5 }
 0x4f6   : > { %10842 = vmatpush1.bf16.msra.mxu0 %v12658_v46  ;;  %11334 = vmatpush1.bf16.msra.mxu1 %v12660_v8  ;;  %v1157_v46 = vld [vmem:[%s14005_s10 + $0x1a90] sm:$0xff] }
 0x4f7   : > { %10843 = vmatprep.subr.bf16.mxu0 %v12667_v10  ;;  %11335 = vmatprep.subr.bf16.mxu1 %v12669_v11  ;;  %v1161_v8 = vld [vmem:[%s14005_s10 + $0x1ab0] sm:$0xff]  ;;  %v1158_v10 = vld [vmem:[%s14005_s10 + $0x1a98] sm:$0xff] }
 0x4f8   : > { %v1162_v11 = vld [vmem:[%s14005_s10 + $0x1ab8] sm:$0xff]  ;;  %v12723_v14 = vcombine.high %v1157_v46, %v1161_v8  ;;  %v12722_v59 = vcombine.low %v1157_v46, %v1161_v8 }
 0x4f9   : > { %v12725_v17 = vcombine.high %v1158_v10, %v1162_v11  ;;  %v12724_v26 = vcombine.low %v1158_v10, %v1162_v11 }
 0x4fa   : > { %10844 = vmatpush1.bf16.msra.mxu0 %v12666_v18  ;;  %11336 = vmatpush1.bf16.msra.mxu1 %v12668_v58  ;;  %v1165_v18 = vld [vmem:[%s14005_s10 + $0x1ad0] sm:$0xff] }
 0x4fb   : > { %10845 = vmatprep.subr.bf16.mxu0 %v12675_v20  ;;  %11337 = vmatprep.subr.bf16.mxu1 %v12677_v23  ;;  %v1169_v58 = vld [vmem:[%s14005_s10 + $0x1af0] sm:$0xff]  ;;  %v1166_v20 = vld [vmem:[%s14005_s10 + $0x1ad8] sm:$0xff] }
 0x4fc   : > { %v1170_v23 = vld [vmem:[%s14005_s10 + $0x1af8] sm:$0xff]  ;;  %v12731_v36 = vcombine.high %v1165_v18, %v1169_v58  ;;  %v12730_v33 = vcombine.low %v1165_v18, %v1169_v58 }
 0x4fd   : > { %v12733_v28 = vcombine.high %v1166_v20, %v1170_v23  ;;  %v12732_v22 = vcombine.low %v1166_v20, %v1170_v23 }
 0x4fe   : > { %10846 = vmatpush1.bf16.msra.mxu0 %v12674_v29  ;;  %11338 = vmatpush1.bf16.msra.mxu1 %v12676_v49  ;;  %v1173_v29 = vld [vmem:[%s14005_s10 + $0x1b10] sm:$0xff] }
 0x4ff   : > { %10847 = vmatprep.subr.bf16.mxu0 %v12683_v15  ;;  %11339 = vmatprep.subr.bf16.mxu1 %v12685_v32  ;;  %v1177_v49 = vld [vmem:[%s14005_s10 + $0x1b30] sm:$0xff]  ;;  %v1174_v15 = vld [vmem:[%s14005_s10 + $0x1b18] sm:$0xff] }
 0x500   : > { %v1178_v32 = vld [vmem:[%s14005_s10 + $0x1b38] sm:$0xff]  ;;  %v12739_v45 = vcombine.high %v1173_v29, %v1177_v49  ;;  %v12738_v40 = vcombine.low %v1173_v29, %v1177_v49 }
 0x501   : > { %v12741_v12 = vcombine.high %v1174_v15, %v1178_v32  ;;  %v12740_v57 = vcombine.low %v1174_v15, %v1178_v32 }
 0x502   : > { %10848 = vmatpush1.bf16.msra.mxu0 %v12682_v16  ;;  %11340 = vmatpush1.bf16.msra.mxu1 %v12684_v35  ;;  %v1181_v16 = vld [vmem:[%s14005_s10 + $0x1b50] sm:$0xff] }
 0x503   : > { %10849 = vmatprep.subr.bf16.mxu0 %v12691_v37  ;;  %11341 = vmatprep.subr.bf16.mxu1 %v12693_v38  ;;  %v1185_v35 = vld [vmem:[%s14005_s10 + $0x1b70] sm:$0xff]  ;;  %v1182_v37 = vld [vmem:[%s14005_s10 + $0x1b58] sm:$0xff] }
 0x504   : > { %v1186_v38 = vld [vmem:[%s14005_s10 + $0x1b78] sm:$0xff]  ;;  %v12747_v41 = vcombine.high %v1181_v16, %v1185_v35  ;;  %v12746_v44 = vcombine.low %v1181_v16, %v1185_v35 }
 0x505   : > { %v12749_v31 = vcombine.high %v1182_v37, %v1186_v38  ;;  %v12748_v47 = vcombine.low %v1182_v37, %v1186_v38  ;;  %v1237_v38 = vld [vmem:[%s14005_s10 + $0x1d10] sm:$0xff] }
 0x506   : > { %10850 = vmatpush1.bf16.msra.mxu0 %v12690_v42  ;;  %11342 = vmatpush1.bf16.msra.mxu1 %v12692_v27  ;;  %v1189_v42 = vld [vmem:[%s14005_s10 + $0x1b90] sm:$0xff] }
 0x507   : > { %10851 = vmatprep.subr.bf16.mxu0 %v12699_v43  ;;  %11343 = vmatprep.subr.bf16.mxu1 %v12701_v21  ;;  %v1193_v27 = vld [vmem:[%s14005_s10 + $0x1bb0] sm:$0xff]  ;;  %v1190_v43 = vld [vmem:[%s14005_s10 + $0x1b98] sm:$0xff] }
 0x508   : > { %v1194_v21 = vld [vmem:[%s14005_s10 + $0x1bb8] sm:$0xff]  ;;  %v12755_v52 = vcombine.high %v1189_v42, %v1193_v27  ;;  %v12754_v62 = vcombine.low %v1189_v42, %v1193_v27 }
 0x509   : > { %v12757_v19 = vcombine.high %v1190_v43, %v1194_v21  ;;  %v12756_v48 = vcombine.low %v1190_v43, %v1194_v21  ;;  %v1245_v43 = vld [vmem:[%s14005_s10 + $0x1d50] sm:$0xff] }
 0x50a   : > { %10852 = vmatpush1.bf16.msra.mxu0 %v12698_v54  ;;  %11344 = vmatpush1.bf16.msra.mxu1 %v12700_v60  ;;  %v1197_v54 = vld [vmem:[%s14005_s10 + $0x1bd0] sm:$0xff] }
 0x50b   : > { %10853 = vmatprep.subr.bf16.mxu0 %v12707_v55  ;;  %11345 = vmatprep.subr.bf16.mxu1 %v12709_v3  ;;  %v1201_v60 = vld [vmem:[%s14005_s10 + $0x1bf0] sm:$0xff]  ;;  %v1198_v55 = vld [vmem:[%s14005_s10 + $0x1bd8] sm:$0xff] }
 0x50c   : > { %v1202_v3 = vld [vmem:[%s14005_s10 + $0x1bf8] sm:$0xff]  ;;  %v12763_v0 = vcombine.high %v1197_v54, %v1201_v60  ;;  %v12762_v46 = vcombine.low %v1197_v54, %v1201_v60  ;;  %v1249_v21 = vld [vmem:[%s14005_s10 + $0x1d70] sm:$0xff] }
 0x50d   : > { %v12765_v5 = vcombine.high %v1198_v55, %v1202_v3  ;;  %v12764_v8 = vcombine.low %v1198_v55, %v1202_v3  ;;  %v12811_v54 = vcombine.high %v1245_v43, %v1249_v21  ;;  %v1253_v55 = vld [vmem:[%s14005_s10 + $0x1d90] sm:$0xff] }
 0x50e   : > { %10854 = vmatpush1.bf16.msra.mxu0 %v12706_v6  ;;  %11346 = vmatpush1.bf16.msra.mxu1 %v12708_v7  ;;  %v1205_v6 = vld [vmem:[%s14005_s10 + $0x1c10] sm:$0xff] }
 0x50f   : > { %10855 = vmatprep.subr.bf16.mxu0 %v12715_v24  ;;  %11347 = vmatprep.subr.bf16.mxu1 %v12717_v1  ;;  %v1209_v7 = vld [vmem:[%s14005_s10 + $0x1c30] sm:$0xff]  ;;  %v1206_v24 = vld [vmem:[%s14005_s10 + $0x1c18] sm:$0xff] }
 0x510   : > { %v1210_v1 = vld [vmem:[%s14005_s10 + $0x1c38] sm:$0xff]  ;;  %v12771_v10 = vcombine.high %v1205_v6, %v1209_v7  ;;  %v12770_v18 = vcombine.low %v1205_v6, %v1209_v7  ;;  %v1257_v3 = vld [vmem:[%s14005_s10 + $0x1db0] sm:$0xff] }
 0x511   : > { %v12773_v11 = vcombine.high %v1206_v24, %v1210_v1  ;;  %v12772_v58 = vcombine.low %v1206_v24, %v1210_v1  ;;  %v12819_v6 = vcombine.high %v1253_v55, %v1257_v3  ;;  %v1261_v24 = vld [vmem:[%s14005_s10 + $0x1dd0] sm:$0xff] }
 0x512   : > { %10856 = vmatpush1.bf16.msra.mxu0 %v12714_v13  ;;  %11348 = vmatpush1.bf16.msra.mxu1 %v12716_v56  ;;  %v1213_v13 = vld [vmem:[%s14005_s10 + $0x1c50] sm:$0xff] }
 0x513   : > { %10857 = vmatprep.subr.bf16.mxu0 %v12723_v14  ;;  %11349 = vmatprep.subr.bf16.mxu1 %v12725_v17  ;;  %v1217_v56 = vld [vmem:[%s14005_s10 + $0x1c70] sm:$0xff]  ;;  %v1214_v14 = vld [vmem:[%s14005_s10 + $0x1c58] sm:$0xff] }
 0x514   : > { %v1218_v17 = vld [vmem:[%s14005_s10 + $0x1c78] sm:$0xff]  ;;  %v12779_v20 = vcombine.high %v1213_v13, %v1217_v56  ;;  %v12778_v29 = vcombine.low %v1213_v13, %v1217_v56  ;;  %v1265_v1 = vld [vmem:[%s14005_s10 + $0x1df0] sm:$0xff] }
 0x515   : > { %v12781_v23 = vcombine.high %v1214_v14, %v1218_v17  ;;  %v12780_v49 = vcombine.low %v1214_v14, %v1218_v17  ;;  %v12827_v13 = vcombine.high %v1261_v24, %v1265_v1  ;;  %v1269_v14 = vld [vmem:[%s14005_s10 + $0x1e10] sm:$0xff] }
 0x516   : > { %10858 = vmatpush1.bf16.msra.mxu0 %v12722_v59  ;;  %11350 = vmatpush1.bf16.msra.mxu1 %v12724_v26  ;;  %v1221_v59 = vld [vmem:[%s14005_s10 + $0x1c90] sm:$0xff] }
 0x517   : > { %10859 = vmatprep.subr.bf16.mxu0 %v12731_v36  ;;  %11351 = vmatprep.subr.bf16.mxu1 %v12733_v28  ;;  %v1225_v26 = vld [vmem:[%s14005_s10 + $0x1cb0] sm:$0xff]  ;;  %v1222_v36 = vld [vmem:[%s14005_s10 + $0x1c98] sm:$0xff] }
 0x518   : > { %v1226_v28 = vld [vmem:[%s14005_s10 + $0x1cb8] sm:$0xff]  ;;  %v12787_v15 = vcombine.high %v1221_v59, %v1225_v26  ;;  %v1273_v17 = vld [vmem:[%s14005_s10 + $0x1e30] sm:$0xff] }
 0x519   : > { %v12789_v32 = vcombine.high %v1222_v36, %v1226_v28  ;;  %v12788_v16 = vcombine.low %v1222_v36, %v1226_v28  ;;  %v1277_v36 = vld [vmem:[%s14005_s10 + $0x1e50] sm:$0xff] }
 0x51a   : > { %10860 = vmatpush1.bf16.msra.mxu0 %v12730_v33  ;;  %11352 = vmatpush1.bf16.msra.mxu1 %v12732_v22  ;;  %v1229_v33 = vld [vmem:[%s14005_s10 + $0x1cd0] sm:$0xff] }
 0x51b   : > { %10861 = vmatprep.subr.bf16.mxu0 %v12739_v45  ;;  %11353 = vmatprep.subr.bf16.mxu1 %v12741_v12  ;;  %v1233_v22 = vld [vmem:[%s14005_s10 + $0x1cf0] sm:$0xff]  ;;  %v1230_v45 = vld [vmem:[%s14005_s10 + $0x1cd8] sm:$0xff] }
 0x51c   : > { %v1234_v12 = vld [vmem:[%s14005_s10 + $0x1cf8] sm:$0xff]  ;;  %v12795_v35 = vcombine.high %v1229_v33, %v1233_v22  ;;  %v1281_v28 = vld [vmem:[%s14005_s10 + $0x1e70] sm:$0xff] }
 0x51d   : > { %v12797_v37 = vcombine.high %v1230_v45, %v1234_v12 }
 0x51e   : > { %10862 = vmatpush1.bf16.msra.mxu0 %v12738_v40  ;;  %11354 = vmatpush1.bf16.msra.mxu1 %v12740_v57  ;;  %v1241_v40 = vld [vmem:[%s14005_s10 + $0x1d30] sm:$0xff]  ;;  %v1238_v57 = vld [vmem:[%s14005_s10 + $0x1d18] sm:$0xff] }
 0x51f   : > { %10863 = vmatprep.subr.bf16.mxu0 %v12747_v41  ;;  %11355 = vmatprep.subr.bf16.mxu1 %v12749_v31  ;;  %v1242_v41 = vld [vmem:[%s14005_s10 + $0x1d38] sm:$0xff]  ;;  %v12794_v31 = vcombine.low %v1229_v33, %v1233_v22  ;;  %v12803_v42 = vcombine.high %v1237_v38, %v1241_v40  ;;  %v12843_v33 = vcombine.high %v1277_v36, %v1281_v28 }
 0x520   : > { %v12805_v27 = vcombine.high %v1238_v57, %v1242_v41 }
 0x522   : > { %10864 = vmatpush1.bf16.msra.mxu0 %v12746_v44  ;;  %11356 = vmatpush1.bf16.msra.mxu1 %v12748_v47  ;;  %v1246_v44 = vld [vmem:[%s14005_s10 + $0x1d58] sm:$0xff] }
 0x523   : > { %10865 = vmatprep.subr.bf16.mxu0 %v12755_v52  ;;  %11357 = vmatprep.subr.bf16.mxu1 %v12757_v19  ;;  %v1250_v47 = vld [vmem:[%s14005_s10 + $0x1d78] sm:$0xff]  ;;  %v12802_v52 = vcombine.low %v1237_v38, %v1241_v40  ;;  %v12804_v19 = vcombine.low %v1238_v57, %v1242_v41  ;;  %v1293_v57 = vld [vmem:[%s14005_s10 + $0x1ed0] sm:$0xff] }
 0x524   : > { %v12813_v60 = vcombine.high %v1246_v44, %v1250_v47  ;;  %v1297_v41 = vld [vmem:[%s14005_s10 + $0x1ef0] sm:$0xff] }
 0x526   : > { %10866 = vmatpush1.bf16.msra.mxu0 %v12754_v62  ;;  %11358 = vmatpush1.bf16.msra.mxu1 %v12756_v48  ;;  %v1254_v62 = vld [vmem:[%s14005_s10 + $0x1d98] sm:$0xff] }
 0x527   : > { %10867 = vmatprep.subr.bf16.mxu0 %v12763_v0  ;;  %11359 = vmatprep.subr.bf16.mxu1 %v12765_v5  ;;  %v1258_v48 = vld [vmem:[%s14005_s10 + $0x1db8] sm:$0xff]  ;;  %v12810_v0 = vcombine.low %v1245_v43, %v1249_v21  ;;  %v12812_v5 = vcombine.low %v1246_v44, %v1250_v47  ;;  %v12859_v43 = vcombine.high %v1293_v57, %v1297_v41  ;;  %v1301_v44 = vld [vmem:[%s14005_s10 + $0x1f10] sm:$0xff] }
 0x528   : > { %v12821_v7 = vcombine.high %v1254_v62, %v1258_v48  ;;  %v1305_v47 = vld [vmem:[%s14005_s10 + $0x1f30] sm:$0xff] }
 0x52a   : > { %10868 = vmatpush1.bf16.msra.mxu0 %v12762_v46  ;;  %11360 = vmatpush1.bf16.msra.mxu1 %v12764_v8  ;;  %v1262_v46 = vld [vmem:[%s14005_s10 + $0x1dd8] sm:$0xff] }
 0x52b   : > { %10878 = vmatprep.subr.bf16.mxu0 %v12771_v10  ;;  %11370 = vmatprep.subr.bf16.mxu1 %v12773_v11  ;;  %v1266_v8 = vld [vmem:[%s14005_s10 + $0x1df8] sm:$0xff]  ;;  %v12818_v10 = vcombine.low %v1253_v55, %v1257_v3  ;;  %v12820_v11 = vcombine.low %v1254_v62, %v1258_v48  ;;  %v12867_v55 = vcombine.high %v1301_v44, %v1305_v47  ;;  %v1309_v62 = vld [vmem:[%s14005_s10 + $0x1f50] sm:$0xff] }
 0x52c   : > { %v12829_v56 = vcombine.high %v1262_v46, %v1266_v8  ;;  %v1313_v48 = vld [vmem:[%s14005_s10 + $0x1f70] sm:$0xff] }
 0x52d   : > { %10870 = vmatmul.mubr.bf16.vlgmr.msra.gmra.mrb[4].mxu0 %v14590_v53  ;;  %11362 = vmatmul.mubr.bf16.vlgmr.msra.gmra.mrb[4].mxu1 %v14590_v53  ;;  %v12786_v53 = vcombine.low %v1221_v59, %v1225_v26  ;;  %v12835_v59 = vcombine.high %v1269_v14, %v1273_v17 }
 0x52e   : > { %10879 = vmatpush1.bf16.msra.mxu0 %v12770_v18  ;;  %11371 = vmatpush1.bf16.msra.mxu1 %v12772_v58  ;;  %v1270_v18 = vld [vmem:[%s14005_s10 + $0x1e18] sm:$0xff] }
 0x52f   : > { %10880 = vmatprep.subr.bf16.mxu0 %v12779_v20  ;;  %11372 = vmatprep.subr.bf16.mxu1 %v12781_v23  ;;  %v1274_v58 = vld [vmem:[%s14005_s10 + $0x1e38] sm:$0xff]  ;;  %v12826_v20 = vcombine.low %v1261_v24, %v1265_v1  ;;  %v12828_v23 = vcombine.low %v1262_v46, %v1266_v8  ;;  %v12875_v24 = vcombine.high %v1309_v62, %v1313_v48  ;;  %v1317_v46 = vld [vmem:[%s14005_s10 + $0x1f90] sm:$0xff] }
 0x530   : > { %10910 = vmatprep.mubr.bf16.mxu0 %v14603_v30  ;;  %11402 = vmatprep.mubr.bf16.mxu1 %v14603_v30  ;;  %v12796_v30 = vcombine.low %v1230_v45, %v1234_v12  ;;  %v12837_v26 = vcombine.high %v1270_v18, %v1274_v58  ;;  %v1285_v45 = vld [vmem:[%s14005_s10 + $0x1e90] sm:$0xff] }
 0x531   : > { %v1289_v12 = vld [vmem:[%s14005_s10 + $0x1eb0] sm:$0xff] }
 0x532   : > { %10881 = vmatpush1.bf16.msra.mxu0 %v12778_v29  ;;  %11373 = vmatpush1.bf16.msra.mxu1 %v12780_v49  ;;  %v1278_v29 = vld [vmem:[%s14005_s10 + $0x1e58] sm:$0xff]  ;;  %v12851_v38 = vcombine.high %v1285_v45, %v1289_v12  ;;  %v1321_v8 = vld [vmem:[%s14005_s10 + $0x1fb0] sm:$0xff] }
 0x533   : > { %10882 = vmatprep.subr.bf16.mxu0 %v12787_v15  ;;  %11374 = vmatprep.subr.bf16.mxu1 %v12789_v32  ;;  %v1282_v49 = vld [vmem:[%s14005_s10 + $0x1e78] sm:$0xff]  ;;  %v12834_v15 = vcombine.low %v1269_v14, %v1273_v17  ;;  %v12836_v32 = vcombine.low %v1270_v18, %v1274_v58  ;;  %v12883_v14 = vcombine.high %v1317_v46, %v1321_v8  ;;  %v1325_v18 = vld [vmem:[%s14005_s10 + $0x1fd0] sm:$0xff] }
 0x534   : > { %v12845_v22 = vcombine.high %v1278_v29, %v1282_v49  ;;  %v1329_v58 = vld [vmem:[%s14005_s10 + $0x1ff0] sm:$0xff] }
 0x536   : > { %10883 = vmatpush1.bf16.msra.mxu0 %v12786_v53  ;;  %11375 = vmatpush1.bf16.msra.mxu1 %v12788_v16  ;;  %v1286_v53 = vld [vmem:[%s14005_s10 + $0x1e98] sm:$0xff] }
 0x537   : > { %10884 = vmatprep.subr.bf16.mxu0 %v12795_v35  ;;  %11376 = vmatprep.subr.bf16.mxu1 %v12797_v37  ;;  %v1290_v16 = vld [vmem:[%s14005_s10 + $0x1eb8] sm:$0xff]  ;;  %v12842_v35 = vcombine.low %v1277_v36, %v1281_v28  ;;  %v12844_v37 = vcombine.low %v1278_v29, %v1282_v49  ;;  %v12891_v36 = vcombine.high %v1325_v18, %v1329_v58  ;;  %v1333_v29 = vld [vmem:[%s14005_s10 + $0x2010] sm:$0xff] }
 0x538   : > { %v12853_v40 = vcombine.high %v1286_v53, %v1290_v16  ;;  %v1337_v49 = vld [vmem:[%s14005_s10 + $0x2030] sm:$0xff] }
 0x53a   : > { %10885 = vmatpush1.bf16.msra.mxu0 %v12794_v31  ;;  %11377 = vmatpush1.bf16.msra.mxu1 %v12796_v30  ;;  %v1294_v31 = vld [vmem:[%s14005_s10 + $0x1ed8] sm:$0xff] }
 0x53b   : > { %10886 = vmatprep.subr.bf16.mxu0 %v12803_v42  ;;  %11378 = vmatprep.subr.bf16.mxu1 %v12805_v27  ;;  %v1298_v30 = vld [vmem:[%s14005_s10 + $0x1ef8] sm:$0xff]  ;;  %v12850_v42 = vcombine.low %v1285_v45, %v1289_v12  ;;  %v12852_v27 = vcombine.low %v1286_v53, %v1290_v16  ;;  %v12899_v45 = vcombine.high %v1333_v29, %v1337_v49  ;;  %v1341_v53 = vld [vmem:[%s14005_s10 + $0x2050] sm:$0xff] }
 0x53c   : > { %v12861_v21 = vcombine.high %v1294_v31, %v1298_v30  ;;  %v1345_v16 = vld [vmem:[%s14005_s10 + $0x2070] sm:$0xff] }
 0x53e   : > { %10887 = vmatpush1.bf16.msra.mxu0 %v12802_v52  ;;  %11379 = vmatpush1.bf16.msra.mxu1 %v12804_v19  ;;  %v1302_v52 = vld [vmem:[%s14005_s10 + $0x1f18] sm:$0xff] }
 0x53f   : > { %10888 = vmatprep.subr.bf16.mxu0 %v12811_v54  ;;  %11380 = vmatprep.subr.bf16.mxu1 %v12813_v60  ;;  %v1306_v19 = vld [vmem:[%s14005_s10 + $0x1f38] sm:$0xff]  ;;  %v12858_v54 = vcombine.low %v1293_v57, %v1297_v41  ;;  %v12860_v60 = vcombine.low %v1294_v31, %v1298_v30  ;;  %v12907_v57 = vcombine.high %v1341_v53, %v1345_v16  ;;  %v1349_v31 = vld [vmem:[%s14005_s10 + $0x2090] sm:$0xff] }
 0x540   : > { %v12869_v3 = vcombine.high %v1302_v52, %v1306_v19  ;;  %v1353_v30 = vld [vmem:[%s14005_s10 + $0x20b0] sm:$0xff] }
 0x542   : > { %10889 = vmatpush1.bf16.msra.mxu0 %v12810_v0  ;;  %11381 = vmatpush1.bf16.msra.mxu1 %v12812_v5  ;;  %v1310_v0 = vld [vmem:[%s14005_s10 + $0x1f58] sm:$0xff] }
 0x543   : > { %10890 = vmatprep.subr.bf16.mxu0 %v12819_v6  ;;  %11382 = vmatprep.subr.bf16.mxu1 %v12821_v7  ;;  %v1314_v5 = vld [vmem:[%s14005_s10 + $0x1f78] sm:$0xff]  ;;  %v12866_v6 = vcombine.low %v1301_v44, %v1305_v47  ;;  %v12868_v7 = vcombine.low %v1302_v52, %v1306_v19  ;;  %v12915_v44 = vcombine.high %v1349_v31, %v1353_v30  ;;  %v1357_v52 = vld [vmem:[%s14005_s10 + $0x20d0] sm:$0xff] }
 0x544   : > { %v12877_v1 = vcombine.high %v1310_v0, %v1314_v5  ;;  %v1361_v19 = vld [vmem:[%s14005_s10 + $0x20f0] sm:$0xff] }
 0x546   : > { %10891 = vmatpush1.bf16.msra.mxu0 %v12818_v10  ;;  %11383 = vmatpush1.bf16.msra.mxu1 %v12820_v11  ;;  %v1318_v10 = vld [vmem:[%s14005_s10 + $0x1f98] sm:$0xff] }
 0x547   : > { %10892 = vmatprep.subr.bf16.mxu0 %v12827_v13  ;;  %11384 = vmatprep.subr.bf16.mxu1 %v12829_v56  ;;  %v1322_v11 = vld [vmem:[%s14005_s10 + $0x1fb8] sm:$0xff]  ;;  %v12874_v13 = vcombine.low %v1309_v62, %v1313_v48  ;;  %v12876_v56 = vcombine.low %v1310_v0, %v1314_v5  ;;  %v1365_v48 = vld [vmem:[%s14005_s10 + $0x2110] sm:$0xff] }
 0x548   : > { %v12885_v17 = vcombine.high %v1318_v10, %v1322_v11  ;;  %v1369_v0 = vld [vmem:[%s14005_s10 + $0x2130] sm:$0xff]  ;;  %v1366_v5 = vld [vmem:[%s14005_s10 + $0x2118] sm:$0xff] }
 0x54a   : > { %10893 = vmatpush1.bf16.msra.mxu0 %v12826_v20  ;;  %11385 = vmatpush1.bf16.msra.mxu1 %v12828_v23  ;;  %v1326_v20 = vld [vmem:[%s14005_s10 + $0x1fd8] sm:$0xff] }
 0x54b   : > { %10894 = vmatprep.subr.bf16.mxu0 %v12835_v59  ;;  %11386 = vmatprep.subr.bf16.mxu1 %v12837_v26  ;;  %v1330_v23 = vld [vmem:[%s14005_s10 + $0x1ff8] sm:$0xff]  ;;  %v12882_v59 = vcombine.low %v1317_v46, %v1321_v8  ;;  %v12884_v26 = vcombine.low %v1318_v10, %v1322_v11  ;;  %v1373_v46 = vld [vmem:[%s14005_s10 + $0x2150] sm:$0xff] }
 0x54c   : > { %v12893_v28 = vcombine.high %v1326_v20, %v1330_v23  ;;  %v1377_v8 = vld [vmem:[%s14005_s10 + $0x2170] sm:$0xff]  ;;  %v1374_v10 = vld [vmem:[%s14005_s10 + $0x2158] sm:$0xff] }
 0x54d   : > { %v1378_v11 = vld [vmem:[%s14005_s10 + $0x2178] sm:$0xff] }
 0x54e   : > { %10895 = vmatpush1.bf16.msra.mxu0 %v12834_v15  ;;  %11387 = vmatpush1.bf16.msra.mxu1 %v12836_v32  ;;  %v1334_v15 = vld [vmem:[%s14005_s10 + $0x2018] sm:$0xff] }
 0x54f   : > { %10896 = vmatprep.subr.bf16.mxu0 %v12843_v33  ;;  %11388 = vmatprep.subr.bf16.mxu1 %v12845_v22  ;;  %v1338_v32 = vld [vmem:[%s14005_s10 + $0x2038] sm:$0xff]  ;;  %v12890_v33 = vcombine.low %v1325_v18, %v1329_v58  ;;  %v12892_v22 = vcombine.low %v1326_v20, %v1330_v23  ;;  %v1381_v18 = vld [vmem:[%s14005_s10 + $0x2190] sm:$0xff] }
 0x550   : > { %v12901_v12 = vcombine.high %v1334_v15, %v1338_v32  ;;  %v1385_v58 = vld [vmem:[%s14005_s10 + $0x21b0] sm:$0xff]  ;;  %v1382_v20 = vld [vmem:[%s14005_s10 + $0x2198] sm:$0xff] }
 0x551   : > { %v1386_v23 = vld [vmem:[%s14005_s10 + $0x21b8] sm:$0xff] }
 0x552   : > { %10897 = vmatpush1.bf16.msra.mxu0 %v12842_v35  ;;  %11389 = vmatpush1.bf16.msra.mxu1 %v12844_v37  ;;  %v1342_v35 = vld [vmem:[%s14005_s10 + $0x2058] sm:$0xff] }
 0x553   : > { %10898 = vmatprep.subr.bf16.mxu0 %v12851_v38  ;;  %11390 = vmatprep.subr.bf16.mxu1 %v12853_v40  ;;  %v1346_v37 = vld [vmem:[%s14005_s10 + $0x2078] sm:$0xff]  ;;  %v12898_v38 = vcombine.low %v1333_v29, %v1337_v49  ;;  %v12900_v40 = vcombine.low %v1334_v15, %v1338_v32  ;;  %v1389_v29 = vld [vmem:[%s14005_s10 + $0x21d0] sm:$0xff] }
 0x554   : > { %v12909_v41 = vcombine.high %v1342_v35, %v1346_v37  ;;  %v1393_v49 = vld [vmem:[%s14005_s10 + $0x21f0] sm:$0xff]  ;;  %v1390_v15 = vld [vmem:[%s14005_s10 + $0x21d8] sm:$0xff] }
 0x555   : > { %v1394_v32 = vld [vmem:[%s14005_s10 + $0x21f8] sm:$0xff] }
 0x556   : > { %10899 = vmatpush1.bf16.msra.mxu0 %v12850_v42  ;;  %11391 = vmatpush1.bf16.msra.mxu1 %v12852_v27  ;;  %v1350_v42 = vld [vmem:[%s14005_s10 + $0x2098] sm:$0xff] }
 0x557   : > { %10900 = vmatprep.subr.bf16.mxu0 %v12859_v43  ;;  %11392 = vmatprep.subr.bf16.mxu1 %v12861_v21  ;;  %v1354_v27 = vld [vmem:[%s14005_s10 + $0x20b8] sm:$0xff]  ;;  %v12906_v43 = vcombine.low %v1341_v53, %v1345_v16  ;;  %v12908_v21 = vcombine.low %v1342_v35, %v1346_v37  ;;  %v1397_v53 = vld [vmem:[%s14005_s10 + $0x2210] sm:$0xff] }
 0x558   : > { %v12917_v47 = vcombine.high %v1350_v42, %v1354_v27  ;;  %v1401_v16 = vld [vmem:[%s14005_s10 + $0x2230] sm:$0xff]  ;;  %v1398_v35 = vld [vmem:[%s14005_s10 + $0x2218] sm:$0xff] }
 0x559   : > { %v1402_v37 = vld [vmem:[%s14005_s10 + $0x2238] sm:$0xff] }
 0x55a   : > { %10901 = vmatpush1.bf16.msra.mxu0 %v12858_v54  ;;  %11393 = vmatpush1.bf16.msra.mxu1 %v12860_v60  ;;  %v1358_v54 = vld [vmem:[%s14005_s10 + $0x20d8] sm:$0xff] }
 0x55b   : > { %10902 = vmatprep.subr.bf16.mxu0 %v12867_v55  ;;  %11394 = vmatprep.subr.bf16.mxu1 %v12869_v3  ;;  %v1362_v60 = vld [vmem:[%s14005_s10 + $0x20f8] sm:$0xff]  ;;  %v12916_v55 = vcombine.low %v1350_v42, %v1354_v27  ;;  %v12923_v3 = vcombine.high %v1357_v52, %v1361_v19 }
 0x55c   : > { %v12925_v62 = vcombine.high %v1358_v54, %v1362_v60  ;;  %v1406_v42 = vld [vmem:[%s14005_s10 + $0x2258] sm:$0xff] }
 0x55d   : > { %v1410_v27 = vld [vmem:[%s14005_s10 + $0x2278] sm:$0xff] }
 0x55e   : > { %10903 = vmatpush1.bf16.msra.mxu0 %v12866_v6  ;;  %11395 = vmatpush1.bf16.msra.mxu1 %v12868_v7  ;;  %v1370_v6 = vld [vmem:[%s14005_s10 + $0x2138] sm:$0xff]  ;;  %v12922_v7 = vcombine.low %v1357_v52, %v1361_v19  ;;  %v1413_v52 = vld [vmem:[%s14005_s10 + $0x2290] sm:$0xff] }
 0x55f   : > { %10904 = vmatprep.subr.bf16.mxu0 %v12875_v24  ;;  %11396 = vmatprep.subr.bf16.mxu1 %v12877_v1  ;;  %v12931_v24 = vcombine.high %v1365_v48, %v1369_v0  ;;  %v12933_v1 = vcombine.high %v1366_v5, %v1370_v6  ;;  %v1417_v19 = vld [vmem:[%s14005_s10 + $0x22b0] sm:$0xff] }
 0x562   : > { %10905 = vmatpush1.bf16.msra.mxu0 %v12874_v13  ;;  %11397 = vmatpush1.bf16.msra.mxu1 %v12876_v56  ;;  %v12930_v13 = vcombine.low %v1365_v48, %v1369_v0  ;;  %v12932_v56 = vcombine.low %v1366_v5, %v1370_v6  ;;  %v1421_v48 = vld [vmem:[%s14005_s10 + $0x22d0] sm:$0xff]  ;;  %v1422_v5 = vld [vmem:[%s14005_s10 + $0x22d8] sm:$0xff] }
 0x563   : > { %10906 = vmatprep.subr.bf16.mxu0 %v12883_v14  ;;  %11398 = vmatprep.subr.bf16.mxu1 %v12885_v17  ;;  %v12939_v14 = vcombine.high %v1373_v46, %v1377_v8  ;;  %v12941_v17 = vcombine.high %v1374_v10, %v1378_v11  ;;  %v1425_v0 = vld [vmem:[%s14005_s10 + $0x22f0] sm:$0xff]  ;;  %v1426_v6 = vld [vmem:[%s14005_s10 + $0x22f8] sm:$0xff] }
 0x566   : > { %10907 = vmatpush1.bf16.msra.mxu0 %v12882_v59  ;;  %11399 = vmatpush1.bf16.msra.mxu1 %v12884_v26  ;;  %v12938_v59 = vcombine.low %v1373_v46, %v1377_v8  ;;  %v12940_v26 = vcombine.low %v1374_v10, %v1378_v11  ;;  %v1429_v46 = vld [vmem:[%s14005_s10 + $0x2310] sm:$0xff]  ;;  %v1430_v10 = vld [vmem:[%s14005_s10 + $0x2318] sm:$0xff] }
 0x567   : > { %10908 = vmatprep.subr.bf16.mxu0 %v12891_v36  ;;  %11400 = vmatprep.subr.bf16.mxu1 %v12893_v28  ;;  %v12947_v36 = vcombine.high %v1381_v18, %v1385_v58  ;;  %v12949_v28 = vcombine.high %v1382_v20, %v1386_v23  ;;  %v1433_v8 = vld [vmem:[%s14005_s10 + $0x2330] sm:$0xff]  ;;  %v1434_v11 = vld [vmem:[%s14005_s10 + $0x2338] sm:$0xff] }
 0x56a   : > { %10909 = vmatpush1.bf16.msra.mxu0 %v12890_v33  ;;  %11401 = vmatpush1.bf16.msra.mxu1 %v12892_v22  ;;  %v12946_v33 = vcombine.low %v1381_v18, %v1385_v58  ;;  %v12948_v22 = vcombine.low %v1382_v20, %v1386_v23  ;;  %v1437_v18 = vld [vmem:[%s14005_s10 + $0x2350] sm:$0xff]  ;;  %v1438_v20 = vld [vmem:[%s14005_s10 + $0x2358] sm:$0xff] }
 0x56b   : > { %10919 = vmatprep.subr.bf16.mxu0 %v12899_v45  ;;  %11411 = vmatprep.subr.bf16.mxu1 %v12901_v12  ;;  %v12955_v45 = vcombine.high %v1389_v29, %v1393_v49  ;;  %v12957_v12 = vcombine.high %v1390_v15, %v1394_v32  ;;  %v1441_v58 = vld [vmem:[%s14005_s10 + $0x2370] sm:$0xff]  ;;  %v1442_v23 = vld [vmem:[%s14005_s10 + $0x2378] sm:$0xff] }
 0x56d   : > { %10911 = vmatmul.mubr.bf16.vlgmr.msra.gmra.mrb[4].mxu0 %v14671_v39  ;;  %11403 = vmatmul.mubr.bf16.vlgmr.msra.gmra.mrb[4].mxu1 %v14671_v39  ;;  %v12914_v39 = vcombine.low %v1349_v31, %v1353_v30  ;;  %v1405_v31 = vld [vmem:[%s14005_s10 + $0x2250] sm:$0xff] }
 0x56e   : > { %10920 = vmatpush1.bf16.msra.mxu0 %v12898_v38  ;;  %11412 = vmatpush1.bf16.msra.mxu1 %v12900_v40  ;;  %v12954_v38 = vcombine.low %v1389_v29, %v1393_v49  ;;  %v12956_v40 = vcombine.low %v1390_v15, %v1394_v32  ;;  %v1409_v30 = vld [vmem:[%s14005_s10 + $0x2270] sm:$0xff]  ;;  %v1446_v15 = vld [vmem:[%s14005_s10 + $0x2398] sm:$0xff] }
 0x56f   : > { %10921 = vmatprep.subr.bf16.mxu0 %v12907_v57  ;;  %11413 = vmatprep.subr.bf16.mxu1 %v12909_v41  ;;  %v12963_v57 = vcombine.high %v1397_v53, %v1401_v16  ;;  %v12965_v41 = vcombine.high %v1398_v35, %v1402_v37  ;;  %v1445_v29 = vld [vmem:[%s14005_s10 + $0x2390] sm:$0xff]  ;;  %v1450_v32 = vld [vmem:[%s14005_s10 + $0x23b8] sm:$0xff] }
 0x570   : > { %10951 = vmatprep.mubr.bf16.mxu0 %v14684_v9  ;;  %11443 = vmatprep.mubr.bf16.mxu1 %v14684_v9  ;;  %v12924_v9 = vcombine.low %v1358_v54, %v1362_v60  ;;  %v1414_v54 = vld [vmem:[%s14005_s10 + $0x2298] sm:$0xff]  ;;  %v1449_v49 = vld [vmem:[%s14005_s10 + $0x23b0] sm:$0xff] }
 0x571   : > { %v1418_v60 = vld [vmem:[%s14005_s10 + $0x22b8] sm:$0xff] }
 0x572   : > { %10922 = vmatpush1.bf16.msra.mxu0 %v12906_v43  ;;  %11414 = vmatpush1.bf16.msra.mxu1 %v12908_v21  ;;  %v12962_v43 = vcombine.low %v1397_v53, %v1401_v16  ;;  %v12964_v21 = vcombine.low %v1398_v35, %v1402_v37  ;;  %v1453_v53 = vld [vmem:[%s14005_s10 + $0x23d0] sm:$0xff]  ;;  %v1454_v35 = vld [vmem:[%s14005_s10 + $0x23d8] sm:$0xff] }
 0x573   : > { %10923 = vmatprep.subr.bf16.mxu0 %v12915_v44  ;;  %11415 = vmatprep.subr.bf16.mxu1 %v12917_v47  ;;  %v12971_v44 = vcombine.high %v1405_v31, %v1409_v30  ;;  %v12973_v47 = vcombine.high %v1406_v42, %v1410_v27  ;;  %v1457_v16 = vld [vmem:[%s14005_s10 + $0x23f0] sm:$0xff]  ;;  %v1458_v37 = vld [vmem:[%s14005_s10 + $0x23f8] sm:$0xff] }
 0x576   : > { %10924 = vmatpush1.bf16.msra.mxu0 %v12914_v39  ;;  %11416 = vmatpush1.bf16.msra.mxu1 %v12916_v55  ;;  %v12970_v39 = vcombine.low %v1405_v31, %v1409_v30  ;;  %v12972_v55 = vcombine.low %v1406_v42, %v1410_v27  ;;  %v1461_v31 = vld [vmem:[%s14005_s10 + $0x2410] sm:$0xff]  ;;  %v1462_v42 = vld [vmem:[%s14005_s10 + $0x2418] sm:$0xff] }
 0x577   : > { %10925 = vmatprep.subr.bf16.mxu0 %v12923_v3  ;;  %11417 = vmatprep.subr.bf16.mxu1 %v12925_v62  ;;  %v12979_v3 = vcombine.high %v1413_v52, %v1417_v19  ;;  %v12981_v62 = vcombine.high %v1414_v54, %v1418_v60  ;;  %v1465_v30 = vld [vmem:[%s14005_s10 + $0x2430] sm:$0xff]  ;;  %v1466_v27 = vld [vmem:[%s14005_s10 + $0x2438] sm:$0xff] }
 0x57a   : > { %10926 = vmatpush1.bf16.msra.mxu0 %v12922_v7  ;;  %11418 = vmatpush1.bf16.msra.mxu1 %v12924_v9  ;;  %v12978_v7 = vcombine.low %v1413_v52, %v1417_v19  ;;  %v12980_v9 = vcombine.low %v1414_v54, %v1418_v60  ;;  %v1469_v52 = vld [vmem:[%s14005_s10 + $0x2450] sm:$0xff]  ;;  %v1470_v54 = vld [vmem:[%s14005_s10 + $0x2458] sm:$0xff] }
 0x57b   : > { %10927 = vmatprep.subr.bf16.mxu0 %v12931_v24  ;;  %11419 = vmatprep.subr.bf16.mxu1 %v12933_v1  ;;  %v12987_v24 = vcombine.high %v1421_v48, %v1425_v0  ;;  %v12989_v1 = vcombine.high %v1422_v5, %v1426_v6  ;;  %v1473_v19 = vld [vmem:[%s14005_s10 + $0x2470] sm:$0xff]  ;;  %v1474_v60 = vld [vmem:[%s14005_s10 + $0x2478] sm:$0xff] }
 0x57e   : > { %10928 = vmatpush1.bf16.msra.mxu0 %v12930_v13  ;;  %11420 = vmatpush1.bf16.msra.mxu1 %v12932_v56  ;;  %v12986_v13 = vcombine.low %v1421_v48, %v1425_v0  ;;  %v12988_v56 = vcombine.low %v1422_v5, %v1426_v6  ;;  %v1477_v48 = vld [vmem:[%s14005_s10 + $0x2490] sm:$0xff]  ;;  %v1478_v5 = vld [vmem:[%s14005_s10 + $0x2498] sm:$0xff] }
 0x57f   : > { %10929 = vmatprep.subr.bf16.mxu0 %v12939_v14  ;;  %11421 = vmatprep.subr.bf16.mxu1 %v12941_v17  ;;  %v12995_v14 = vcombine.high %v1429_v46, %v1433_v8  ;;  %v12997_v17 = vcombine.high %v1430_v10, %v1434_v11  ;;  %v1481_v0 = vld [vmem:[%s14005_s10 + $0x24b0] sm:$0xff]  ;;  %v1482_v6 = vld [vmem:[%s14005_s10 + $0x24b8] sm:$0xff] }
 0x582   : > { %10930 = vmatpush1.bf16.msra.mxu0 %v12938_v59  ;;  %11422 = vmatpush1.bf16.msra.mxu1 %v12940_v26  ;;  %v12994_v59 = vcombine.low %v1429_v46, %v1433_v8  ;;  %v12996_v26 = vcombine.low %v1430_v10, %v1434_v11  ;;  %v1485_v46 = vld [vmem:[%s14005_s10 + $0x24d0] sm:$0xff]  ;;  %v1486_v10 = vld [vmem:[%s14005_s10 + $0x24d8] sm:$0xff] }
 0x583   : > { %10931 = vmatprep.subr.bf16.mxu0 %v12947_v36  ;;  %11423 = vmatprep.subr.bf16.mxu1 %v12949_v28  ;;  %v13003_v36 = vcombine.high %v1437_v18, %v1441_v58  ;;  %v13005_v28 = vcombine.high %v1438_v20, %v1442_v23  ;;  %v1489_v8 = vld [vmem:[%s14005_s10 + $0x24f0] sm:$0xff]  ;;  %v1490_v11 = vld [vmem:[%s14005_s10 + $0x24f8] sm:$0xff] }
 0x586   : > { %10932 = vmatpush1.bf16.msra.mxu0 %v12946_v33  ;;  %11424 = vmatpush1.bf16.msra.mxu1 %v12948_v22  ;;  %v13002_v33 = vcombine.low %v1437_v18, %v1441_v58  ;;  %v13004_v22 = vcombine.low %v1438_v20, %v1442_v23  ;;  %v1497_v18 = vld [vmem:[%s14005_s10 + $0x2530] sm:$0xff]  ;;  %v1494_v58 = vld [vmem:[%s14005_s10 + $0x2518] sm:$0xff]  ;;  %v13050_v23 = vcombine.low %v1485_v46, %v1489_v8 }
 0x587   : > { %10933 = vmatprep.subr.bf16.mxu0 %v12955_v45  ;;  %11425 = vmatprep.subr.bf16.mxu1 %v12957_v12  ;;  %v13011_v45 = vcombine.high %v1445_v29, %v1449_v49  ;;  %v13013_v12 = vcombine.high %v1446_v15, %v1450_v32  ;;  %v1498_v20 = vld [vmem:[%s14005_s10 + $0x2538] sm:$0xff] }
 0x58a   : > { %10934 = vmatpush1.bf16.msra.mxu0 %v12954_v38  ;;  %11426 = vmatpush1.bf16.msra.mxu1 %v12956_v40  ;;  %v13010_v38 = vcombine.low %v1445_v29, %v1449_v49  ;;  %v13012_v40 = vcombine.low %v1446_v15, %v1450_v32  ;;  %v1502_v29 = vld [vmem:[%s14005_s10 + $0x2558] sm:$0xff]  ;;  %v13060_v32 = vcombine.low %v1494_v58, %v1498_v20 }
 0x58b   : > { %10935 = vmatprep.subr.bf16.mxu0 %v12963_v57  ;;  %11427 = vmatprep.subr.bf16.mxu1 %v12965_v41  ;;  %v13019_v57 = vcombine.high %v1453_v53, %v1457_v16  ;;  %v13021_v41 = vcombine.high %v1454_v35, %v1458_v37  ;;  %v1506_v49 = vld [vmem:[%s14005_s10 + $0x2578] sm:$0xff] }
 0x58e   : > { %10936 = vmatpush1.bf16.msra.mxu0 %v12962_v43  ;;  %11428 = vmatpush1.bf16.msra.mxu1 %v12964_v21  ;;  %v13018_v43 = vcombine.low %v1453_v53, %v1457_v16  ;;  %v13020_v21 = vcombine.low %v1454_v35, %v1458_v37  ;;  %v1510_v53 = vld [vmem:[%s14005_s10 + $0x2598] sm:$0xff]  ;;  %v13068_v37 = vcombine.low %v1502_v29, %v1506_v49 }
 0x58f   : > { %10937 = vmatprep.subr.bf16.mxu0 %v12971_v44  ;;  %11429 = vmatprep.subr.bf16.mxu1 %v12973_v47  ;;  %v13027_v44 = vcombine.high %v1461_v31, %v1465_v30  ;;  %v13029_v47 = vcombine.high %v1462_v42, %v1466_v27  ;;  %v1514_v16 = vld [vmem:[%s14005_s10 + $0x25b8] sm:$0xff] }
 0x592   : > { %10938 = vmatpush1.bf16.msra.mxu0 %v12970_v39  ;;  %11430 = vmatpush1.bf16.msra.mxu1 %v12972_v55  ;;  %v13026_v39 = vcombine.low %v1461_v31, %v1465_v30  ;;  %v13028_v55 = vcombine.low %v1462_v42, %v1466_v27  ;;  %v1518_v31 = vld [vmem:[%s14005_s10 + $0x25d8] sm:$0xff]  ;;  %v13076_v27 = vcombine.low %v1510_v53, %v1514_v16 }
 0x593   : > { %10939 = vmatprep.subr.bf16.mxu0 %v12979_v3  ;;  %11431 = vmatprep.subr.bf16.mxu1 %v12981_v62  ;;  %v13035_v3 = vcombine.high %v1469_v52, %v1473_v19  ;;  %v13037_v62 = vcombine.high %v1470_v54, %v1474_v60  ;;  %v1522_v30 = vld [vmem:[%s14005_s10 + $0x25f8] sm:$0xff] }
 0x596   : > { %10940 = vmatpush1.bf16.msra.mxu0 %v12978_v7  ;;  %11432 = vmatpush1.bf16.msra.mxu1 %v12980_v9  ;;  %v13034_v7 = vcombine.low %v1469_v52, %v1473_v19  ;;  %v13036_v9 = vcombine.low %v1470_v54, %v1474_v60  ;;  %v1526_v52 = vld [vmem:[%s14005_s10 + $0x2618] sm:$0xff]  ;;  %v13084_v60 = vcombine.low %v1518_v31, %v1522_v30 }
 0x597   : > { %10941 = vmatprep.subr.bf16.mxu0 %v12987_v24  ;;  %11433 = vmatprep.subr.bf16.mxu1 %v12989_v1  ;;  %v13043_v24 = vcombine.high %v1477_v48, %v1481_v0  ;;  %v13045_v1 = vcombine.high %v1478_v5, %v1482_v6  ;;  %v1530_v19 = vld [vmem:[%s14005_s10 + $0x2638] sm:$0xff] }
 0x59a   : > { %10942 = vmatpush1.bf16.msra.mxu0 %v12986_v13  ;;  %11434 = vmatpush1.bf16.msra.mxu1 %v12988_v56  ;;  %v13044_v13 = vcombine.low %v1478_v5, %v1482_v6  ;;  %v13051_v56 = vcombine.high %v1485_v46, %v1489_v8  ;;  %v13092_v6 = vcombine.low %v1526_v52, %v1530_v19  ;;  %v1542_v46 = vld [vmem:[%s14005_s10 + $0x2698] sm:$0xff] }
 0x59b   : > { %10943 = vmatprep.subr.bf16.mxu0 %v12995_v14  ;;  %11435 = vmatprep.subr.bf16.mxu1 %v12997_v17  ;;  %v13053_v14 = vcombine.high %v1486_v10, %v1490_v11  ;;  %v1493_v17 = vld [vmem:[%s14005_s10 + $0x2510] sm:$0xff]  ;;  %v1546_v8 = vld [vmem:[%s14005_s10 + $0x26b8] sm:$0xff] }
 0x59c   : > { %v13058_v15 = vcombine.low %v1493_v17, %v1497_v18 }
 0x59e   : > { %10944 = vmatpush1.bf16.msra.mxu0 %v12994_v59  ;;  %11436 = vmatpush1.bf16.msra.mxu1 %v12996_v26  ;;  %v13059_v59 = vcombine.high %v1493_v17, %v1497_v18  ;;  %v13061_v26 = vcombine.high %v1494_v58, %v1498_v20  ;;  %v1550_v17 = vld [vmem:[%s14005_s10 + $0x26d8] sm:$0xff]  ;;  %v13108_v20 = vcombine.low %v1542_v46, %v1546_v8 }
 0x59f   : > { %10945 = vmatprep.subr.bf16.mxu0 %v13003_v36  ;;  %11437 = vmatprep.subr.bf16.mxu1 %v13005_v28  ;;  %v1501_v36 = vld [vmem:[%s14005_s10 + $0x2550] sm:$0xff]  ;;  %v1554_v18 = vld [vmem:[%s14005_s10 + $0x26f8] sm:$0xff] }
 0x5a0   : > { %v1505_v28 = vld [vmem:[%s14005_s10 + $0x2570] sm:$0xff] }
 0x5a1   : > { %v13066_v35 = vcombine.low %v1501_v36, %v1505_v28 }
 0x5a2   : > { %10946 = vmatpush1.bf16.msra.mxu0 %v13002_v33  ;;  %11438 = vmatpush1.bf16.msra.mxu1 %v13004_v22  ;;  %v13067_v33 = vcombine.high %v1501_v36, %v1505_v28  ;;  %v13069_v22 = vcombine.high %v1502_v29, %v1506_v49  ;;  %v1558_v36 = vld [vmem:[%s14005_s10 + $0x2718] sm:$0xff]  ;;  %v13116_v49 = vcombine.low %v1550_v17, %v1554_v18 }
 0x5a3   : > { %10947 = vmatprep.subr.bf16.mxu0 %v13011_v45  ;;  %11439 = vmatprep.subr.bf16.mxu1 %v13013_v12  ;;  %v1509_v45 = vld [vmem:[%s14005_s10 + $0x2590] sm:$0xff]  ;;  %v1562_v28 = vld [vmem:[%s14005_s10 + $0x2738] sm:$0xff] }
 0x5a4   : > { %v1513_v12 = vld [vmem:[%s14005_s10 + $0x25b0] sm:$0xff] }
 0x5a5   : > { %v13074_v42 = vcombine.low %v1509_v45, %v1513_v12 }
 0x5a6   : > { %10948 = vmatpush1.bf16.msra.mxu0 %v13010_v38  ;;  %11440 = vmatpush1.bf16.msra.mxu1 %v13012_v40  ;;  %v13075_v38 = vcombine.high %v1509_v45, %v1513_v12  ;;  %v13077_v40 = vcombine.high %v1510_v53, %v1514_v16  ;;  %v1566_v45 = vld [vmem:[%s14005_s10 + $0x2758] sm:$0xff]  ;;  %v13124_v16 = vcombine.low %v1558_v36, %v1562_v28 }
 0x5a7   : > { %10949 = vmatprep.subr.bf16.mxu0 %v13019_v57  ;;  %11441 = vmatprep.subr.bf16.mxu1 %v13021_v41  ;;  %v1517_v57 = vld [vmem:[%s14005_s10 + $0x25d0] sm:$0xff]  ;;  %v1570_v12 = vld [vmem:[%s14005_s10 + $0x2778] sm:$0xff] }
 0x5a8   : > { %v1521_v41 = vld [vmem:[%s14005_s10 + $0x25f0] sm:$0xff] }
 0x5a9   : > { %v13082_v54 = vcombine.low %v1517_v57, %v1521_v41 }
 0x5aa   : > { %10950 = vmatpush1.bf16.msra.mxu0 %v13018_v43  ;;  %11442 = vmatpush1.bf16.msra.mxu1 %v13020_v21  ;;  %v13083_v43 = vcombine.high %v1517_v57, %v1521_v41  ;;  %v13085_v21 = vcombine.high %v1518_v31, %v1522_v30  ;;  %v1574_v57 = vld [vmem:[%s14005_s10 + $0x2798] sm:$0xff]  ;;  %v13132_v30 = vcombine.low %v1566_v45, %v1570_v12 }
 0x5ab   : > { %10960 = vmatprep.subr.bf16.mxu0 %v13027_v44  ;;  %11452 = vmatprep.subr.bf16.mxu1 %v13029_v47  ;;  %v1525_v44 = vld [vmem:[%s14005_s10 + $0x2610] sm:$0xff]  ;;  %v1578_v41 = vld [vmem:[%s14005_s10 + $0x27b8] sm:$0xff] }
 0x5ac   : > { %v1529_v47 = vld [vmem:[%s14005_s10 + $0x2630] sm:$0xff] }
 0x5ad   : > { %10952 = vmatmul.mubr.bf16.vlgmr.msra.gmra.mrb[4].mxu0 %v14752_v50  ;;  %11444 = vmatmul.mubr.bf16.vlgmr.msra.gmra.mrb[4].mxu1 %v14752_v50  ;;  %v13042_v50 = vcombine.low %v1477_v48, %v1481_v0  ;;  %v1534_v48 = vld [vmem:[%s14005_s10 + $0x2658] sm:$0xff]  ;;  %v13090_v5 = vcombine.low %v1525_v44, %v1529_v47 }
 0x5ae   : > { %10961 = vmatpush1.bf16.msra.mxu0 %v13026_v39  ;;  %11453 = vmatpush1.bf16.msra.mxu1 %v13028_v55  ;;  %v13091_v39 = vcombine.high %v1525_v44, %v1529_v47  ;;  %v13093_v55 = vcombine.high %v1526_v52, %v1530_v19  ;;  %v1538_v0 = vld [vmem:[%s14005_s10 + $0x2678] sm:$0xff]  ;;  %v13140_v19 = vcombine.low %v1574_v57, %v1578_v41 }
 0x5af   : > { %10962 = vmatprep.subr.bf16.mxu0 %v13035_v3  ;;  %11454 = vmatprep.subr.bf16.mxu1 %v13037_v62  ;;  %v1533_v3 = vld [vmem:[%s14005_s10 + $0x2650] sm:$0xff]  ;;  %v1582_v44 = vld [vmem:[%s14005_s10 + $0x27d8] sm:$0xff] }
 0x5b0   : > { %10992 = vmatprep.mubr.bf16.mxu0 %v14765_v63  ;;  %11484 = vmatprep.mubr.bf16.mxu1 %v14765_v63  ;;  %v13052_v63 = vcombine.low %v1486_v10, %v1490_v11  ;;  %v1537_v62 = vld [vmem:[%s14005_s10 + $0x2670] sm:$0xff]  ;;  %v13100_v11 = vcombine.low %v1534_v48, %v1538_v0  ;;  %v1586_v47 = vld [vmem:[%s14005_s10 + $0x27f8] sm:$0xff] }
 0x5b1   : > { %v13098_v10 = vcombine.low %v1533_v3, %v1537_v62 }
 0x5b2   : > { %10963 = vmatpush1.bf16.msra.mxu0 %v13034_v7  ;;  %11455 = vmatpush1.bf16.msra.mxu1 %v13036_v9  ;;  %v13099_v7 = vcombine.high %v1533_v3, %v1537_v62  ;;  %v13101_v9 = vcombine.high %v1534_v48, %v1538_v0  ;;  %v1590_v3 = vld [vmem:[%s14005_s10 + $0x2818] sm:$0xff]  ;;  %v13148_v0 = vcombine.low %v1582_v44, %v1586_v47 }
 0x5b3   : > { %10964 = vmatprep.subr.bf16.mxu0 %v13043_v24  ;;  %11456 = vmatprep.subr.bf16.mxu1 %v13045_v1  ;;  %v1541_v24 = vld [vmem:[%s14005_s10 + $0x2690] sm:$0xff]  ;;  %v1594_v62 = vld [vmem:[%s14005_s10 + $0x2838] sm:$0xff] }
 0x5b4   : > { %v1545_v1 = vld [vmem:[%s14005_s10 + $0x26b0] sm:$0xff] }
 0x5b5   : > { %v13106_v58 = vcombine.low %v1541_v24, %v1545_v1 }
 0x5b6   : > { %10965 = vmatpush1.bf16.msra.mxu0 %v13042_v50  ;;  %11457 = vmatpush1.bf16.msra.mxu1 %v13044_v13  ;;  %v13107_v50 = vcombine.high %v1541_v24, %v1545_v1  ;;  %v13109_v13 = vcombine.high %v1542_v46, %v1546_v8  ;;  %v1598_v24 = vld [vmem:[%s14005_s10 + $0x2858] sm:$0xff]  ;;  %v13156_v8 = vcombine.low %v1590_v3, %v1594_v62 }
 0x5b7   : > { %10966 = vmatprep.subr.bf16.mxu0 %v13051_v56  ;;  %11458 = vmatprep.subr.bf16.mxu1 %v13053_v14  ;;  %v1549_v56 = vld [vmem:[%s14005_s10 + $0x26d0] sm:$0xff]  ;;  %v1602_v1 = vld [vmem:[%s14005_s10 + $0x2878] sm:$0xff] }
 0x5b8   : > { %v1553_v14 = vld [vmem:[%s14005_s10 + $0x26f0] sm:$0xff] }
 0x5b9   : > { %v13114_v29 = vcombine.low %v1549_v56, %v1553_v14 }
 0x5ba   : > { %10967 = vmatpush1.bf16.msra.mxu0 %v13050_v23  ;;  %11459 = vmatpush1.bf16.msra.mxu1 %v13052_v63  ;;  %v13115_v23 = vcombine.high %v1549_v56, %v1553_v14  ;;  %v13117_v63 = vcombine.high %v1550_v17, %v1554_v18  ;;  %v1606_v56 = vld [vmem:[%s14005_s10 + $0x2898] sm:$0xff]  ;;  %v13164_v18 = vcombine.low %v1598_v24, %v1602_v1 }
 0x5bb   : > { %10968 = vmatprep.subr.bf16.mxu0 %v13059_v59  ;;  %11460 = vmatprep.subr.bf16.mxu1 %v13061_v26  ;;  %v1557_v59 = vld [vmem:[%s14005_s10 + $0x2710] sm:$0xff]  ;;  %v1610_v14 = vld [vmem:[%s14005_s10 + $0x28b8] sm:$0xff] }
 0x5bc   : > { %v1561_v26 = vld [vmem:[%s14005_s10 + $0x2730] sm:$0xff] }
 0x5bd   : > { %v13122_v53 = vcombine.low %v1557_v59, %v1561_v26 }
 0x5be   : > { %10969 = vmatpush1.bf16.msra.mxu0 %v13058_v15  ;;  %11461 = vmatpush1.bf16.msra.mxu1 %v13060_v32  ;;  %v13123_v15 = vcombine.high %v1557_v59, %v1561_v26  ;;  %v13125_v32 = vcombine.high %v1558_v36, %v1562_v28  ;;  %v1614_v59 = vld [vmem:[%s14005_s10 + $0x28d8] sm:$0xff]  ;;  %v13172_v36 = vcombine.low %v1606_v56, %v1610_v14 }
 0x5bf   : > { %10970 = vmatprep.subr.bf16.mxu0 %v13067_v33  ;;  %11462 = vmatprep.subr.bf16.mxu1 %v13069_v22  ;;  %v1565_v33 = vld [vmem:[%s14005_s10 + $0x2750] sm:$0xff]  ;;  %v1618_v26 = vld [vmem:[%s14005_s10 + $0x28f8] sm:$0xff] }
 0x5c0   : > { %v1569_v22 = vld [vmem:[%s14005_s10 + $0x2770] sm:$0xff] }
 0x5c1   : > { %v13130_v31 = vcombine.low %v1565_v33, %v1569_v22 }
 0x5c2   : > { %10971 = vmatpush1.bf16.msra.mxu0 %v13066_v35  ;;  %11463 = vmatpush1.bf16.msra.mxu1 %v13068_v37  ;;  %v13131_v35 = vcombine.high %v1565_v33, %v1569_v22  ;;  %v13133_v37 = vcombine.high %v1566_v45, %v1570_v12  ;;  %v1626_v33 = vld [vmem:[%s14005_s10 + $0x2938] sm:$0xff] }
 0x5c3   : > { %10972 = vmatprep.subr.bf16.mxu0 %v13075_v38  ;;  %11464 = vmatprep.subr.bf16.mxu1 %v13077_v40  ;;  %v1573_v38 = vld [vmem:[%s14005_s10 + $0x2790] sm:$0xff] }
 0x5c4   : > { %v1577_v40 = vld [vmem:[%s14005_s10 + $0x27b0] sm:$0xff] }
 0x5c5   : > { %v13138_v52 = vcombine.low %v1573_v38, %v1577_v40 }
 0x5c6   : > { %10973 = vmatpush1.bf16.msra.mxu0 %v13074_v42  ;;  %11465 = vmatpush1.bf16.msra.mxu1 %v13076_v27  ;;  %v13139_v42 = vcombine.high %v1573_v38, %v1577_v40  ;;  %v13141_v27 = vcombine.high %v1574_v57, %v1578_v41 }
 0x5c7   : > { %10974 = vmatprep.subr.bf16.mxu0 %v13083_v43  ;;  %11466 = vmatprep.subr.bf16.mxu1 %v13085_v21  ;;  %v1581_v43 = vld [vmem:[%s14005_s10 + $0x27d0] sm:$0xff] }
 0x5c8   : > { %v1585_v21 = vld [vmem:[%s14005_s10 + $0x27f0] sm:$0xff] }
 0x5c9   : > { %v13146_v48 = vcombine.low %v1581_v43, %v1585_v21 }
 0x5ca   : > { %10975 = vmatpush1.bf16.msra.mxu0 %v13082_v54  ;;  %11467 = vmatpush1.bf16.msra.mxu1 %v13084_v60  ;;  %v13147_v54 = vcombine.high %v1581_v43, %v1585_v21  ;;  %v13149_v60 = vcombine.high %v1582_v44, %v1586_v47 }
 0x5cb   : > { %10976 = vmatprep.subr.bf16.mxu0 %v13091_v39  ;;  %11468 = vmatprep.subr.bf16.mxu1 %v13093_v55  ;;  %v1589_v39 = vld [vmem:[%s14005_s10 + $0x2810] sm:$0xff] }
 0x5cc   : > { %v1593_v55 = vld [vmem:[%s14005_s10 + $0x2830] sm:$0xff] }
 0x5cd   : > { %v13154_v46 = vcombine.low %v1589_v39, %v1593_v55 }
 0x5ce   : > { %10977 = vmatpush1.bf16.msra.mxu0 %v13090_v5  ;;  %11469 = vmatpush1.bf16.msra.mxu1 %v13092_v6  ;;  %v13155_v5 = vcombine.high %v1589_v39, %v1593_v55  ;;  %v13157_v6 = vcombine.high %v1590_v3, %v1594_v62 }
 0x5cf   : > { %10978 = vmatprep.subr.bf16.mxu0 %v13099_v7  ;;  %11470 = vmatprep.subr.bf16.mxu1 %v13101_v9  ;;  %v1597_v7 = vld [vmem:[%s14005_s10 + $0x2850] sm:$0xff] }
 0x5d0   : > { %v1601_v9 = vld [vmem:[%s14005_s10 + $0x2870] sm:$0xff] }
 0x5d1   : > { %v13162_v17 = vcombine.low %v1597_v7, %v1601_v9 }
 0x5d2   : > { %10979 = vmatpush1.bf16.msra.mxu0 %v13098_v10  ;;  %11471 = vmatpush1.bf16.msra.mxu1 %v13100_v11  ;;  %v13163_v10 = vcombine.high %v1597_v7, %v1601_v9  ;;  %v13165_v11 = vcombine.high %v1598_v24, %v1602_v1 }
 0x5d3   : > { %10980 = vmatprep.subr.bf16.mxu0 %v13107_v50  ;;  %11472 = vmatprep.subr.bf16.mxu1 %v13109_v13  ;;  %v1605_v50 = vld [vmem:[%s14005_s10 + $0x2890] sm:$0xff] }
 0x5d4   : > { %v1609_v13 = vld [vmem:[%s14005_s10 + $0x28b0] sm:$0xff] }
 0x5d6   : > { %10981 = vmatpush1.bf16.msra.mxu0 %v13106_v58  ;;  %11473 = vmatpush1.bf16.msra.mxu1 %v13108_v20  ;;  %v13171_v58 = vcombine.high %v1605_v50, %v1609_v13  ;;  %v13173_v20 = vcombine.high %v1606_v56, %v1610_v14 }
 0x5d7   : > { %10982 = vmatprep.subr.bf16.mxu0 %v13115_v23  ;;  %11474 = vmatprep.subr.bf16.mxu1 %v13117_v63  ;;  %v1613_v23 = vld [vmem:[%s14005_s10 + $0x28d0] sm:$0xff] }
 0x5d8   : > { %v1617_v63 = vld [vmem:[%s14005_s10 + $0x28f0] sm:$0xff] }
 0x5d9   : > { %v13179_v28 = vcombine.high %v1613_v23, %v1617_v63  ;;  %v13178_v22 = vcombine.low %v1613_v23, %v1617_v63 }
 0x5da   : > { %10983 = vmatpush1.bf16.msra.mxu0 %v13114_v29  ;;  %11475 = vmatpush1.bf16.msra.mxu1 %v13116_v49  ;;  %v13181_v29 = vcombine.high %v1614_v59, %v1618_v26  ;;  %v1621_v49 = vld [vmem:[%s14005_s10 + $0x2910] sm:$0xff] }
 0x5db   : > { %10984 = vmatprep.subr.bf16.mxu0 %v13123_v15  ;;  %11476 = vmatprep.subr.bf16.mxu1 %v13125_v32  ;;  %v1625_v15 = vld [vmem:[%s14005_s10 + $0x2930] sm:$0xff]  ;;  %v1622_v32 = vld [vmem:[%s14005_s10 + $0x2918] sm:$0xff] }
 0x5dc   : > { %v13187_v45 = vcombine.high %v1621_v49, %v1625_v15  ;;  %v13189_v12 = vcombine.high %v1622_v32, %v1626_v33  ;;  %v13186_v38 = vcombine.low %v1621_v49, %v1625_v15  ;;  %v13188_v40 = vcombine.low %v1622_v32, %v1626_v33 }
 0x5de   : > { %10985 = vmatpush1.bf16.msra.mxu0 %v13122_v53  ;;  %11477 = vmatpush1.bf16.msra.mxu1 %v13124_v16  ;;  %v1629_v53 = vld [vmem:[%s14005_s10 + $0x2950] sm:$0xff] }
 0x5df   : > { %10986 = vmatprep.subr.bf16.mxu0 %v13131_v35  ;;  %11478 = vmatprep.subr.bf16.mxu1 %v13133_v37  ;;  %v1633_v16 = vld [vmem:[%s14005_s10 + $0x2970] sm:$0xff]  ;;  %v1630_v35 = vld [vmem:[%s14005_s10 + $0x2958] sm:$0xff] }
 0x5e0   : > { %v1634_v37 = vld [vmem:[%s14005_s10 + $0x2978] sm:$0xff]  ;;  %v13195_v57 = vcombine.high %v1629_v53, %v1633_v16  ;;  %v13194_v43 = vcombine.low %v1629_v53, %v1633_v16 }
 0x5e1   : > { %v13197_v41 = vcombine.high %v1630_v35, %v1634_v37  ;;  %v13196_v21 = vcombine.low %v1630_v35, %v1634_v37 }
 0x5e2   : > { %10987 = vmatpush1.bf16.msra.mxu0 %v13130_v31  ;;  %11479 = vmatpush1.bf16.msra.mxu1 %v13132_v30  ;;  %v1637_v31 = vld [vmem:[%s14005_s10 + $0x2990] sm:$0xff] }
 0x5e3   : > { %10988 = vmatprep.subr.bf16.mxu0 %v13139_v42  ;;  %11480 = vmatprep.subr.bf16.mxu1 %v13141_v27  ;;  %v1641_v30 = vld [vmem:[%s14005_s10 + $0x29b0] sm:$0xff]  ;;  %v1638_v42 = vld [vmem:[%s14005_s10 + $0x2998] sm:$0xff] }
 0x5e4   : > { %v1642_v27 = vld [vmem:[%s14005_s10 + $0x29b8] sm:$0xff]  ;;  %v13203_v44 = vcombine.high %v1637_v31, %v1641_v30  ;;  %v13202_v39 = vcombine.low %v1637_v31, %v1641_v30 }
 0x5e5   : > { %v13205_v47 = vcombine.high %v1638_v42, %v1642_v27  ;;  %v13204_v55 = vcombine.low %v1638_v42, %v1642_v27 }
 0x5e6   : > { %10989 = vmatpush1.bf16.msra.mxu0 %v13138_v52  ;;  %11481 = vmatpush1.bf16.msra.mxu1 %v13140_v19  ;;  %v1645_v52 = vld [vmem:[%s14005_s10 + $0x29d0] sm:$0xff] }
 0x5e7   : > { %10990 = vmatprep.subr.bf16.mxu0 %v13147_v54  ;;  %11482 = vmatprep.subr.bf16.mxu1 %v13149_v60  ;;  %v1649_v19 = vld [vmem:[%s14005_s10 + $0x29f0] sm:$0xff]  ;;  %v1646_v54 = vld [vmem:[%s14005_s10 + $0x29d8] sm:$0xff] }
 0x5e8   : > { %v1650_v60 = vld [vmem:[%s14005_s10 + $0x29f8] sm:$0xff]  ;;  %v13211_v3 = vcombine.high %v1645_v52, %v1649_v19  ;;  %v13210_v7 = vcombine.low %v1645_v52, %v1649_v19 }
 0x5e9   : > { %v13213_v62 = vcombine.high %v1646_v54, %v1650_v60  ;;  %v13212_v9 = vcombine.low %v1646_v54, %v1650_v60 }
 0x5ea   : > { %10991 = vmatpush1.bf16.msra.mxu0 %v13146_v48  ;;  %11483 = vmatpush1.bf16.msra.mxu1 %v13148_v0  ;;  %v1653_v48 = vld [vmem:[%s14005_s10 + $0x2a10] sm:$0xff] }
 0x5eb   : > { %11001 = vmatprep.subr.bf16.mxu0 %v13155_v5  ;;  %11493 = vmatprep.subr.bf16.mxu1 %v13157_v6  ;;  %v1657_v0 = vld [vmem:[%s14005_s10 + $0x2a30] sm:$0xff]  ;;  %v1654_v5 = vld [vmem:[%s14005_s10 + $0x2a18] sm:$0xff] }
 0x5ec   : > { %v1658_v6 = vld [vmem:[%s14005_s10 + $0x2a38] sm:$0xff]  ;;  %v13219_v24 = vcombine.high %v1653_v48, %v1657_v0 }
 0x5ed   : > { %10993 = vmatmul.mubr.bf16.vlgmr.msra.gmra.mrb[4].mxu0 %v14833_v25  ;;  %11485 = vmatmul.mubr.bf16.vlgmr.msra.gmra.mrb[4].mxu1 %v14833_v25  ;;  %v13170_v25 = vcombine.low %v1605_v50, %v1609_v13  ;;  %v13221_v1 = vcombine.high %v1654_v5, %v1658_v6  ;;  %v13218_v50 = vcombine.low %v1653_v48, %v1657_v0 }
 0x5ee   : > { %11002 = vmatpush1.bf16.msra.mxu0 %v13154_v46  ;;  %11494 = vmatpush1.bf16.msra.mxu1 %v13156_v8  ;;  %v1661_v46 = vld [vmem:[%s14005_s10 + $0x2a50] sm:$0xff]  ;;  %v13220_v13 = vcombine.low %v1654_v5, %v1658_v6 }
 0x5ef   : > { %11003 = vmatprep.subr.bf16.mxu0 %v13163_v10  ;;  %11495 = vmatprep.subr.bf16.mxu1 %v13165_v11  ;;  %v1665_v8 = vld [vmem:[%s14005_s10 + $0x2a70] sm:$0xff]  ;;  %v1662_v10 = vld [vmem:[%s14005_s10 + $0x2a58] sm:$0xff] }
 0x5f0   : > { %11033 = vmatprep.mubr.bf16.mxu0 %v14846_v61  ;;  %11525 = vmatprep.mubr.bf16.mxu1 %v14846_v61  ;;  %v13180_v61 = vcombine.low %v1614_v59, %v1618_v26  ;;  %v1666_v11 = vld [vmem:[%s14005_s10 + $0x2a78] sm:$0xff]  ;;  %v13227_v56 = vcombine.high %v1661_v46, %v1665_v8  ;;  %v13226_v23 = vcombine.low %v1661_v46, %v1665_v8 }
 0x5f1   : > { %v13229_v14 = vcombine.high %v1662_v10, %v1666_v11  ;;  %v13228_v63 = vcombine.low %v1662_v10, %v1666_v11 }
 0x5f2   : > { %11004 = vmatpush1.bf16.msra.mxu0 %v13162_v17  ;;  %11496 = vmatpush1.bf16.msra.mxu1 %v13164_v18  ;;  %v1669_v17 = vld [vmem:[%s14005_s10 + $0x2a90] sm:$0xff] }
 0x5f3   : > { %11005 = vmatprep.subr.bf16.mxu0 %v13171_v58  ;;  %11497 = vmatprep.subr.bf16.mxu1 %v13173_v20  ;;  %v1673_v18 = vld [vmem:[%s14005_s10 + $0x2ab0] sm:$0xff]  ;;  %v1670_v58 = vld [vmem:[%s14005_s10 + $0x2a98] sm:$0xff] }
 0x5f4   : > { %v1674_v20 = vld [vmem:[%s14005_s10 + $0x2ab8] sm:$0xff]  ;;  %v13235_v59 = vcombine.high %v1669_v17, %v1673_v18  ;;  %v13234_v49 = vcombine.low %v1669_v17, %v1673_v18 }
 0x5f5   : > { %v13237_v26 = vcombine.high %v1670_v58, %v1674_v20  ;;  %v13236_v15 = vcombine.low %v1670_v58, %v1674_v20 }
 0x5f6   : > { %11006 = vmatpush1.bf16.msra.mxu0 %v13170_v25  ;;  %11498 = vmatpush1.bf16.msra.mxu1 %v13172_v36  ;;  %v1677_v25 = vld [vmem:[%s14005_s10 + $0x2ad0] sm:$0xff] }
 0x5f7   : > { %11007 = vmatprep.subr.bf16.mxu0 %v13179_v28  ;;  %11499 = vmatprep.subr.bf16.mxu1 %v13181_v29  ;;  %v1681_v36 = vld [vmem:[%s14005_s10 + $0x2af0] sm:$0xff]  ;;  %v1678_v28 = vld [vmem:[%s14005_s10 + $0x2ad8] sm:$0xff] }
 0x5f8   : > { %v1682_v29 = vld [vmem:[%s14005_s10 + $0x2af8] sm:$0xff]  ;;  %v13243_v32 = vcombine.high %v1677_v25, %v1681_v36  ;;  %v13242_v53 = vcombine.low %v1677_v25, %v1681_v36 }
 0x5f9   : > { %v13245_v33 = vcombine.high %v1678_v28, %v1682_v29  ;;  %v13244_v16 = vcombine.low %v1678_v28, %v1682_v29 }
 0x5fa   : > { %11008 = vmatpush1.bf16.msra.mxu0 %v13178_v22  ;;  %11500 = vmatpush1.bf16.msra.mxu1 %v13180_v61  ;;  %v1685_v22 = vld [vmem:[%s14005_s10 + $0x2b10] sm:$0xff] }
 0x5fb   : > { %11009 = vmatprep.subr.bf16.mxu0 %v13187_v45  ;;  %11501 = vmatprep.subr.bf16.mxu1 %v13189_v12  ;;  %v1689_v61 = vld [vmem:[%s14005_s10 + $0x2b30] sm:$0xff]  ;;  %v1686_v45 = vld [vmem:[%s14005_s10 + $0x2b18] sm:$0xff] }
 0x5fc   : > { %v1690_v12 = vld [vmem:[%s14005_s10 + $0x2b38] sm:$0xff]  ;;  %v13251_v35 = vcombine.high %v1685_v22, %v1689_v61  ;;  %v13250_v31 = vcombine.low %v1685_v22, %v1689_v61 }
 0x5fd   : > { %v13253_v37 = vcombine.high %v1686_v45, %v1690_v12  ;;  %v13252_v30 = vcombine.low %v1686_v45, %v1690_v12  ;;  %v1749_v12 = vld [vmem:[%s14005_s10 + $0x2d10] sm:$0xff] }
 0x5fe   : > { %11010 = vmatpush1.bf16.msra.mxu0 %v13186_v38  ;;  %11502 = vmatpush1.bf16.msra.mxu1 %v13188_v40  ;;  %v1693_v38 = vld [vmem:[%s14005_s10 + $0x2b50] sm:$0xff] }
 0x5ff   : > { %11011 = vmatprep.subr.bf16.mxu0 %v13195_v57  ;;  %11503 = vmatprep.subr.bf16.mxu1 %v13197_v41  ;;  %v1697_v40 = vld [vmem:[%s14005_s10 + $0x2b70] sm:$0xff]  ;;  %v1694_v57 = vld [vmem:[%s14005_s10 + $0x2b58] sm:$0xff] }
 0x600   : > { %v1698_v41 = vld [vmem:[%s14005_s10 + $0x2b78] sm:$0xff]  ;;  %v13259_v42 = vcombine.high %v1693_v38, %v1697_v40  ;;  %v13258_v52 = vcombine.low %v1693_v38, %v1697_v40 }
 0x601   : > { %v13261_v27 = vcombine.high %v1694_v57, %v1698_v41  ;;  %v13260_v19 = vcombine.low %v1694_v57, %v1698_v41  ;;  %v1757_v57 = vld [vmem:[%s14005_s10 + $0x2d50] sm:$0xff] }
 0x602   : > { %11012 = vmatpush1.bf16.msra.mxu0 %v13194_v43  ;;  %11504 = vmatpush1.bf16.msra.mxu1 %v13196_v21  ;;  %v1701_v43 = vld [vmem:[%s14005_s10 + $0x2b90] sm:$0xff] }
 0x603   : > { %11013 = vmatprep.subr.bf16.mxu0 %v13203_v44  ;;  %11505 = vmatprep.subr.bf16.mxu1 %v13205_v47  ;;  %v1705_v21 = vld [vmem:[%s14005_s10 + $0x2bb0] sm:$0xff]  ;;  %v1702_v44 = vld [vmem:[%s14005_s10 + $0x2b98] sm:$0xff] }
 0x604   : > { %v1706_v47 = vld [vmem:[%s14005_s10 + $0x2bb8] sm:$0xff]  ;;  %v13267_v54 = vcombine.high %v1701_v43, %v1705_v21  ;;  %v13266_v48 = vcombine.low %v1701_v43, %v1705_v21  ;;  %v1761_v41 = vld [vmem:[%s14005_s10 + $0x2d70] sm:$0xff] }
 0x605   : > { %v13269_v60 = vcombine.high %v1702_v44, %v1706_v47  ;;  %v13268_v0 = vcombine.low %v1702_v44, %v1706_v47  ;;  %v13323_v43 = vcombine.high %v1757_v57, %v1761_v41  ;;  %v1765_v44 = vld [vmem:[%s14005_s10 + $0x2d90] sm:$0xff] }
 0x606   : > { %11014 = vmatpush1.bf16.msra.mxu0 %v13202_v39  ;;  %11506 = vmatpush1.bf16.msra.mxu1 %v13204_v55  ;;  %v1709_v39 = vld [vmem:[%s14005_s10 + $0x2bd0] sm:$0xff] }
 0x607   : > { %11015 = vmatprep.subr.bf16.mxu0 %v13211_v3  ;;  %11507 = vmatprep.subr.bf16.mxu1 %v13213_v62  ;;  %v1713_v55 = vld [vmem:[%s14005_s10 + $0x2bf0] sm:$0xff]  ;;  %v1710_v3 = vld [vmem:[%s14005_s10 + $0x2bd8] sm:$0xff] }
 0x608   : > { %v1714_v62 = vld [vmem:[%s14005_s10 + $0x2bf8] sm:$0xff]  ;;  %v13275_v5 = vcombine.high %v1709_v39, %v1713_v55  ;;  %v13274_v46 = vcombine.low %v1709_v39, %v1713_v55  ;;  %v1769_v47 = vld [vmem:[%s14005_s10 + $0x2db0] sm:$0xff] }
 0x609   : > { %v13277_v6 = vcombine.high %v1710_v3, %v1714_v62  ;;  %v13276_v8 = vcombine.low %v1710_v3, %v1714_v62  ;;  %v13331_v39 = vcombine.high %v1765_v44, %v1769_v47  ;;  %v1773_v3 = vld [vmem:[%s14005_s10 + $0x2dd0] sm:$0xff] }
 0x60a   : > { %11016 = vmatpush1.bf16.msra.mxu0 %v13210_v7  ;;  %11508 = vmatpush1.bf16.msra.mxu1 %v13212_v9  ;;  %v1717_v7 = vld [vmem:[%s14005_s10 + $0x2c10] sm:$0xff] }
 0x60b   : > { %11017 = vmatprep.subr.bf16.mxu0 %v13219_v24  ;;  %11509 = vmatprep.subr.bf16.mxu1 %v13221_v1  ;;  %v1721_v9 = vld [vmem:[%s14005_s10 + $0x2c30] sm:$0xff]  ;;  %v1718_v24 = vld [vmem:[%s14005_s10 + $0x2c18] sm:$0xff] }
 0x60c   : > { %v1722_v1 = vld [vmem:[%s14005_s10 + $0x2c38] sm:$0xff]  ;;  %v13283_v10 = vcombine.high %v1717_v7, %v1721_v9  ;;  %v13282_v17 = vcombine.low %v1717_v7, %v1721_v9  ;;  %v1777_v62 = vld [vmem:[%s14005_s10 + $0x2df0] sm:$0xff] }
 0x60d   : > { %v13285_v11 = vcombine.high %v1718_v24, %v1722_v1  ;;  %v13284_v18 = vcombine.low %v1718_v24, %v1722_v1  ;;  %v13339_v7 = vcombine.high %v1773_v3, %v1777_v62  ;;  %v1781_v24 = vld [vmem:[%s14005_s10 + $0x2e10] sm:$0xff] }
 0x60e   : > { %11018 = vmatpush1.bf16.msra.mxu0 %v13218_v50  ;;  %11510 = vmatpush1.bf16.msra.mxu1 %v13220_v13  ;;  %v1725_v50 = vld [vmem:[%s14005_s10 + $0x2c50] sm:$0xff] }
 0x60f   : > { %11019 = vmatprep.subr.bf16.mxu0 %v13227_v56  ;;  %11511 = vmatprep.subr.bf16.mxu1 %v13229_v14  ;;  %v1729_v13 = vld [vmem:[%s14005_s10 + $0x2c70] sm:$0xff]  ;;  %v1726_v56 = vld [vmem:[%s14005_s10 + $0x2c58] sm:$0xff] }
 0x610   : > { %v1730_v14 = vld [vmem:[%s14005_s10 + $0x2c78] sm:$0xff]  ;;  %v13291_v58 = vcombine.high %v1725_v50, %v1729_v13  ;;  %v13290_v25 = vcombine.low %v1725_v50, %v1729_v13  ;;  %v1785_v1 = vld [vmem:[%s14005_s10 + $0x2e30] sm:$0xff] }
 0x611   : > { %v13293_v20 = vcombine.high %v1726_v56, %v1730_v14  ;;  %v13292_v36 = vcombine.low %v1726_v56, %v1730_v14  ;;  %v13347_v50 = vcombine.high %v1781_v24, %v1785_v1  ;;  %v1789_v56 = vld [vmem:[%s14005_s10 + $0x2e50] sm:$0xff] }
 0x612   : > { %11020 = vmatpush1.bf16.msra.mxu0 %v13226_v23  ;;  %11512 = vmatpush1.bf16.msra.mxu1 %v13228_v63  ;;  %v1733_v23 = vld [vmem:[%s14005_s10 + $0x2c90] sm:$0xff] }
 0x613   : > { %11021 = vmatprep.subr.bf16.mxu0 %v13235_v59  ;;  %11513 = vmatprep.subr.bf16.mxu1 %v13237_v26  ;;  %v1737_v63 = vld [vmem:[%s14005_s10 + $0x2cb0] sm:$0xff]  ;;  %v1734_v59 = vld [vmem:[%s14005_s10 + $0x2c98] sm:$0xff] }
 0x614   : > { %v1738_v26 = vld [vmem:[%s14005_s10 + $0x2cb8] sm:$0xff]  ;;  %v13299_v28 = vcombine.high %v1733_v23, %v1737_v63  ;;  %v1793_v14 = vld [vmem:[%s14005_s10 + $0x2e70] sm:$0xff] }
 0x615   : > { %v13301_v29 = vcombine.high %v1734_v59, %v1738_v26  ;;  %v13300_v22 = vcombine.low %v1734_v59, %v1738_v26  ;;  %v1797_v59 = vld [vmem:[%s14005_s10 + $0x2e90] sm:$0xff] }
 0x616   : > { %11022 = vmatpush1.bf16.msra.mxu0 %v13234_v49  ;;  %11514 = vmatpush1.bf16.msra.mxu1 %v13236_v15  ;;  %v1741_v49 = vld [vmem:[%s14005_s10 + $0x2cd0] sm:$0xff] }
 0x617   : > { %11023 = vmatprep.subr.bf16.mxu0 %v13243_v32  ;;  %11515 = vmatprep.subr.bf16.mxu1 %v13245_v33  ;;  %v1745_v15 = vld [vmem:[%s14005_s10 + $0x2cf0] sm:$0xff]  ;;  %v1742_v32 = vld [vmem:[%s14005_s10 + $0x2cd8] sm:$0xff] }
 0x618   : > { %v1746_v33 = vld [vmem:[%s14005_s10 + $0x2cf8] sm:$0xff]  ;;  %v13307_v61 = vcombine.high %v1741_v49, %v1745_v15  ;;  %v1801_v26 = vld [vmem:[%s14005_s10 + $0x2eb0] sm:$0xff] }
 0x619   : > { %v13309_v45 = vcombine.high %v1742_v32, %v1746_v33 }
 0x61a   : > { %11024 = vmatpush1.bf16.msra.mxu0 %v13242_v53  ;;  %11516 = vmatpush1.bf16.msra.mxu1 %v13244_v16  ;;  %v1753_v53 = vld [vmem:[%s14005_s10 + $0x2d30] sm:$0xff]  ;;  %v1750_v16 = vld [vmem:[%s14005_s10 + $0x2d18] sm:$0xff] }
 0x61b   : > { %11025 = vmatprep.subr.bf16.mxu0 %v13251_v35  ;;  %11517 = vmatprep.subr.bf16.mxu1 %v13253_v37  ;;  %v1754_v35 = vld [vmem:[%s14005_s10 + $0x2d38] sm:$0xff]  ;;  %v13306_v37 = vcombine.low %v1741_v49, %v1745_v15  ;;  %v13315_v38 = vcombine.high %v1749_v12, %v1753_v53  ;;  %v13363_v49 = vcombine.high %v1797_v59, %v1801_v26 }
 0x61c   : > { %v13317_v40 = vcombine.high %v1750_v16, %v1754_v35 }
 0x61e   : > { %11026 = vmatpush1.bf16.msra.mxu0 %v13250_v31  ;;  %11518 = vmatpush1.bf16.msra.mxu1 %v13252_v30  ;;  %v1758_v31 = vld [vmem:[%s14005_s10 + $0x2d58] sm:$0xff] }
 0x61f   : > { %11027 = vmatprep.subr.bf16.mxu0 %v13259_v42  ;;  %11519 = vmatprep.subr.bf16.mxu1 %v13261_v27  ;;  %v1762_v30 = vld [vmem:[%s14005_s10 + $0x2d78] sm:$0xff]  ;;  %v13314_v42 = vcombine.low %v1749_v12, %v1753_v53  ;;  %v13316_v27 = vcombine.low %v1750_v16, %v1754_v35  ;;  %v1813_v16 = vld [vmem:[%s14005_s10 + $0x2f10] sm:$0xff] }
 0x620   : > { %v13325_v21 = vcombine.high %v1758_v31, %v1762_v30  ;;  %v1817_v35 = vld [vmem:[%s14005_s10 + $0x2f30] sm:$0xff] }
 0x622   : > { %11028 = vmatpush1.bf16.msra.mxu0 %v13258_v52  ;;  %11520 = vmatpush1.bf16.msra.mxu1 %v13260_v19  ;;  %v1766_v52 = vld [vmem:[%s14005_s10 + $0x2d98] sm:$0xff] }
 0x623   : > { %11029 = vmatprep.subr.bf16.mxu0 %v13267_v54  ;;  %11521 = vmatprep.subr.bf16.mxu1 %v13269_v60  ;;  %v1770_v19 = vld [vmem:[%s14005_s10 + $0x2db8] sm:$0xff]  ;;  %v13322_v54 = vcombine.low %v1757_v57, %v1761_v41  ;;  %v13324_v60 = vcombine.low %v1758_v31, %v1762_v30  ;;  %v13379_v57 = vcombine.high %v1813_v16, %v1817_v35  ;;  %v1821_v31 = vld [vmem:[%s14005_s10 + $0x2f50] sm:$0xff] }
 0x624   : > { %v13333_v55 = vcombine.high %v1766_v52, %v1770_v19  ;;  %v1825_v30 = vld [vmem:[%s14005_s10 + $0x2f70] sm:$0xff] }
 0x626   : > { %11030 = vmatpush1.bf16.msra.mxu0 %v13266_v48  ;;  %11522 = vmatpush1.bf16.msra.mxu1 %v13268_v0  ;;  %v1774_v48 = vld [vmem:[%s14005_s10 + $0x2dd8] sm:$0xff] }
 0x627   : > { %11031 = vmatprep.subr.bf16.mxu0 %v13275_v5  ;;  %11523 = vmatprep.subr.bf16.mxu1 %v13277_v6  ;;  %v1778_v0 = vld [vmem:[%s14005_s10 + $0x2df8] sm:$0xff]  ;;  %v13330_v5 = vcombine.low %v1765_v44, %v1769_v47  ;;  %v13332_v6 = vcombine.low %v1766_v52, %v1770_v19  ;;  %v13387_v44 = vcombine.high %v1821_v31, %v1825_v30  ;;  %v1829_v52 = vld [vmem:[%s14005_s10 + $0x2f90] sm:$0xff] }
 0x628   : > { %v13341_v9 = vcombine.high %v1774_v48, %v1778_v0  ;;  %v1833_v19 = vld [vmem:[%s14005_s10 + $0x2fb0] sm:$0xff] }
 0x62a   : > { %11032 = vmatpush1.bf16.msra.mxu0 %v13274_v46  ;;  %11524 = vmatpush1.bf16.msra.mxu1 %v13276_v8  ;;  %v1782_v46 = vld [vmem:[%s14005_s10 + $0x2e18] sm:$0xff] }
 0x62b   : > { %11042 = vmatprep.subr.bf16.mxu0 %v13283_v10  ;;  %11534 = vmatprep.subr.bf16.mxu1 %v13285_v11  ;;  %v1786_v8 = vld [vmem:[%s14005_s10 + $0x2e38] sm:$0xff]  ;;  %v13338_v10 = vcombine.low %v1773_v3, %v1777_v62  ;;  %v13340_v11 = vcombine.low %v1774_v48, %v1778_v0  ;;  %v13395_v3 = vcombine.high %v1829_v52, %v1833_v19  ;;  %v1837_v48 = vld [vmem:[%s14005_s10 + $0x2fd0] sm:$0xff] }
 0x62c   : > { %v13349_v13 = vcombine.high %v1782_v46, %v1786_v8  ;;  %v1841_v0 = vld [vmem:[%s14005_s10 + $0x2ff0] sm:$0xff] }
 0x62d   : > { %11034 = vmatmul.mubr.bf16.vlgmr.msra.gmra.mrb[4].mxu0 %v14914_v51  ;;  %11526 = vmatmul.mubr.bf16.vlgmr.msra.gmra.mrb[4].mxu1 %v14914_v51  ;;  %v13298_v51 = vcombine.low %v1733_v23, %v1737_v63  ;;  %v13355_v23 = vcombine.high %v1789_v56, %v1793_v14 }
 0x62e   : > { %11043 = vmatpush1.bf16.msra.mxu0 %v13282_v17  ;;  %11535 = vmatpush1.bf16.msra.mxu1 %v13284_v18  ;;  %v1790_v17 = vld [vmem:[%s14005_s10 + $0x2e58] sm:$0xff] }
 0x62f   : > { %11044 = vmatprep.subr.bf16.mxu0 %v13291_v58  ;;  %11536 = vmatprep.subr.bf16.mxu1 %v13293_v20  ;;  %v1794_v18 = vld [vmem:[%s14005_s10 + $0x2e78] sm:$0xff]  ;;  %v13346_v58 = vcombine.low %v1781_v24, %v1785_v1  ;;  %v13348_v20 = vcombine.low %v1782_v46, %v1786_v8  ;;  %v13403_v24 = vcombine.high %v1837_v48, %v1841_v0 }
 0x630   : > { %11074 = vmatprep.mubr.bf16.mxu0 %v14927_v2  ;;  %11566 = vmatprep.mubr.bf16.mxu1 %v14927_v2  ;;  %v13308_v2 = vcombine.low %v1742_v32, %v1746_v33  ;;  %v13357_v63 = vcombine.high %v1790_v17, %v1794_v18  ;;  %v1805_v32 = vld [vmem:[%s14005_s10 + $0x2ed0] sm:$0xff]  ;;  %v13402_v46 = vcombine.low %v1837_v48, %v1841_v0 }
 0x631   : > { %v1809_v33 = vld [vmem:[%s14005_s10 + $0x2ef0] sm:$0xff] }
 0x632   : > { %11045 = vmatpush1.bf16.msra.mxu0 %v13290_v25  ;;  %11537 = vmatpush1.bf16.msra.mxu1 %v13292_v36  ;;  %v1798_v25 = vld [vmem:[%s14005_s10 + $0x2e98] sm:$0xff]  ;;  %v13371_v12 = vcombine.high %v1805_v32, %v1809_v33 }
 0x633   : > { %11046 = vmatprep.subr.bf16.mxu0 %v13299_v28  ;;  %11538 = vmatprep.subr.bf16.mxu1 %v13301_v29  ;;  %v1802_v36 = vld [vmem:[%s14005_s10 + $0x2eb8] sm:$0xff]  ;;  %v13354_v28 = vcombine.low %v1789_v56, %v1793_v14  ;;  %v13356_v29 = vcombine.low %v1790_v17, %v1794_v18  ;;  %v13673_v56 = vld [vmem:[%s14015_s9] sm:$0xff] }
 0x634   : > { %v13365_v15 = vcombine.high %v1798_v25, %v1802_v36 }
 0x636   : > { %11047 = vmatpush1.bf16.msra.mxu0 %v13298_v51  ;;  %11539 = vmatpush1.bf16.msra.mxu1 %v13300_v22  ;;  %v1806_v51 = vld [vmem:[%s14005_s10 + $0x2ed8] sm:$0xff] }
 0x637   : > { %11048 = vmatprep.subr.bf16.mxu0 %v13307_v61  ;;  %11540 = vmatprep.subr.bf16.mxu1 %v13309_v45  ;;  %v1810_v22 = vld [vmem:[%s14005_s10 + $0x2ef8] sm:$0xff]  ;;  %v13362_v61 = vcombine.low %v1797_v59, %v1801_v26  ;;  %v13364_v45 = vcombine.low %v1798_v25, %v1802_v36 }
 0x638   : > { %v13373_v53 = vcombine.high %v1806_v51, %v1810_v22 }
 0x63a   : > { %11049 = vmatpush1.bf16.msra.mxu0 %v13306_v37  ;;  %11541 = vmatpush1.bf16.msra.mxu1 %v13308_v2  ;;  %v1814_v37 = vld [vmem:[%s14005_s10 + $0x2f18] sm:$0xff] }
 0x63b   : > { %11050 = vmatprep.subr.bf16.mxu0 %v13315_v38  ;;  %11542 = vmatprep.subr.bf16.mxu1 %v13317_v40  ;;  %v1818_v2 = vld [vmem:[%s14005_s10 + $0x2f38] sm:$0xff]  ;;  %v13370_v38 = vcombine.low %v1805_v32, %v1809_v33  ;;  %v13372_v40 = vcombine.low %v1806_v51, %v1810_v22 }
 0x63c   : > { %v13381_v41 = vcombine.high %v1814_v37, %v1818_v2 }
 0x63e   : > { %11051 = vmatpush1.bf16.msra.mxu0 %v13314_v42  ;;  %11543 = vmatpush1.bf16.msra.mxu1 %v13316_v27  ;;  %v1822_v42 = vld [vmem:[%s14005_s10 + $0x2f58] sm:$0xff] }
 0x63f   : > { %11052 = vmatprep.subr.bf16.mxu0 %v13323_v43  ;;  %11544 = vmatprep.subr.bf16.mxu1 %v13325_v21  ;;  %v1826_v27 = vld [vmem:[%s14005_s10 + $0x2f78] sm:$0xff]  ;;  %v13378_v43 = vcombine.low %v1813_v16, %v1817_v35  ;;  %v13380_v21 = vcombine.low %v1814_v37, %v1818_v2 }
 0x640   : > { %v13389_v47 = vcombine.high %v1822_v42, %v1826_v27 }
 0x642   : > { %11053 = vmatpush1.bf16.msra.mxu0 %v13322_v54  ;;  %11545 = vmatpush1.bf16.msra.mxu1 %v13324_v60  ;;  %v1830_v54 = vld [vmem:[%s14005_s10 + $0x2f98] sm:$0xff] }
 0x643   : > { %11054 = vmatprep.subr.bf16.mxu0 %v13331_v39  ;;  %11546 = vmatprep.subr.bf16.mxu1 %v13333_v55  ;;  %v1834_v60 = vld [vmem:[%s14005_s10 + $0x2fb8] sm:$0xff]  ;;  %v13386_v39 = vcombine.low %v1821_v31, %v1825_v30  ;;  %v13388_v55 = vcombine.low %v1822_v42, %v1826_v27 }
 0x644   : > { %v13397_v62 = vcombine.high %v1830_v54, %v1834_v60 }
 0x646   : > { %11055 = vmatpush1.bf16.msra.mxu0 %v13330_v5  ;;  %11547 = vmatpush1.bf16.msra.mxu1 %v13332_v6  ;;  %v1838_v5 = vld [vmem:[%s14005_s10 + $0x2fd8] sm:$0xff] }
 0x647   : > { %11056 = vmatprep.subr.bf16.mxu0 %v13339_v7  ;;  %11548 = vmatprep.subr.bf16.mxu1 %v13341_v9  ;;  %v1842_v6 = vld [vmem:[%s14005_s10 + $0x2ff8] sm:$0xff]  ;;  %v13394_v7 = vcombine.low %v1829_v52, %v1833_v19  ;;  %v13396_v9 = vcombine.low %v1830_v54, %v1834_v60 }
 0x648   : > { %v13405_v1 = vcombine.high %v1838_v5, %v1842_v6  ;;  %v13404_v8 = vcombine.low %v1838_v5, %v1842_v6 }
 0x64a   : > { %11057 = vmatpush1.bf16.msra.mxu0 %v13338_v10  ;;  %11549 = vmatpush1.bf16.msra.mxu1 %v13340_v11  ;;  %v11595_v10 = vsub.s32 4, %v15219_v34  ;;  %v11603_v11 = vsub.s32 6, %v15219_v34 }
 0x64b   : > { %11058 = vmatprep.subr.bf16.mxu0 %v13347_v50  ;;  %11550 = vmatprep.subr.bf16.mxu1 %v13349_v13  ;;  %v11599_v50 = vsub.s32 5, %v15219_v34  ;;  %v11607_v13 = vsub.s32 7, %v15219_v34 }
 0x64c   : > { %v11596_v14 = vrot.slane %v13673_v56, %v11595_v10  ;;  %v11604_v17 = vrot.slane %v13673_v56, %v11603_v11 }
 0x64d   : > { %v11600_v18 = vrot.slane %v13673_v56, %v11599_v50 }
 0x64e   : > { %11059 = vmatpush1.bf16.msra.mxu0 %v13346_v58  ;;  %11551 = vmatpush1.bf16.msra.mxu1 %v13348_v20  ;;  %v13674_v58 = vld [vmem:[%s15233_s8] sm:$0xff] }
 0x64f   : > { %11060 = vmatprep.subr.bf16.mxu0 %v13355_v23  ;;  %11552 = vmatprep.subr.bf16.mxu1 %v13357_v63  ;;  %v11646_v20 = vrot.slane %v13674_v58, %v11595_v10  ;;  %v11608_v23 = vrot.slane %v13673_v56, %v11607_v13  ;;  %v11654_v59 = vrot.slane %v13674_v58, %v11603_v11 }
 0x650   : > { %v11650_v26 = vrot.slane %v13674_v58, %v11599_v50 }
 0x652   : > { %11061 = vmatpush1.bf16.msra.mxu0 %v13354_v28  ;;  %11553 = vmatpush1.bf16.msra.mxu1 %v13356_v29  ;;  %v11658_v28 = vrot.slane %v13674_v58, %v11607_v13 }
 0x653   : > { %11062 = vmatprep.subr.bf16.mxu0 %v13363_v49  ;;  %11554 = vmatprep.subr.bf16.mxu1 %v13365_v15 }
 0x656   : > { %11063 = vmatpush1.bf16.msra.mxu0 %v13362_v61  ;;  %11555 = vmatpush1.bf16.msra.mxu1 %v13364_v45 }
 0x657   : > { %11064 = vmatprep.subr.bf16.mxu0 %v13371_v12  ;;  %11556 = vmatprep.subr.bf16.mxu1 %v13373_v53 }
 0x65a   : > { %11065 = vmatpush1.bf16.msra.mxu0 %v13370_v38  ;;  %11557 = vmatpush1.bf16.msra.mxu1 %v13372_v40 }
 0x65b   : > { %11066 = vmatprep.subr.bf16.mxu0 %v13379_v57  ;;  %11558 = vmatprep.subr.bf16.mxu1 %v13381_v41 }
 0x65e   : > { %11067 = vmatpush1.bf16.msra.mxu0 %v13378_v43  ;;  %11559 = vmatpush1.bf16.msra.mxu1 %v13380_v21 }
 0x65f   : > { %11068 = vmatprep.subr.bf16.mxu0 %v13387_v44  ;;  %11560 = vmatprep.subr.bf16.mxu1 %v13389_v47 }
 0x662   : > { %11069 = vmatpush1.bf16.msra.mxu0 %v13386_v39  ;;  %11561 = vmatpush1.bf16.msra.mxu1 %v13388_v55 }
 0x663   : > { %11070 = vmatprep.subr.bf16.mxu0 %v13395_v3  ;;  %11562 = vmatprep.subr.bf16.mxu1 %v13397_v62 }
 0x666   : > { %11071 = vmatpush1.bf16.msra.mxu0 %v13394_v7  ;;  %11563 = vmatpush1.bf16.msra.mxu1 %v13396_v9 }
 0x667   : > { %11072 = vmatprep.subr.bf16.mxu0 %v13403_v24  ;;  %11564 = vmatprep.subr.bf16.mxu1 %v13405_v1 }
 0x66a   : > { %11073 = vmatpush1.bf16.msra.mxu0 %v13402_v46  ;;  %11565 = vmatpush1.bf16.msra.mxu1 %v13404_v8 }
 0x66d   : > { %11075 = vmatmul.mubr.bf16.vlgmr.msra.gmra.mrb[4].mxu0 %v14995_v4  ;;  %11567 = vmatmul.mubr.bf16.vlgmr.msra.gmra.mrb[4].mxu1 %v14995_v4 }
 0x740   : > { %v11076_v63 = vpop.f32.mrb[4].mxu0  ;;  %v11568_v4 = vpop.f32.mrb[4].mxu1 }
 0x741   : > { %v11621_v25 = vmul.f32 %v11596_v14, %v11076_v63  ;;  %v11078_v36 = vpop.f32.mrb[5].mxu0  ;;  %v11623_v29 = vmul.f32 %v11604_v17, %v11568_v4  ;;  %v11570_v15 = vpop.f32.mrb[5].mxu1 }
 0x742   : > { %v11622_v49 = vmul.f32 %v11600_v18, %v11078_v36  ;;  %v11080_v32 = vpop.f32.mrb[6].mxu0  ;;  %v11624_v33 = vmul.f32 %v11608_v23, %v11570_v15  ;;  %v11572_v51 = vpop.f32.mrb[6].mxu1 }
 0x743   : > { %v11671_v34 = vadd.f32 %v11646_v20, %v11621_v25  ;;  %v11081_v22 = vpop.f32.mrb[7].mxu0  ;;  %v11673_v61 = vadd.f32 %v11654_v59, %v11623_v29  ;;  %v11573_v12 = vpop.f32.mrb[7].mxu1 }
 0x744   : > { %v11672_v45 = vadd.f32 %v11650_v26, %v11622_v49  ;;  %v11674_v16 = vadd.f32 %v11658_v28, %v11624_v33 }
 0x745   : > { %v11679_v53 = vmax.f32 %v11671_v34, 0.0  ;;  %v11681_v35 = vmax.f32 %v11673_v61, 0.0 }
 0x746   : > { %v11680_v37 = vmax.f32 %v11672_v45, 0.0  ;;  %v11682_v2 = vmax.f32 %v11674_v16, 0.0 }
 0x748   : > { %v13417_v38 = vpack.c.bf16 %v11680_v37, %v11679_v53  ;;  %v13418_v40 = vpack.c.bf16 %v11682_v2, %v11681_v35 }
 0x74a   : > { %11717 = vst [vmem:[%s15264_s30 + $0x10] sm:$0xff] %v13417_v38  ;;  %11718 = vst [vmem:[%s15264_s30 + $0x18] sm:$0xff] %v13418_v40 }
 0x74b PF: > { %p17_p0 = scmp.ge.s32.totalorder %s13858_s20, 4   ;;  %s15878_s15 = smov %s13795_s16 }
 0x74c   : > { %s15879_s16 = smov %s13799_s17  ;;  %s15880_s17 = smov %s13868_s23 }
 0x74d   : > { %s15881_s18 = smov %s13858_s20  ;;  %19 = sbr.rel (!%p17_p0) target bundleno = 5 (0x5), region = 100 }
 0x754   :  { %11741 = vsyncpa [#allocation3], 1 }
 0x755   :  { %11743 = vsyncpa [#allocation3 + $0x1], 1 }
 0x756   :  { %11744 = vsyncpa [#allocation5], 1 }
 0x757   :  { %11746 = vsyncpa [#allocation5 + $0x1], 1 }

</bundles_post_ra>
